<compile_context>
chip_gen: v6e
topology: v6e:2x2x1
jax: 0.10.0
libtpu: 0.0.40
codegen_flags: <defaults>
</compile_context>

<pallas_src>
import functools
import numpy as np

import jax
import jax.numpy as jnp
from jax import lax
from jax.experimental import pallas as pl
from jax.experimental.pallas import tpu as pltpu


# ----------------------------------------------------------------------------
# Pallas kernel: all windows of one batch element per grid step.
# ----------------------------------------------------------------------------
def _swattn_kernel(x_ref, wqkv_ref, bqkv_ref, wout_ref, bout_ref, bm_ref,
                   o_ref, qkv_ref, oh_ref, *, heads, head_dim):
    C = heads * head_dim

    x = x_ref[0]                                                   # (M, C) bf16

    # Fused QKV projection across all windows (softmax scale pre-folded into
    # the Q columns of W_qkv / b_qkv).  Materialize into a bf16 VMEM scratch
    # so per-head q/k/v below are cheap ref slices.
    qkv = jnp.dot(x, wqkv_ref[...], preferred_element_type=jnp.float32)
    qkv_ref[...] = (qkv + bqkv_ref[...]).astype(jnp.bfloat16)      # (M, 3C)

    for h in range(heads):                                         # static unroll
        lo = h * head_dim
        q_h = qkv_ref[:, lo:lo + head_dim]                         # (M, hd) bf16
        k_h = qkv_ref[:, C + lo:C + lo + head_dim]                 # (M, hd) bf16
        v_h = qkv_ref[:, 2 * C + lo:2 * C + lo + head_dim]         # (M, hd) bf16

        # Block-diagonal full-sequence scores: one lane-dense (M, M) matmul.
        s = lax.dot_general(q_h, k_h, (((1,), (1,)), ((), ())),
                            preferred_element_type=jnp.float32)    # (M, M) f32
        # rel-pos bias + shift mask inside each window block, -1e9 off-block.
        s = s + bm_ref[h].astype(jnp.float32)

        # Hand-rolled softmax over the lane-dense axis; divide on the EUP.
        m = jnp.max(s, axis=-1, keepdims=True)
        e = jnp.exp(s - m)
        denom = jnp.sum(e, axis=-1, keepdims=True)
        p = e * pl.reciprocal(denom, approx=True)
        # TODO(synk): attn_drop / proj_drop are identity here (eval mode).

        o_h = jnp.dot(p.astype(jnp.bfloat16), v_h,
                      preferred_element_type=jnp.float32)          # (M, hd)
        oh_ref[:, lo:lo + head_dim] = o_h.astype(jnp.bfloat16)

    # Single fused output projection (K = C) + bias, bf16 store.
    out = jnp.dot(oh_ref[...], wout_ref[...],
                  preferred_element_type=jnp.float32)
    o_ref[0] = (out + bout_ref[...]).astype(o_ref.dtype)


# ----------------------------------------------------------------------------
# Wrapper: roll + window partition (glue), pallas_call, un-partition + roll.
# ----------------------------------------------------------------------------
def shift_window_attention(x, params, *, heads, window_size, shift_size):
    B, C, H, W = x.shape
    Wh, Ww = window_size
    r1, r2 = H // Wh, W // Ww
    nW = r1 * r2
    N = Wh * Ww
    M = nW * N
    head_dim = C // heads
    scale = head_dim ** (-0.5)

    wqkv, bqkv, wout, bout, bias, attn_mask = (
        params["wqkv"], params["bqkv"], params["wout"], params["bout"],
        params["bias"], params["attn_mask"])

    # Fold the softmax scale into the Q slice of the qkv projection (one-off,
    # tiny op), then cast MXU-weight operands to bf16.
    wqkv_s = wqkv.at[:, :C].multiply(scale).astype(jnp.bfloat16)   # (C, 3C)
    bqkv_s = bqkv.at[:, :C].multiply(scale)                        # (1, 3C) f32
    wout_b = wout.astype(jnp.bfloat16)                             # (C, C)

    # Fuse relative-position bias (heads, N, N) + shifted-window mask
    # (nW, N, N), then expand to the block-diagonal full-sequence form
    # (heads, M, M): diagonal window blocks get bias + mask, off-blocks -1e9
    # (structural mask; exp() underflows to exactly 0 in f32).
    inner = bias[:, None, :, :] + attn_mask[None, :, :, :]         # (h, nW, N, N)
    bm = jnp.full((heads, nW, N, nW, N), -1e9, jnp.float32)
    widx = jnp.arange(nW)
    bm = bm.at[:, widx, :, widx, :].set(jnp.transpose(inner, (1, 0, 2, 3)))
    bm = bm.reshape(heads, M, M).astype(jnp.bfloat16)              # lane-dense

    # cyclic shift + window partition: b c (r1 h1) (r2 w1) -> (b, nW*N, c)
    xs = jnp.roll(x, shift=(-shift_size, -shift_size), axis=(2, 3))
    xw = xs.reshape(B, C, r1, Wh, r2, Ww)
    xw = jnp.transpose(xw, (0, 2, 4, 3, 5, 1)).reshape(B, M, C)
    xw = xw.astype(jnp.bfloat16)

    kernel = functools.partial(_swattn_kernel, heads=heads, head_dim=head_dim)

    out = pl.pallas_call(
        kernel,
        out_shape=jax.ShapeDtypeStruct((B, M, C), jnp.bfloat16),
        grid_spec=pltpu.PrefetchScalarGridSpec(
            num_scalar_prefetch=0,
            grid=(B,),
            in_specs=[
                pl.BlockSpec((1, M, C), lambda b: (b, 0, 0)),        # x windows
                pl.BlockSpec((C, 3 * C), lambda b: (0, 0)),          # W_qkv (scaled)
                pl.BlockSpec((1, 3 * C), lambda b: (0, 0)),          # b_qkv (scaled)
                pl.BlockSpec((C, C), lambda b: (0, 0)),              # W_out
                pl.BlockSpec((1, C), lambda b: (0, 0)),              # b_out
                pl.BlockSpec((heads, M, M), lambda b: (0, 0, 0)),    # bias+mask
            ],
            out_specs=pl.BlockSpec((1, M, C), lambda b: (b, 0, 0)),
            scratch_shapes=[
                pltpu.VMEM((M, 3 * C), jnp.bfloat16),                # qkv scratch
                pltpu.VMEM((M, C), jnp.bfloat16),                    # merged heads
            ],
        ),
        compiler_params=pltpu.CompilerParams(
            dimension_semantics=("parallel",)),   # v7x: one batch elem per TC
    )(xw, wqkv_s, bqkv_s, wout_b, bout, bm)

    # (b, nW*N, c) -> b c (r1 h1) (r2 w1)  (done in bf16: half the HBM traffic)
    y = out.reshape(B, r1, r2, Wh, Ww, C)
    y = jnp.transpose(y, (0, 5, 1, 3, 2, 4)).reshape(B, C, H, W)
    # reverse cyclic shift
    y = jnp.roll(y, shift=(shift_size, shift_size), axis=(2, 3))
    return y.astype(jnp.float32)


# ----------------------------------------------------------------------------
# Deterministic parameter / buffer construction (mirrors module __init__).
# ----------------------------------------------------------------------------
def make_params(key, *, dim, heads, window_size, shift_size, fmap_size):
    Wh, Ww = window_size
    Hf, Wf = fmap_size
    N = Wh * Ww
    assert 0 < shift_size < min(window_size), "wrong shift size."
    k1, k2, k3, k4, k5 = jax.random.split(key, 5)

    wqkv = jax.random.normal(k1, (dim, 3 * dim), jnp.float32) * 0.02
    bqkv = jax.random.normal(k2, (1, 3 * dim), jnp.float32) * 0.02
    wout = jax.random.normal(k3, (dim, dim), jnp.float32) * 0.02
    bout = jax.random.normal(k4, (1, dim), jnp.float32) * 0.02

    # relative position bias table (trunc-normal-ish, std 0.01)
    table = 0.01 * jax.random.truncated_normal(
        k5, -2.0, 2.0, ((2 * Wh - 1) * (2 * Ww - 1), heads), jnp.float32)

    # relative_position_index (as in torch code)
    coords_h = np.arange(Wh)
    coords_w = np.arange(Ww)
    coords = np.stack(np.meshgrid(coords_h, coords_w, indexing="ij"))     # 2,Wh,Ww
    coords_flat = coords.reshape(2, -1)                                   # 2,N
    rel = coords_flat[:, :, None] - coords_flat[:, None, :]               # 2,N,N
    rel = rel.transpose(1, 2, 0)                                          # N,N,2
    rel[:, :, 0] += Wh - 1
    rel[:, :, 1] += Ww - 1
    rel[:, :, 0] *= 2 * Ww - 1
    rel_idx = rel.sum(-1)                                                 # N,N

    bias = table[jnp.asarray(rel_idx.reshape(-1))]                        # N*N,heads
    bias = bias.reshape(N, N, heads).transpose(2, 0, 1)                   # heads,N,N

    # shifted-window attention mask (numpy, mirrors torch code)
    img_mask = np.zeros((Hf, Wf), dtype=np.float32)
    h_slices = (slice(0, -Wh), slice(-Wh, -shift_size), slice(-shift_size, None))
    w_slices = (slice(0, -Ww), slice(-Ww, -shift_size), slice(-shift_size, None))
    cnt = 0
    for hs in h_slices:
        for ws in w_slices:
            img_mask[hs, ws] = cnt
            cnt += 1
    r1, r2 = Hf // Wh, Wf // Ww
    mask_windows = img_mask.reshape(r1, Wh, r2, Ww).transpose(0, 2, 1, 3)
    mask_windows = mask_windows.reshape(r1 * r2, N)                       # nW,N
    attn_mask = mask_windows[:, None, :] - mask_windows[:, :, None]       # nW,N,N
    attn_mask = np.where(attn_mask != 0, -100.0, 0.0).astype(np.float32)

    return dict(wqkv=wqkv, bqkv=bqkv, wout=wout, bout=bout,
                bias=jnp.asarray(bias, jnp.float32),
                attn_mask=jnp.asarray(attn_mask))


# ----------------------------------------------------------------------------
# Pure-JAX reference (for a silent correctness check).
# ----------------------------------------------------------------------------
def reference(x, params, *, heads, window_size, shift_size):
    B, C, H, W = x.shape
    Wh, Ww = window_size
    r1, r2 = H // Wh, W // Ww
    nW, N = r1 * r2, Wh * Ww
    hd = C // heads
    scale = hd ** (-0.5)

    xs = jnp.roll(x, shift=(-shift_size, -shift_size), axis=(2, 3))
    xw = xs.reshape(B, C, r1, Wh, r2, Ww).transpose(0, 2, 4, 3, 5, 1)
    xw = xw.reshape(B * nW, N, C)

    qkv = xw @ params["wqkv"] + params["bqkv"]
    q, k, v = jnp.split(qkv, 3, axis=-1)
    q = q * scale
    q, k, v = [t.reshape(B * nW, N, heads, hd).transpose(0, 2, 1, 3) for t in (q, k, v)]
    attn = jnp.einsum("bhmc,bhnc->bhmn", q, k)
    attn = attn + params["bias"][None]
    attn = attn.reshape(B, nW, heads, N, N) + params["attn_mask"][None, :, None]
    attn = jax.nn.softmax(attn.reshape(B * nW, heads, N, N), axis=-1)
    out = jnp.einsum("bhmn,bhnc->bhmc", attn, v)
    out = out.transpose(0, 2, 1, 3).reshape(B * nW, N, C)
    out = out @ params["wout"] + params["bout"]
    y = out.reshape(B, r1, r2, Wh, Ww, C).transpose(0, 5, 1, 3, 2, 4).reshape(B, C, H, W)
    return jnp.roll(y, shift=(shift_size, shift_size), axis=(2, 3))


if __name__ == "__main__":
    # small config consistent with the module
    B, dim, fmap = 2, 32, 16
    heads, window, shift = 4, 4, 2

    key = jax.random.PRNGKey(0)
    kx, kp = jax.random.split(key)
    x = jax.random.normal(kx, (B, dim, fmap, fmap), jnp.float32)
    params = make_params(kp, dim=dim, heads=heads, window_size=(window, window),
                         shift_size=shift, fmap_size=(fmap, fmap))

    y = shift_window_attention(x, params, heads=heads,
                               window_size=(window, window), shift_size=shift)
    y = jax.block_until_ready(y)

    y_ref = reference(x, params, heads=heads,
                      window_size=(window, window), shift_size=shift)
    assert y.shape == (B, dim, fmap, fmap)
    # bf16 MXU operands / bf16 output with f32 accumulation -> loosened tolerance.
    np.testing.assert_allclose(np.asarray(y), np.asarray(y_ref), rtol=2e-2, atol=2e-2)

    print("KERNEL_OK")
</pallas_src>

<mosaic_0001>
module attributes {stable_mosaic.version = 11 : i64} {
  func.func @_swattn_kernel(%arg0: i32, %arg1: memref<1x256x32xbf16, #tpu.memory_space<vmem>>, %arg2: memref<32x96xbf16, #tpu.memory_space<vmem>>, %arg3: memref<1x96xf32, #tpu.memory_space<vmem>>, %arg4: memref<32x32xbf16, #tpu.memory_space<vmem>>, %arg5: memref<1x32xf32, #tpu.memory_space<vmem>>, %arg6: memref<4x256x256xbf16, #tpu.memory_space<vmem>>, %arg7: memref<1x256x32xbf16, #tpu.memory_space<vmem>>, %arg8: memref<256x96xbf16, #tpu.memory_space<vmem>>, %arg9: memref<256x32xbf16, #tpu.memory_space<vmem>>) attributes {dimension_semantics = [#tpu.dimension_semantics<parallel>], iteration_bounds = array<i64: 2>, scalar_prefetch = 0 : i64, scratch_operands = 2 : i64, tpu.core_type = #tpu.core_type<tc>, window_params = [{transform_indices = @transform_0, window_bounds = array<i64: 1, 256, 32>}, {pipeline_mode = #tpu.pipeline_mode<synchronous>, transform_indices = @transform_1, window_bounds = array<i64: 32, 96>}, {pipeline_mode = #tpu.pipeline_mode<synchronous>, transform_indices = @transform_2, window_bounds = array<i64: 1, 96>}, {pipeline_mode = #tpu.pipeline_mode<synchronous>, transform_indices = @transform_3, window_bounds = array<i64: 32, 32>}, {pipeline_mode = #tpu.pipeline_mode<synchronous>, transform_indices = @transform_4, window_bounds = array<i64: 1, 32>}, {pipeline_mode = #tpu.pipeline_mode<synchronous>, transform_indices = @transform_5, window_bounds = array<i64: 4, 256, 256>}, {transform_indices = @transform_6, window_bounds = array<i64: 1, 256, 32>}]} {
    %c0 = arith.constant 0 : index
    %c0_0 = arith.constant 0 : index
    %c0_1 = arith.constant 0 : index
    %0 = vector.load %arg1[%c0, %c0_0, %c0_1] : memref<1x256x32xbf16, #tpu.memory_space<vmem>>, vector<1x256x32xbf16>
    %1 = vector.shape_cast %0 : vector<1x256x32xbf16> to vector<256x32xbf16>
    %c0_2 = arith.constant 0 : index
    %c0_3 = arith.constant 0 : index
    %2 = vector.load %arg2[%c0_2, %c0_3] : memref<32x96xbf16, #tpu.memory_space<vmem>>, vector<32x96xbf16>
    %cst = arith.constant dense<0.000000e+00> : vector<256x96xf32>
    %3 = tpu.matmul %1, %2, %cst {dimension_numbers = #tpu.dot_dimension_numbers<[1], [0], [0], [1], [0, 0, 1, 1], [], []>} : vector<256x32xbf16>, vector<32x96xbf16>, vector<256x96xf32> -> vector<256x96xf32>
    %c0_4 = arith.constant 0 : index
    %c0_5 = arith.constant 0 : index
    %4 = vector.load %arg3[%c0_4, %c0_5] : memref<1x96xf32, #tpu.memory_space<vmem>>, vector<1x96xf32>
    %5 = vector.broadcast %4 : vector<1x96xf32> to vector<256x96xf32>
    %6 = arith.addf %3, %5 : vector<256x96xf32>
    %7 = arith.truncf %6 : vector<256x96xf32> to vector<256x96xbf16>
    %c0_6 = arith.constant 0 : index
    %c0_7 = arith.constant 0 : index
    %8 = vector.load %arg8[%c0_6, %c0_7] : memref<256x96xbf16, #tpu.memory_space<vmem>>, vector<256x96xbf16>
    tpu.vector_store %arg8[%c0_6, %c0_7], %7 {strides = array<i32>} : memref<256x96xbf16, #tpu.memory_space<vmem>>, vector<256x96xbf16>,
    %c0_8 = arith.constant 0 : index
    %c0_9 = arith.constant 0 : index
    %9 = vector.load %arg8[%c0_8, %c0_9] : memref<256x96xbf16, #tpu.memory_space<vmem>>, vector<256x8xbf16>
    %c0_10 = arith.constant 0 : index
    %c32 = arith.constant 32 : index
    %10 = vector.load %arg8[%c0_10, %c32] : memref<256x96xbf16, #tpu.memory_space<vmem>>, vector<256x8xbf16>
    %c0_11 = arith.constant 0 : index
    %c64 = arith.constant 64 : index
    %11 = vector.load %arg8[%c0_11, %c64] : memref<256x96xbf16, #tpu.memory_space<vmem>>, vector<256x8xbf16>
    %cst_12 = arith.constant dense<0.000000e+00> : vector<256x256xf32>
    %12 = tpu.matmul %9, %10, %cst_12 {dimension_numbers = #tpu.dot_dimension_numbers<[1], [1], [0], [0], [0, 0, 1, 0], [], []>} : vector<256x8xbf16>, vector<256x8xbf16>, vector<256x256xf32> -> vector<256x256xf32>
    %c0_13 = arith.constant 0 : index
    %c0_14 = arith.constant 0 : index
    %c0_15 = arith.constant 0 : index
    %13 = vector.load %arg6[%c0_13, %c0_14, %c0_15] : memref<4x256x256xbf16, #tpu.memory_space<vmem>>, vector<1x256x256xbf16>
    %14 = vector.shape_cast %13 : vector<1x256x256xbf16> to vector<256x256xbf16>
    %15 = arith.extf %14 : vector<256x256xbf16> to vector<256x256xf32>
    %16 = arith.addf %12, %15 : vector<256x256xf32>
    %cst_16 = arith.constant dense<0xFF800000> : vector<256xf32>
    %17 = vector.multi_reduction <maximumf>, %16, %cst_16 [1] : vector<256x256xf32> to vector<256xf32>
    %18 = vector.shape_cast %17 : vector<256xf32> to vector<256x1xf32>
    %19 = vector.broadcast %18 : vector<256x1xf32> to vector<256x256xf32>
    %20 = arith.subf %16, %19 : vector<256x256xf32>
    %21 = math.exp %20 : vector<256x256xf32>
    %cst_17 = arith.constant dense<0.000000e+00> : vector<256xf32>
    %22 = vector.multi_reduction <add>, %21, %cst_17 [1] : vector<256x256xf32> to vector<256xf32>
    %23 = vector.shape_cast %22 : vector<256xf32> to vector<256x1xf32>
    %24 = tpu.reciprocal %23 {approx = true} : vector<256x1xf32> -> vector<256x1xf32>
    %25 = vector.broadcast %24 : vector<256x1xf32> to vector<256x256xf32>
    %26 = arith.mulf %21, %25 : vector<256x256xf32>
    %27 = arith.truncf %26 : vector<256x256xf32> to vector<256x256xbf16>
    %cst_18 = arith.constant dense<0.000000e+00> : vector<256x8xf32>
    %28 = tpu.matmul %27, %11, %cst_18 {dimension_numbers = #tpu.dot_dimension_numbers<[1], [0], [0], [1], [0, 0, 1, 1], [], []>} : vector<256x256xbf16>, vector<256x8xbf16>, vector<256x8xf32> -> vector<256x8xf32>
    %29 = arith.truncf %28 : vector<256x8xf32> to vector<256x8xbf16>
    %c0_19 = arith.constant 0 : index
    %c0_20 = arith.constant 0 : index
    %30 = vector.load %arg9[%c0_19, %c0_20] : memref<256x32xbf16, #tpu.memory_space<vmem>>, vector<256x8xbf16>
    tpu.vector_store %arg9[%c0_19, %c0_20], %29 {strides = array<i32>} : memref<256x32xbf16, #tpu.memory_space<vmem>>, vector<256x8xbf16>,
    %c0_21 = arith.constant 0 : index
    %c8 = arith.constant 8 : index
    %31 = vector.load %arg8[%c0_21, %c8] : memref<256x96xbf16, #tpu.memory_space<vmem>>, vector<256x8xbf16>
    %c0_22 = arith.constant 0 : index
    %c40 = arith.constant 40 : index
    %32 = vector.load %arg8[%c0_22, %c40] : memref<256x96xbf16, #tpu.memory_space<vmem>>, vector<256x8xbf16>
    %c0_23 = arith.constant 0 : index
    %c72 = arith.constant 72 : index
    %33 = vector.load %arg8[%c0_23, %c72] : memref<256x96xbf16, #tpu.memory_space<vmem>>, vector<256x8xbf16>
    %cst_24 = arith.constant dense<0.000000e+00> : vector<256x256xf32>
    %34 = tpu.matmul %31, %32, %cst_24 {dimension_numbers = #tpu.dot_dimension_numbers<[1], [1], [0], [0], [0, 0, 1, 0], [], []>} : vector<256x8xbf16>, vector<256x8xbf16>, vector<256x256xf32> -> vector<256x256xf32>
    %c1 = arith.constant 1 : index
    %c0_25 = arith.constant 0 : index
    %c0_26 = arith.constant 0 : index
    %35 = vector.load %arg6[%c1, %c0_25, %c0_26] : memref<4x256x256xbf16, #tpu.memory_space<vmem>>, vector<1x256x256xbf16>
    %36 = vector.shape_cast %35 : vector<1x256x256xbf16> to vector<256x256xbf16>
    %37 = arith.extf %36 : vector<256x256xbf16> to vector<256x256xf32>
    %38 = arith.addf %34, %37 : vector<256x256xf32>
    %cst_27 = arith.constant dense<0xFF800000> : vector<256xf32>
    %39 = vector.multi_reduction <maximumf>, %38, %cst_27 [1] : vector<256x256xf32> to vector<256xf32>
    %40 = vector.shape_cast %39 : vector<256xf32> to vector<256x1xf32>
    %41 = vector.broadcast %40 : vector<256x1xf32> to vector<256x256xf32>
    %42 = arith.subf %38, %41 : vector<256x256xf32>
    %43 = math.exp %42 : vector<256x256xf32>
    %cst_28 = arith.constant dense<0.000000e+00> : vector<256xf32>
    %44 = vector.multi_reduction <add>, %43, %cst_28 [1] : vector<256x256xf32> to vector<256xf32>
    %45 = vector.shape_cast %44 : vector<256xf32> to vector<256x1xf32>
    %46 = tpu.reciprocal %45 {approx = true} : vector<256x1xf32> -> vector<256x1xf32>
    %47 = vector.broadcast %46 : vector<256x1xf32> to vector<256x256xf32>
    %48 = arith.mulf %43, %47 : vector<256x256xf32>
    %49 = arith.truncf %48 : vector<256x256xf32> to vector<256x256xbf16>
    %cst_29 = arith.constant dense<0.000000e+00> : vector<256x8xf32>
    %50 = tpu.matmul %49, %33, %cst_29 {dimension_numbers = #tpu.dot_dimension_numbers<[1], [0], [0], [1], [0, 0, 1, 1], [], []>} : vector<256x256xbf16>, vector<256x8xbf16>, vector<256x8xf32> -> vector<256x8xf32>
    %51 = arith.truncf %50 : vector<256x8xf32> to vector<256x8xbf16>
    %c0_30 = arith.constant 0 : index
    %c8_31 = arith.constant 8 : index
    %52 = vector.load %arg9[%c0_30, %c8_31] : memref<256x32xbf16, #tpu.memory_space<vmem>>, vector<256x8xbf16>
    tpu.vector_store %arg9[%c0_30, %c8_31], %51 {strides = array<i32>} : memref<256x32xbf16, #tpu.memory_space<vmem>>, vector<256x8xbf16>,
    %c0_32 = arith.constant 0 : index
    %c16 = arith.constant 16 : index
    %53 = vector.load %arg8[%c0_32, %c16] : memref<256x96xbf16, #tpu.memory_space<vmem>>, vector<256x8xbf16>
    %c0_33 = arith.constant 0 : index
    %c48 = arith.constant 48 : index
    %54 = vector.load %arg8[%c0_33, %c48] : memref<256x96xbf16, #tpu.memory_space<vmem>>, vector<256x8xbf16>
    %c0_34 = arith.constant 0 : index
    %c80 = arith.constant 80 : index
    %55 = vector.load %arg8[%c0_34, %c80] : memref<256x96xbf16, #tpu.memory_space<vmem>>, vector<256x8xbf16>
    %cst_35 = arith.constant dense<0.000000e+00> : vector<256x256xf32>
    %56 = tpu.matmul %53, %54, %cst_35 {dimension_numbers = #tpu.dot_dimension_numbers<[1], [1], [0], [0], [0, 0, 1, 0], [], []>} : vector<256x8xbf16>, vector<256x8xbf16>, vector<256x256xf32> -> vector<256x256xf32>
    %c2 = arith.constant 2 : index
    %c0_36 = arith.constant 0 : index
    %c0_37 = arith.constant 0 : index
    %57 = vector.load %arg6[%c2, %c0_36, %c0_37] : memref<4x256x256xbf16, #tpu.memory_space<vmem>>, vector<1x256x256xbf16>
    %58 = vector.shape_cast %57 : vector<1x256x256xbf16> to vector<256x256xbf16>
    %59 = arith.extf %58 : vector<256x256xbf16> to vector<256x256xf32>
    %60 = arith.addf %56, %59 : vector<256x256xf32>
    %cst_38 = arith.constant dense<0xFF800000> : vector<256xf32>
    %61 = vector.multi_reduction <maximumf>, %60, %cst_38 [1] : vector<256x256xf32> to vector<256xf32>
    %62 = vector.shape_cast %61 : vector<256xf32> to vector<256x1xf32>
    %63 = vector.broadcast %62 : vector<256x1xf32> to vector<256x256xf32>
    %64 = arith.subf %60, %63 : vector<256x256xf32>
    %65 = math.exp %64 : vector<256x256xf32>
    %cst_39 = arith.constant dense<0.000000e+00> : vector<256xf32>
    %66 = vector.multi_reduction <add>, %65, %cst_39 [1] : vector<256x256xf32> to vector<256xf32>
    %67 = vector.shape_cast %66 : vector<256xf32> to vector<256x1xf32>
    %68 = tpu.reciprocal %67 {approx = true} : vector<256x1xf32> -> vector<256x1xf32>
    %69 = vector.broadcast %68 : vector<256x1xf32> to vector<256x256xf32>
    %70 = arith.mulf %65, %69 : vector<256x256xf32>
    %71 = arith.truncf %70 : vector<256x256xf32> to vector<256x256xbf16>
    %cst_40 = arith.constant dense<0.000000e+00> : vector<256x8xf32>
    %72 = tpu.matmul %71, %55, %cst_40 {dimension_numbers = #tpu.dot_dimension_numbers<[1], [0], [0], [1], [0, 0, 1, 1], [], []>} : vector<256x256xbf16>, vector<256x8xbf16>, vector<256x8xf32> -> vector<256x8xf32>
    %73 = arith.truncf %72 : vector<256x8xf32> to vector<256x8xbf16>
    %c0_41 = arith.constant 0 : index
    %c16_42 = arith.constant 16 : index
    %74 = vector.load %arg9[%c0_41, %c16_42] : memref<256x32xbf16, #tpu.memory_space<vmem>>, vector<256x8xbf16>
    tpu.vector_store %arg9[%c0_41, %c16_42], %73 {strides = array<i32>} : memref<256x32xbf16, #tpu.memory_space<vmem>>, vector<256x8xbf16>,
    %c0_43 = arith.constant 0 : index
    %c24 = arith.constant 24 : index
    %75 = vector.load %arg8[%c0_43, %c24] : memref<256x96xbf16, #tpu.memory_space<vmem>>, vector<256x8xbf16>
    %c0_44 = arith.constant 0 : index
    %c56 = arith.constant 56 : index
    %76 = vector.load %arg8[%c0_44, %c56] : memref<256x96xbf16, #tpu.memory_space<vmem>>, vector<256x8xbf16>
    %c0_45 = arith.constant 0 : index
    %c88 = arith.constant 88 : index
    %77 = vector.load %arg8[%c0_45, %c88] : memref<256x96xbf16, #tpu.memory_space<vmem>>, vector<256x8xbf16>
    %cst_46 = arith.constant dense<0.000000e+00> : vector<256x256xf32>
    %78 = tpu.matmul %75, %76, %cst_46 {dimension_numbers = #tpu.dot_dimension_numbers<[1], [1], [0], [0], [0, 0, 1, 0], [], []>} : vector<256x8xbf16>, vector<256x8xbf16>, vector<256x256xf32> -> vector<256x256xf32>
    %c3 = arith.constant 3 : index
    %c0_47 = arith.constant 0 : index
    %c0_48 = arith.constant 0 : index
    %79 = vector.load %arg6[%c3, %c0_47, %c0_48] : memref<4x256x256xbf16, #tpu.memory_space<vmem>>, vector<1x256x256xbf16>
    %80 = vector.shape_cast %79 : vector<1x256x256xbf16> to vector<256x256xbf16>
    %81 = arith.extf %80 : vector<256x256xbf16> to vector<256x256xf32>
    %82 = arith.addf %78, %81 : vector<256x256xf32>
    %cst_49 = arith.constant dense<0xFF800000> : vector<256xf32>
    %83 = vector.multi_reduction <maximumf>, %82, %cst_49 [1] : vector<256x256xf32> to vector<256xf32>
    %84 = vector.shape_cast %83 : vector<256xf32> to vector<256x1xf32>
    %85 = vector.broadcast %84 : vector<256x1xf32> to vector<256x256xf32>
    %86 = arith.subf %82, %85 : vector<256x256xf32>
    %87 = math.exp %86 : vector<256x256xf32>
    %cst_50 = arith.constant dense<0.000000e+00> : vector<256xf32>
    %88 = vector.multi_reduction <add>, %87, %cst_50 [1] : vector<256x256xf32> to vector<256xf32>
    %89 = vector.shape_cast %88 : vector<256xf32> to vector<256x1xf32>
    %90 = tpu.reciprocal %89 {approx = true} : vector<256x1xf32> -> vector<256x1xf32>
    %91 = vector.broadcast %90 : vector<256x1xf32> to vector<256x256xf32>
    %92 = arith.mulf %87, %91 : vector<256x256xf32>
    %93 = arith.truncf %92 : vector<256x256xf32> to vector<256x256xbf16>
    %cst_51 = arith.constant dense<0.000000e+00> : vector<256x8xf32>
    %94 = tpu.matmul %93, %77, %cst_51 {dimension_numbers = #tpu.dot_dimension_numbers<[1], [0], [0], [1], [0, 0, 1, 1], [], []>} : vector<256x256xbf16>, vector<256x8xbf16>, vector<256x8xf32> -> vector<256x8xf32>
    %95 = arith.truncf %94 : vector<256x8xf32> to vector<256x8xbf16>
    %c0_52 = arith.constant 0 : index
    %c24_53 = arith.constant 24 : index
    %96 = vector.load %arg9[%c0_52, %c24_53] : memref<256x32xbf16, #tpu.memory_space<vmem>>, vector<256x8xbf16>
    tpu.vector_store %arg9[%c0_52, %c24_53], %95 {strides = array<i32>} : memref<256x32xbf16, #tpu.memory_space<vmem>>, vector<256x8xbf16>,
    %c0_54 = arith.constant 0 : index
    %c0_55 = arith.constant 0 : index
    %97 = vector.load %arg9[%c0_54, %c0_55] : memref<256x32xbf16, #tpu.memory_space<vmem>>, vector<256x32xbf16>
    %c0_56 = arith.constant 0 : index
    %c0_57 = arith.constant 0 : index
    %98 = vector.load %arg4[%c0_56, %c0_57] : memref<32x32xbf16, #tpu.memory_space<vmem>>, vector<32x32xbf16>
    %cst_58 = arith.constant dense<0.000000e+00> : vector<256x32xf32>
    %99 = tpu.matmul %97, %98, %cst_58 {dimension_numbers = #tpu.dot_dimension_numbers<[1], [0], [0], [1], [0, 0, 1, 1], [], []>} : vector<256x32xbf16>, vector<32x32xbf16>, vector<256x32xf32> -> vector<256x32xf32>
    %c0_59 = arith.constant 0 : index
    %c0_60 = arith.constant 0 : index
    %100 = vector.load %arg5[%c0_59, %c0_60] : memref<1x32xf32, #tpu.memory_space<vmem>>, vector<1x32xf32>
    %101 = vector.broadcast %100 : vector<1x32xf32> to vector<256x32xf32>
    %102 = arith.addf %99, %101 : vector<256x32xf32>
    %103 = arith.truncf %102 : vector<256x32xf32> to vector<256x32xbf16>
    %c0_61 = arith.constant 0 : index
    %c0_62 = arith.constant 0 : index
    %c0_63 = arith.constant 0 : index
    %104 = vector.load %arg7[%c0_61, %c0_62, %c0_63] : memref<1x256x32xbf16, #tpu.memory_space<vmem>>, vector<1x256x32xbf16>
    %105 = vector.shape_cast %104 : vector<1x256x32xbf16> to vector<256x32xbf16>
    %106 = vector.shape_cast %103 : vector<256x32xbf16> to vector<1x256x32xbf16>
    tpu.vector_store %arg7[%c0_61, %c0_62, %c0_63], %106 {strides = array<i32>} : memref<1x256x32xbf16, #tpu.memory_space<vmem>>, vector<1x256x32xbf16>,
    return
  }
  func.func @transform_0(%arg0: i32) -> (i32, i32, i32) {
    %c0_i32 = arith.constant 0 : i32
    %c0_i32_0 = arith.constant 0 : i32
    %c0_i32_1 = arith.constant 0 : i32
    return %arg0, %c0_i32, %c0_i32_0 : i32, i32, i32
  }
  func.func @transform_1(%arg0: i32) -> (i32, i32) {
    %c0_i32 = arith.constant 0 : i32
    %c0_i32_0 = arith.constant 0 : i32
    %c0_i32_1 = arith.constant 0 : i32
    return %c0_i32, %c0_i32_0 : i32, i32
  }
  func.func @transform_2(%arg0: i32) -> (i32, i32) {
    %c0_i32 = arith.constant 0 : i32
    %c0_i32_0 = arith.constant 0 : i32
    %c0_i32_1 = arith.constant 0 : i32
    return %c0_i32, %c0_i32_0 : i32, i32
  }
  func.func @transform_3(%arg0: i32) -> (i32, i32) {
    %c0_i32 = arith.constant 0 : i32
    %c0_i32_0 = arith.constant 0 : i32
    %c0_i32_1 = arith.constant 0 : i32
    return %c0_i32, %c0_i32_0 : i32, i32
  }
  func.func @transform_4(%arg0: i32) -> (i32, i32) {
    %c0_i32 = arith.constant 0 : i32
    %c0_i32_0 = arith.constant 0 : i32
    %c0_i32_1 = arith.constant 0 : i32
    return %c0_i32, %c0_i32_0 : i32, i32
  }
  func.func @transform_5(%arg0: i32) -> (i32, i32, i32) {
    %c0_i32 = arith.constant 0 : i32
    %c0_i32_0 = arith.constant 0 : i32
    %c0_i32_1 = arith.constant 0 : i32
    %c0_i32_2 = arith.constant 0 : i32
    return %c0_i32, %c0_i32_0, %c0_i32_1 : i32, i32, i32
  }
  func.func @transform_6(%arg0: i32) -> (i32, i32, i32) {
    %c0_i32 = arith.constant 0 : i32
    %c0_i32_0 = arith.constant 0 : i32
    %c0_i32_1 = arith.constant 0 : i32
    return %arg0, %c0_i32, %c0_i32_0 : i32, i32, i32
  }
}

</mosaic_0001>

<bundles_post_ra>
// kernel: tpu_custom_call.1
= control target key start
LH: loop header
LB: loop body
LE: loop exit
PB: predicated region body
PF: predicated region fallthrough
CT: control target
= control target key end

     0   :  { %11 = vsyncpa [#allocation5], 0  ;;  %s9723_s21 = smov 0   ;;  %s14303_s0 = inlined_call_operand.vmem [shape: bf16[2,256,32], index: 0, kind: input, shape index: {}]   ;;  %s14304_s1 = inlined_call_operand.vmem [shape: bf16[32,96], index: 1, kind: input, shape index: {}]   ;;  %s14305_s2 = inlined_call_operand.vmem [shape: f32[1,96], index: 2, kind: input, shape index: {}]   ;;  %s14306_s3 = inlined_call_operand.vmem [shape: bf16[32,32], index: 3, kind: input, shape index: {}]   ;;  %s14307_s4 = inlined_call_operand.vmem [shape: f32[1,32], index: 4, kind: input, shape index: {}]   ;;  %s14308_s5 = inlined_call_operand.hbm [shape: bf16[4,256,256], index: 5, kind: input, shape index: {}]   ;;  %s14309_s6 = inlined_call_operand.vmem [shape: bf16[2,256,32], index: 6, kind: output, shape index: {}]  }
   0x1 LB: > { %s7282_s22 = sadd.s32 4294967295, %s9669_s21   ;;  %p7284_p0 = scmp.ge.s32.totalorder %s9669_s21, 1  ;;  %s9669_s21 = sphi %s9723_s21, %s17_s21  }
   0x2   : > { %p179_p1 = scmp.lt.s32.totalorder %s9669_s21, 3  ;;  %s9671_s23 = smov [#allocation4]  }
   0x3   : > { %s203_s24 = sshll.u32 %s9671_s23, 4  ;;  %p8671_p3 = scmp.eq.s32.totalorder %s7282_s22, 0  ;;  %s204_s24 = int_to_ptr.vmem [resolvable:$true] %s203_s24 }
   0x4   : > { %p9731_p2 = pnand %p7284_p0, %p179_p1  ;;  %s9644_s26 = scalar_lea.vmem %s204_s24, 16384 }
   0x5   : > { %p9645_p7 = scmp.ne.s32.totalorder %s204_s24, %s9644_s26  ;;  %p9652_p10 = scmp.lt.s32.totalorder %s204_s24, %s204_s24 }
   0x6   : > { %p8667_p4 = pneg %p9731_p2  ;;  %p9653_p11 = scmp.lt.s32.totalorder %s9644_s26, %s9644_s26 }
   0x8   : > { %p8668_p5 = pnand %p8671_p3, %p8667_p4  ;;  %p9654_p12 = por %p9653_p11, %p9652_p10 }
   0xa   : > { %p9635_p6 = pneg %p8668_p5 }
   0xc   : > { %p9647_p8 = pnand %p9645_p7, %p9635_p6 }
   0xe   : > { %p9648_p9 = pneg %p9647_p8 }
  0x10   : > { %p9655_p13 = pnand %p9654_p12, %p9648_p9 }
  0x12   : > { %9658 = shalt.err (!%p9655_p13)
}
  0x13   : > { %s9672_s27 = smov 128   ;;  %s9673_s28 = smov 8  }
  0x14   : > { %8670 = dma.hbm_to_vmem [thread:$0]  (!%p8668_p5), %s14308_s5, 16384, %s204_s24, [#allocation5], %s9672_s27, %s9672_s27, %s9673_s28  }
  0x15   : > { %227 = sbr.rel (%p9731_p2) target bundleno = 3318 (0xcf6), region = 44 }
  0x1a   : > { %9664 = dma.done.wait (%p8671_p3), [#allocation5], 16384  }
  0x1b   : > { %9666 = vsyncadd (%p8671_p3), [#allocation5], 4294950912  ;;  %p257_p0 = scmp.lt.s32.totalorder %s7282_s22, 1  ;;  %v8698_v0 = vld [vmem:[%s14304_s1 + $0x8] sm:$0xff]   ;;  %v8699_v1 = vld [vmem:[%s14304_s1] sm:$0xff]   ;;  %vm403_vm0 = vcmask 261120  }
  0x1c   : > { %8555 = vmatprep.subr.bf16.mxu0 %v8698_v0  ;;  %v9796_v18 = vld [vmem:[%s14305_s2] ss:$0 sm:$0xff]  ;;  %vm741_vm1 = vcmask 781312   ;;  %vm1014_vm2 = vcmask 64512   ;;  %s9674_s17 = smov 120   ;;  %s9675_s18 = smov 96  }
  0x1d   : > { %s15451_s22 = smov (!%p257_p0, %s7282_s22), 1  ;;  %8556 = vmatpush3.bf16.msra.mxu0 %v8698_v0  ;;  %s9676_s19 = smov 80   ;;  %vm2153_vm3 = vcmask 60416   ;;  %vm3661_vm4 = vcmask 126016   ;;  %vm5169_vm5 = vcmask 191616   ;;  %vm6677_vm6 = vcmask 257216  }
  0x1e   : > { %s7685_s7 = sshll.u32 %s15451_s22, 7  ;;  %8557 = vmatprep.subr.bf16.mxu0 %v8699_v1  ;;  %s9677_s20 = smov 88   ;;  %vm7182_vm7 = vcmask 257024  }
  0x1f   : > { %s9753_s10 = scalar_lea.vmem %s14303_s0, %s7685_s7  ;;  %s9678_s23 = smov 112  }
  0x20   : > { %v8700_v2 = vld [vmem:[%s9753_s10] sm:$0xff]   ;;  %v8701_v3 = vld [vmem:[%s9753_s10 + $0x8] sm:$0xff]   ;;  %v8702_v4 = vld [vmem:[%s9753_s10 + $0x10] sm:$0xff]   ;;  %s9679_s24 = smov 72   ;;  %s9680_s25 = smov 64  }
  0x21   : > { %8559 = vmatprep.mubr.msk.bf16.mxu0 %vm403_vm0, %v8700_v2  ;;  %8558 = vmatpush3.bf16.msra.mxu0 %v8699_v1  ;;  %v8703_v5 = vld [vmem:[%s9753_s10 + $0x18] sm:$0xff]   ;;  %v8704_v6 = vld [vmem:[%s9753_s10 + $0x20] sm:$0xff]   ;;  %v8705_v7 = vld [vmem:[%s9753_s10 + $0x28] sm:$0xff]   ;;  %s9681_s26 = smov 104   ;;  %s9682_s27 = smov 56  }
  0x22   : > { %v8706_v8 = vld [vmem:[%s9753_s10 + $0x30] sm:$0xff]   ;;  %v8707_v9 = vld [vmem:[%s9753_s10 + $0x38] sm:$0xff]   ;;  %v8708_v10 = vld [vmem:[%s9753_s10 + $0x40] sm:$0xff]   ;;  %s9683_s28 = smov 48   ;;  %s9684_s29 = smov 40  }
  0x23   : > { %v8709_v11 = vld [vmem:[%s9753_s10 + $0x48] sm:$0xff]   ;;  %v8710_v12 = vld [vmem:[%s9753_s10 + $0x50] sm:$0xff]   ;;  %v8711_v13 = vld [vmem:[%s9753_s10 + $0x58] sm:$0xff]   ;;  %s9685_s30 = smov 8   ;;  %s9686_s8 = smov 16  }
  0x24   : > { %8560 = vmatmul.mubr.msk.bf16.vlgmr.msra.gmra.mxu0 %vm403_vm0, %v8701_v3  ;;  %v8712_v14 = vld [vmem:[%s9753_s10 + $0x60] sm:$0xff]   ;;  %v8713_v15 = vld [vmem:[%s9753_s10 + $0x68] sm:$0xff]   ;;  %v8714_v16 = vld [vmem:[%s9753_s10 + $0x70] sm:$0xff]   ;;  %s9687_s9 = smov 24  }
  0x25   : > { %8563 = vmatprep.mubr.msk.bf16.mxu0 %vm403_vm0, %v8702_v4  ;;  %v8715_v17 = vld [vmem:[%s9753_s10 + $0x78] sm:$0xff]  }
  0x2c   : > { %8564 = vmatmul.mubr.msk.bf16.gmra.mxu0 %vm403_vm0, %v8703_v5 }
  0x2d   : > { %8567 = vmatprep.mubr.msk.bf16.mxu0 %vm403_vm0, %v8704_v6 }
  0x34   : > { %8568 = vmatmul.mubr.msk.bf16.gmra.mxu0 %vm403_vm0, %v8705_v7 }
  0x35   : > { %8571 = vmatprep.mubr.msk.bf16.mxu0 %vm403_vm0, %v8706_v8 }
  0x3c   : > { %8572 = vmatmul.mubr.msk.bf16.gmra.mxu0 %vm403_vm0, %v8707_v9 }
  0x3d   : > { %8575 = vmatprep.mubr.msk.bf16.mxu0 %vm403_vm0, %v8708_v10 }
  0x44   : > { %8576 = vmatmul.mubr.msk.bf16.gmra.mxu0 %vm403_vm0, %v8709_v11 }
  0x45   : > { %8579 = vmatprep.mubr.msk.bf16.mxu0 %vm403_vm0, %v8710_v12 }
  0x4c   : > { %8580 = vmatmul.mubr.msk.bf16.gmra.mxu0 %vm403_vm0, %v8711_v13 }
  0x4d   : > { %8583 = vmatprep.mubr.msk.bf16.mxu0 %vm403_vm0, %v8712_v14 }
  0x54   : > { %8584 = vmatmul.mubr.msk.bf16.gmra.mxu0 %vm403_vm0, %v8713_v15 }
  0x55   : > { %8587 = vmatprep.mubr.msk.bf16.mxu0 %vm403_vm0, %v8714_v16 }
  0x5c   : > { %8588 = vmatmul.mubr.msk.bf16.gmra.mxu0 %vm403_vm0, %v8715_v17 }
  0xe4   : > { %v8561_v19 = vpop.f32.mrf.mxu0 }
  0xe5   : > { %v495_v20 = vadd.f32 %v8561_v19, %v9796_v18 }
  0xe6   : > { %v486_v21 = vpop.f32.mrf.mxu0 }
  0xe7   : > { %v7689_v22 = vpack.c.bf16 %v495_v20, %v495_v20  ;;  %v487_v23 = vadd.f32 %v9796_v18, %v486_v21 }
  0xe8   : > { %v8562_v24 = vpop.f32.mrf.mxu0 }
  0xe9   : > { %744 = vst.msk [vmem:[#allocation2 + $0x8] sm:$0xf] %vm741_vm1, %v7689_v22  ;;  %v7687_v25 = vpack.c.bf16 %v487_v23, %v487_v23  ;;  %v498_v26 = vadd.f32 %v8562_v24, %v9796_v18 }
  0xea   : > { %v489_v27 = vpop.f32.mrf.mxu0 }
  0xeb   : > { %742 = vst.msk [vmem:[#allocation2] sm:$0xf] %vm741_vm1, %v7687_v25  ;;  %v7690_v28 = vpack.c.bf16 %v498_v26, %v498_v26  ;;  %v490_v29 = vadd.f32 %v9796_v18, %v489_v27 }
  0xec   : > { %v8565_v30 = vpop.f32.mrf.mxu0 }
  0xed   : > { %745 = vst.msk [vmem:[#allocation2 + $0xc] sm:$0xf] %vm741_vm1, %v7690_v28  ;;  %v7688_v31 = vpack.c.bf16 %v490_v29, %v490_v29  ;;  %v511_v32 = vadd.f32 %v8565_v30, %v9796_v18 }
  0xee   : > { %v502_v33 = vpop.f32.mrf.mxu0 }
  0xef   : > { %743 = vst.msk [vmem:[#allocation2 + $0x4] sm:$0xf] %vm741_vm1, %v7688_v31  ;;  %v7693_v34 = vpack.c.bf16 %v511_v32, %v511_v32  ;;  %v503_v35 = vadd.f32 %v9796_v18, %v502_v33 }
  0xf0   : > { %v8566_v36 = vpop.f32.mrf.mxu0 }
  0xf1   : > { %748 = vst.msk [vmem:[#allocation2 + $0x18] sm:$0xf] %vm741_vm1, %v7693_v34  ;;  %v7691_v37 = vpack.c.bf16 %v503_v35, %v503_v35  ;;  %v514_v38 = vadd.f32 %v8566_v36, %v9796_v18 }
  0xf2   : > { %v505_v39 = vpop.f32.mrf.mxu0 }
  0xf3   : > { %746 = vst.msk [vmem:[#allocation2 + $0x10] sm:$0xf] %vm741_vm1, %v7691_v37  ;;  %v7694_v40 = vpack.c.bf16 %v514_v38, %v514_v38  ;;  %v506_v41 = vadd.f32 %v9796_v18, %v505_v39 }
  0xf4   : > { %v8716_v42 = vld [vmem:[#allocation2 + $0x8] sm:$0xff]   ;;  %v8569_v43 = vpop.f32.mrf.mxu0 }
  0xf5   : > { %749 = vst.msk [vmem:[#allocation2 + $0x1c] sm:$0xf] %vm741_vm1, %v7694_v40  ;;  %v7692_v44 = vpack.c.bf16 %v506_v41, %v506_v41  ;;  %v9813_v45 = vld [vmem:[#allocation2 + $0x8] sm:$0xff]   ;;  %v527_v46 = vadd.f32 %v8569_v43, %v9796_v18  ;;  %2397 = vrot.lane.b32.xlu1 %v8716_v42, %s9674_s17 }
  0xf6   : > { %v8718_v47 = vld [vmem:[#allocation2] sm:$0xff]   ;;  %v518_v48 = vpop.f32.mrf.mxu0  ;;  %984 = vrot.lane.b32.xlu0 %v9813_v45, %s9675_s18  ;;  %v8719_v51 = vld [vmem:[#allocation2 + $0x8] sm:$0xff]  }
  0xf7   : > { %747 = vst.msk [vmem:[#allocation2 + $0x14] sm:$0xf] %vm741_vm1, %v7692_v44  ;;  %v7697_v49 = vpack.c.bf16 %v527_v46, %v527_v46  ;;  %v519_v50 = vadd.f32 %v9796_v18, %v518_v48  ;;  %7913 = vmatprep.mubr.msk.bf16.mxu1 %vm1014_vm2, %v8718_v47  ;;  %v8723_v10 = vld [vmem:[#allocation2] sm:$0xff]  }
  0xf8   : > { %v8570_v52 = vpop.f32.mrf.mxu0  ;;  %v8726_v26 = vld [vmem:[#allocation2] sm:$0xff]  }
  0xf9   : > { %752 = vst.msk [vmem:[#allocation2 + $0x28] sm:$0xf] %vm741_vm1, %v7697_v49  ;;  %v7695_v53 = vpack.c.bf16 %v519_v50, %v519_v50  ;;  %v530_v54 = vadd.f32 %v8570_v52, %v9796_v18  ;;  %3937 = vrot.lane.b32.xlu1 %v8719_v51, %s9676_s19 }
  0xfa   : > { %v521_v55 = vpop.f32.mrf.mxu0  ;;  %2429 = vrot.lane.b32.xlu0 %v8716_v42, %s9677_s20 }
  0xfb   : > { %750 = vst.msk [vmem:[#allocation2 + $0x20] sm:$0xf] %vm741_vm1, %v7695_v53  ;;  %v7698_v56 = vpack.c.bf16 %v530_v54, %v530_v54  ;;  %v522_v57 = vadd.f32 %v9796_v18, %v521_v55 }
  0xfc   : > { %v9828_v58 = vld [vmem:[#allocation2 + $0x18] sm:$0xff]   ;;  %v8573_v59 = vpop.f32.mrf.mxu0 }
  0xfd   : > { %753 = vst.msk [vmem:[#allocation2 + $0x2c] sm:$0xf] %vm741_vm1, %v7698_v56  ;;  %v7696_v60 = vpack.c.bf16 %v522_v57, %v522_v57  ;;  %v543_v61 = vadd.f32 %v8573_v59, %v9796_v18  ;;  %2401 = vrot.lane.b32.xlu1 %v9828_v58, %s9674_s17  ;;  %v9834_v62 = vld [vmem:[#allocation2 + $0x18] sm:$0xff]  }
  0xfe   : > { %v534_v63 = vpop.f32.mrf.mxu0  ;;  %3905 = vrot.lane.b32.xlu0 %v8719_v51, %s9678_s23  ;;  %v9839_v3 = vld [vmem:[#allocation2 + $0x10] sm:$0xff]   ;;  %v9881_v41 = vld [vmem:[#allocation2 + $0x18] sm:$0xff]  }
  0xff   : > { %751 = vst.msk [vmem:[#allocation2 + $0x24] sm:$0xf] %vm741_vm1, %v7696_v60  ;;  %v7701_v0 = vpack.c.bf16 %v543_v61, %v543_v61  ;;  %v535_v1 = vadd.f32 %v9796_v18, %v534_v63  ;;  %v9906_v61 = vld [vmem:[#allocation2 + $0x10] sm:$0xff]  }
 0x100   : > { %v8574_v2 = vpop.f32.mrf.mxu0 }
 0x101   : > { %756 = vst.msk [vmem:[#allocation2 + $0x38] sm:$0xf] %vm741_vm1, %v7701_v0  ;;  %v7699_v4 = vpack.c.bf16 %v535_v1, %v535_v1  ;;  %v546_v5 = vadd.f32 %v8574_v2, %v9796_v18  ;;  %3941 = vrot.lane.b32.xlu1 %v9834_v62, %s9676_s19 }
 0x102   : > { %v537_v6 = vpop.f32.mrf.mxu0  ;;  %982 = vrot.lane.b32.xlu0 %v8718_v47, %s9675_s18 }
 0x103   : > { %754 = vst.msk [vmem:[#allocation2 + $0x30] sm:$0xf] %vm741_vm1, %v7699_v4  ;;  %v7702_v7 = vpack.c.bf16 %v546_v5, %v546_v5  ;;  %v538_v8 = vadd.f32 %v9796_v18, %v537_v6 }
 0x104   : > { %v8577_v9 = vpop.f32.mrf.mxu0  ;;  %v9852_v13 = vld [vmem:[#allocation2 + $0x28] sm:$0xff]  }
 0x105   : > { %757 = vst.msk [vmem:[#allocation2 + $0x3c] sm:$0xf] %vm741_vm1, %v7702_v7  ;;  %v7700_v11 = vpack.c.bf16 %v538_v8, %v538_v8  ;;  %v559_v12 = vadd.f32 %v8577_v9, %v9796_v18  ;;  %3907 = vrot.lane.b32.xlu1 %v9839_v3, %s9678_s23  ;;  %v9857_v19 = vld [vmem:[#allocation2 + $0x28] sm:$0xff]   ;;  %v8734_v7 = vld [vmem:[#allocation2 + $0x10] sm:$0xff]  }
 0x106   : > { %v550_v14 = vpop.f32.mrf.mxu0  ;;  %2427 = vrot.lane.b32.xlu0 %v8723_v10, %s9677_s20  ;;  %v8727_v29 = vld [vmem:[#allocation2 + $0x28] sm:$0xff]   ;;  %v9873_v34 = vld [vmem:[#allocation2 + $0x20] sm:$0xff]  }
 0x107   : > { %755 = vst.msk [vmem:[#allocation2 + $0x34] sm:$0xf] %vm741_vm1, %v7700_v11  ;;  %v7705_v15 = vpack.c.bf16 %v559_v12, %v559_v12  ;;  %v551_v16 = vadd.f32 %v9796_v18, %v550_v14  ;;  %v9931_v11 = vld [vmem:[#allocation2 + $0x28] sm:$0xff]  }
 0x108   : > { %v8578_v17 = vpop.f32.mrf.mxu0 }
 0x109   : > { %760 = vst.msk [vmem:[#allocation2 + $0x48] sm:$0xf] %vm741_vm1, %v7705_v15  ;;  %v7703_v20 = vpack.c.bf16 %v551_v16, %v551_v16  ;;  %v562_v21 = vadd.f32 %v8578_v17, %v9796_v18  ;;  %2405 = vrot.lane.b32.xlu1 %v9852_v13, %s9674_s17  ;;  %v8743_v16 = vld [vmem:[#allocation2 + $0x20] sm:$0xff]  }
 0x10a   : > { %v553_v22 = vpop.f32.mrf.mxu0  ;;  %2395 = vrot.lane.b32.xlu0 %v8723_v10, %s9674_s17 }
 0x10b   : > { %758 = vst.msk [vmem:[#allocation2 + $0x40] sm:$0xf] %vm741_vm1, %v7703_v20  ;;  %v7706_v23 = vpack.c.bf16 %v562_v21, %v562_v21  ;;  %v554_v24 = vadd.f32 %v9796_v18, %v553_v22 }
 0x10c   : > { %v8581_v25 = vpop.f32.mrf.mxu0  ;;  %v9887_v44 = vld [vmem:[#allocation2 + $0x38] sm:$0xff]  }
 0x10d   : > { %761 = vst.msk [vmem:[#allocation2 + $0x4c] sm:$0xf] %vm741_vm1, %v7706_v23  ;;  %v7704_v27 = vpack.c.bf16 %v554_v24, %v554_v24  ;;  %v575_v28 = vadd.f32 %v8581_v25, %v9796_v18  ;;  %3945 = vrot.lane.b32.xlu1 %v9857_v19, %s9676_s19  ;;  %v8731_v50 = vld [vmem:[#allocation2 + $0x38] sm:$0xff]  }
 0x10e   : > { %v566_v30 = vpop.f32.mrf.mxu0  ;;  %3935 = vrot.lane.b32.xlu0 %v8726_v26, %s9676_s19  ;;  %v8733_v1 = vld [vmem:[#allocation2 + $0x38] sm:$0xff]   ;;  %v9919_v9 = vld [vmem:[#allocation2 + $0x30] sm:$0xff]  }
 0x10f   : > { %759 = vst.msk [vmem:[#allocation2 + $0x44] sm:$0xf] %vm741_vm1, %v7704_v27  ;;  %v7709_v31 = vpack.c.bf16 %v575_v28, %v575_v28  ;;  %v567_v32 = vadd.f32 %v9796_v18, %v566_v30  ;;  %v8736_v10 = vld [vmem:[#allocation2 + $0x30] sm:$0xff]   ;;  %v9961_v20 = vld [vmem:[#allocation2 + $0x38] sm:$0xff]  }
 0x110   : > { %v8582_v33 = vpop.f32.mrf.mxu0  ;;  %v8749_v22 = vld [vmem:[#allocation2 + $0x30] sm:$0xff]  }
 0x111   : > { %764 = vst.msk [vmem:[#allocation2 + $0x58] sm:$0xf] %vm741_vm1, %v7709_v31  ;;  %v7707_v35 = vpack.c.bf16 %v567_v32, %v567_v32  ;;  %v578_v36 = vadd.f32 %v8582_v33, %v9796_v18  ;;  %5453 = vrot.lane.b32.xlu1 %v8727_v29, %s9679_s24  ;;  %v8752_v25 = vld [vmem:[#allocation2 + $0x30] sm:$0xff]  }
 0x112   : > { %v569_v37 = vpop.f32.mrf.mxu0  ;;  %3903 = vrot.lane.b32.xlu0 %v8726_v26, %s9678_s23 }
 0x113   : > { %762 = vst.msk [vmem:[#allocation2 + $0x50] sm:$0xf] %vm741_vm1, %v7707_v35  ;;  %v7710_v38 = vpack.c.bf16 %v578_v36, %v578_v36  ;;  %v570_v39 = vadd.f32 %v9796_v18, %v569_v37 }
 0x114   : > { %v8585_v40 = vpop.f32.mrf.mxu0  ;;  %v8739_v12 = vld [vmem:[#allocation2 + $0x48] sm:$0xff]  }
 0x115   : > { %765 = vst.msk [vmem:[#allocation2 + $0x5c] sm:$0xf] %vm741_vm1, %v7710_v38  ;;  %v7708_v42 = vpack.c.bf16 %v570_v39, %v570_v39  ;;  %v591_v43 = vadd.f32 %v8585_v40, %v9796_v18  ;;  %3911 = vrot.lane.b32.xlu1 %v9873_v34, %s9678_s23  ;;  %v8755_v28 = vld [vmem:[#allocation2 + $0x48] sm:$0xff]  }
 0x116   : > { %v582_v46 = vpop.f32.mrf.mxu0  ;;  %988 = vrot.lane.b32.xlu0 %v9881_v41, %s9675_s18  ;;  %v9941_v14 = vld [vmem:[#allocation2 + $0x40] sm:$0xff]  }
 0x117   : > { %763 = vst.msk [vmem:[#allocation2 + $0x54] sm:$0xf] %vm741_vm1, %v7708_v42  ;;  %v7713_v47 = vpack.c.bf16 %v591_v43, %v591_v43  ;;  %v583_v48 = vadd.f32 %v9796_v18, %v582_v46  ;;  %v8742_v15 = vld [vmem:[#allocation2 + $0x40] sm:$0xff]  }
 0x118   : > { %v8586_v49 = vpop.f32.mrf.mxu0 }
 0x119   : > { %768 = vst.msk [vmem:[#allocation2 + $0x68] sm:$0xf] %vm741_vm1, %v7713_v47  ;;  %v7711_v51 = vpack.c.bf16 %v583_v48, %v583_v48  ;;  %v594_v52 = vadd.f32 %v8586_v49, %v9796_v18  ;;  %2409 = vrot.lane.b32.xlu1 %v9887_v44, %s9674_s17 }
 0x11a   : > { %v585_v53 = vpop.f32.mrf.mxu0  ;;  %2433 = vrot.lane.b32.xlu0 %v9828_v58, %s9677_s20 }
 0x11b   : > { %766 = vst.msk [vmem:[#allocation2 + $0x60] sm:$0xf] %vm741_vm1, %v7711_v51  ;;  %v7714_v54 = vpack.c.bf16 %v594_v52, %v594_v52  ;;  %v586_v55 = vadd.f32 %v9796_v18, %v585_v53 }
 0x11c   : > { %v8589_v56 = vpop.f32.mrf.mxu0  ;;  %v9954_v17 = vld [vmem:[#allocation2 + $0x58] sm:$0xff]  }
 0x11d   : > { %769 = vst.msk [vmem:[#allocation2 + $0x6c] sm:$0xf] %vm741_vm1, %v7714_v54  ;;  %v7712_v57 = vpack.c.bf16 %v586_v55, %v586_v55  ;;  %v607_v59 = vadd.f32 %v8589_v56, %v9796_v18  ;;  %3949 = vrot.lane.b32.xlu1 %v8731_v50, %s9676_s19  ;;  %v8759_v40 = vld [vmem:[#allocation2 + $0x58] sm:$0xff]  }
 0x11e   : > { %v598_v60 = vpop.f32.mrf.mxu0  ;;  %3909 = vrot.lane.b32.xlu0 %v9834_v62, %s9678_s23  ;;  %v9967_v21 = vld [vmem:[#allocation2 + $0x50] sm:$0xff]  }
 0x11f   : > { %767 = vst.msk [vmem:[#allocation2 + $0x64] sm:$0xf] %vm741_vm1, %v7712_v57  ;;  %v7717_v58 = vpack.c.bf16 %v607_v59, %v607_v59  ;;  %v599_v63 = vadd.f32 %v9796_v18, %v598_v60  ;;  %v8750_v23 = vld [vmem:[#allocation2 + $0x50] sm:$0xff]  }
 0x120   : > { %v8590_v0 = vpop.f32.mrf.mxu0  ;;  %v8751_v24 = vld [vmem:[#allocation2 + $0x50] sm:$0xff]  }
 0x121   : > { %772 = vst.msk [vmem:[#allocation2 + $0x78] sm:$0xf] %vm741_vm1, %v7717_v58  ;;  %v7715_v2 = vpack.c.bf16 %v599_v63, %v599_v63  ;;  %v610_v4 = vadd.f32 %v8590_v0, %v9796_v18  ;;  %3917 = vrot.lane.b32.xlu1 %v8731_v50, %s9678_s23  ;;  %v8766_v58 = vld [vmem:[#allocation2 + $0x20] sm:$0xff]  }
 0x122   : > { %v601_v5 = vpop.f32.mrf.mxu0  ;;  %986 = vrot.lane.b32.xlu0 %v9906_v61, %s9675_s18 }
 0x123   : > { %770 = vst.msk [vmem:[#allocation2 + $0x70] sm:$0xf] %vm741_vm1, %v7715_v2  ;;  %v7718_v62 = vpack.c.bf16 %v610_v4, %v610_v4  ;;  %v602_v6 = vadd.f32 %v9796_v18, %v601_v5  ;;  %v9927_v18 = vld [vmem:[#allocation2 + $0x48] sm:$0xff]  }
 0x124   : > { %v9977_v26 = vld [vmem:[#allocation2 + $0x68] sm:$0xff]  }
 0x125   : > { %773 = vst.msk [vmem:[#allocation2 + $0x7c] sm:$0xf] %vm741_vm1, %v7718_v62  ;;  %v7716_v8 = vpack.c.bf16 %v602_v6, %v602_v6  ;;  %5457 = vrot.lane.b32.xlu1 %v8733_v1, %s9679_s24  ;;  %v8754_v27 = vld [vmem:[#allocation2 + $0x68] sm:$0xff]  }
 0x126   : > { %2431 = vrot.lane.b32.xlu0 %v8734_v7, %s9677_s20  ;;  %v9990_v31 = vld [vmem:[#allocation2 + $0x60] sm:$0xff]   ;;  %v10033_v51 = vld [vmem:[#allocation2 + $0x68] sm:$0xff]  }
 0x127   : > { %771 = vst.msk [vmem:[#allocation2 + $0x74] sm:$0xf] %vm741_vm1, %v7716_v8  ;;  %v10008_v38 = vld [vmem:[#allocation2 + $0x60] sm:$0xff]   ;;  %v8764_v55 = vld [vmem:[#allocation2 + $0x68] sm:$0xff]   ;;  %v8770_v8 = vld [vmem:[#allocation2 + $0x50] sm:$0xff]  }
 0x129   : > { %994 = vrot.lane.b32.xlu1 %v9919_v9, %s9675_s18 }
 0x12a   : > { %2399 = vrot.lane.b32.xlu0 %v8734_v7, %s9674_s17 }
 0x12c   : > { %v8760_v42 = vld [vmem:[#allocation2 + $0x78] sm:$0xff]  }
 0x12d   : > { %5455 = vrot.lane.b32.xlu1 %v8736_v10, %s9679_s24  ;;  %v10058_v0 = vld [vmem:[#allocation2 + $0x78] sm:$0xff]  }
 0x12e   : > { %3939 = vrot.lane.b32.xlu0 %v9839_v3, %s9676_s19  ;;  %v9945_v3 = vld [vmem:[#allocation2 + $0x20] sm:$0xff]   ;;  %v10026_v48 = vld [vmem:[#allocation2 + $0x70] sm:$0xff]   ;;  %v8768_v4 = vld [vmem:[#allocation2 + $0x78] sm:$0xff]  }
 0x12f   : > { %v8763_v52 = vld [vmem:[#allocation2 + $0x70] sm:$0xff]   ;;  %v8769_v6 = vld [vmem:[#allocation2 + $0x78] sm:$0xff]  }
 0x130   : > { %v10044_v56 = vld [vmem:[#allocation2 + $0x70] sm:$0xff]  }
 0x131   : > { %1000 = vrot.lane.b32.xlu1 %v9927_v18, %s9675_s18 }
 0x132   : > { %992 = vrot.lane.b32.xlu0 %v9931_v11, %s9675_s18 }
 0x135   : > { %2445 = vrot.lane.b32.xlu1 %v8739_v12, %s9677_s20 }
 0x136   : > { %2437 = vrot.lane.b32.xlu0 %v9852_v13, %s9677_s20  ;;  %v8744_v13 = vld [vmem:[#allocation2 + $0x40] sm:$0xff]  }
 0x139   : > { %2413 = vrot.lane.b32.xlu1 %v8739_v12, %s9674_s17 }
 0x13a   : > { %3913 = vrot.lane.b32.xlu0 %v9857_v19, %s9678_s23  ;;  %v8746_v19 = vld [vmem:[#allocation2 + $0x58] sm:$0xff]  }
 0x13d   : > { %998 = vrot.lane.b32.xlu1 %v9941_v14, %s9675_s18 }
 0x13e   : > { %990 = vrot.lane.b32.xlu0 %v9945_v3, %s9675_s18 }
 0x141   : > { %2443 = vrot.lane.b32.xlu1 %v8742_v15, %s9677_s20 }
 0x142   : > { %2435 = vrot.lane.b32.xlu0 %v8743_v16, %s9677_s20 }
 0x145   : > { %3951 = vrot.lane.b32.xlu1 %v8744_v13, %s9676_s19 }
 0x146   : > { %2403 = vrot.lane.b32.xlu0 %v8743_v16, %s9674_s17  ;;  %v8771_v16 = vld [vmem:[#allocation2 + $0x70] sm:$0xff]  }
 0x149   : > { %1004 = vrot.lane.b32.xlu1 %v9954_v17, %s9675_s18 }
 0x14a   : > { %3943 = vrot.lane.b32.xlu0 %v9873_v34, %s9676_s19  ;;  %v8757_v34 = vld [vmem:[#allocation2 + $0x60] sm:$0xff]  }
 0x14d   : > { %2449 = vrot.lane.b32.xlu1 %v8746_v19, %s9677_s20 }
 0x14e   : > { %996 = vrot.lane.b32.xlu0 %v9961_v20, %s9675_s18 }
 0x151   : > { %2417 = vrot.lane.b32.xlu1 %v8746_v19, %s9674_s17 }
 0x152   : > { %2441 = vrot.lane.b32.xlu0 %v9887_v44, %s9677_s20 }
 0x155   : > { %1002 = vrot.lane.b32.xlu1 %v9967_v21, %s9675_s18 }
 0x156   : > { %2439 = vrot.lane.b32.xlu0 %v8749_v22, %s9677_s20 }
 0x159   : > { %2447 = vrot.lane.b32.xlu1 %v8750_v23, %s9677_s20 }
 0x15a   : > { %2407 = vrot.lane.b32.xlu0 %v8749_v22, %s9674_s17 }
 0x15d   : > { %3955 = vrot.lane.b32.xlu1 %v8751_v24, %s9676_s19 }
 0x15e   : > { %3947 = vrot.lane.b32.xlu0 %v8752_v25, %s9676_s19 }
 0x161   : > { %1008 = vrot.lane.b32.xlu1 %v9977_v26, %s9675_s18 }
 0x162   : > { %3915 = vrot.lane.b32.xlu0 %v8752_v25, %s9678_s23 }
 0x165   : > { %2453 = vrot.lane.b32.xlu1 %v8754_v27, %s9677_s20 }
 0x166   : > { %3953 = vrot.lane.b32.xlu0 %v8755_v28, %s9676_s19 }
 0x167   : > { %v9985_v29 = vpop.permute.xlu1 %2397 }
 0x168   : > { %v9987_v30 = vpop.permute.xlu0 %984 }
 0x169   : > { %2421 = vrot.lane.b32.xlu1 %v8754_v27, %s9674_s17 }
 0x16a   : > { %3921 = vrot.lane.b32.xlu0 %v8755_v28, %s9678_s23 }
 0x16b   : > { %v9993_v32 = vpop.permute.xlu1 %3937 }
 0x16c   : > { %14617 = vst [vmem:[#allocation7_spill] sm:$0xff] %v9993_v32  ;;  %v9995_v33 = vpop.permute.xlu0 %2429 }
 0x16d   : > { %1006 = vrot.lane.b32.xlu1 %v9990_v31, %s9675_s18 }
 0x16e   : > { %2411 = vrot.lane.b32.xlu0 %v8742_v15, %s9674_s17 }
 0x16f   : > { %v10000_v35 = vpop.permute.xlu1 %2401 }
 0x170   : > { %v10002_v36 = vpop.permute.xlu0 %3905 }
 0x171   : > { %14618 = vst [vmem:[#allocation8_spill] sm:$0xff] %v10002_v36  ;;  %2451 = vrot.lane.b32.xlu1 %v8757_v34, %s9677_s20  ;;  %v8776_v36 = vld [vmem:[#allocation2 + $0x8] sm:$0xff]  }
 0x172   : > { %3919 = vrot.lane.b32.xlu0 %v8744_v13, %s9678_s23 }
 0x173   : > { %v10006_v37 = vpop.permute.xlu1 %3941 }
 0x174   : > { %14619 = vst [vmem:[#allocation9_spill] sm:$0xff] %v10006_v37  ;;  %v10010_v39 = vpop.permute.xlu0 %982 }
 0x175   : > { %3959 = vrot.lane.b32.xlu1 %v10008_v38, %s9676_s19 }
 0x176   : > { %3957 = vrot.lane.b32.xlu0 %v8759_v40, %s9676_s19 }
 0x177   : > { %v10015_v43 = vpop.permute.xlu1 %3907 }
 0x178   : > { %14620 = vst [vmem:[#allocation10_spill] sm:$0xff] %v10015_v43  ;;  %v10017_v44 = vpop.permute.xlu0 %2427 }
 0x179   : > { %2457 = vrot.lane.b32.xlu1 %v8760_v42, %s9677_s20 }
 0x17a   : > { %2415 = vrot.lane.b32.xlu0 %v8750_v23, %s9674_s17 }
 0x17b   : > { %v10021_v46 = vpop.permute.xlu1 %2405 }
 0x17c   : > { %14621 = vst [vmem:[#allocation11_spill] sm:$0xff] %v10021_v46  ;;  %v10023_v47 = vpop.permute.xlu0 %2395 }
 0x17d   : > { %2425 = vrot.lane.b32.xlu1 %v8760_v42, %s9674_s17 }
 0x17e   : > { %3923 = vrot.lane.b32.xlu0 %v8751_v24, %s9678_s23  ;;  %v8772_v24 = vld [vmem:[#allocation2 + $0x60] sm:$0xff]  }
 0x17f   : > { %v10029_v49 = vpop.permute.xlu1 %3945 }
 0x180   : > { %v10031_v50 = vpop.permute.xlu0 %3935 }
 0x181   : > { %14622 = vst [vmem:[#allocation12_spill] sm:$0xff] %v10031_v50  ;;  %1010 = vrot.lane.b32.xlu1 %v10026_v48, %s9675_s18 }
 0x182   : > { %3961 = vrot.lane.b32.xlu0 %v10033_v51, %s9676_s19 }
 0x183   : > { %v10039_v53 = vpop.permute.xlu1 %5453 }
 0x184   : > { %14623 = vst [vmem:[#allocation13_spill] sm:$0xff] %v10039_v53  ;;  %v10041_v54 = vpop.permute.xlu0 %3903 }
 0x185   : > { %14624 = vst [vmem:[#allocation14_spill] sm:$0xff] %v10041_v54  ;;  %2455 = vrot.lane.b32.xlu1 %v8763_v52, %s9677_s20 }
 0x186   : > { %5469 = vrot.lane.b32.xlu0 %v8764_v55, %s9679_s24 }
 0x187   : > { %v10047_v57 = vpop.permute.xlu1 %3911 }
 0x188   : > { %14625 = vst [vmem:[#allocation15_spill] sm:$0xff] %v10047_v57  ;;  %v10049_v59 = vpop.permute.xlu0 %988 }
 0x189   : > { %3963 = vrot.lane.b32.xlu1 %v10044_v56, %s9676_s19 }
 0x18a   : > { %2419 = vrot.lane.b32.xlu0 %v8757_v34, %s9674_s17 }
 0x18b   : > { %v10054_v60 = vpop.permute.xlu1 %2409 }
 0x18c   : > { %14626 = vst [vmem:[#allocation16_spill] sm:$0xff] %v10054_v60  ;;  %v10056_v63 = vpop.permute.xlu0 %2433 }
 0x18d   : > { %5451 = vrot.lane.b32.xlu1 %v8766_v58, %s9679_s24 }
 0x18e   : > { %1012 = vrot.lane.b32.xlu0 %v10058_v0, %s9675_s18  ;;  %s14203_s18 = scalar_lea.vmem %s14309_s6, %s7685_s7 }
 0x18f   : > { %v10063_v1 = vpop.permute.xlu1 %3949 }
 0x190   : > { %v10065_v2 = vpop.permute.xlu0 %3909 }
 0x191   : > { %14627 = vst [vmem:[#allocation17_spill] sm:$0xff] %v10065_v2  ;;  %1830 = vrot.lane.b32.xlu1 %v9961_v20, %s9680_s25 }
 0x192   : > { %3965 = vrot.lane.b32.xlu0 %v8768_v4, %s9676_s19  ;;  %v8774_v4 = vld [vmem:[#allocation2 + $0x58] sm:$0xff]  }
 0x193   : > { %v10070_v5 = vpop.permute.xlu1 %3917 }
 0x194   : > { %14628 = vst [vmem:[#allocation18_spill] sm:$0xff] %v10070_v5  ;;  %v10072_v62 = vpop.permute.xlu0 %986  ;;  %v8775_v5 = vld [vmem:[#allocation2 + $0x10] sm:$0xff]  }
 0x195   : > { %1826 = vrot.lane.b32.xlu1 %v9931_v11, %s9680_s25 }
 0x196   : > { %5473 = vrot.lane.b32.xlu0 %v8769_v6, %s9679_s24 }
 0x197   : > { %v10077_v7 = vpop.permute.xlu1 %5457 }
 0x198   : > { %14629 = vst [vmem:[#allocation19_spill] sm:$0xff] %v10077_v7  ;;  %v10079_v10 = vpop.permute.xlu0 %2431 }
 0x199   : > { %5463 = vrot.lane.b32.xlu1 %v8770_v8, %s9679_s24 }
 0x19a   : > { %2423 = vrot.lane.b32.xlu0 %v8763_v52, %s9674_s17  ;;  %v8773_v52 = vld [vmem:[#allocation2 + $0x18] sm:$0xff]  }
 0x19b   : > { %v10083_v12 = vpop.permute.xlu1 %994 }
 0x19c   : > { %v10085_v15 = vpop.permute.xlu0 %2399 }
 0x19d   : > { %1844 = vrot.lane.b32.xlu1 %v10026_v48, %s9680_s25 }
 0x19e   : > { %5471 = vrot.lane.b32.xlu0 %v8771_v16, %s9679_s24 }
 0x19f   : > { %v10090_v13 = vpop.permute.xlu1 %5455 }
 0x1a0   : > { %14630 = vst [vmem:[#allocation20_spill] sm:$0xff] %v10090_v13  ;;  %v10092_v19 = vpop.permute.xlu0 %3939 }
 0x1a1   : > { %14631 = vst [vmem:[#allocation21_spill] sm:$0xff] %v10092_v19  ;;  %1824 = vrot.lane.b32.xlu1 %v9945_v3, %s9680_s25 }
 0x1a2   : > { %3925 = vrot.lane.b32.xlu0 %v8759_v40, %s9678_s23 }
 0x1a3   : > { %v10097_v22 = vpop.permute.xlu1 %1000 }
 0x1a4   : > { %v10099_v23 = vpop.permute.xlu0 %992 }
 0x1a5   : > { %1822 = vrot.lane.b32.xlu1 %v9881_v41, %s9680_s25 }
 0x1a6   : > { %5467 = vrot.lane.b32.xlu0 %v8772_v24, %s9679_s24 }
 0x1a7   : > { %v10104_v25 = vpop.permute.xlu1 %2445 }
 0x1a8   : > { %v10106_v27 = vpop.permute.xlu0 %2437 }
 0x1a9   : > { %1836 = vrot.lane.b32.xlu1 %v9967_v21, %s9680_s25 }
 0x1aa   : > { %1846 = vrot.lane.b32.xlu0 %v10058_v0, %s9680_s25 }
 0x1ab   : > { %v10112_v28 = vpop.permute.xlu1 %2413 }
 0x1ac   : > { %14632 = vst [vmem:[#allocation22_spill] sm:$0xff] %v10112_v28  ;;  %v10114_v34 = vpop.permute.xlu0 %3913 }
 0x1ad   : > { %14633 = vst [vmem:[#allocation23_spill] sm:$0xff] %v10114_v34  ;;  %1818 = vrot.lane.b32.xlu1 %v9813_v45, %s9680_s25 }
 0x1ae   : > { %3927 = vrot.lane.b32.xlu0 %v10008_v38, %s9678_s23 }
 0x1af   : > { %v10120_v40 = vpop.permute.xlu1 %998 }
 0x1b0   : > { %v10122_v42 = vpop.permute.xlu0 %990 }
 0x1b2   : > { %5449 = vrot.lane.b32.xlu0 %v8773_v52, %s9679_s24 }
 0x1b3   : > { %v10125_v55 = vpop.permute.xlu1 %2443 }
 0x1b4   : > { %v10127_v58 = vpop.permute.xlu0 %2435 }
 0x1b6   : > { %5465 = vrot.lane.b32.xlu0 %v8774_v4, %s9679_s24 }
 0x1b7   : > { %v10130_v6 = vpop.permute.xlu1 %3951 }
 0x1b8   : > { %14634 = vst [vmem:[#allocation24_spill] sm:$0xff] %v10130_v6  ;;  %v10132_v45 = vpop.permute.xlu0 %2403 }
 0x1b9   : > { %14635 = vst [vmem:[#allocation25_spill] sm:$0xff] %v10132_v45 }
 0x1ba   : > { %1828 = vrot.lane.b32.xlu0 %v9919_v9, %s9680_s25 }
 0x1bb   : > { %v10136_v38 = vpop.permute.xlu1 %1004 }
 0x1bc   : > { %v10138_v8 = vpop.permute.xlu0 %3943 }
 0x1be   : > { %1842 = vrot.lane.b32.xlu0 %v9977_v26, %s9680_s25 }
 0x1bf   : > { %v10142_v16 = vpop.permute.xlu1 %2449 }
 0x1c0   : > { %v997_v24 = vpop.permute.xlu0 %996 }
 0x1c2   : > { %3929 = vrot.lane.b32.xlu0 %v10033_v51, %s9678_s23 }
 0x1c3   : > { %v10146_v52 = vpop.permute.xlu1 %2417 }
 0x1c4   : > { %14636 = vst [vmem:[#allocation26_spill] sm:$0xff] %v10146_v52  ;;  %v10148_v4 = vpop.permute.xlu0 %2441  ;;  %v8777_v52 = vld [vmem:[#allocation2 + $0x48] sm:$0xff]  }
 0x1c6   : > { %5447 = vrot.lane.b32.xlu0 %v8775_v5, %s9679_s24 }
 0x1c7   : > { %v10151_v34 = vpop.permute.xlu1 %1002 }
 0x1c8   : > { %v10153_v57 = vpop.permute.xlu0 %2439 }
 0x1ca   : > { %1840 = vrot.lane.b32.xlu0 %v9990_v31, %s9680_s25 }
 0x1cb   : > { %v10157_v2 = vpop.permute.xlu1 %2447 }
 0x1cc   : > { %v10159_v53 = vpop.permute.xlu0 %2407 }
 0x1cd   : > { %14637 = vst [vmem:[#allocation27_spill] sm:$0xff] %v10159_v53 }
 0x1ce   : > { %1838 = vrot.lane.b32.xlu0 %v9954_v17, %s9680_s25 }
 0x1cf   : > { %v10163_v51 = vpop.permute.xlu1 %3955 }
 0x1d0   : > { %14638 = vst [vmem:[#allocation28_spill] sm:$0xff] %v10163_v51  ;;  %v10165_v43 = vpop.permute.xlu0 %3947 }
 0x1d2   : > { %3931 = vrot.lane.b32.xlu0 %v10044_v56, %s9678_s23 }
 0x1d3   : > { %v1009_v5 = vpop.permute.xlu1 %1008 }
 0x1d4   : > { %v10169_v13 = vpop.permute.xlu0 %3915 }
 0x1d5   : > { %14639 = vst [vmem:[#allocation29_spill] sm:$0xff] %v10169_v13 }
 0x1d6   : > { %5445 = vrot.lane.b32.xlu0 %v8776_v36, %s9679_s24 }
 0x1d7   : > { %v10172_v7 = vpop.permute.xlu1 %2453 }
 0x1d8   : > { %v10174_v54 = vpop.permute.xlu0 %3953 }
 0x1d9   : > { %14640 = vst [vmem:[#allocation30_spill] sm:$0xff] %v10174_v54 }
 0x1da   : > { %5461 = vrot.lane.b32.xlu0 %v8777_v52, %s9679_s24 }
 0x1db   : > { %v10177_v28 = vpop.permute.xlu1 %2421 }
 0x1dc   : > { %14641 = vst [vmem:[#allocation31_spill] sm:$0xff] %v10177_v28  ;;  %v10179_v50 = vpop.permute.xlu0 %3921 }
 0x1dd   : > { %14642 = vst [vmem:[#allocation32_spill] sm:$0xff] %v10179_v50 }
 0x1de   : > { %1820 = vrot.lane.b32.xlu0 %v9906_v61, %s9680_s25 }
 0x1df   : > { %v1007_v56 = vpop.permute.xlu1 %1006 }
 0x1e0   : > { %v10183_v6 = vpop.permute.xlu0 %2411 }
 0x1e1   : > { %14643 = vst [vmem:[#allocation33_spill] sm:$0xff] %v10183_v6 }
 0x1e2   : > { %1834 = vrot.lane.b32.xlu0 %v9927_v18, %s9680_s25 }
 0x1e3   : > { %v10187_v36 = vpop.permute.xlu1 %2451 }
 0x1e4   : > { %v10189_v13 = vpop.permute.xlu0 %3919 }
 0x1e5   : > { %14644 = vst [vmem:[#allocation34_spill] sm:$0xff] %v10189_v13 }
 0x1e7   : > { %v10191_v60 = vpop.permute.xlu1 %3959 }
 0x1e8   : > { %v10193_v52 = vpop.permute.xlu0 %3957 }
 0x1e9   : > { %14645 = vst [vmem:[#allocation35_spill] sm:$0xff] %v10193_v52 }
 0x1eb   : > { %v2458_v28 = vpop.permute.xlu1 %2457 }
 0x1ec   : > { %v10195_v32 = vpop.permute.xlu0 %2415 }
 0x1ed   : > { %14646 = vst [vmem:[#allocation36_spill] sm:$0xff] %v10195_v32  ;;  %v1085_v32 = vsel %vm1014_vm2, %v997_v24, 0 }
 0x1ef   : > { %v10197_v50 = vpop.permute.xlu1 %2425 }
 0x1f0   : > { %14647 = vst [vmem:[#allocation37_spill] sm:$0xff] %v10197_v50  ;;  %v10199_v54 = vpop.permute.xlu0 %3923 }
 0x1f1   : > { %14648 = vst [vmem:[#allocation38_spill] sm:$0xff] %v10199_v54 }
 0x1f3   : > { %v1011_v53 = vpop.permute.xlu1 %1010 }
 0x1f4   : > { %v10201_v6 = vpop.permute.xlu0 %3961 }
 0x1f7   : > { %v10205_v51 = vpop.permute.xlu1 %2455 }
 0x1f8   : > { %v10203_v19 = vpop.permute.xlu0 %5469 }
 0x1f9   : > { %14649 = vst [vmem:[#allocation39_spill] sm:$0xff] %v10203_v19  ;;  %v1082_v19 = vsel %vm1014_vm2, %v10083_v12, 0 }
 0x1fb   : > { %v10209_v13 = vpop.permute.xlu1 %3963 }
 0x1fc   : > { %v10207_v46 = vpop.permute.xlu0 %2419 }
 0x1fd   : > { %14650 = vst [vmem:[#allocation40_spill] sm:$0xff] %v10207_v46 }
 0x1ff   : > { %v10216_v50 = vpop.permute.xlu1 %5451 }
 0x200   : > { %v1013_v37 = vpop.permute.xlu0 %1012  ;;  %14651 = vst [vmem:[#allocation41_spill] sm:$0xff] %v10216_v50 }
 0x201   : > { %8631 = vmatprep.subr.msk.bf16.mxu1 %vm1014_vm2, %v1013_v37 }
 0x202   : > { %7898 = vmatpush3.bf16.xpose.msra.mxu1 %v1085_v32  ;;  %v1079_v32 = vsel %vm1014_vm2, %v10099_v23, 0 }
 0x203   : > { %8632 = vmatprep.subr.msk.bf16.mxu1 %vm1014_vm2, %v1011_v53  ;;  %v1831_v46 = vpop.permute.xlu1 %1830 }
 0x204   : > { %v10214_v54 = vpop.permute.xlu0 %3965 }
 0x207   : > { %v1827_v53 = vpop.permute.xlu1 %1826 }
 0x208   : > { %v10218_v52 = vpop.permute.xlu0 %5473 }
 0x20a   : > { %7900 = vmatpush3.bf16.xpose.msra.mxu1 %v1082_v19  ;;  %v1076_v19 = vsel %vm1014_vm2, %v10122_v42, 0 }
 0x20b   : > { %8633 = vmatprep.subr.msk.bf16.mxu1 %vm1014_vm2, %v1009_v5  ;;  %v10232_v50 = vpop.permute.xlu1 %5463 }
 0x20c   : > { %v10223_v45 = vpop.permute.xlu0 %2423 }
 0x20f   : > { %v1845_v23 = vpop.permute.xlu1 %1844 }
 0x210   : > { %v10225_v37 = vpop.permute.xlu0 %5471 }
 0x212   : > { %7902 = vmatpush3.bf16.xpose.msra.mxu1 %v1079_v32 }
 0x213   : > { %8634 = vmatprep.subr.msk.bf16.mxu1 %vm1014_vm2, %v1007_v56  ;;  %v1073_v56 = vsel %vm1014_vm2, %v10049_v59, 0  ;;  %v1067_v59 = vsel %vm1014_vm2, %v9987_v30, 0 }
 0x214   : > { %v10230_v24 = vpop.permute.xlu0 %3925 }
 0x215   : > { %14652 = vst [vmem:[#allocation42_spill] sm:$0xff] %v10230_v24 }
 0x218   : > { %v10234_v12 = vpop.permute.xlu0 %5467 }
 0x21a   : > { %7904 = vmatpush3.bf16.xpose.msra.mxu1 %v1076_v19 }
 0x21b   : > { %8635 = vmatprep.subr.msk.bf16.mxu1 %vm1014_vm2, %v10136_v38  ;;  %v1070_v38 = vsel %vm1014_vm2, %v10072_v62, 0 }
 0x21c   : > { %v1847_v5 = vpop.permute.xlu0 %1846 }
 0x21d   : > { %7945 = vmatprep.subr.bf16.mxu0 %v1847_v5  ;;  %v1825_v5 = vpop.permute.xlu1 %1824 }
 0x21e   : > { %7946 = vmatpush3.bf16.msra.mxu0 %v1831_v46 }
 0x21f   : > { %7947 = vmatprep.subr.bf16.mxu0 %v1845_v23 }
 0x220   : > { %v10240_v32 = vpop.permute.xlu0 %3927 }
 0x221   : > { %v1823_v23 = vpop.permute.xlu1 %1822 }
 0x222   : > { %7906 = vmatpush3.bf16.xpose.msra.mxu1 %v1073_v56 }
 0x223   : > { %8636 = vmatprep.subr.msk.bf16.mxu1 %vm1014_vm2, %v10151_v34 }
 0x224   : > { %v10246_v24 = vpop.permute.xlu0 %5449 }
 0x228   : > { %v10248_v42 = vpop.permute.xlu0 %5465 }
 0x22a   : > { %7908 = vmatpush3.bf16.xpose.msra.mxu1 %v1070_v38  ;;  %v1837_v38 = vpop.permute.xlu1 %1836 }
 0x22b   : > { %8637 = vmatprep.subr.msk.bf16.mxu1 %vm1014_vm2, %v10097_v22  ;;  %v1064_v22 = vsel %vm1014_vm2, %v10010_v39, 0 }
 0x22c   : > { %v1829_v46 = vpop.permute.xlu0 %1828 }
 0x22d   : > { %7948 = vmatpush3.bf16.msra.mxu0 %v1829_v46  ;;  %v9567_v46 = vld [vmem:[#allocation2 + $0x8] sm:$0xff]  }
 0x230   : > { %v1843_v19 = vpop.permute.xlu0 %1842 }
 0x231   : > { %7949 = vmatprep.subr.bf16.mxu0 %v1843_v19  ;;  %v2526_v19 = vsel %vm1014_vm2, %v10153_v57, 0 }
 0x232   : > { %7910 = vmatpush3.bf16.xpose.msra.mxu1 %v1067_v59  ;;  %7950 = vmatpush3.bf16.msra.mxu0 %v1827_v53  ;;  %v10265_v53 = vld [vmem:[#allocation2] sm:$0xff]  }
 0x233   : > { %8638 = vmatprep.subr.msk.bf16.mxu1 %vm1014_vm2, %v10120_v40  ;;  %v2529_v40 = vsel %vm1014_vm2, %v10148_v4, 0 }
 0x234   : > { %v10258_v34 = vpop.permute.xlu0 %3929 }
 0x238   : > { %v10260_v62 = vpop.permute.xlu0 %5447 }
 0x23a   : > { %7912 = vmatpush3.bf16.xpose.msra.mxu1 %v1064_v22 }
 0x23b   : > { %8639 = vmatprep.subr.msk.bf16.mxu1 %vm1014_vm2, %v2458_v28 }
 0x23c   : > { %v1841_v56 = vpop.permute.xlu0 %1840 }
 0x23d   : > { %7951 = vmatprep.subr.bf16.mxu0 %v1841_v56 }
 0x23e   : > { %7952 = vmatpush3.bf16.msra.mxu0 %v1825_v5  ;;  %v1819_v5 = vpop.permute.xlu1 %1818 }
 0x240   : > { %v1839_v30 = vpop.permute.xlu0 %1838 }
 0x241   : > { %7914 = vmatmul.mubr.msk.bf16.vlgmr.msra.gmra.mxu1 %vm1014_vm2, %v10265_v53  ;;  %7953 = vmatprep.subr.bf16.mxu0 %v1839_v30 }
 0x242   : > { %7915 = vmatprep.mubr.msk.bf16.mxu1 %vm1014_vm2, %v9567_v46  ;;  %7954 = vmatpush3.bf16.msra.mxu0 %v1823_v23 }
 0x243   : > { %8058 = vmatpush3.bf16.xpose.msra.mxu1 %v2529_v40  ;;  %7955 = vmatprep.subr.bf16.mxu0 %v1837_v38 }
 0x244   : > { %8640 = vmatprep.subr.msk.bf16.mxu1 %vm1014_vm2, %v10205_v51  ;;  %v10274_v39 = vpop.permute.xlu0 %3931  ;;  %v2523_v51 = vsel %vm1014_vm2, %v10106_v27, 0  ;;  %v14666_v27 = vld [vmem:[#allocation22_spill] sm:$0xff] }
 0x248   : > { %v10276_v28 = vpop.permute.xlu0 %5445 }
 0x249   : > { %7916 = vmatmul.mubr.msk.bf16.gmra.mxu1 %vm1014_vm2, %v9567_v46 }
 0x24a   : > { %7917 = vmatprep.mubr.msk.bf16.mxu1 %vm1014_vm2, %v9906_v61 }
 0x24b   : > { %8060 = vmatpush3.bf16.xpose.msra.mxu1 %v2526_v19  ;;  %v809_v19 = vld [vmem:[#allocation4 + $0x18] sm:$0xff] }
 0x24c   : > { %8641 = vmatprep.subr.msk.bf16.mxu1 %vm1014_vm2, %v10172_v7  ;;  %v10285_v4 = vpop.permute.xlu0 %5461  ;;  %v2517_v7 = vsel %vm1014_vm2, %v10056_v63, 0  ;;  %v14664_v63 = vld [vmem:[#allocation12_spill] sm:$0xff] }
 0x250   : > { %v1821_v59 = vpop.permute.xlu0 %1820 }
 0x251   : > { %7918 = vmatmul.mubr.msk.bf16.gmra.mxu1 %vm1014_vm2, %v9906_v61  ;;  %7956 = vmatpush3.bf16.msra.mxu0 %v1821_v59  ;;  %v2520_v61 = vsel %vm1014_vm2, %v10127_v58, 0 }
 0x252   : > { %7919 = vmatprep.mubr.msk.bf16.mxu1 %vm1014_vm2, %v9881_v41 }
 0x253   : > { %8062 = vmatpush3.bf16.xpose.msra.mxu1 %v2523_v51  ;;  %v14667_v51 = vld [vmem:[#allocation36_spill] sm:$0xff] }
 0x254   : > { %8642 = vmatprep.subr.msk.bf16.mxu1 %vm1014_vm2, %v10187_v36  ;;  %v1835_v57 = vpop.permute.xlu0 %1834 }
 0x255   : > { %7957 = vmatprep.subr.bf16.mxu0 %v1835_v57 }
 0x256   : > { %7958 = vmatpush3.bf16.msra.mxu0 %v1819_v5 }
 0x259   : > { %7920 = vmatmul.mubr.msk.bf16.gmra.mxu1 %vm1014_vm2, %v9881_v41  ;;  %v2514_v41 = vsel %vm1014_vm2, %v10079_v10, 0 }
 0x25a   : > { %7921 = vmatprep.mubr.msk.bf16.mxu1 %vm1014_vm2, %v9945_v3 }
 0x25b   : > { %8064 = vmatpush3.bf16.xpose.msra.mxu1 %v2520_v61 }
 0x25c   : > { %8643 = vmatprep.subr.msk.bf16.mxu1 %vm1014_vm2, %v10142_v16 }
 0x261   : > { %7922 = vmatmul.mubr.msk.bf16.gmra.mxu1 %vm1014_vm2, %v9945_v3  ;;  %v2511_v3 = vsel %vm1014_vm2, %v9995_v33, 0  ;;  %v14657_v33 = vld [vmem:[#allocation28_spill] sm:$0xff] }
 0x262   : > { %7923 = vmatprep.mubr.msk.bf16.mxu1 %vm1014_vm2, %v9931_v11 }
 0x263   : > { %8066 = vmatpush3.bf16.xpose.msra.mxu1 %v2517_v7  ;;  %v844_v7 = vunpack.c.l.bf16 %v809_v19 }
 0x264   : > { %8644 = vmatprep.subr.msk.bf16.mxu1 %vm1014_vm2, %v10157_v2  ;;  %v806_v2 = vld [vmem:[#allocation4] sm:$0xff] }
 0x265   : > { %v838_v10 = vunpack.c.l.bf16 %v806_v2 }
 0x269   : > { %7924 = vmatmul.mubr.msk.bf16.gmra.mxu1 %vm1014_vm2, %v9931_v11  ;;  %v2508_v11 = vsel %vm1014_vm2, %v10017_v44, 0  ;;  %v14659_v44 = vld [vmem:[#allocation27_spill] sm:$0xff] }
 0x26a   : > { %7925 = vmatprep.mubr.msk.bf16.mxu1 %vm1014_vm2, %v9919_v9 }
 0x26b   : > { %8068 = vmatpush3.bf16.xpose.msra.mxu1 %v2514_v41  ;;  %v845_v41 = vunpack.c.h.bf16 %v809_v19 }
 0x26c   : > { %8645 = vmatprep.subr.msk.bf16.mxu1 %vm1014_vm2, %v10104_v25  ;;  %v807_v25 = vld [vmem:[#allocation4 + $0x8] sm:$0xff] }
 0x26d   : > { %v841_v16 = vunpack.c.h.bf16 %v807_v25 }
 0x271   : > { %7926 = vmatmul.mubr.msk.bf16.gmra.mxu1 %vm1014_vm2, %v9919_v9  ;;  %v4037_v9 = vsel %vm1014_vm2, %v10063_v1, 0  ;;  %v14665_v1 = vld [vmem:[#allocation33_spill] sm:$0xff] }
 0x272   : > { %7927 = vmatprep.mubr.msk.bf16.mxu1 %vm1014_vm2, %v9961_v20 }
 0x273   : > { %8070 = vmatpush3.bf16.xpose.msra.mxu1 %v2511_v3 }
 0x274   : > { %8646 = vmatprep.subr.msk.bf16.mxu1 %vm1014_vm2, %v10125_v55 }
 0x279   : > { %7928 = vmatmul.mubr.msk.bf16.gmra.mxu1 %vm1014_vm2, %v9961_v20  ;;  %v14653_v20 = vld [vmem:[#allocation25_spill] sm:$0xff] }
 0x27a   : > { %7929 = vmatprep.mubr.msk.bf16.mxu1 %vm1014_vm2, %v9941_v14 }
 0x27b   : > { %8072 = vmatpush3.bf16.xpose.msra.mxu1 %v2508_v11  ;;  %v810_v11 = vld [vmem:[#allocation4 + $0x20] sm:$0xff] }
 0x27c   : > { %8647 = vmatprep.subr.msk.bf16.mxu1 %vm1014_vm2, %v10214_v54  ;;  %v14662_v54 = vld [vmem:[#allocation16_spill] sm:$0xff] }
 0x281   : > { %7930 = vmatmul.mubr.msk.bf16.gmra.mxu1 %vm1014_vm2, %v9941_v14  ;;  %v4031_v14 = vsel %vm1014_vm2, %v10029_v49, 0 }
 0x282   : > { %7931 = vmatprep.mubr.msk.bf16.mxu1 %vm1014_vm2, %v9927_v18 }
 0x289   : > { %7932 = vmatmul.mubr.msk.bf16.gmra.mxu1 %vm1014_vm2, %v9927_v18  ;;  %v4034_v18 = vsel %vm1014_vm2, %v10165_v43, 0 }
 0x28a   : > { %7933 = vmatprep.mubr.msk.bf16.mxu1 %vm1014_vm2, %v9967_v21 }
 0x291   : > { %7934 = vmatmul.mubr.msk.bf16.gmra.mxu1 %vm1014_vm2, %v9967_v21  ;;  %v14654_v21 = vld [vmem:[#allocation35_spill] sm:$0xff] }
 0x292   : > { %7935 = vmatprep.mubr.msk.bf16.mxu1 %vm1014_vm2, %v9954_v17 }
 0x299   : > { %7936 = vmatmul.mubr.msk.bf16.gmra.mxu1 %vm1014_vm2, %v9954_v17  ;;  %v4028_v17 = vsel %vm1014_vm2, %v10138_v8, 0  ;;  %v840_v8 = vunpack.c.l.bf16 %v807_v25 }
 0x29a   : > { %7937 = vmatprep.mubr.msk.bf16.mxu1 %vm1014_vm2, %v9990_v31 }
 0x2a1   : > { %7938 = vmatmul.mubr.msk.bf16.gmra.mxu1 %vm1014_vm2, %v9990_v31  ;;  %v14656_v31 = vld [vmem:[#allocation11_spill] sm:$0xff] }
 0x2a2   : > { %7939 = vmatprep.mubr.msk.bf16.mxu1 %vm1014_vm2, %v9977_v26 }
 0x2a9   : > { %7940 = vmatmul.mubr.msk.bf16.gmra.mxu1 %vm1014_vm2, %v9977_v26  ;;  %v14655_v26 = vld [vmem:[#allocation9_spill] sm:$0xff] }
 0x2aa   : > { %7941 = vmatprep.mubr.msk.bf16.mxu1 %vm1014_vm2, %v10026_v48 }
 0x2b1   : > { %7942 = vmatmul.mubr.msk.bf16.gmra.mxu1 %vm1014_vm2, %v10026_v48  ;;  %v14661_v48 = vld [vmem:[#allocation7_spill] sm:$0xff] }
 0x2b2   : > { %7943 = vmatprep.mubr.msk.bf16.mxu1 %vm1014_vm2, %v10058_v0  ;;  %v4019_v49 = vsel %vm1014_vm2, %v14661_v48, 0 }
 0x2b9   : > { %7944 = vmatmul.mubr.msk.bf16.gmra.mxu1 %vm1014_vm2, %v10058_v0  ;;  %v4016_v0 = vsel %vm1014_vm2, %v14664_v63, 0 }
 0x2ba   : > { %8073 = vmatprep.mubr.msk.bf16.mxu1 %vm1014_vm2, %v10023_v47 }
 0x2c1   : > { %8074 = vmatmul.mubr.msk.bf16.vlgmr.msra.gmra.mxu1 %vm1014_vm2, %v10023_v47  ;;  %v14660_v47 = vld [vmem:[#allocation30_spill] sm:$0xff] }
 0x2c2   : > { %8218 = vmatpush3.bf16.xpose.msra.mxu1 %v4037_v9  ;;  %8075 = vmatprep.mubr.msk.bf16.mxu1 %vm1014_vm2, %v9985_v29 }
 0x2c3   : > { %8648 = vmatprep.subr.msk.bf16.mxu1 %vm1014_vm2, %v10209_v13 }
 0x2c9   : > { %8076 = vmatmul.mubr.msk.bf16.gmra.mxu1 %vm1014_vm2, %v9985_v29  ;;  %v4025_v29 = vsel %vm1014_vm2, %v14655_v26, 0 }
 0x2ca   : > { %8220 = vmatpush3.bf16.xpose.msra.mxu1 %v4034_v18  ;;  %8077 = vmatprep.mubr.msk.bf16.mxu1 %vm1014_vm2, %v10085_v15 }
 0x2cb   : > { %8649 = vmatprep.subr.msk.bf16.mxu1 %vm1014_vm2, %v10201_v6 }
 0x2d1   : > { %8078 = vmatmul.mubr.msk.bf16.gmra.mxu1 %vm1014_vm2, %v10085_v15  ;;  %v839_v15 = vunpack.c.h.bf16 %v806_v2 }
 0x2d2   : > { %8222 = vmatpush3.bf16.xpose.msra.mxu1 %v4031_v14  ;;  %8079 = vmatprep.mubr.msk.bf16.mxu1 %vm1014_vm2, %v10000_v35 }
 0x2d3   : > { %8650 = vmatprep.subr.msk.bf16.mxu1 %vm1014_vm2, %v10191_v60  ;;  %v14663_v60 = vld [vmem:[#allocation24_spill] sm:$0xff] }
 0x2d9   : > { %8080 = vmatmul.mubr.msk.bf16.gmra.mxu1 %vm1014_vm2, %v10000_v35  ;;  %v14658_v35 = vld [vmem:[#allocation21_spill] sm:$0xff] }
 0x2da   : > { %8224 = vmatpush3.bf16.xpose.msra.mxu1 %v4028_v17  ;;  %8081 = vmatprep.mubr.msk.bf16.mxu1 %vm1014_vm2, %v14653_v20  ;;  %v4022_v43 = vsel %vm1014_vm2, %v14658_v35, 0 }
 0x2db   : > { %8651 = vmatprep.subr.msk.bf16.mxu1 %vm1014_vm2, %v14654_v21  ;;  %v847_v21 = vunpack.c.h.bf16 %v810_v11 }
 0x2e1   : > { %8082 = vmatmul.mubr.msk.bf16.gmra.mxu1 %vm1014_vm2, %v14653_v20  ;;  %v846_v20 = vunpack.c.l.bf16 %v810_v11 }
 0x2e2   : > { %8226 = vmatpush3.bf16.xpose.msra.mxu1 %v4025_v29  ;;  %8083 = vmatprep.mubr.msk.bf16.mxu1 %vm1014_vm2, %v14656_v31  ;;  %v811_v29 = vld [vmem:[#allocation4 + $0x28] sm:$0xff] }
 0x2e3   : > { %8652 = vmatprep.subr.msk.bf16.mxu1 %vm1014_vm2, %v14657_v33  ;;  %v14668_v33 = vld [vmem:[#allocation26_spill] sm:$0xff]  ;;  %v849_v48 = vunpack.c.h.bf16 %v811_v29 }
 0x2e9   : > { %8084 = vmatmul.mubr.msk.bf16.gmra.mxu1 %vm1014_vm2, %v14656_v31 }
 0x2ea   : > { %8228 = vmatpush3.bf16.xpose.msra.mxu1 %v4022_v43  ;;  %8085 = vmatprep.mubr.msk.bf16.mxu1 %vm1014_vm2, %v14659_v44 }
 0x2eb   : > { %8653 = vmatprep.subr.msk.bf16.mxu1 %vm1014_vm2, %v14660_v47  ;;  %v848_v47 = vunpack.c.l.bf16 %v811_v29  ;;  %v816_v29 = vld [vmem:[#allocation4 + $0x50] sm:$0xff] }
 0x2f1   : > { %8086 = vmatmul.mubr.msk.bf16.gmra.mxu1 %vm1014_vm2, %v14659_v44 }
 0x2f2   : > { %8230 = vmatpush3.bf16.xpose.msra.mxu1 %v4019_v49  ;;  %8087 = vmatprep.mubr.msk.bf16.mxu1 %vm1014_vm2, %v14662_v54 }
 0x2f3   : > { %8654 = vmatprep.subr.msk.bf16.mxu1 %vm1014_vm2, %v14663_v60 }
 0x2f9   : > { %8088 = vmatmul.mubr.msk.bf16.gmra.mxu1 %vm1014_vm2, %v14662_v54  ;;  %v812_v54 = vld [vmem:[#allocation4 + $0x30] sm:$0xff] }
 0x2fa   : > { %8232 = vmatpush3.bf16.xpose.msra.mxu1 %v4016_v0  ;;  %8089 = vmatprep.mubr.msk.bf16.mxu1 %vm1014_vm2, %v14665_v1  ;;  %v850_v2 = vunpack.c.l.bf16 %v812_v54 }
 0x2fb   : > { %8655 = vmatprep.subr.msk.bf16.mxu1 %vm1014_vm2, %v10218_v52  ;;  %v808_v52 = vld [vmem:[#allocation4 + $0x10] sm:$0xff] }
 0x2fc   : > { %v842_v40 = vunpack.c.l.bf16 %v808_v52  ;;  %v843_v38 = vunpack.c.h.bf16 %v808_v52 }
 0x301   : > { %v1145_v13 = vpop.f32.mrf.mxu1  ;;  %8090 = vmatmul.mubr.msk.bf16.gmra.mxu1 %vm1014_vm2, %v14665_v1 }
 0x302   : > { %8091 = vmatprep.mubr.msk.bf16.mxu1 %vm1014_vm2, %v14666_v27  ;;  %v10435_v58 = vadd.f32 %v1145_v13, %v838_v10  ;;  %v851_v10 = vunpack.c.h.bf16 %v812_v54  ;;  %v813_v13 = vld [vmem:[#allocation4 + $0x38] sm:$0xff] }
 0x303   : > { %v1147_v55 = vpop.f32.mrf.mxu1  ;;  %v853_v52 = vunpack.c.h.bf16 %v813_v13 }
 0x304   : > { %v10437_v6 = vadd.f32 %v1147_v55, %v839_v15 }
 0x305   : > { %v1149_v36 = vpop.f32.mrf.mxu1 }
 0x306   : > { %v1304_v22 = vmax.f32 %v10435_v58, %v10437_v6  ;;  %v10441_v56 = vadd.f32 %v1149_v36, %v840_v8  ;;  %v852_v36 = vunpack.c.l.bf16 %v813_v13 }
 0x307   : > { %v1151_v23 = vpop.f32.mrf.mxu1 }
 0x308   : > { %v10443_v30 = vadd.f32 %v1151_v23, %v841_v16  ;;  %1305 = vmax.xlane.f32.xlu1 %v1304_v22  ;;  %v814_v23 = vld [vmem:[#allocation4 + $0x40] sm:$0xff] }
 0x309   : > { %v1155_v46 = vpop.f32.mrf.mxu1  ;;  %8092 = vmatmul.mubr.msk.bf16.gmra.mxu1 %vm1014_vm2, %v14666_v27  ;;  %v14669_v27 = vld [vmem:[#allocation40_spill] sm:$0xff] }
 0x30a   : > { %v1307_v59 = vmax.f32 %v10441_v56, %v10443_v30  ;;  %8093 = vmatprep.mubr.msk.bf16.mxu1 %vm1014_vm2, %v14667_v51  ;;  %v10451_v5 = vadd.f32 %v1155_v46, %v842_v40 }
 0x30b   : > { %v1157_v57 = vpop.f32.mrf.mxu1 }
 0x30c   : > { %v10453_v61 = vadd.f32 %v1157_v57, %v843_v38  ;;  %1308 = vmax.xlane.f32.xlu0 %v1307_v59  ;;  %v854_v59 = vunpack.c.l.bf16 %v814_v23 }
 0x30d   : > { %v1159_v3 = vpop.f32.mrf.mxu1 }
 0x30e   : > { %v1310_v9 = vmax.f32 %v10451_v5, %v10453_v61  ;;  %v10457_v14 = vadd.f32 %v1159_v3, %v844_v7  ;;  %v815_v7 = vld [vmem:[#allocation4 + $0x48] sm:$0xff]  ;;  %v14670_v3 = vld [vmem:[#allocation31_spill] sm:$0xff] }
 0x30f   : > { %v1161_v18 = vpop.f32.mrf.mxu1 }
 0x310   : > { %v10459_v17 = vadd.f32 %v1161_v18, %v845_v41  ;;  %1311 = vmax.xlane.f32.xlu1 %v1310_v9 }
 0x311   : > { %v1165_v26 = vpop.f32.mrf.mxu1  ;;  %8094 = vmatmul.mubr.msk.bf16.gmra.mxu1 %vm1014_vm2, %v14667_v51  ;;  %v855_v51 = vunpack.c.h.bf16 %v814_v23 }
 0x312   : > { %v1313_v31 = vmax.f32 %v10457_v14, %v10459_v17  ;;  %8095 = vmatprep.mubr.msk.bf16.mxu1 %vm1014_vm2, %v14668_v33  ;;  %v10467_v43 = vadd.f32 %v1165_v26, %v846_v20  ;;  %v856_v20 = vunpack.c.l.bf16 %v815_v7 }
 0x313   : > { %v1167_v35 = vpop.f32.mrf.mxu1 }
 0x314   : > { %v10469_v44 = vadd.f32 %v1167_v35, %v847_v21  ;;  %1314 = vmax.xlane.f32.xlu1 %v1313_v31  ;;  %v857_v21 = vunpack.c.h.bf16 %v815_v7  ;;  %v14671_v7 = vld [vmem:[#allocation37_spill] sm:$0xff] }
 0x315   : > { %v1169_v49 = vpop.f32.mrf.mxu1 }
 0x316   : > { %v1316_v60 = vmax.f32 %v10467_v43, %v10469_v44  ;;  %v10473_v0 = vadd.f32 %v1169_v49, %v848_v47  ;;  %v859_v49 = vunpack.c.h.bf16 %v816_v29 }
 0x317   : > { %v1171_v63 = vpop.f32.mrf.mxu1 }
 0x318   : > { %v10475_v1 = vadd.f32 %v1171_v63, %v849_v48  ;;  %1317 = vmax.xlane.f32.xlu0 %v1316_v60  ;;  %v858_v48 = vunpack.c.l.bf16 %v816_v29  ;;  %v817_v60 = vld [vmem:[#allocation4 + $0x58] sm:$0xff]  ;;  %v820_v29 = vld [vmem:[#allocation4 + $0x70] sm:$0xff] }
 0x319   : > { %v1175_v15 = vpop.f32.mrf.mxu1  ;;  %8096 = vmatmul.mubr.msk.bf16.gmra.mxu1 %vm1014_vm2, %v14668_v33  ;;  %v860_v13 = vunpack.c.l.bf16 %v817_v60 }
 0x31a   : > { %v1319_v25 = vmax.f32 %v10473_v0, %v10475_v1  ;;  %8097 = vmatprep.mubr.msk.bf16.mxu1 %vm1014_vm2, %v14669_v27  ;;  %v10483_v8 = vadd.f32 %v1175_v15, %v850_v2 }
 0x31b   : > { %v1177_v55 = vpop.f32.mrf.mxu1 }
 0x31c   : > { %v10485_v16 = vadd.f32 %v1177_v55, %v851_v10  ;;  %1320 = vmax.xlane.f32.xlu1 %v1319_v25  ;;  %v861_v25 = vunpack.c.h.bf16 %v817_v60  ;;  %v818_v55 = vld [vmem:[#allocation4 + $0x60] sm:$0xff] }
 0x31d   : > { %v1179_v22 = vpop.f32.mrf.mxu1 }
 0x31e   : > { %v1322_v40 = vmax.f32 %v10483_v8, %v10485_v16  ;;  %v10489_v46 = vadd.f32 %v1179_v22, %v852_v36 }
 0x31f   : > { %v1181_v38 = vpop.f32.mrf.mxu1 }
 0x320   : > { %v10491_v19 = vadd.f32 %v1181_v38, %v853_v52  ;;  %1323 = vmax.xlane.f32.xlu1 %v1322_v40  ;;  %v862_v40 = vunpack.c.l.bf16 %v818_v55  ;;  %v863_v38 = vunpack.c.h.bf16 %v818_v55 }
 0x321   : > { %v1185_v57 = vpop.f32.mrf.mxu1  ;;  %8098 = vmatmul.mubr.msk.bf16.gmra.mxu1 %vm1014_vm2, %v14669_v27 }
 0x322   : > { %v1325_v41 = vmax.f32 %v10489_v46, %v10491_v19  ;;  %8099 = vmatprep.mubr.msk.bf16.mxu1 %vm1014_vm2, %v14670_v3  ;;  %v10499_v9 = vadd.f32 %v1185_v57, %v854_v59 }
 0x323   : > { %v1187_v11 = vpop.f32.mrf.mxu1 }
 0x324   : > { %v10501_v18 = vadd.f32 %v1187_v11, %v855_v51  ;;  %1326 = vmax.xlane.f32.xlu1 %v1325_v41  ;;  %v819_v51 = vld [vmem:[#allocation4 + $0x68] sm:$0xff] }
 0x325   : > { %v1189_v26 = vpop.f32.mrf.mxu1 }
 0x326   : > { %v1328_v31 = vmax.f32 %v10499_v9, %v10501_v18  ;;  %v10505_v35 = vadd.f32 %v1189_v26, %v856_v20  ;;  %v864_v20 = vunpack.c.l.bf16 %v819_v51 }
 0x327   : > { %v1191_v33 = vpop.f32.mrf.mxu1 }
 0x328   : > { %v10507_v47 = vadd.f32 %v1191_v33, %v857_v21  ;;  %1329 = vmax.xlane.f32.xlu0 %v1328_v31  ;;  %v865_v21 = vunpack.c.h.bf16 %v819_v51 }
 0x329   : > { %v1195_v54 = vpop.f32.mrf.mxu1  ;;  %8100 = vmatmul.mubr.msk.bf16.gmra.mxu1 %vm1014_vm2, %v14670_v3 }
 0x32a   : > { %v1331_v63 = vmax.f32 %v10505_v35, %v10507_v47  ;;  %8101 = vmatprep.mubr.msk.bf16.mxu1 %vm1014_vm2, %v10223_v45  ;;  %v10515_v10 = vadd.f32 %v1195_v54, %v858_v48  ;;  %v867_v54 = vunpack.c.h.bf16 %v820_v29 }
 0x32b   : > { %v1197_v2 = vpop.f32.mrf.mxu1 }
 0x32c   : > { %v10517_v15 = vadd.f32 %v1197_v2, %v859_v49  ;;  %1332 = vmax.xlane.f32.xlu1 %v1331_v63  ;;  %v866_v49 = vunpack.c.l.bf16 %v820_v29  ;;  %v821_v63 = vld [vmem:[#allocation4 + $0x78] sm:$0xff] }
 0x32d   : > { %v1199_v27 = vpop.f32.mrf.mxu1 }
 0x32e   : > { %v1334_v36 = vmax.f32 %v10515_v10, %v10517_v15  ;;  %v10521_v22 = vadd.f32 %v1199_v27, %v860_v13  ;;  %v14672_v13 = vld [vmem:[#allocation14_spill] sm:$0xff] }
 0x32f   : > { %v1201_v52 = vpop.f32.mrf.mxu1 }
 0x330   : > { %v10523_v23 = vadd.f32 %v1201_v52, %v861_v25  ;;  %1335 = vmax.xlane.f32.xlu1 %v1334_v36  ;;  %v868_v36 = vunpack.c.l.bf16 %v821_v63  ;;  %v869_v52 = vunpack.c.h.bf16 %v821_v63 }
 0x331   : > { %v1205_v59 = vpop.f32.mrf.mxu1  ;;  %8102 = vmatmul.mubr.msk.bf16.gmra.mxu1 %vm1014_vm2, %v10223_v45 }
 0x332   : > { %v1337_v57 = vmax.f32 %v10521_v22, %v10523_v23  ;;  %8103 = vmatprep.mubr.msk.bf16.mxu1 %vm1014_vm2, %v14671_v7  ;;  %v10531_v3 = vadd.f32 %v1205_v59, %v862_v40 }
 0x333   : > { %v1207_v41 = vpop.f32.mrf.mxu1 }
 0x334   : > { %v10533_v11 = vadd.f32 %v1207_v41, %v863_v38  ;;  %1338 = vmax.xlane.f32.xlu1 %v1337_v57  ;;  %v822_v38 = vld [vmem:[#allocation4 + $0x80] sm:$0xff] }
 0x335   : > { %v1209_v26 = vpop.f32.mrf.mxu1  ;;  %v870_v41 = vunpack.c.l.bf16 %v822_v38 }
 0x336   : > { %v1340_v45 = vmax.f32 %v10531_v3, %v10533_v11  ;;  %v10537_v33 = vadd.f32 %v1209_v26, %v864_v20  ;;  %v871_v20 = vunpack.c.h.bf16 %v822_v38 }
 0x337   : > { %v1211_v31 = vpop.f32.mrf.mxu1 }
 0x338   : > { %v10539_v48 = vadd.f32 %v1211_v31, %v865_v21  ;;  %1341 = vmax.xlane.f32.xlu1 %v1340_v45  ;;  %v14675_v21 = vld [vmem:[#allocation19_spill] sm:$0xff]  ;;  %v823_v45 = vld [vmem:[#allocation4 + $0x88] sm:$0xff] }
 0x339   : > { %v1215_v60 = vpop.f32.mrf.mxu1  ;;  %8104 = vmatmul.mubr.msk.bf16.gmra.mxu1 %vm1014_vm2, %v14671_v7  ;;  %v5545_v26 = vsel %vm1014_vm2, %v14675_v21, 0 }
 0x33a   : > { %v1343_v2 = vmax.f32 %v10537_v33, %v10539_v48  ;;  %8233 = vmatprep.mubr.msk.bf16.mxu1 %vm1014_vm2, %v14672_v13  ;;  %v10547_v27 = vadd.f32 %v1215_v60, %v866_v49  ;;  %v14676_v49 = vld [vmem:[#allocation8_spill] sm:$0xff] }
 0x33b   : > { %v1217_v25 = vpop.f32.mrf.mxu1 }
 0x33c   : > { %v10549_v55 = vadd.f32 %v1217_v25, %v867_v54  ;;  %1344 = vmax.xlane.f32.xlu0 %v1343_v2  ;;  %v872_v2 = vunpack.c.l.bf16 %v823_v45  ;;  %v873_v25 = vunpack.c.h.bf16 %v823_v45  ;;  %v14682_v45 = vld [vmem:[#allocation10_spill] sm:$0xff] }
 0x33d   : > { %v1219_v40 = vpop.f32.mrf.mxu1 }
 0x33e   : > { %v1346_v59 = vmax.f32 %v10547_v27, %v10549_v55  ;;  %v10553_v57 = vadd.f32 %v1219_v40, %v868_v36  ;;  %v824_v36 = vld [vmem:[#allocation4 + $0x90] sm:$0xff] }
 0x33f   : > { %v1221_v51 = vpop.f32.mrf.mxu1 }
 0x340   : > { %14673 = vst [vmem:[#allocation25_spill] sm:$0xff] %v10553_v57  ;;  %v10555_v7 = vadd.f32 %v1221_v51, %v869_v52  ;;  %1347 = vmax.xlane.f32.xlu1 %v1346_v59  ;;  %v875_v51 = vunpack.c.h.bf16 %v824_v36 }
 0x341   : > { %v1225_v29 = vpop.f32.mrf.mxu1  ;;  %8234 = vmatmul.mubr.msk.bf16.vlgmr.msra.gmra.mxu1 %vm1014_vm2, %v14672_v13 }
 0x342   : > { %14674 = vst [vmem:[#allocation35_spill] sm:$0xff] %v10555_v7  ;;  %v1349_v31 = vmax.f32 %v10553_v57, %v10555_v7  ;;  %8378 = vmatpush3.bf16.xpose.msra.mxu1 %v5545_v26  ;;  %8235 = vmatprep.mubr.msk.bf16.mxu1 %vm1014_vm2, %v14676_v49  ;;  %v10567_v60 = vadd.f32 %v1225_v29, %v870_v41  ;;  %v14681_v41 = vld [vmem:[#allocation20_spill] sm:$0xff]  ;;  %v825_v26 = vld [vmem:[#allocation4 + $0x98] sm:$0xff] }
 0x343   : > { %8656 = vmatprep.subr.msk.bf16.mxu1 %vm1014_vm2, %v10225_v37  ;;  %v1227_v54 = vpop.f32.mrf.mxu1  ;;  %v874_v37 = vunpack.c.l.bf16 %v824_v36  ;;  %v877_v36 = vunpack.c.h.bf16 %v825_v26  ;;  %v2220_v57 = vld [vmem:[#allocation4 + $0x108] sm:$0xff] }
 0x344   : > { %14677 = vst [vmem:[#allocation9_spill] sm:$0xff] %v10567_v60  ;;  %v10569_v63 = vadd.f32 %v1227_v54, %v871_v20  ;;  %1350 = vmax.xlane.f32.xlu0 %v1349_v31  ;;  %v5542_v20 = vsel %vm1014_vm2, %v14681_v41, 0  ;;  %v14683_v31 = vld [vmem:[#allocation39_spill] sm:$0xff] }
 0x345   : > { %v1229_v13 = vpop.f32.mrf.mxu1 }
 0x346   : > { %14678 = vst [vmem:[#allocation11_spill] sm:$0xff] %v10569_v63  ;;  %v1352_v52 = vmax.f32 %v10567_v60, %v10569_v63  ;;  %v10573_v38 = vadd.f32 %v1229_v13, %v872_v2  ;;  %v876_v13 = vunpack.c.l.bf16 %v825_v26  ;;  %v827_v26 = vld [vmem:[#allocation4 + $0xa8] sm:$0xff] }
 0x347   : > { %v1231_v40 = vpop.f32.mrf.mxu1 }
 0x348   : > { %14679 = vst [vmem:[#allocation28_spill] sm:$0xff] %v10573_v38  ;;  %v10575_v59 = vadd.f32 %v1231_v40, %v873_v25  ;;  %1353 = vmax.xlane.f32.xlu0 %v1352_v52  ;;  %v826_v52 = vld [vmem:[#allocation4 + $0xa0] sm:$0xff] }
 0x349   : > { %v1235_v21 = vpop.f32.mrf.mxu1  ;;  %8236 = vmatmul.mubr.msk.bf16.gmra.mxu1 %vm1014_vm2, %v14676_v49 }
 0x34a   : > { %14680 = vst [vmem:[#allocation21_spill] sm:$0xff] %v10575_v59  ;;  %v1355_v29 = vmax.f32 %v10573_v38, %v10575_v59  ;;  %8380 = vmatpush3.bf16.xpose.msra.mxu1 %v5542_v20  ;;  %8237 = vmatprep.mubr.msk.bf16.mxu1 %vm1014_vm2, %v14682_v45  ;;  %v10587_v2 = vadd.f32 %v1235_v21, %v874_v37  ;;  %v879_v38 = vunpack.c.h.bf16 %v826_v52  ;;  %v14688_v37 = vld [vmem:[#allocation13_spill] sm:$0xff] }
 0x34b   : > { %8657 = vmatprep.subr.msk.bf16.mxu1 %vm1014_vm2, %v14683_v31  ;;  %v1237_v54 = vpop.f32.mrf.mxu1  ;;  %v878_v31 = vunpack.c.l.bf16 %v826_v52  ;;  %v880_v52 = vunpack.c.l.bf16 %v827_v26 }
 0x34c   : > { %14684 = vst [vmem:[#allocation27_spill] sm:$0xff] %v10587_v2  ;;  %v10589_v25 = vadd.f32 %v1237_v54, %v875_v51  ;;  %1356 = vmax.xlane.f32.xlu1 %v1355_v29  ;;  %v5539_v51 = vsel %vm1014_vm2, %v14688_v37, 0  ;;  %v14689_v54 = vld [vmem:[#allocation17_spill] sm:$0xff] }
 0x34d   : > { %v1239_v49 = vpop.f32.mrf.mxu1 }
 0x34e   : > { %14685 = vst [vmem:[#allocation30_spill] sm:$0xff] %v10589_v25  ;;  %v1358_v40 = vmax.f32 %v10587_v2, %v10589_v25  ;;  %v10593_v20 = vadd.f32 %v1239_v49, %v876_v13 }
 0x34f   : > { %v1241_v41 = vpop.f32.mrf.mxu1 }
 0x350   : > { %14686 = vst [vmem:[#allocation7_spill] sm:$0xff] %v10593_v20  ;;  %v10595_v59 = vadd.f32 %v1241_v41, %v877_v36  ;;  %1359 = vmax.xlane.f32.xlu0 %v1358_v40  ;;  %v881_v40 = vunpack.c.h.bf16 %v827_v26  ;;  %v828_v41 = vld [vmem:[#allocation4 + $0xb0] sm:$0xff]  ;;  %v829_v26 = vld [vmem:[#allocation4 + $0xb8] sm:$0xff] }
 0x351   : > { %v1245_v21 = vpop.f32.mrf.mxu1  ;;  %8238 = vmatmul.mubr.msk.bf16.gmra.mxu1 %vm1014_vm2, %v14682_v45  ;;  %v883_v25 = vunpack.c.h.bf16 %v828_v41 }
 0x352   : > { %14687 = vst [vmem:[#allocation16_spill] sm:$0xff] %v10595_v59  ;;  %v1361_v29 = vmax.f32 %v10593_v20, %v10595_v59  ;;  %8382 = vmatpush3.bf16.xpose.msra.mxu1 %v5539_v51  ;;  %8239 = vmatprep.mubr.msk.bf16.mxu1 %vm1014_vm2, %v14689_v54  ;;  %v10607_v36 = vadd.f32 %v1245_v21, %v878_v31  ;;  %v14694_v31 = vld [vmem:[#allocation41_spill] sm:$0xff] }
 0x353   : > { %8658 = vmatprep.subr.msk.bf16.mxu1 %vm1014_vm2, %v10234_v12  ;;  %v1247_v13 = vpop.f32.mrf.mxu1  ;;  %v882_v12 = vunpack.c.l.bf16 %v828_v41  ;;  %v884_v41 = vunpack.c.l.bf16 %v829_v26 }
 0x354   : > { %14690 = vst [vmem:[#allocation24_spill] sm:$0xff] %v10607_v36  ;;  %v10609_v49 = vadd.f32 %v1247_v13, %v879_v38  ;;  %1362 = vmax.xlane.f32.xlu1 %v1361_v29  ;;  %v5536_v38 = vsel %vm1014_vm2, %v14694_v31, 0  ;;  %v14695_v13 = vld [vmem:[#allocation15_spill] sm:$0xff] }
 0x355   : > { %v1249_v45 = vpop.f32.mrf.mxu1 }
 0x356   : > { %14691 = vst [vmem:[#allocation12_spill] sm:$0xff] %v10609_v49  ;;  %v1364_v37 = vmax.f32 %v10607_v36, %v10609_v49  ;;  %v10613_v59 = vadd.f32 %v1249_v45, %v880_v52 }
 0x357   : > { %v1251_v51 = vpop.f32.mrf.mxu1 }
 0x358   : > { %14692 = vst [vmem:[#allocation33_spill] sm:$0xff] %v10613_v59  ;;  %v10615_v20 = vadd.f32 %v1251_v51, %v881_v40  ;;  %1365 = vmax.xlane.f32.xlu0 %v1364_v37  ;;  %v885_v37 = vunpack.c.h.bf16 %v829_v26  ;;  %v830_v51 = vld [vmem:[#allocation4 + $0xc0] sm:$0xff] }
 0x359   : > { %v1255_v21 = vpop.f32.mrf.mxu1  ;;  %8240 = vmatmul.mubr.msk.bf16.gmra.mxu1 %vm1014_vm2, %v14689_v54  ;;  %v887_v49 = vunpack.c.h.bf16 %v830_v51 }
 0x35a   : > { %14693 = vst [vmem:[#allocation22_spill] sm:$0xff] %v10615_v20  ;;  %v1367_v29 = vmax.f32 %v10613_v59, %v10615_v20  ;;  %8384 = vmatpush3.bf16.xpose.msra.mxu1 %v5536_v38  ;;  %8241 = vmatprep.mubr.msk.bf16.mxu1 %vm1014_vm2, %v14695_v13  ;;  %v10627_v40 = vadd.f32 %v1255_v21, %v882_v12  ;;  %v831_v21 = vld [vmem:[#allocation4 + $0xc8] sm:$0xff] }
 0x35b   : > { %8659 = vmatprep.subr.msk.bf16.mxu1 %vm1014_vm2, %v10248_v42  ;;  %v1257_v52 = vpop.f32.mrf.mxu1  ;;  %v886_v42 = vunpack.c.l.bf16 %v830_v51  ;;  %v832_v51 = vld [vmem:[#allocation4 + $0xd0] sm:$0xff] }
 0x35c   : > { %14696 = vst [vmem:[#allocation36_spill] sm:$0xff] %v10627_v40  ;;  %v10629_v45 = vadd.f32 %v1257_v52, %v883_v25  ;;  %1368 = vmax.xlane.f32.xlu1 %v1367_v29  ;;  %v5533_v25 = vsel %vm1014_vm2, %v10246_v24, 0  ;;  %v14700_v29 = vld [vmem:[#allocation23_spill] sm:$0xff]  ;;  %v888_v24 = vunpack.c.l.bf16 %v831_v21 }
 0x35d   : > { %v1259_v54 = vpop.f32.mrf.mxu1 }
 0x35e   : > { %14697 = vst [vmem:[#allocation26_spill] sm:$0xff] %v10629_v45  ;;  %v1370_v31 = vmax.f32 %v10627_v40, %v10629_v45  ;;  %v10633_v20 = vadd.f32 %v1259_v54, %v884_v41  ;;  %v889_v54 = vunpack.c.h.bf16 %v831_v21 }
 0x35f   : > { %v1261_v38 = vpop.f32.mrf.mxu1 }
 0x360   : > { %14698 = vst [vmem:[#allocation40_spill] sm:$0xff] %v10633_v20  ;;  %v10635_v59 = vadd.f32 %v1261_v38, %v885_v37  ;;  %1371 = vmax.xlane.f32.xlu0 %v1370_v31 }
 0x361   : > { %v1265_v12 = vpop.f32.mrf.mxu1  ;;  %8242 = vmatmul.mubr.msk.bf16.gmra.mxu1 %vm1014_vm2, %v14695_v13 }
 0x362   : > { %14699 = vst [vmem:[#allocation31_spill] sm:$0xff] %v10635_v59  ;;  %v1373_v26 = vmax.f32 %v10633_v20, %v10635_v59  ;;  %8386 = vmatpush3.bf16.xpose.msra.mxu1 %v5533_v25  ;;  %8243 = vmatprep.mubr.msk.bf16.mxu1 %vm1014_vm2, %v14700_v29  ;;  %v10647_v41 = vadd.f32 %v1265_v12, %v886_v42  ;;  %v891_v20 = vunpack.c.h.bf16 %v832_v51  ;;  %v833_v12 = vld [vmem:[#allocation4 + $0xd8] sm:$0xff] }
 0x363   : > { %8660 = vmatprep.subr.msk.bf16.mxu1 %vm1014_vm2, %v10232_v50  ;;  %v1267_v52 = vpop.f32.mrf.mxu1  ;;  %v890_v50 = vunpack.c.l.bf16 %v832_v51  ;;  %v834_v51 = vld [vmem:[#allocation4 + $0xe0] sm:$0xff] }
 0x364   : > { %14701 = vst [vmem:[#allocation37_spill] sm:$0xff] %v10647_v41  ;;  %v10649_v37 = vadd.f32 %v1267_v52, %v887_v49  ;;  %1374 = vmax.xlane.f32.xlu1 %v1373_v26  ;;  %v5530_v49 = vsel %vm1014_vm2, %v10260_v62, 0  ;;  %v14705_v26 = vld [vmem:[#allocation29_spill] sm:$0xff]  ;;  %v892_v62 = vunpack.c.l.bf16 %v833_v12 }
 0x365   : > { %v1269_v13 = vpop.f32.mrf.mxu1 }
 0x366   : > { %14702 = vst [vmem:[#allocation14_spill] sm:$0xff] %v10649_v37  ;;  %v1376_v31 = vmax.f32 %v10647_v41, %v10649_v37  ;;  %v10653_v25 = vadd.f32 %v1269_v13, %v888_v24  ;;  %v893_v13 = vunpack.c.h.bf16 %v833_v12 }
 0x367   : > { %v1271_v38 = vpop.f32.mrf.mxu1 }
 0x368   : > { %14703 = vst [vmem:[#allocation19_spill] sm:$0xff] %v10653_v25  ;;  %v10655_v59 = vadd.f32 %v1271_v38, %v889_v54  ;;  %1377 = vmax.xlane.f32.xlu1 %v1376_v31 }
 0x369   : > { %v1275_v42 = vpop.f32.mrf.mxu1  ;;  %8244 = vmatmul.mubr.msk.bf16.gmra.mxu1 %vm1014_vm2, %v14700_v29 }
 0x36a   : > { %14704 = vst [vmem:[#allocation8_spill] sm:$0xff] %v10655_v59  ;;  %v1379_v21 = vmax.f32 %v10653_v25, %v10655_v59  ;;  %8388 = vmatpush3.bf16.xpose.msra.mxu1 %v5530_v49  ;;  %8245 = vmatprep.mubr.msk.bf16.mxu1 %vm1014_vm2, %v14705_v26  ;;  %v10667_v24 = vadd.f32 %v1275_v42, %v890_v50  ;;  %v895_v25 = vunpack.c.h.bf16 %v834_v51  ;;  %v835_v42 = vld [vmem:[#allocation4 + $0xe8] sm:$0xff] }
 0x36b   : > { %8661 = vmatprep.subr.msk.bf16.mxu1 %vm1014_vm2, %v10285_v4  ;;  %v1277_v52 = vpop.f32.mrf.mxu1  ;;  %v894_v4 = vunpack.c.l.bf16 %v834_v51 }
 0x36c   : > { %14706 = vst [vmem:[#allocation20_spill] sm:$0xff] %v10667_v24  ;;  %v10669_v54 = vadd.f32 %v1277_v52, %v891_v20  ;;  %1380 = vmax.xlane.f32.xlu0 %v1379_v21  ;;  %v5527_v20 = vsel %vm1014_vm2, %v10276_v28, 0  ;;  %v14710_v21 = vld [vmem:[#allocation18_spill] sm:$0xff]  ;;  %v897_v28 = vunpack.c.h.bf16 %v835_v42 }
 0x36d   : > { %v1279_v29 = vpop.f32.mrf.mxu1 }
 0x36e   : > { %14707 = vst [vmem:[#allocation10_spill] sm:$0xff] %v10669_v54  ;;  %v1382_v31 = vmax.f32 %v10667_v24, %v10669_v54  ;;  %v10673_v49 = vadd.f32 %v1279_v29, %v892_v62  ;;  %v896_v29 = vunpack.c.l.bf16 %v835_v42  ;;  %v837_v54 = vld [vmem:[#allocation4 + $0xf8] sm:$0xff] }
 0x36f   : > { %v1281_v38 = vpop.f32.mrf.mxu1  ;;  %v901_v24 = vunpack.c.h.bf16 %v837_v54 }
 0x370   : > { %14708 = vst [vmem:[#allocation39_spill] sm:$0xff] %v10673_v49  ;;  %v10675_v59 = vadd.f32 %v1281_v38, %v893_v13  ;;  %1383 = vmax.xlane.f32.xlu0 %v1382_v31 }
 0x371   : > { %v1285_v50 = vpop.f32.mrf.mxu1  ;;  %8246 = vmatmul.mubr.msk.bf16.gmra.mxu1 %vm1014_vm2, %v14705_v26 }
 0x372   : > { %14709 = vst [vmem:[#allocation13_spill] sm:$0xff] %v10675_v59  ;;  %v1385_v12 = vmax.f32 %v10673_v49, %v10675_v59  ;;  %8390 = vmatpush3.bf16.xpose.msra.mxu1 %v5527_v20  ;;  %8247 = vmatprep.mubr.msk.bf16.mxu1 %vm1014_vm2, %v14710_v21  ;;  %v10685_v62 = vadd.f32 %v1285_v50, %v894_v4  ;;  %v14715_v4 = vld [vmem:[#allocation34_spill] sm:$0xff] }
 0x373   : > { %v1287_v52 = vpop.f32.mrf.mxu1 }
 0x374   : > { %14711 = vst [vmem:[#allocation17_spill] sm:$0xff] %v10685_v62  ;;  %v10687_v13 = vadd.f32 %v1287_v52, %v895_v25  ;;  %1386 = vmax.xlane.f32.xlu1 %v1385_v12  ;;  %v14716_v52 = vld [vmem:[#allocation32_spill] sm:$0xff] }
 0x375   : > { %v1289_v51 = vpop.f32.mrf.mxu1 }
 0x376   : > { %14712 = vst [vmem:[#allocation41_spill] sm:$0xff] %v10687_v13  ;;  %v1388_v26 = vmax.f32 %v10685_v62, %v10687_v13  ;;  %v10691_v38 = vadd.f32 %v1289_v51, %v896_v29  ;;  %v14717_v51 = vld [vmem:[#allocation38_spill] sm:$0xff] }
 0x377   : > { %v1291_v31 = vpop.f32.mrf.mxu1 }
 0x378   : > { %14713 = vst [vmem:[#allocation15_spill] sm:$0xff] %v10691_v38  ;;  %v10693_v59 = vadd.f32 %v1291_v31, %v897_v28  ;;  %1389 = vmax.xlane.f32.xlu1 %v1388_v26  ;;  %v8778_v28 = vld [vmem:[#allocation2 + $0x40] sm:$0xff]  }
 0x379   : > { %v10695_v20 = vpop.f32.mrf.mxu1  ;;  %8248 = vmatmul.mubr.msk.bf16.gmra.mxu1 %vm1014_vm2, %v14710_v21 }
 0x37a   : > { %14714 = vst [vmem:[#allocation23_spill] sm:$0xff] %v10693_v59  ;;  %v1391_v25 = vmax.f32 %v10691_v38, %v10693_v59  ;;  %8249 = vmatprep.mubr.msk.bf16.mxu1 %vm1014_vm2, %v14715_v4 }
 0x37b   : > { %v1297_v50 = vpop.f32.mrf.mxu1 }
 0x37c   : > { %1392 = vmax.xlane.f32.xlu0 %v1391_v25  ;;  %v14718_v25 = vld [vmem:[#allocation42_spill] sm:$0xff] }
 0x37d   : > { %v1299_v42 = vpop.f32.mrf.mxu1 }
 0x37f   : > { %v1301_v12 = vpop.f32.mrf.mxu1 }
 0x381   : > { %8250 = vmatmul.mubr.msk.bf16.gmra.mxu1 %vm1014_vm2, %v14715_v4  ;;  %v10707_v29 = vpop.f32.mrf.mxu1  ;;  %v9568_v4 = vld [vmem:[#allocation2 + $0x78] sm:$0xff]  }
 0x382   : > { %8251 = vmatprep.mubr.msk.bf16.mxu1 %vm1014_vm2, %v14716_v52 }
 0x383   : > { %v10709_v21 = vpop.f32.mrf.mxu1 }
 0x385   : > { %v10716_v26 = vpop.f32.mrf.mxu1 }
 0x387   : > { %v10720_v31 = vpop.f32.mrf.mxu1 }
 0x389   : > { %8252 = vmatmul.mubr.msk.bf16.gmra.mxu1 %vm1014_vm2, %v14716_v52  ;;  %5459 = vrot.lane.b32.xlu1 %v8778_v28, %s9679_s24  ;;  %v10727_v52 = vpop.f32.mrf.mxu1  ;;  %v10729_v28 = vld [vmem:[#allocation2] sm:$0xff]  }
 0x38a   : > { %8253 = vmatprep.mubr.msk.bf16.mxu1 %vm1014_vm2, %v14717_v51 }
 0x38d   : > { %1816 = vrot.lane.b32.xlu1 %v10265_v53, %s9680_s25  ;;  %v10735_v53 = vpop.f32.mrf.mxu1 }
 0x38f   : > { %v10744_v38 = vpop.f32.mrf.mxu1 }
 0x390   : > { %14719 = vst [vmem:[#allocation29_spill] sm:$0xff] %v10744_v38 }
 0x391   : > { %8254 = vmatmul.mubr.msk.bf16.gmra.mxu1 %vm1014_vm2, %v14717_v51  ;;  %v10731_v59 = vpop.xlane.xlu1 %1305  ;;  %v10746_v13 = vpop.f32.mrf.mxu1 }
 0x392   : > { %8255 = vmatprep.mubr.msk.bf16.mxu1 %vm1014_vm2, %v14718_v25  ;;  %3933 = vrot.lane.b32.xlu0 %v9568_v4, %s9678_s23  ;;  %v9569_v4 = vld [vmem:[#allocation2 + $0x40] sm:$0xff]   ;;  %14720 = vst [vmem:[#allocation18_spill] sm:$0xff] %v10746_v13 }
 0x395   : > { %v10760_v41 = vpop.xlane.xlu0 %1308 }
 0x396   : > { %5443 = vrot.lane.b32.xlu0 %v10729_v28, %s9679_s24 }
 0x399   : > { %8256 = vmatmul.mubr.msk.bf16.gmra.mxu1 %vm1014_vm2, %v14718_v25  ;;  %v10741_v51 = vpop.xlane.xlu1 %1311  ;;  %v10754_v25 = vpop.f32.mrf.mxu1 }
 0x39a   : > { %8257 = vmatprep.mubr.msk.bf16.mxu1 %vm1014_vm2, %v10240_v32  ;;  %1832 = vrot.lane.b32.xlu0 %v9569_v4, %s9680_s25  ;;  %14721 = vst [vmem:[#allocation34_spill] sm:$0xff] %v10754_v25  ;;  %v900_v4 = vunpack.c.l.bf16 %v837_v54  ;;  %v836_v25 = vld [vmem:[#allocation4 + $0xf0] sm:$0xff] }
 0x39b   : > { %v10758_v37 = vpop.f32.mrf.mxu1 }
 0x39c   : > { %14722 = vst [vmem:[#allocation32_spill] sm:$0xff] %v10758_v37  ;;  %v10772_v36 = vadd.f32 %v1299_v42, %v900_v4  ;;  %v899_v37 = vunpack.c.h.bf16 %v836_v25  ;;  %v2219_v4 = vld [vmem:[#allocation4 + $0x100] sm:$0xff] }
 0x39d   : > { %v10748_v62 = vpop.xlane.xlu1 %1314  ;;  %v10770_v40 = vpop.f32.mrf.mxu1  ;;  %v2252_v63 = vunpack.c.h.bf16 %v2219_v4  ;;  %v2251_v7 = vunpack.c.l.bf16 %v2219_v4 }
 0x39e   : > { %14724 = vst [vmem:[#allocation42_spill] sm:$0xff] %v10770_v40  ;;  %14725 = vst [vmem:[#allocation43_spill] sm:$0xff] %v10772_v36  ;;  %v10786_v13 = vadd.f32 %v1297_v50, %v899_v37 }
 0x39f   : > { %v10778_v38 = vpop.f32.mrf.mxu1  ;;  %v10796_v37 = vadd.f32 %v10709_v21, %v2252_v63 }
 0x3a0   : > { %14726 = vst [vmem:[#allocation44_spill] sm:$0xff] %v10778_v38  ;;  %14727 = vst [vmem:[#allocation45_spill] sm:$0xff] %v10786_v13 }
 0x3a1   : > { %8258 = vmatmul.mubr.msk.bf16.gmra.mxu1 %vm1014_vm2, %v10240_v32  ;;  %v10766_v32 = vadd.f32 %v1301_v12, %v901_v24  ;;  %v10774_v2 = vpop.xlane.xlu0 %1317  ;;  %v898_v12 = vunpack.c.l.bf16 %v836_v25  ;;  %14729 = vst [vmem:[#allocation47_spill] sm:$0xff] %v10796_v37 }
 0x3a2   : > { %8259 = vmatprep.mubr.msk.bf16.mxu1 %vm1014_vm2, %v10258_v34 }
 0x3a3   : > { %14723 = vst [vmem:[#allocation38_spill] sm:$0xff] %v10766_v32  ;;  %v1397_v54 = vmax.f32 %v10772_v36, %v10766_v32  ;;  %v10789_v38 = vadd.f32 %v10695_v20, %v898_v12  ;;  %v10799_v20 = vadd.f32 %v10707_v29, %v2251_v7  ;;  %v2221_v12 = vld [vmem:[#allocation4 + $0x110] sm:$0xff] }
 0x3a4   : > { %v2255_v29 = vunpack.c.l.bf16 %v2221_v12 }
 0x3a5   : > { %v10756_v49 = vpop.xlane.xlu1 %1320  ;;  %14728 = vst [vmem:[#allocation46_spill] sm:$0xff] %v10789_v38  ;;  %14730 = vst [vmem:[#allocation48_spill] sm:$0xff] %v10799_v20 }
 0x3a9   : > { %8260 = vmatmul.mubr.msk.bf16.gmra.mxu1 %vm1014_vm2, %v10258_v34  ;;  %v10768_v45 = vpop.xlane.xlu1 %1323 }
 0x3aa   : > { %8261 = vmatprep.mubr.msk.bf16.mxu1 %vm1014_vm2, %v10274_v39 }
 0x3ad   : > { %v10780_v34 = vpop.xlane.xlu1 %1326 }
 0x3b1   : > { %8262 = vmatmul.mubr.msk.bf16.gmra.mxu1 %vm1014_vm2, %v10274_v39  ;;  %v1330_v24 = vpop.xlane.xlu0 %1329  ;;  %1398 = vmax.xlane.f32.xlu1 %v1397_v54  ;;  %v2254_v54 = vunpack.c.h.bf16 %v2220_v57 }
 0x3b2   : > { %v1416_v42 = vsub.f32 %v10499_v9, %v1330_v24  ;;  %v1417_v40 = vsub.f32 %v10501_v18, %v1330_v24  ;;  %v1394_v18 = vmax.f32 %v10789_v38, %v10786_v13  ;;  %v2253_v24 = vunpack.c.l.bf16 %v2220_v57 }
 0x3b3   : > { %v10806_v63 = vadd.f32 %v10720_v31, %v2254_v54 }
 0x3b4   : > { %v1496_v32 = vmul.f32 1.442695, %v1416_v42  ;;  %v1498_v36 = vmul.f32 1.442695, %v1417_v40  ;;  %v10809_v57 = vadd.f32 %v10716_v26, %v2253_v24  ;;  %v10819_v26 = vadd.f32 %v10727_v52, %v2255_v29 }
 0x3b5   : > { %v1333_v60 = vpop.xlane.xlu1 %1332  ;;  %14731 = vst [vmem:[#allocation49_spill] sm:$0xff] %v10806_v63 }
 0x3b6   : > { %v1418_v39 = vsub.f32 %v10505_v35, %v1333_v60  ;;  %8798 = vpow2.f32 %v1496_v32  ;;  %v1419_v9 = vsub.f32 %v10507_v47, %v1333_v60  ;;  %v2256_v32 = vunpack.c.h.bf16 %v2221_v12  ;;  %14732 = vst [vmem:[#allocation50_spill] sm:$0xff] %v10809_v57  ;;  %14734 = vst [vmem:[#allocation52_spill] sm:$0xff] %v10819_v26 }
 0x3b7   : > { %8800 = vpow2.f32 %v1498_v36  ;;  %v2748_v60 = vmax.f32 %v10799_v20, %v10796_v37  ;;  %v2751_v42 = vmax.f32 %v10809_v57, %v10806_v63  ;;  %v14745_v57 = vld [vmem:[#allocation21_spill] sm:$0xff] }
 0x3b8   : > { %v1500_v40 = vmul.f32 1.442695, %v1418_v39  ;;  %v1502_v50 = vmul.f32 1.442695, %v1419_v9  ;;  %v10816_v31 = vadd.f32 %v10735_v53, %v2256_v32 }
 0x3b9   : > { %v1336_v25 = vpop.xlane.xlu1 %1335  ;;  %1395 = vmax.xlane.f32.xlu0 %v1394_v18 }
 0x3ba   : > { %v1420_v35 = vsub.f32 %v10515_v10, %v1336_v25  ;;  %8802 = vpow2.f32 %v1500_v40  ;;  %v1421_v47 = vsub.f32 %v10517_v15, %v1336_v25  ;;  %14733 = vst [vmem:[#allocation51_spill] sm:$0xff] %v10816_v31  ;;  %v2754_v53 = vmax.f32 %v10819_v26, %v10816_v31  ;;  %v9570_v25 = vld [vmem:[#allocation2 + $0x8] sm:$0xff]  }
 0x3bb   : > { %8804 = vpow2.f32 %v1502_v50  ;;  %v14744_v26 = vld [vmem:[#allocation28_spill] sm:$0xff] }
 0x3bc   : > { %v1504_v36 = vmul.f32 1.442695, %v1420_v35  ;;  %v1506_v21 = vmul.f32 1.442695, %v1421_v47 }
 0x3bd   : > { %v1339_v7 = vpop.xlane.xlu1 %1338  ;;  %2749 = vmax.xlane.f32.xlu0 %v2748_v60 }
 0x3be   : > { %v1422_v10 = vsub.f32 %v10521_v22, %v1339_v7  ;;  %8806 = vpow2.f32 %v1504_v36  ;;  %v1423_v15 = vsub.f32 %v10523_v23, %v1339_v7 }
 0x3bf   : > { %8808 = vpow2.f32 %v1506_v21  ;;  %v1401_v21 = vsub.f32 %v10437_v6, %v10731_v59 }
 0x3c0   : > { %v1508_v4 = vmul.f32 1.442695, %v1422_v10  ;;  %v1510_v39 = vmul.f32 1.442695, %v1423_v15  ;;  %v1402_v15 = vsub.f32 %v10441_v56, %v10760_v41 }
 0x3c1   : > { %v1342_v54 = vpop.xlane.xlu1 %1341  ;;  %2752 = vmax.xlane.f32.xlu0 %v2751_v42 }
 0x3c2   : > { %v1424_v9 = vsub.f32 %v10531_v3, %v1342_v54  ;;  %5411 = vrot.lane.b32.xlu1 %v10729_v28, %s9681_s26  ;;  %8810 = vpow2.f32 %v1508_v4  ;;  %v1425_v22 = vsub.f32 %v10533_v11, %v1342_v54  ;;  %v1466_v4 = vmul.f32 1.442695, %v1401_v21 }
 0x3c3   : > { %v10825_v23 = vpop.eup %8798  ;;  %8812 = vpow2.f32 %v1510_v39  ;;  %v1404_v54 = vsub.f32 %v10451_v5, %v10741_v51  ;;  %v1413_v21 = vsub.f32 %v10485_v16, %v10768_v45  ;;  %v1415_v16 = vsub.f32 %v10491_v19, %v10780_v34 }
 0x3c4   : > { %v1512_v18 = vmul.f32 1.442695, %v1424_v9  ;;  %v10829_v40 = vpop.eup %8800  ;;  %v1514_v52 = vmul.f32 1.442695, %v1425_v22  ;;  %v1405_v22 = vsub.f32 %v10453_v61, %v10741_v51  ;;  %v1408_v51 = vsub.f32 %v10467_v43, %v10774_v2 }
 0x3c5   : > { %v1345_v50 = vpop.xlane.xlu0 %1344  ;;  %2755 = vmax.xlane.f32.xlu0 %v2754_v53  ;;  %v1616_v12 = vadd.f32 %v10829_v40, %v10825_v23  ;;  %v1472_v53 = vmul.f32 1.442695, %v1404_v54 }
 0x3c6   : > { %v1426_v3 = vsub.f32 %v10537_v33, %v1345_v50  ;;  %5413 = vrot.lane.b32.xlu1 %v9570_v25, %s9681_s26  ;;  %8814 = vpow2.f32 %v1512_v18  ;;  %v1427_v11 = vsub.f32 %v10539_v48, %v1345_v50  ;;  %v1400_v48 = vsub.f32 %v10435_v58, %v10731_v59 }
 0x3c7   : > { %v10834_v28 = vpop.eup %8802  ;;  %8816 = vpow2.f32 %v1514_v52  ;;  %v1403_v58 = vsub.f32 %v10443_v30, %v10760_v41  ;;  %v1468_v59 = vmul.f32 1.442695, %v1402_v15  ;;  %v1406_v18 = vsub.f32 %v10457_v14, %v10748_v62 }
 0x3c8   : > { %v1516_v24 = vmul.f32 1.442695, %v1426_v3  ;;  %v10838_v35 = vpop.eup %8804  ;;  %v1518_v32 = vmul.f32 1.442695, %v1427_v11  ;;  %v1464_v10 = vmul.f32 1.442695, %v1400_v48  ;;  %v1407_v52 = vsub.f32 %v10459_v17, %v10748_v62 }
 0x3c9   : > { %1617 = vadd.xlane.f32.xlu0 %v1616_v12  ;;  %v1619_v33 = vadd.f32 %v10838_v35, %v10834_v28  ;;  %v1470_v56 = vmul.f32 1.442695, %v1403_v58  ;;  %v1474_v5 = vmul.f32 1.442695, %v1405_v22  ;;  %v1476_v61 = vmul.f32 1.442695, %v1406_v18  ;;  %v1348_v17 = vpop.xlane.xlu1 %1347 }
 0x3ca   : > { %8818 = vpow2.f32 %v1516_v24  ;;  %v1478_v3 = vmul.f32 1.442695, %v1407_v52  ;;  %v1409_v25 = vsub.f32 %v10469_v44, %v10774_v2  ;;  %v1480_v14 = vmul.f32 1.442695, %v1408_v51 }
 0x3cb   : > { %v10840_v47 = vpop.eup %8806  ;;  %8820 = vpow2.f32 %v1518_v32  ;;  %v1410_v11 = vsub.f32 %v10473_v0, %v10756_v49  ;;  %v1411_v12 = vsub.f32 %v10475_v1, %v10756_v49  ;;  %v1412_v44 = vsub.f32 %v10483_v8, %v10768_v45 }
 0x3cc   : > { %v10844_v60 = vpop.eup %8808  ;;  %8822 = vpow2.f32 %v1464_v10  ;;  %v1482_v24 = vmul.f32 1.442695, %v1409_v25  ;;  %v1414_v8 = vsub.f32 %v10489_v46, %v10780_v34  ;;  %v1490_v58 = vmul.f32 1.442695, %v1413_v21 }
 0x3cd   : > { %1620 = vadd.xlane.f32.xlu0 %v1619_v33  ;;  %v1622_v7 = vadd.f32 %v10844_v60, %v10840_v47  ;;  %8824 = vpow2.f32 %v1466_v4  ;;  %v10894_v43 = vpop.xlane.xlu0 %1350  ;;  %v1484_v33 = vmul.f32 1.442695, %v1410_v11  ;;  %v1486_v48 = vmul.f32 1.442695, %v1411_v12 }
 0x3ce   : > { %8826 = vpow2.f32 %v1468_v59  ;;  %v1492_v59 = vmul.f32 1.442695, %v1414_v8  ;;  %v1494_v22 = vmul.f32 1.442695, %v1415_v16  ;;  %v1429_v25 = vsub.f32 %v10549_v55, %v1348_v17 }
 0x3cf   : > { %v10848_v36 = vpop.eup %8810  ;;  %8828 = vpow2.f32 %v1470_v56 }
 0x3d0   : > { %v10854_v29 = vpop.eup %8812  ;;  %8830 = vpow2.f32 %v1472_v53  ;;  %v1522_v21 = vmul.f32 1.442695, %v1429_v25  ;;  %v14739_v25 = vld [vmem:[#allocation11_spill] sm:$0xff] }
 0x3d1   : > { %1623 = vadd.xlane.f32.xlu0 %v1622_v7  ;;  %v1625_v39 = vadd.f32 %v10854_v29, %v10848_v36  ;;  %8832 = vpow2.f32 %v1474_v5  ;;  %v1488_v7 = vmul.f32 1.442695, %v1412_v44  ;;  %v10910_v10 = vpop.xlane.xlu0 %1353  ;;  %v9571_v5 = vld [vmem:[#allocation2 + $0x10] sm:$0xff]  }
 0x3d2   : > { %8834 = vpow2.f32 %v1476_v61  ;;  %v1428_v61 = vsub.f32 %v10547_v27, %v1348_v17 }
 0x3d3   : > { %v10858_v42 = vpop.eup %8814  ;;  %8836 = vpow2.f32 %v1478_v3 }
 0x3d4   : > { %v10864_v6 = vpop.eup %8816  ;;  %8838 = vpow2.f32 %v1480_v14  ;;  %v1520_v12 = vmul.f32 1.442695, %v1428_v61 }
 0x3d5   : > { %1626 = vadd.xlane.f32.xlu0 %v1625_v39  ;;  %v1628_v30 = vadd.f32 %v10864_v6, %v10858_v42  ;;  %v10898_v2 = vpop.xlane.xlu1 %1356  ;;  %8840 = vpow2.f32 %v1482_v24 }
 0x3d6   : > { %8842 = vpow2.f32 %v1484_v33  ;;  %v14735_v33 = vld [vmem:[#allocation25_spill] sm:$0xff]  ;;  %v1434_v63 = vsub.f32 %v14744_v26, %v10898_v2 }
 0x3d7   : > { %v10868_v9 = vpop.eup %8818  ;;  %8844 = vpow2.f32 %v1486_v48  ;;  %v1430_v44 = vsub.f32 %v14735_v33, %v10894_v43 }
 0x3d8   : > { %v10874_v41 = vpop.eup %8820  ;;  %8846 = vpow2.f32 %v1488_v7 }
 0x3d9   : > { %1629 = vadd.xlane.f32.xlu0 %v1628_v30  ;;  %v1631_v50 = vadd.f32 %v10874_v41, %v10868_v9  ;;  %v10888_v62 = vpop.eup %8822  ;;  %v10922_v46 = vpop.xlane.xlu0 %1359  ;;  %8848 = vpow2.f32 %v1490_v58  ;;  %v2222_v58 = vld [vmem:[#allocation4 + $0x118] sm:$0xff] }
 0x3da   : > { %v10892_v32 = vpop.eup %8824  ;;  %8850 = vpow2.f32 %v1492_v59  ;;  %v2258_v16 = vunpack.c.h.bf16 %v2222_v58  ;;  %v1524_v59 = vmul.f32 1.442695, %v1430_v44  ;;  %v2224_v44 = vld [vmem:[#allocation4 + $0x128] sm:$0xff] }
 0x3db   : > { %v10900_v0 = vpop.eup %8826  ;;  %v1592_v1 = vadd.f32 %v10892_v32, %v10888_v62  ;;  %8852 = vpow2.f32 %v1494_v22 }
 0x3dc   : > { %v10906_v49 = vpop.eup %8828  ;;  %8854 = vpow2.f32 %v1520_v12  ;;  %v2257_v12 = vunpack.c.l.bf16 %v2222_v58  ;;  %v1435_v58 = vsub.f32 %v14745_v57, %v10898_v2  ;;  %v1532_v57 = vmul.f32 1.442695, %v1434_v63 }
 0x3dd   : > { %1632 = vadd.xlane.f32.xlu0 %v1631_v50  ;;  %v10912_v15 = vpop.xlane.xlu1 %1362  ;;  %v10914_v4 = vpop.eup %8830  ;;  %v1595_v45 = vadd.f32 %v10906_v49, %v10900_v0  ;;  %8856 = vpow2.f32 %v1522_v21  ;;  %v14742_v21 = vld [vmem:[#allocation18_spill] sm:$0xff] }
 0x3de   : > { %v10920_v39 = vpop.eup %8832  ;;  %8858 = vpow2.f32 %v1524_v59 }
 0x3df   : > { %v10926_v56 = vpop.eup %8834  ;;  %v1598_v30 = vadd.f32 %v10920_v39, %v10914_v4 }
 0x3e0   : > { %v10930_v19 = vpop.eup %8836 }
 0x3e1   : > { %v10932_v34 = vpop.xlane.xlu0 %1365  ;;  %v10936_v18 = vpop.eup %8838  ;;  %v1601_v52 = vadd.f32 %v10930_v19, %v10926_v56 }
 0x3e2   : > { %v10941_v50 = vpop.eup %8840 }
 0x3e3   : > { %v10946_v3 = vpop.eup %8842  ;;  %v1604_v14 = vadd.f32 %v10941_v50, %v10936_v18 }
 0x3e4   : > { %v10951_v11 = vpop.eup %8844 }
 0x3e5   : > { %v10924_v54 = vpop.xlane.xlu1 %1368  ;;  %v10959_v27 = vpop.eup %8846  ;;  %v1607_v17 = vadd.f32 %v10951_v11, %v10946_v3 }
 0x3e6   : > { %v10965_v7 = vpop.eup %8848 }
 0x3e7   : > { %v10971_v22 = vpop.eup %8850 }
 0x3e8   : > { %v10977_v61 = vpop.eup %8852 }
 0x3e9   : > { %v10944_v51 = vpop.xlane.xlu0 %1371 }
 0x3ea   : > { %1593 = vadd.xlane.f32.xlu1 %v1592_v1  ;;  %v14736_v1 = vld [vmem:[#allocation35_spill] sm:$0xff] }
 0x3eb   : > { %v1431_v55 = vsub.f32 %v14736_v1, %v10894_v43  ;;  %v14738_v43 = vld [vmem:[#allocation9_spill] sm:$0xff] }
 0x3ed   : > { %v10934_v53 = vpop.xlane.xlu1 %1374 }
 0x3ee   : > { %1596 = vadd.xlane.f32.xlu1 %v1595_v45  ;;  %v10969_v45 = vpop.f32.mrf.mxu1 }
 0x3f1   : > { %v10953_v24 = vpop.xlane.xlu1 %1377 }
 0x3f2   : > { %1599 = vadd.xlane.f32.xlu1 %v1598_v30  ;;  %v1526_v30 = vmul.f32 1.442695, %v1431_v55  ;;  %v10986_v55 = vadd.f32 %v14742_v21, %v2258_v16  ;;  %v2261_v21 = vunpack.c.l.bf16 %v2224_v44 }
 0x3f3   : > { %5415 = vrot.lane.b32.xlu0 %v9571_v5, %s9681_s26  ;;  %v1432_v5 = vsub.f32 %v14738_v43, %v10910_v10  ;;  %v2621_v43 = vpop.f32.mrf.mxu1 }
 0x3f4   : > { %14743 = vst [vmem:[#allocation11_spill] sm:$0xff] %v10986_v55  ;;  %8860 = vpow2.f32 %v1526_v30  ;;  %v2223_v30 = vld [vmem:[#allocation4 + $0x120] sm:$0xff] }
 0x3f5   : > { %v10957_v48 = vpop.xlane.xlu0 %1380  ;;  %v1528_v31 = vmul.f32 1.442695, %v1432_v5  ;;  %v10999_v59 = vpop.f32.mrf.mxu1  ;;  %v14749_v5 = vld [vmem:[#allocation44_spill] sm:$0xff]  ;;  %v2260_v2 = vunpack.c.h.bf16 %v2223_v30 }
 0x3f6   : > { %1602 = vadd.xlane.f32.xlu1 %v1601_v52  ;;  %v1610_v52 = vadd.f32 %v10965_v7, %v10959_v27 }
 0x3f7   : > { %8862 = vpow2.f32 %v1528_v31  ;;  %v2225_v31 = vld [vmem:[#allocation4 + $0x130] sm:$0xff] }
 0x3f9   : > { %v10981_v33 = vpop.xlane.xlu0 %1383 }
 0x3fa   : > { %1605 = vadd.xlane.f32.xlu1 %v1604_v14  ;;  %v1433_v14 = vsub.f32 %v14739_v25, %v10910_v10  ;;  %14740 = vst [vmem:[#allocation35_spill] sm:$0xff] %v10981_v33  ;;  %v1613_v10 = vadd.f32 %v10977_v61, %v10971_v22 }
 0x3fc   : > { %v1530_v25 = vmul.f32 1.442695, %v1433_v14 }
 0x3fd   : > { %v10967_v8 = vpop.xlane.xlu1 %1386 }
 0x3fe   : > { %14737 = vst [vmem:[#allocation25_spill] sm:$0xff] %v10967_v8  ;;  %1608 = vadd.xlane.f32.xlu1 %v1607_v17  ;;  %v2262_v17 = vunpack.c.h.bf16 %v2224_v44  ;;  %8864 = vpow2.f32 %v1530_v25  ;;  %v14751_v44 = vld [vmem:[#allocation42_spill] sm:$0xff]  ;;  %v14755_v25 = vld [vmem:[#allocation32_spill] sm:$0xff] }
 0x3ff   : > { %v11008_v13 = vadd.f32 %v14751_v44, %v2261_v21  ;;  %8866 = vpow2.f32 %v1532_v57  ;;  %v2264_v21 = vunpack.c.h.bf16 %v2225_v31  ;;  %v2263_v44 = vunpack.c.l.bf16 %v2225_v31 }
 0x400   : > { %v11005_v14 = vadd.f32 %v14749_v5, %v2262_v17  ;;  %v14757_v5 = vld [vmem:[#allocation34_spill] sm:$0xff] }
 0x401   : > { %v10983_v1 = vpop.xlane.xlu1 %1389 }
 0x402   : > { %14741 = vst [vmem:[#allocation9_spill] sm:$0xff] %v10983_v1  ;;  %1611 = vadd.xlane.f32.xlu1 %v1610_v52  ;;  %v14747_v52 = vld [vmem:[#allocation29_spill] sm:$0xff]  ;;  %14750 = vst [vmem:[#allocation21_spill] sm:$0xff] %v11005_v14  ;;  %v2763_v63 = vmax.f32 %v11008_v13, %v11005_v14  ;;  %v2226_v1 = vld [vmem:[#allocation4 + $0x138] sm:$0xff] }
 0x403   : > { %v10997_v16 = vadd.f32 %v14747_v52, %v2257_v12  ;;  %v1534_v12 = vmul.f32 1.442695, %v1435_v58  ;;  %14752 = vst [vmem:[#allocation29_spill] sm:$0xff] %v11008_v13  ;;  %v11021_v58 = vadd.f32 %v14755_v25, %v2260_v2 }
 0x405   : > { %v10994_v37 = vpop.xlane.xlu0 %1392  ;;  %14748 = vst [vmem:[#allocation28_spill] sm:$0xff] %v10997_v16  ;;  %v5460_v20 = vpop.permute.xlu1 %5459  ;;  %v2757_v26 = vmax.f32 %v10997_v16, %v10986_v55  ;;  %14756 = vst [vmem:[#allocation32_spill] sm:$0xff] %v11021_v58  ;;  %8868 = vpow2.f32 %v1534_v12  ;;  %v11035_v12 = vadd.f32 %v2621_v43, %v2264_v21 }
 0x406   : > { %14746 = vst [vmem:[#allocation18_spill] sm:$0xff] %v10994_v37  ;;  %1614 = vadd.xlane.f32.xlu1 %v1613_v10  ;;  %8662 = vmatprep.subr.msk.bf16.mxu1 %vm1014_vm2, %v5460_v20  ;;  %v2259_v20 = vunpack.c.l.bf16 %v2223_v30  ;;  %v11011_v10 = vpop.f32.mrf.mxu1  ;;  %v11014_v55 = vpop.eup %8854  ;;  %v14770_v37 = vld [vmem:[#allocation16_spill] sm:$0xff] }
 0x407   : > { %14753 = vst [vmem:[#allocation44_spill] sm:$0xff] %v11014_v55  ;;  %v11018_v17 = vpop.eup %8856  ;;  %14760 = vst [vmem:[#allocation54_spill] sm:$0xff] %v11035_v12 }
 0x408   : > { %14754 = vst [vmem:[#allocation42_spill] sm:$0xff] %v11018_v17  ;;  %v11027_v16 = vpop.eup %8858  ;;  %v1634_v57 = vadd.f32 %v11018_v17, %v11014_v55 }
 0x409   : > { %v3934_v52 = vpop.permute.xlu0 %3933  ;;  %14759 = vst [vmem:[#allocation53_spill] sm:$0xff] %v11027_v16  ;;  %v11031_v14 = vpop.eup %8860 }
 0x40a   : > { %8263 = vmatprep.mubr.msk.bf16.mxu1 %vm1014_vm2, %v3934_v52  ;;  %2758 = vmax.xlane.f32.xlu1 %v2757_v26  ;;  %v11042_v31 = vpop.eup %8862 }
 0x40b   : > { %8264 = vmatmul.mubr.msk.bf16.gmra.mxu1 %vm1014_vm2, %v3934_v52  ;;  %v11025_v52 = vadd.f32 %v14757_v5, %v2259_v20  ;;  %v11038_v20 = vadd.f32 %v10969_v45, %v2263_v44  ;;  %14762 = vst [vmem:[#allocation56_spill] sm:$0xff] %v11042_v31  ;;  %v11046_v5 = vpop.eup %8864 }
 0x40c   : > { %14763 = vst [vmem:[#allocation57_spill] sm:$0xff] %v11046_v5  ;;  %v11048_v43 = vpop.eup %8866  ;;  %v1640_v45 = vadd.f32 %v11046_v5, %v11042_v31 }
 0x40d   : > { %v5444_v26 = vpop.permute.xlu0 %5443  ;;  %14758 = vst [vmem:[#allocation34_spill] sm:$0xff] %v11025_v52  ;;  %v2760_v2 = vmax.f32 %v11025_v52, %v11021_v58  ;;  %14761 = vst [vmem:[#allocation55_spill] sm:$0xff] %v11038_v20 }
 0x40e   : > { %v5524_v30 = vsel %vm1014_vm2, %v5444_v26, 0  ;;  %2764 = vmax.xlane.f32.xlu1 %v2763_v63  ;;  %v1817_v26 = vpop.permute.xlu1 %1816  ;;  %v1637_v63 = vadd.f32 %v11031_v14, %v11027_v16  ;;  %14764 = vst [vmem:[#allocation58_spill] sm:$0xff] %v11048_v43 }
 0x40f   : > { %8392 = vmatpush3.bf16.xpose.msra.mxu1 %v5524_v30  ;;  %v2766_v30 = vmax.f32 %v11038_v20, %v11035_v12  ;;  %v14766_v12 = vld [vmem:[#allocation27_spill] sm:$0xff] }
 0x410   : > { %v1436_v20 = vsub.f32 %v14766_v12, %v10922_v46 }
 0x411   : > { %v1833_v25 = vpop.permute.xlu0 %1832 }
 0x412   : > { %7959 = vmatprep.subr.bf16.mxu0 %v1833_v25  ;;  %1635 = vadd.xlane.f32.xlu1 %v1634_v57  ;;  %v11052_v21 = vpop.eup %8868  ;;  %v9572_v57 = vld [vmem:[#allocation2 + $0x18] sm:$0xff]   ;;  %v1536_v52 = vmul.f32 1.442695, %v1436_v20  ;;  %v14771_v20 = vld [vmem:[#allocation24_spill] sm:$0xff] }
 0x413   : > { %2761 = vmax.xlane.f32.xlu0 %v2760_v2  ;;  %7960 = vmatpush3.bf16.msra.mxu0 %v1817_v26  ;;  %14765 = vst [vmem:[#allocation59_spill] sm:$0xff] %v11052_v21  ;;  %v1643_v44 = vadd.f32 %v11052_v21, %v11048_v43  ;;  %v11057_v2 = vpop.f32.mrf.mxu1  ;;  %v1439_v43 = vsub.f32 %v14770_v37, %v10912_v15  ;;  %v2265_v37 = vunpack.c.l.bf16 %v2226_v1 }
 0x414   : > { %8870 = vpow2.f32 %v1536_v52 }
 0x415   : > { %v2631_v25 = vpop.f32.mrf.mxu1 }
 0x416   : > { %1638 = vadd.xlane.f32.xlu1 %v1637_v63  ;;  %v9573_v63 = vld [vmem:[#allocation2 + $0x20] sm:$0xff]  }
 0x417   : > { %2767 = vmax.xlane.f32.xlu0 %v2766_v30  ;;  %v2633_v26 = vpop.f32.mrf.mxu1 }
 0x419   : > { %v2635_v30 = vpop.f32.mrf.mxu1 }
 0x41b   : > { %1641 = vadd.xlane.f32.xlu0 %v1640_v45  ;;  %v14767_v45 = vld [vmem:[#allocation30_spill] sm:$0xff] }
 0x41c   : > { %v1437_v13 = vsub.f32 %v14767_v45, %v10922_v46  ;;  %v2266_v46 = vunpack.c.h.bf16 %v2226_v1  ;;  %v1542_v45 = vmul.f32 1.442695, %v1439_v43  ;;  %v14776_v1 = vld [vmem:[#allocation22_spill] sm:$0xff] }
 0x41e   : > { %v1538_v31 = vmul.f32 1.442695, %v1437_v13  ;;  %v14772_v13 = vld [vmem:[#allocation12_spill] sm:$0xff] }
 0x41f   : > { %1644 = vadd.xlane.f32.xlu0 %v1643_v44  ;;  %v11066_v44 = vpop.f32.mrf.mxu1 }
 0x420   : > { %8872 = vpow2.f32 %v1538_v31  ;;  %v11084_v31 = vadd.f32 %v11011_v10, %v2266_v46 }
 0x421   : > { %v2641_v12 = vpop.f32.mrf.mxu1 }
 0x427   : > { %5417 = vrot.lane.b32.xlu1 %v9572_v57, %s9681_s26  ;;  %v14769_v57 = vld [vmem:[#allocation7_spill] sm:$0xff] }
 0x428   : > { %v1438_v38 = vsub.f32 %v14769_v57, %v10912_v15  ;;  %v1441_v57 = vsub.f32 %v14772_v13, %v10932_v34  ;;  %v2228_v15 = vld [vmem:[#allocation4 + $0x148] sm:$0xff]  ;;  %14774 = vst [vmem:[#allocation7_spill] sm:$0xff] %v11084_v31  ;;  %v1443_v13 = vsub.f32 %v14776_v1, %v10924_v54 }
 0x429   : > { %v2270_v52 = vunpack.c.h.bf16 %v2228_v15  ;;  %v2269_v8 = vunpack.c.l.bf16 %v2228_v15  ;;  %v11106_v15 = vpop.eup %8870 }
 0x42a   : > { %v1540_v5 = vmul.f32 1.442695, %v1438_v38  ;;  %v11081_v38 = vpop.f32.mrf.mxu1  ;;  %14782 = vst [vmem:[#allocation60_spill] sm:$0xff] %v11106_v15 }
 0x42c   : > { %8874 = vpow2.f32 %v1540_v5  ;;  %v11095_v33 = vpop.f32.mrf.mxu1  ;;  %v11100_v5 = vadd.f32 %v2635_v30, %v2270_v52 }
 0x42d   : > { %8876 = vpow2.f32 %v1542_v45  ;;  %v11110_v30 = vpop.eup %8872 }
 0x42e   : > { %14779 = vst [vmem:[#allocation12_spill] sm:$0xff] %v11100_v5  ;;  %14783 = vst [vmem:[#allocation61_spill] sm:$0xff] %v11110_v30  ;;  %v1646_v1 = vadd.f32 %v11110_v30, %v11106_v15  ;;  %v14799_v15 = vld [vmem:[#allocation37_spill] sm:$0xff]  ;;  %v2232_v30 = vld [vmem:[#allocation4 + $0x168] sm:$0xff] }
 0x435   : > { %5419 = vrot.lane.b32.xlu0 %v9573_v63, %s9681_s26 }
 0x43a   : > { %v11064_v58 = vpop.xlane.xlu1 %1398 }
 0x43b   : > { %14768 = vst [vmem:[#allocation27_spill] sm:$0xff] %v11064_v58  ;;  %v1440_v58 = vsub.f32 %v14771_v20, %v10932_v34  ;;  %v1546_v34 = vmul.f32 1.442695, %v1441_v57 }
 0x43d   : > { %v1544_v43 = vmul.f32 1.442695, %v1440_v58  ;;  %v2227_v58 = vld [vmem:[#allocation4 + $0x140] sm:$0xff] }
 0x43e   : > { %v5412_v63 = vpop.permute.xlu1 %5411  ;;  %v2268_v45 = vunpack.c.h.bf16 %v2227_v58 }
 0x43f   : > { %8393 = vmatprep.mubr.msk.bf16.mxu1 %vm1014_vm2, %v5412_v63  ;;  %8878 = vpow2.f32 %v1544_v43 }
 0x440   : > { %8394 = vmatmul.mubr.msk.bf16.vlgmr.msra.gmra.mxu1 %vm1014_vm2, %v5412_v63  ;;  %v14775_v63 = vld [vmem:[#allocation33_spill] sm:$0xff]  ;;  %8880 = vpow2.f32 %v1546_v34  ;;  %v11112_v52 = vadd.f32 %v2631_v25, %v2268_v45  ;;  %v11119_v34 = vpop.eup %8874 }
 0x441   : > { %v1442_v20 = vsub.f32 %v14775_v63, %v10924_v54  ;;  %v1550_v54 = vmul.f32 1.442695, %v1443_v13  ;;  %v2229_v63 = vld [vmem:[#allocation4 + $0x150] sm:$0xff]  ;;  %14787 = vst [vmem:[#allocation65_spill] sm:$0xff] %v11119_v34  ;;  %v11123_v13 = vpop.eup %8876 }
 0x442   : > { %v5414_v55 = vpop.permute.xlu1 %5413  ;;  %v11078_v21 = vpop.xlane.xlu0 %1395  ;;  %14784 = vst [vmem:[#allocation62_spill] sm:$0xff] %v11112_v52  ;;  %v2272_v43 = vunpack.c.h.bf16 %v2229_v63  ;;  %14788 = vst [vmem:[#allocation66_spill] sm:$0xff] %v11123_v13 }
 0x443   : > { %14773 = vst [vmem:[#allocation30_spill] sm:$0xff] %v11078_v21  ;;  %8395 = vmatprep.mubr.msk.bf16.mxu1 %vm1014_vm2, %v5414_v55  ;;  %v11091_v21 = vadd.f32 %v10999_v59, %v2265_v37  ;;  %v1548_v46 = vmul.f32 1.442695, %v1442_v20  ;;  %v11102_v59 = vadd.f32 %v2633_v26, %v2269_v8  ;;  %v2267_v37 = vunpack.c.l.bf16 %v2227_v58 }
 0x444   : > { %v2271_v26 = vunpack.c.l.bf16 %v2229_v63 }
 0x445   : > { %14777 = vst [vmem:[#allocation16_spill] sm:$0xff] %v11091_v21  ;;  %v2769_v10 = vmax.f32 %v11091_v21, %v11084_v31  ;;  %14780 = vst [vmem:[#allocation33_spill] sm:$0xff] %v11102_v59  ;;  %8882 = vpow2.f32 %v1548_v46  ;;  %v11117_v8 = vadd.f32 %v11057_v2, %v2267_v37  ;;  %v1649_v2 = vadd.f32 %v11123_v13, %v11119_v34  ;;  %v14795_v31 = vld [vmem:[#allocation36_spill] sm:$0xff] }
 0x446   : > { %v11093_v16 = vpop.xlane.xlu0 %2749  ;;  %8884 = vpow2.f32 %v1550_v54  ;;  %v11132_v46 = vadd.f32 %v11066_v44, %v2271_v26  ;;  %v1444_v21 = vsub.f32 %v14795_v31, %v10944_v51 }
 0x447   : > { %14778 = vst [vmem:[#allocation24_spill] sm:$0xff] %v11093_v16  ;;  %14786 = vst [vmem:[#allocation64_spill] sm:$0xff] %v11117_v8  ;;  %v2772_v25 = vmax.f32 %v11117_v8, %v11112_v52  ;;  %v9575_v52 = vld [vmem:[#allocation2 + $0x30] sm:$0xff]   ;;  %v14797_v16 = vld [vmem:[#allocation40_spill] sm:$0xff] }
 0x448   : > { %8396 = vmatmul.mubr.msk.bf16.gmra.mxu1 %vm1014_vm2, %v5414_v55  ;;  %v2775_v55 = vmax.f32 %v11102_v59, %v11100_v5  ;;  %14790 = vst [vmem:[#allocation68_spill] sm:$0xff] %v11132_v46 }
 0x44a   : > { %v11104_v57 = vpop.xlane.xlu0 %2752 }
 0x44b   : > { %14781 = vst [vmem:[#allocation22_spill] sm:$0xff] %v11104_v57  ;;  %2770 = vmax.xlane.f32.xlu1 %v2769_v10  ;;  %v11127_v10 = vadd.f32 %v2641_v12, %v2272_v43 }
 0x44c   : > { %v11136_v45 = vpop.eup %8878 }
 0x44d   : > { %14789 = vst [vmem:[#allocation67_spill] sm:$0xff] %v11127_v10  ;;  %14791 = vst [vmem:[#allocation69_spill] sm:$0xff] %v11136_v45  ;;  %v2778_v54 = vmax.f32 %v11132_v46, %v11127_v10  ;;  %v11140_v37 = vpop.eup %8880  ;;  %v9574_v46 = vld [vmem:[#allocation2 + $0x28] sm:$0xff]  }
 0x44e   : > { %v11114_v20 = vpop.xlane.xlu0 %2755  ;;  %14792 = vst [vmem:[#allocation70_spill] sm:$0xff] %v11140_v37  ;;  %v1652_v44 = vadd.f32 %v11140_v37, %v11136_v45  ;;  %v1552_v45 = vmul.f32 1.442695, %v1444_v21  ;;  %v2230_v37 = vld [vmem:[#allocation4 + $0x158] sm:$0xff] }
 0x44f   : > { %14785 = vst [vmem:[#allocation63_spill] sm:$0xff] %v11114_v20  ;;  %2776 = vmax.xlane.f32.xlu1 %v2775_v55  ;;  %v2274_v34 = vunpack.c.h.bf16 %v2230_v37  ;;  %v2273_v21 = vunpack.c.l.bf16 %v2230_v37 }
 0x452   : > { %v11129_v58 = vpop.xlane.xlu0 %1617  ;;  %v11144_v12 = vpop.eup %8882 }
 0x453   : > { %1647 = vadd.xlane.f32.xlu1 %v1646_v1  ;;  %14793 = vst [vmem:[#allocation71_spill] sm:$0xff] %v11144_v12  ;;  %v11148_v63 = vpop.eup %8884 }
 0x454   : > { %2773 = vmax.xlane.f32.xlu0 %v2772_v25  ;;  %14794 = vst [vmem:[#allocation72_spill] sm:$0xff] %v11148_v63  ;;  %v1655_v26 = vadd.f32 %v11148_v63, %v11144_v12  ;;  %v11156_v25 = vpop.f32.mrf.mxu1  ;;  %v1446_v12 = vsub.f32 %v14797_v16, %v10934_v53 }
 0x456   : > { %v11142_v55 = vpop.xlane.xlu0 %1620 }
 0x457   : > { %1650 = vadd.xlane.f32.xlu1 %v1649_v2 }
 0x458   : > { %2779 = vmax.xlane.f32.xlu0 %v2778_v54  ;;  %v11160_v54 = vpop.f32.mrf.mxu1 }
 0x45a   : > { %v11150_v43 = vpop.xlane.xlu0 %1623  ;;  %v11165_v5 = vpop.f32.mrf.mxu1 }
 0x45c   : > { %1653 = vadd.xlane.f32.xlu0 %v1652_v44  ;;  %v2655_v59 = vpop.f32.mrf.mxu1 }
 0x45e   : > { %v11154_v1 = vpop.xlane.xlu0 %1626 }
 0x460   : > { %1656 = vadd.xlane.f32.xlu0 %v1655_v26 }
 0x462   : > { %v11158_v2 = vpop.xlane.xlu0 %1629 }
 0x466   : > { %v11162_v10 = vpop.xlane.xlu0 %1632 }
 0x468   : > { %5421 = vrot.lane.b32.xlu1 %v9574_v46, %s9681_s26  ;;  %v14796_v46 = vld [vmem:[#allocation26_spill] sm:$0xff] }
 0x469   : > { %v1445_v20 = vsub.f32 %v14796_v46, %v10944_v51  ;;  %v1448_v51 = vsub.f32 %v14799_v15, %v10953_v24  ;;  %v14800_v46 = vld [vmem:[#allocation14_spill] sm:$0xff] }
 0x46a   : > { %v5416_v44 = vpop.permute.xlu0 %5415  ;;  %v1449_v13 = vsub.f32 %v14800_v46, %v10953_v24 }
 0x46b   : > { %8397 = vmatprep.mubr.msk.bf16.mxu1 %vm1014_vm2, %v5416_v44 }
 0x46c   : > { %8398 = vmatmul.mubr.msk.bf16.gmra.mxu1 %vm1014_vm2, %v5416_v44  ;;  %v14798_v44 = vld [vmem:[#allocation31_spill] sm:$0xff]  ;;  %v1562_v24 = vmul.f32 1.442695, %v1449_v13 }
 0x46d   : > { %v1447_v63 = vsub.f32 %v14798_v44, %v10934_v53  ;;  %v14801_v53 = vld [vmem:[#allocation19_spill] sm:$0xff]  ;;  %v11185_v44 = vadd.f32 %v11095_v33, %v2274_v34  ;;  %v11194_v33 = vadd.f32 %v11081_v38, %v2273_v21  ;;  %v2277_v34 = vunpack.c.l.bf16 %v2232_v30 }
 0x46f   : > { %v1558_v31 = vmul.f32 1.442695, %v1447_v63  ;;  %v11201_v38 = vadd.f32 %v11165_v5, %v2277_v34 }
 0x473   : > { %v1594_v26 = vpop.xlane.xlu1 %1593 }
 0x474   : > { %8886 = vrcp.f32 %v1594_v26  ;;  %v1554_v26 = vmul.f32 1.442695, %v1445_v20 }
 0x476   : > { %5423 = vrot.lane.b32.xlu0 %v9575_v52, %s9681_s26 }
 0x477   : > { %v1597_v8 = vpop.xlane.xlu1 %1596 }
 0x478   : > { %8888 = vrcp.f32 %v1597_v8  ;;  %v1556_v8 = vmul.f32 1.442695, %v1446_v12  ;;  %v2278_v12 = vunpack.c.h.bf16 %v2232_v30 }
 0x47a   : > { %v11196_v13 = vadd.f32 %v2655_v59, %v2278_v12  ;;  %v2233_v12 = vld [vmem:[#allocation4 + $0x170] sm:$0xff] }
 0x47b   : > { %v1600_v57 = vpop.xlane.xlu1 %1599 }
 0x47c   : > { %8890 = vrcp.f32 %v1600_v57  ;;  %v1450_v57 = vsub.f32 %v14801_v53, %v10957_v48  ;;  %v2787_v21 = vmax.f32 %v11201_v38, %v11196_v13 }
 0x47f   : > { %v1603_v52 = vpop.xlane.xlu1 %1602 }
 0x480   : > { %8892 = vrcp.f32 %v1603_v52  ;;  %v1560_v52 = vmul.f32 1.442695, %v1448_v51 }
 0x481   : > { %8894 = vpow2.f32 %v1552_v45  ;;  %v8887_v16 = vpop.eup %8886  ;;  %v14802_v45 = vld [vmem:[#allocation8_spill] sm:$0xff] }
 0x482   : > { %8896 = vpow2.f32 %v1554_v26  ;;  %v1451_v63 = vsub.f32 %v14802_v45, %v10957_v48  ;;  %v1721_v26 = vmul.f32 %v8887_v16, %v10892_v32  ;;  %v1720_v46 = vmul.f32 %v8887_v16, %v10888_v62  ;;  %v2231_v62 = vld [vmem:[#allocation4 + $0x160] sm:$0xff] }
 0x483   : > { %v1606_v20 = vpop.xlane.xlu1 %1605  ;;  %8898 = vpow2.f32 %v1556_v8  ;;  %v1564_v8 = vmul.f32 1.442695, %v1450_v57  ;;  %v2275_v16 = vunpack.c.l.bf16 %v2231_v62 }
 0x484   : > { %8900 = vpow2.f32 %v1558_v31  ;;  %v1566_v48 = vmul.f32 1.442695, %v1451_v63 }
 0x485   : > { %v8889_v15 = vpop.eup %8888  ;;  %8902 = vrcp.f32 %v1606_v20 }
 0x486   : > { %v1723_v37 = vmul.f32 %v8889_v15, %v10906_v49  ;;  %v1722_v53 = vmul.f32 %v8889_v15, %v10900_v0  ;;  %v2781_v49 = vmax.f32 %v11194_v33, %v11185_v44  ;;  %v2276_v0 = vunpack.c.h.bf16 %v2231_v62 }
 0x487   : > { %v1609_v17 = vpop.xlane.xlu1 %1608 }
 0x488   : > { %8904 = vrcp.f32 %v1609_v17  ;;  %v1785_v31 = vpack.c.bf16 %v1723_v37, %v1721_v26  ;;  %v1784_v51 = vpack.c.bf16 %v1722_v53, %v1720_v46  ;;  %v2659_v17 = vpop.f32.mrf.mxu1 }
 0x489   : > { %8906 = vpow2.f32 %v1560_v52  ;;  %v8891_v32 = vpop.eup %8890  ;;  %v11215_v52 = vadd.f32 %v11160_v54, %v2276_v0 }
 0x48a   : > { %8908 = vpow2.f32 %v1562_v24  ;;  %1896 = vmatprep.mubr.bf16.mxu0 %v1785_v31  ;;  %v1725_v57 = vmul.f32 %v8891_v32, %v10920_v39  ;;  %v1724_v45 = vmul.f32 %v8891_v32, %v10914_v4  ;;  %v2280_v24 = vunpack.c.h.bf16 %v2233_v12  ;;  %v2661_v39 = vpop.f32.mrf.mxu1 }
 0x48b   : > { %8910 = vpow2.f32 %v1564_v8  ;;  %1897 = vmatmul.mubr.bf16.vlgmr.msra.gmra.mxu0 %v1784_v51  ;;  %v1612_v30 = vpop.xlane.xlu1 %1611  ;;  %14803 = vst [vmem:[#allocation36_spill] sm:$0xff] %v11215_v52  ;;  %v11221_v4 = vadd.f32 %v11156_v25, %v2275_v16 }
 0x48c   : > { %8912 = vpow2.f32 %v1566_v48  ;;  %2782 = vmax.xlane.f32.xlu1 %v2781_v49  ;;  %v11229_v34 = vadd.f32 %v2661_v39, %v2280_v24 }
 0x48d   : > { %v8893_v59 = vpop.eup %8892  ;;  %8914 = vrcp.f32 %v11142_v55  ;;  %14804 = vst [vmem:[#allocation26_spill] sm:$0xff] %v11221_v4 }
 0x48e   : > { %v11207_v20 = vpop.eup %8894  ;;  %8916 = vrcp.f32 %v1612_v30  ;;  %v1727_v5 = vmul.f32 %v8893_v59, %v10930_v19  ;;  %v1726_v63 = vmul.f32 %v8893_v59, %v10926_v56  ;;  %v2279_v56 = vunpack.c.l.bf16 %v2233_v12  ;;  %14805 = vst [vmem:[#allocation40_spill] sm:$0xff] %v11229_v34 }
 0x48f   : > { %v11212_v15 = vpop.eup %8896  ;;  %8918 = vrcp.f32 %v11129_v58  ;;  %v1615_v55 = vpop.xlane.xlu1 %1614  ;;  %v2784_v58 = vmax.f32 %v11221_v4, %v11215_v52  ;;  %v14874_v52 = vld [vmem:[#allocation11_spill] sm:$0xff] }
 0x490   : > { %8920 = vrcp.f32 %v1615_v55  ;;  %2788 = vmax.xlane.f32.xlu1 %v2787_v21  ;;  %v1787_v26 = vpack.c.bf16 %v1727_v5, %v1725_v57  ;;  %v1786_v37 = vpack.c.bf16 %v1726_v63, %v1724_v45  ;;  %v11218_v46 = vpop.eup %8898  ;;  %v1658_v54 = vadd.f32 %v11212_v15, %v11207_v20  ;;  %v11255_v21 = vpop.f32.mrf.mxu1 }
 0x491   : > { %v11223_v19 = vpop.eup %8900  ;;  %v11233_v25 = vadd.f32 %v2659_v17, %v2279_v56  ;;  %8922 = vrcp.f32 %v11154_v1 }
 0x492   : > { %1904 = vmatprep.mubr.bf16.mxu0 %v1787_v26  ;;  %v8903_v53 = vpop.eup %8902  ;;  %v1661_v31 = vadd.f32 %v11223_v19, %v11218_v46  ;;  %8924 = vrcp.f32 %v11150_v43  ;;  %v11263_v24 = vpop.f32.mrf.mxu1 }
 0x493   : > { %1905 = vmatmul.mubr.bf16.gmra.mxu0 %v1786_v37  ;;  %v11231_v8 = vpop.xlane.xlu1 %2758  ;;  %14806 = vst [vmem:[#allocation31_spill] sm:$0xff] %v11233_v25  ;;  %v1729_v32 = vmul.f32 %v8903_v53, %v10941_v50  ;;  %v2790_v30 = vmax.f32 %v11233_v25, %v11229_v34  ;;  %v1728_v59 = vmul.f32 %v8903_v53, %v10936_v18  ;;  %8926 = vrcp.f32 %v11162_v10 }
 0x494   : > { %1659 = vadd.xlane.f32.xlu1 %v1658_v54  ;;  %8928 = vrcp.f32 %v11158_v2  ;;  %v2851_v4 = vsub.f32 %v14874_v52, %v11231_v8 }
 0x495   : > { %v8905_v48 = vpop.eup %8904  ;;  %2785 = vmax.xlane.f32.xlu0 %v2784_v58 }
 0x496   : > { %v11237_v51 = vpop.eup %8906  ;;  %v1731_v49 = vmul.f32 %v8905_v48, %v10951_v11  ;;  %v1730_v62 = vmul.f32 %v8905_v48, %v10946_v3 }
 0x497   : > { %v11243_v0 = vpop.eup %8908  ;;  %v11247_v17 = vpop.xlane.xlu1 %2764 }
 0x498   : > { %v11250_v16 = vpop.eup %8910  ;;  %1662 = vadd.xlane.f32.xlu1 %v1661_v31  ;;  %v1789_v1 = vpack.c.bf16 %v1731_v49, %v1729_v32  ;;  %v1788_v11 = vpack.c.bf16 %v1730_v62, %v1728_v59  ;;  %v1664_v18 = vadd.f32 %v11243_v0, %v11237_v51  ;;  %v9576_v59 = vld [vmem:[#allocation2 + $0x38] sm:$0xff]  }
 0x499   : > { %v11253_v50 = vpop.eup %8912  ;;  %2791 = vmax.xlane.f32.xlu0 %v2790_v30 }
 0x49a   : > { %v8915_v3 = vpop.eup %8914  ;;  %1912 = vmatprep.mubr.bf16.mxu0 %v1789_v1  ;;  %v1667_v54 = vadd.f32 %v11253_v50, %v11250_v16 }
 0x49b   : > { %v8917_v57 = vpop.eup %8916  ;;  %1913 = vmatmul.mubr.bf16.gmra.mxu0 %v1788_v11  ;;  %v1636_v12 = vpop.xlane.xlu1 %1635  ;;  %v1739_v63 = vmul.f32 %v8915_v3, %v10838_v35  ;;  %v1738_v2 = vmul.f32 %v8915_v3, %v10834_v28 }
 0x49c   : > { %v8919_v5 = vpop.eup %8918  ;;  %v11259_v45 = vpop.xlane.xlu0 %2761  ;;  %v1733_v55 = vmul.f32 %v8917_v57, %v10965_v7  ;;  %v1732_v26 = vmul.f32 %v8917_v57, %v10959_v27 }
 0x49d   : > { %v8921_v43 = vpop.eup %8920  ;;  %1665 = vadd.xlane.f32.xlu0 %v1664_v18  ;;  %v1737_v58 = vmul.f32 %v8919_v5, %v10829_v40  ;;  %v11275_v7 = vpop.f32.mrf.mxu1  ;;  %v1736_v49 = vmul.f32 %v8919_v5, %v10825_v23 }
 0x49e   : > { %v1735_v39 = vmul.f32 %v8921_v43, %v10977_v61  ;;  %v1734_v37 = vmul.f32 %v8921_v43, %v10971_v22  ;;  %v8923_v27 = vpop.eup %8922 }
 0x49f   : > { %v1639_v56 = vpop.xlane.xlu1 %1638  ;;  %v1793_v61 = vpack.c.bf16 %v1739_v63, %v1737_v58  ;;  %v8925_v31 = vpop.eup %8924  ;;  %v1743_v40 = vmul.f32 %v8923_v27, %v10854_v29  ;;  %v1792_v1 = vpack.c.bf16 %v1738_v2, %v1736_v49  ;;  %v1742_v23 = vmul.f32 %v8923_v27, %v10848_v36  ;;  %v14810_v27 = vld [vmem:[#allocation10_spill] sm:$0xff]  ;;  %v14812_v2 = vld [vmem:[#allocation25_spill] sm:$0xff]  ;;  %v14814_v49 = vld [vmem:[#allocation59_spill] sm:$0xff] }
 0x4a0   : > { %v11272_v10 = vpop.xlane.xlu0 %2767  ;;  %v1791_v53 = vpack.c.bf16 %v1735_v39, %v1733_v55  ;;  %v1790_v35 = vpack.c.bf16 %v1734_v37, %v1732_v26  ;;  %v11280_v32 = vpop.f32.mrf.mxu1  ;;  %8930 = vrcp.f32 %v1639_v56  ;;  %v1741_v30 = vmul.f32 %v8925_v31, %v10844_v60  ;;  %v9577_v37 = vld [vmem:[#allocation2 + $0x40] sm:$0xff]   ;;  %v14807_v56 = vld [vmem:[#allocation42_spill] sm:$0xff] }
 0x4a1   : > { %1668 = vadd.xlane.f32.xlu0 %v1667_v54  ;;  %8932 = vrcp.f32 %v1636_v12  ;;  %v8927_v11 = vpop.eup %8926  ;;  %v1740_v12 = vmul.f32 %v8925_v31, %v10840_v47 }
 0x4a2   : > { %1920 = vmatprep.mubr.bf16.mxu0 %v1791_v53  ;;  %v11286_v57 = vpop.f32.mrf.mxu1  ;;  %v1795_v18 = vpack.c.bf16 %v1743_v40, %v1741_v30  ;;  %v8929_v3 = vpop.eup %8928  ;;  %v1747_v60 = vmul.f32 %v8927_v11, %v10874_v41  ;;  %v1746_v36 = vmul.f32 %v8927_v11, %v10868_v9  ;;  %v14808_v53 = vld [vmem:[#allocation35_spill] sm:$0xff]  ;;  %v14816_v11 = vld [vmem:[#allocation44_spill] sm:$0xff] }
 0x4a3   : > { %1921 = vmatmul.mubr.bf16.gmra.mxu0 %v1790_v35  ;;  %v5418_v22 = vpop.permute.xlu1 %5417  ;;  %v1745_v5 = vmul.f32 %v8929_v3, %v10864_v6  ;;  %v1794_v43 = vpack.c.bf16 %v1742_v23, %v1740_v12  ;;  %v1744_v41 = vmul.f32 %v8929_v3, %v10858_v42  ;;  %v14809_v6 = vld [vmem:[#allocation20_spill] sm:$0xff]  ;;  %v14813_v40 = vld [vmem:[#allocation39_spill] sm:$0xff]  ;;  %v2234_v23 = vld [vmem:[#allocation4 + $0x178] sm:$0xff] }
 0x4a4   : > { %v1642_v48 = vpop.xlane.xlu0 %1641  ;;  %1928 = vmatprep.mubr.bf16.mxu0 %v1793_v61  ;;  %8399 = vmatprep.mubr.msk.bf16.mxu1 %vm1014_vm2, %v5418_v22  ;;  %v11290_v29 = vpop.f32.mrf.mxu1  ;;  %v1452_v35 = vsub.f32 %v14809_v6, %v14808_v53  ;;  %v1454_v42 = vsub.f32 %v14813_v40, %v14812_v2  ;;  %v2282_v12 = vunpack.c.h.bf16 %v2234_v23 }
 0x4a5   : > { %8400 = vmatmul.mubr.msk.bf16.gmra.mxu1 %vm1014_vm2, %v5418_v22  ;;  %v1797_v63 = vpack.c.bf16 %v1747_v60, %v1745_v5  ;;  %v1796_v54 = vpack.c.bf16 %v1746_v36, %v1744_v41  ;;  %v1453_v22 = vsub.f32 %v14810_v27, %v14808_v53  ;;  %v14819_v36 = vld [vmem:[#allocation17_spill] sm:$0xff]  ;;  %v14824_v27 = vld [vmem:[#allocation15_spill] sm:$0xff] }
 0x4a6   : > { %v1568_v31 = vmul.f32 1.442695, %v1452_v35  ;;  %v1572_v5 = vmul.f32 1.442695, %v1454_v42  ;;  %v11319_v53 = vadd.f32 %v11263_v24, %v2282_v12 }
 0x4a7   : > { %v1570_v30 = vmul.f32 1.442695, %v1453_v22 }
 0x4a8   : > { %v1645_v62 = vpop.xlane.xlu0 %1644  ;;  %14822 = vst [vmem:[#allocation37_spill] sm:$0xff] %v11319_v53 }
 0x4a9   : > { %5425 = vrot.lane.b32.xlu1 %v9576_v59, %s9681_s26  ;;  %8934 = vrcp.f32 %v1645_v62  ;;  %v14815_v59 = vld [vmem:[#allocation13_spill] sm:$0xff] }
 0x4aa   : > { %8936 = vrcp.f32 %v1642_v48 }
 0x4ab   : > { %1929 = vmatmul.mubr.bf16.gmra.mxu0 %v1792_v1  ;;  %v1455_v1 = vsub.f32 %v14815_v59, %v14812_v2  ;;  %8938 = vpow2.f32 %v1568_v31  ;;  %v14826_v2 = vld [vmem:[#allocation23_spill] sm:$0xff] }
 0x4ac   : > { %v5420_v28 = vpop.permute.xlu0 %5419  ;;  %1936 = vmatprep.mubr.bf16.mxu0 %v1795_v18  ;;  %8940 = vpow2.f32 %v1570_v30 }
 0x4ad   : > { %8401 = vmatprep.mubr.msk.bf16.mxu1 %vm1014_vm2, %v5420_v28  ;;  %v8931_v55 = vpop.eup %8930  ;;  %8942 = vpow2.f32 %v1572_v5 }
 0x4ae   : > { %8402 = vmatmul.mubr.msk.bf16.gmra.mxu1 %vm1014_vm2, %v5420_v28  ;;  %v8933_v39 = vpop.eup %8932  ;;  %v1751_v26 = vmul.f32 %v8931_v55, %v11031_v14  ;;  %v14811_v14 = vld [vmem:[#allocation53_spill] sm:$0xff] }
 0x4af   : > { %v1749_v47 = vmul.f32 %v8933_v39, %v14807_v56  ;;  %v1750_v48 = vmul.f32 %v8931_v55, %v14811_v14  ;;  %v1748_v18 = vmul.f32 %v8933_v39, %v14816_v11  ;;  %v14817_v28 = vld [vmem:[#allocation57_spill] sm:$0xff]  ;;  %v2281_v56 = vunpack.c.l.bf16 %v2234_v23  ;;  %v2236_v39 = vld [vmem:[#allocation4 + $0x188] sm:$0xff] }
 0x4b0   : > { %v14818_v55 = vld [vmem:[#allocation9_spill] sm:$0xff]  ;;  %v2286_v6 = vunpack.c.h.bf16 %v2236_v39  ;;  %v14825_v14 = vld [vmem:[#allocation56_spill] sm:$0xff] }
 0x4b1   : > { %v1799_v58 = vpack.c.bf16 %v1751_v26, %v1749_v47  ;;  %v1798_v60 = vpack.c.bf16 %v1750_v48, %v1748_v18  ;;  %v1456_v26 = vsub.f32 %v14819_v36, %v14818_v55  ;;  %v14821_v47 = vld [vmem:[#allocation58_spill] sm:$0xff]  ;;  %v11327_v42 = vadd.f32 %v11255_v21, %v2281_v56  ;;  %v2679_v21 = vpop.f32.mrf.mxu1  ;;  %v2237_v23 = vld [vmem:[#allocation4 + $0x190] sm:$0xff] }
 0x4b2   : > { %v11332_v30 = vadd.f32 %v11290_v29, %v2286_v6  ;;  %v2288_v12 = vunpack.c.h.bf16 %v2237_v23 }
 0x4b3   : > { %1937 = vmatmul.mubr.bf16.gmra.mxu0 %v1794_v43  ;;  %v1576_v35 = vmul.f32 1.442695, %v1456_v26  ;;  %14827 = vst [vmem:[#allocation14_spill] sm:$0xff] %v11327_v42  ;;  %v2793_v24 = vmax.f32 %v11327_v42, %v11319_v53  ;;  %v2681_v5 = vpop.f32.mrf.mxu1 }
 0x4b4   : > { %1944 = vmatprep.mubr.bf16.mxu0 %v1797_v63  ;;  %v1574_v63 = vmul.f32 1.442695, %v1455_v1  ;;  %14828 = vst [vmem:[#allocation19_spill] sm:$0xff] %v11332_v30 }
 0x4b5   : > { %v11373_v6 = vpop.f32.mrf.mxu1 }
 0x4b6   : > { %v8935_v61 = vpop.eup %8934  ;;  %8944 = vpow2.f32 %v1574_v63 }
 0x4b7   : > { %5427 = vrot.lane.b32.xlu0 %v9577_v37, %s9681_s26  ;;  %v8937_v9 = vpop.eup %8936  ;;  %v1755_v62 = vmul.f32 %v8935_v61, %v14814_v49  ;;  %v14820_v37 = vld [vmem:[#allocation41_spill] sm:$0xff]  ;;  %8946 = vpow2.f32 %v1576_v35 }
 0x4b8   : > { %v1753_v3 = vmul.f32 %v8937_v9, %v14817_v28  ;;  %v1457_v41 = vsub.f32 %v14820_v37, %v14818_v55  ;;  %v1752_v48 = vmul.f32 %v8937_v9, %v14825_v14  ;;  %v11337_v28 = vpop.eup %8938 }
 0x4b9   : > { %v11341_v29 = vpop.eup %8940 }
 0x4ba   : > { %v1801_v43 = vpack.c.bf16 %v1755_v62, %v1753_v3  ;;  %v1578_v31 = vmul.f32 1.442695, %v1457_v41  ;;  %v2235_v62 = vld [vmem:[#allocation4 + $0x180] sm:$0xff]  ;;  %v11349_v63 = vpop.eup %8942  ;;  %v1670_v55 = vadd.f32 %v11341_v29, %v11337_v28 }
 0x4bb   : > { %1945 = vmatmul.mubr.bf16.gmra.mxu0 %v1796_v54  ;;  %v1754_v54 = vmul.f32 %v8935_v61, %v14821_v47  ;;  %v2285_v61 = vunpack.c.l.bf16 %v2236_v39  ;;  %v2284_v9 = vunpack.c.h.bf16 %v2235_v62  ;;  %v2283_v18 = vunpack.c.l.bf16 %v2235_v62 }
 0x4bc   : > { %1952 = vmatprep.mubr.bf16.mxu0 %v1799_v58  ;;  %v14823_v58 = vld [vmem:[#allocation18_spill] sm:$0xff]  ;;  %8948 = vpow2.f32 %v1578_v31 }
 0x4bd   : > { %v1458_v22 = vsub.f32 %v14824_v27, %v14823_v58  ;;  %v1459_v40 = vsub.f32 %v14826_v2, %v14823_v58  ;;  %v1800_v49 = vpack.c.bf16 %v1754_v54, %v1752_v48  ;;  %v11335_v11 = vadd.f32 %v11286_v57, %v2285_v61  ;;  %v2685_v48 = vpop.f32.mrf.mxu1 }
 0x4be   : > { %v11347_v57 = vadd.f32 %v11275_v7, %v2283_v18 }
 0x4bf   : > { %v1580_v59 = vmul.f32 1.442695, %v1458_v22  ;;  %v1582_v1 = vmul.f32 1.442695, %v1459_v40  ;;  %14829 = vst [vmem:[#allocation8_spill] sm:$0xff] %v11335_v11  ;;  %v2799_v3 = vmax.f32 %v11335_v11, %v11332_v30  ;;  %v11387_v61 = vpop.f32.mrf.mxu1 }
 0x4c0   : > { %14831 = vst [vmem:[#allocation35_spill] sm:$0xff] %v11347_v57 }
 0x4c1   : > { %8950 = vpow2.f32 %v1580_v59  ;;  %v11391_v62 = vpop.f32.mrf.mxu1 }
 0x4c2   : > { %8952 = vpow2.f32 %v1582_v1 }
 0x4c3   : > { %1953 = vmatmul.mubr.bf16.gmra.mxu0 %v1798_v60  ;;  %v11344_v60 = vadd.f32 %v11280_v32, %v2284_v9  ;;  %v11353_v36 = vpop.eup %8944  ;;  %v11357_v32 = vadd.f32 %v2681_v5, %v2288_v12  ;;  %v9578_v9 = vld [vmem:[#allocation2 + $0x48] sm:$0xff]   ;;  %v2693_v1 = vpop.f32.mrf.mxu1  ;;  %v14834_v12 = vld [vmem:[#allocation61_spill] sm:$0xff] }
 0x4c4   : > { %1960 = vmatprep.mubr.bf16.mxu0 %v1801_v43  ;;  %v2287_v43 = vunpack.c.l.bf16 %v2237_v23  ;;  %v1673_v7 = vadd.f32 %v11353_v36, %v11349_v63  ;;  %v11365_v56 = vpop.eup %8946 }
 0x4c5   : > { %14830 = vst [vmem:[#allocation42_spill] sm:$0xff] %v11344_v60  ;;  %v2796_v26 = vmax.f32 %v11347_v57, %v11344_v60  ;;  %14832 = vst [vmem:[#allocation20_spill] sm:$0xff] %v11357_v32  ;;  %v2695_v23 = vpop.f32.mrf.mxu1  ;;  %v14859_v57 = vld [vmem:[#allocation48_spill] sm:$0xff] }
 0x4c6   : > { %v11361_v41 = vadd.f32 %v2679_v21, %v2287_v43  ;;  %v14835_v43 = vld [vmem:[#allocation66_spill] sm:$0xff] }
 0x4c8   : > { %14833 = vst [vmem:[#allocation10_spill] sm:$0xff] %v11361_v41  ;;  %v2802_v39 = vmax.f32 %v11361_v41, %v11357_v32 }
 0x4c9   : > { %v11371_v54 = vpop.eup %8948 }
 0x4ca   : > { %v1676_v27 = vadd.f32 %v11371_v54, %v11365_v56 }
 0x4cb   : > { %1961 = vmatmul.mubr.bf16.gmra.mxu0 %v1800_v49 }
 0x4cd   : > { %2794 = vmax.xlane.f32.xlu1 %v2793_v24 }
 0x4ce   : > { %v11375_v35 = vpop.eup %8950 }
 0x4cf   : > { %v11379_v22 = vpop.eup %8952 }
 0x4d0   : > { %v1679_v2 = vadd.f32 %v11379_v22, %v11375_v35 }
 0x4d1   : > { %2800 = vmax.xlane.f32.xlu1 %v2799_v3 }
 0x4d4   : > { %v11359_v37 = vpop.xlane.xlu1 %2770 }
 0x4d5   : > { %1671 = vadd.xlane.f32.xlu1 %v1670_v55 }
 0x4d6   : > { %2797 = vmax.xlane.f32.xlu0 %v2796_v26  ;;  %v14836_v26 = vld [vmem:[#allocation60_spill] sm:$0xff] }
 0x4d8   : > { %v11369_v47 = vpop.xlane.xlu1 %2776 }
 0x4d9   : > { %1674 = vadd.xlane.f32.xlu1 %v1673_v7 }
 0x4da   : > { %2803 = vmax.xlane.f32.xlu0 %v2802_v39  ;;  %v14837_v39 = vld [vmem:[#allocation65_spill] sm:$0xff] }
 0x4dc   : > { %v1648_v58 = vpop.xlane.xlu1 %1647 }
 0x4dd   : > { %v11381_v14 = vpop.xlane.xlu0 %2773  ;;  %8954 = vrcp.f32 %v1648_v58 }
 0x4de   : > { %1677 = vadd.xlane.f32.xlu0 %v1676_v27 }
 0x4e0   : > { %v1651_v31 = vpop.xlane.xlu1 %1650 }
 0x4e1   : > { %v11385_v40 = vpop.xlane.xlu0 %2779  ;;  %8956 = vrcp.f32 %v1651_v31 }
 0x4e2   : > { %1680 = vadd.xlane.f32.xlu0 %v1679_v2 }
 0x4e4   : > { %v5422_v49 = vpop.permute.xlu1 %5421 }
 0x4e5   : > { %v1654_v24 = vpop.xlane.xlu0 %1653  ;;  %8403 = vmatprep.mubr.msk.bf16.mxu1 %vm1014_vm2, %v5422_v49 }
 0x4e6   : > { %8404 = vmatmul.mubr.msk.bf16.gmra.mxu1 %vm1014_vm2, %v5422_v49  ;;  %8958 = vrcp.f32 %v1654_v24  ;;  %v9579_v24 = vld [vmem:[#allocation2 + $0x50] sm:$0xff]  }
 0x4e9   : > { %v1657_v59 = vpop.xlane.xlu0 %1656 }
 0x4ea   : > { %8960 = vrcp.f32 %v1657_v59  ;;  %5429 = vrot.lane.b32.xlu1 %v9578_v9, %s9681_s26  ;;  %v8955_v21 = vpop.eup %8954  ;;  %v14838_v59 = vld [vmem:[#allocation70_spill] sm:$0xff] }
 0x4eb   : > { %v1757_v5 = vmul.f32 %v8955_v21, %v14834_v12  ;;  %v1756_v7 = vmul.f32 %v8955_v21, %v14836_v26  ;;  %v14840_v12 = vld [vmem:[#allocation69_spill] sm:$0xff] }
 0x4ed   : > { %v5424_v18 = vpop.permute.xlu0 %5423 }
 0x4ee   : > { %v8957_v3 = vpop.eup %8956  ;;  %8405 = vmatprep.mubr.msk.bf16.mxu1 %vm1014_vm2, %v5424_v18 }
 0x4ef   : > { %8406 = vmatmul.mubr.msk.bf16.gmra.mxu1 %vm1014_vm2, %v5424_v18  ;;  %v1759_v55 = vmul.f32 %v8957_v3, %v14835_v43  ;;  %v1758_v58 = vmul.f32 %v8957_v3, %v14837_v39  ;;  %v14839_v18 = vld [vmem:[#allocation72_spill] sm:$0xff]  ;;  %v14841_v43 = vld [vmem:[#allocation71_spill] sm:$0xff]  ;;  %v14842_v3 = vld [vmem:[#allocation30_spill] sm:$0xff] }
 0x4f1   : > { %v1803_v27 = vpack.c.bf16 %v1759_v55, %v1757_v5  ;;  %v1802_v31 = vpack.c.bf16 %v1758_v58, %v1756_v7  ;;  %v14843_v5 = vld [vmem:[#allocation46_spill] sm:$0xff]  ;;  %v14844_v7 = vld [vmem:[#allocation45_spill] sm:$0xff]  ;;  %v14845_v58 = vld [vmem:[#allocation27_spill] sm:$0xff] }
 0x4f2   : > { %v1460_v55 = vsub.f32 %v14843_v5, %v14842_v3  ;;  %v1461_v39 = vsub.f32 %v14844_v7, %v14842_v3 }
 0x4f3   : > { %1968 = vmatprep.mubr.bf16.mxu0 %v1803_v27  ;;  %v8959_v2 = vpop.eup %8958  ;;  %v14846_v27 = vld [vmem:[#allocation43_spill] sm:$0xff] }
 0x4f4   : > { %1969 = vmatmul.mubr.bf16.gmra.mxu0 %v1802_v31  ;;  %v1761_v9 = vmul.f32 %v8959_v2, %v14838_v59  ;;  %v1760_v41 = vmul.f32 %v8959_v2, %v14840_v12  ;;  %v1462_v31 = vsub.f32 %v14846_v27, %v14845_v58  ;;  %v14847_v59 = vld [vmem:[#allocation38_spill] sm:$0xff]  ;;  %v1586_v2 = vmul.f32 1.442695, %v1461_v39  ;;  %v2699_v27 = vpop.f32.mrf.mxu1 }
 0x4f5   : > { %v2238_v12 = vld [vmem:[#allocation4 + $0x198] sm:$0xff] }
 0x4f7   : > { %v8961_v49 = vpop.eup %8960 }
 0x4f8   : > { %5431 = vrot.lane.b32.xlu0 %v9579_v24, %s9681_s26  ;;  %v1763_v32 = vmul.f32 %v8961_v49, %v14839_v18  ;;  %v1762_v60 = vmul.f32 %v8961_v49, %v14841_v43  ;;  %v1584_v24 = vmul.f32 1.442695, %v1460_v55  ;;  %v1463_v18 = vsub.f32 %v14847_v59, %v14845_v58  ;;  %v2239_v55 = vld [vmem:[#allocation4 + $0x1a0] sm:$0xff] }
 0x4f9   : > { %v1588_v49 = vmul.f32 1.442695, %v1462_v31  ;;  %v2292_v39 = vunpack.c.h.bf16 %v2239_v55  ;;  %v2291_v31 = vunpack.c.l.bf16 %v2239_v55 }
 0x4fa   : > { %v1805_v21 = vpack.c.bf16 %v1763_v32, %v1761_v9  ;;  %v1804_v26 = vpack.c.bf16 %v1762_v60, %v1760_v41  ;;  %8962 = vpow2.f32 %v1584_v24  ;;  %v2290_v60 = vunpack.c.h.bf16 %v2238_v12  ;;  %v2240_v9 = vld [vmem:[#allocation4 + $0x1a8] sm:$0xff] }
 0x4fb   : > { %v1590_v32 = vmul.f32 1.442695, %v1463_v18  ;;  %8964 = vpow2.f32 %v1586_v2  ;;  %v2289_v41 = vunpack.c.l.bf16 %v2238_v12  ;;  %v2293_v3 = vunpack.c.l.bf16 %v2240_v9 }
 0x4fc   : > { %1976 = vmatprep.mubr.bf16.mxu0 %v1805_v21  ;;  %8966 = vpow2.f32 %v1588_v49  ;;  %v11413_v43 = vadd.f32 %v2685_v48, %v2290_v60  ;;  %v2294_v21 = vunpack.c.h.bf16 %v2240_v9  ;;  %v11431_v18 = vadd.f32 %v11391_v62, %v2292_v39 }
 0x4fd   : > { %1977 = vmatmul.mubr.bf16.gmra.mxu0 %v1804_v26  ;;  %8968 = vpow2.f32 %v1590_v32  ;;  %v11416_v26 = vadd.f32 %v11373_v6, %v2289_v41  ;;  %v11422_v58 = vadd.f32 %v2693_v1, %v2293_v3  ;;  %v2241_v6 = vld [vmem:[#allocation4 + $0x1b0] sm:$0xff]  ;;  %v11434_v1 = vadd.f32 %v11387_v61, %v2291_v31 }
 0x4fe   : > { %14848 = vst [vmem:[#allocation53_spill] sm:$0xff] %v11413_v43  ;;  %v11420_v7 = vadd.f32 %v2695_v23, %v2294_v21  ;;  %14852 = vst [vmem:[#allocation13_spill] sm:$0xff] %v11431_v18  ;;  %v2296_v2 = vunpack.c.h.bf16 %v2241_v6  ;;  %v2701_v23 = vpop.f32.mrf.mxu1  ;;  %v2295_v12 = vunpack.c.l.bf16 %v2241_v6 }
 0x4ff   : > { %14849 = vst [vmem:[#allocation25_spill] sm:$0xff] %v11416_v26  ;;  %v2805_v5 = vmax.f32 %v11416_v26, %v11413_v43  ;;  %14851 = vst [vmem:[#allocation59_spill] sm:$0xff] %v11422_v58  ;;  %v2808_v41 = vmax.f32 %v11434_v1, %v11431_v18 }
 0x500   : > { %14850 = vst [vmem:[#allocation39_spill] sm:$0xff] %v11420_v7  ;;  %v2811_v24 = vmax.f32 %v11422_v58, %v11420_v7  ;;  %14853 = vst [vmem:[#allocation44_spill] sm:$0xff] %v11434_v1  ;;  %v11444_v9 = vadd.f32 %v2701_v23, %v2296_v2  ;;  %v11448_v21 = vadd.f32 %v2699_v27, %v2295_v12  ;;  %v11456_v55 = vpop.f32.mrf.mxu1  ;;  %v14858_v58 = vld [vmem:[#allocation24_spill] sm:$0xff] }
 0x501   : > { %v2844_v43 = vsub.f32 %v14859_v57, %v14858_v58 }
 0x502   : > { %14854 = vst [vmem:[#allocation57_spill] sm:$0xff] %v11444_v9  ;;  %14855 = vst [vmem:[#allocation9_spill] sm:$0xff] %v11448_v21  ;;  %v2814_v3 = vmax.f32 %v11448_v21, %v11444_v9 }
 0x503   : > { %v2908_v34 = vmul.f32 1.442695, %v2844_v43 }
 0x507   : > { %v11424_v48 = vpop.eup %8962 }
 0x508   : > { %v11428_v59 = vpop.eup %8964 }
 0x509   : > { %v11436_v49 = vpop.eup %8966  ;;  %v1682_v60 = vadd.f32 %v11428_v59, %v11424_v48 }
 0x50a   : > { %v11440_v32 = vpop.eup %8968 }
 0x50b   : > { %v1685_v61 = vadd.f32 %v11440_v32, %v11436_v49 }
 0x50e   : > { %2806 = vmax.xlane.f32.xlu1 %v2805_v5 }
 0x512   : > { %2812 = vmax.xlane.f32.xlu1 %v2811_v24  ;;  %v2705_v24 = vpop.f32.mrf.mxu1 }
 0x514   : > { %v11462_v2 = vpop.f32.mrf.mxu1 }
 0x515   : > { %v11446_v62 = vpop.xlane.xlu1 %2782 }
 0x516   : > { %1683 = vadd.xlane.f32.xlu1 %v1682_v60  ;;  %v11466_v60 = vpop.f32.mrf.mxu1 }
 0x517   : > { %2809 = vmax.xlane.f32.xlu0 %v2808_v41 }
 0x519   : > { %v11454_v5 = vpop.xlane.xlu1 %2788 }
 0x51a   : > { %1686 = vadd.xlane.f32.xlu1 %v1685_v61  ;;  %v9580_v61 = vld [vmem:[#allocation2 + $0x58] sm:$0xff]  }
 0x51b   : > { %2815 = vmax.xlane.f32.xlu0 %v2814_v3  ;;  %v11469_v3 = vpop.f32.mrf.mxu1 }
 0x51d   : > { %v1660_v39 = vpop.xlane.xlu1 %1659  ;;  %v11472_v21 = vpop.f32.mrf.mxu1 }
 0x51e   : > { %v11458_v31 = vpop.xlane.xlu0 %2785  ;;  %8970 = vrcp.f32 %v1660_v39 }
 0x51f   : > { %14856 = vst [vmem:[#allocation17_spill] sm:$0xff] %v11458_v31 }
 0x521   : > { %v1663_v27 = vpop.xlane.xlu1 %1662 }
 0x522   : > { %v11460_v6 = vpop.xlane.xlu0 %2791  ;;  %8972 = vrcp.f32 %v1663_v27 }
 0x523   : > { %14857 = vst [vmem:[#allocation41_spill] sm:$0xff] %v11460_v6 }
 0x525   : > { %v5426_v23 = vpop.permute.xlu1 %5425 }
 0x526   : > { %v1666_v12 = vpop.xlane.xlu0 %1665  ;;  %8407 = vmatprep.mubr.msk.bf16.mxu1 %vm1014_vm2, %v5426_v23 }
 0x527   : > { %8408 = vmatmul.mubr.msk.bf16.gmra.mxu1 %vm1014_vm2, %v5426_v23  ;;  %8974 = vrcp.f32 %v1666_v12 }
 0x52a   : > { %v1669_v41 = vpop.xlane.xlu0 %1668 }
 0x52b   : > { %8976 = vrcp.f32 %v1669_v41  ;;  %5433 = vrot.lane.b32.xlu1 %v9580_v61, %s9681_s26  ;;  %v8971_v39 = vpop.eup %8970  ;;  %v9581_v61 = vld [vmem:[#allocation2 + $0x78] sm:$0xff]  }
 0x52c   : > { %v1765_v23 = vmul.f32 %v8971_v39, %v11212_v15  ;;  %v1764_v41 = vmul.f32 %v8971_v39, %v11207_v20  ;;  %v14860_v15 = vld [vmem:[#allocation47_spill] sm:$0xff]  ;;  %v14861_v20 = vld [vmem:[#allocation22_spill] sm:$0xff]  ;;  %8978 = vpow2.f32 %v2908_v34 }
 0x52d   : > { %v2845_v26 = vsub.f32 %v14860_v15, %v14858_v58  ;;  %v14862_v39 = vld [vmem:[#allocation50_spill] sm:$0xff] }
 0x52e   : > { %v5428_v27 = vpop.permute.xlu0 %5427 }
 0x52f   : > { %v8973_v9 = vpop.eup %8972  ;;  %8409 = vmatprep.mubr.msk.bf16.mxu1 %vm1014_vm2, %v5428_v27 }
 0x530   : > { %8410 = vmatmul.mubr.msk.bf16.gmra.mxu1 %vm1014_vm2, %v5428_v27  ;;  %v1767_v12 = vmul.f32 %v8973_v9, %v11223_v19  ;;  %v1766_v18 = vmul.f32 %v8973_v9, %v11218_v46  ;;  %v2846_v46 = vsub.f32 %v14862_v39, %v14861_v20  ;;  %v14863_v9 = vld [vmem:[#allocation49_spill] sm:$0xff] }
 0x531   : > { %3290 = vrot.lane.b32.xlu0 %v9581_v61, %s9682_s27  ;;  %v2847_v25 = vsub.f32 %v14863_v9, %v14861_v20  ;;  %v2242_v61 = vld [vmem:[#allocation4 + $0x1b8] sm:$0xff] }
 0x532   : > { %v1807_v1 = vpack.c.bf16 %v1767_v12, %v1765_v23  ;;  %v1806_v7 = vpack.c.bf16 %v1766_v18, %v1764_v41  ;;  %v2912_v58 = vmul.f32 1.442695, %v2846_v46  ;;  %v2298_v15 = vunpack.c.h.bf16 %v2242_v61 }
 0x533   : > { %v2914_v43 = vmul.f32 1.442695, %v2847_v25 }
 0x534   : > { %1984 = vmatprep.mubr.bf16.mxu0 %v1807_v1  ;;  %v8975_v27 = vpop.eup %8974  ;;  %v2910_v1 = vmul.f32 1.442695, %v2845_v26  ;;  %v11492_v20 = vadd.f32 %v2705_v24, %v2298_v15 }
 0x535   : > { %1985 = vmatmul.mubr.bf16.gmra.mxu0 %v1806_v7  ;;  %v1769_v23 = vmul.f32 %v8975_v27, %v11243_v0  ;;  %v1768_v57 = vmul.f32 %v8975_v27, %v11237_v51  ;;  %v2297_v0 = vunpack.c.l.bf16 %v2242_v61 }
 0x536   : > { %8980 = vpow2.f32 %v2910_v1  ;;  %14864 = vst [vmem:[#allocation58_spill] sm:$0xff] %v11492_v20  ;;  %v11512_v1 = vpop.f32.mrf.mxu1 }
 0x537   : > { %8982 = vpow2.f32 %v2912_v58 }
 0x538   : > { %v8977_v19 = vpop.eup %8976  ;;  %8984 = vpow2.f32 %v2914_v43  ;;  %v11517_v15 = vpop.f32.mrf.mxu1 }
 0x539   : > { %v1771_v18 = vmul.f32 %v8977_v19, %v11253_v50  ;;  %v1770_v7 = vmul.f32 %v8977_v19, %v11250_v16  ;;  %v11494_v50 = vpop.eup %8978  ;;  %v11499_v16 = vadd.f32 %v11456_v55, %v2297_v0 }
 0x53b   : > { %v1809_v12 = vpack.c.bf16 %v1771_v18, %v1769_v23  ;;  %v1808_v41 = vpack.c.bf16 %v1770_v7, %v1768_v57  ;;  %14865 = vst [vmem:[#allocation18_spill] sm:$0xff] %v11499_v16  ;;  %v2817_v25 = vmax.f32 %v11499_v16, %v11492_v20  ;;  %v9584_v20 = vld [vmem:[#allocation2 + $0x70] sm:$0xff]  }
 0x53c   : > { %v9585_v16 = vld [vmem:[#allocation2 + $0x30] sm:$0xff]  }
 0x53d   : > { %1992 = vmatprep.mubr.bf16.mxu0 %v1809_v12 }
 0x53e   : > { %1993 = vmatmul.mubr.bf16.gmra.mxu0 %v1808_v41 }
 0x543   : > { %v11496_v51 = vpop.eup %8980 }
 0x544   : > { %v11501_v34 = vpop.eup %8982  ;;  %v3036_v24 = vadd.f32 %v11496_v51, %v11494_v50 }
 0x545   : > { %v11505_v19 = vpop.eup %8984 }
 0x546   : > { %v3039_v23 = vadd.f32 %v11505_v19, %v11501_v34 }
 0x54b   : > { %v7961_v26 = vpop.f32.mrf.mxu0 }
 0x54d   : > { %v7962_v27 = vpop.f32.mrf.mxu0 }
 0x54e   : > { %v7963_v39 = vadd.f32 %v7962_v27, %v7961_v26 }
 0x54f   : > { %2818 = vmax.xlane.f32.xlu1 %v2817_v25  ;;  %v7964_v46 = vpop.f32.mrf.mxu0 }
 0x550   : > { %v7719_v9 = vpack.c.bf16 %v7963_v39, %v7963_v39  ;;  %3037 = vadd.xlane.f32.xlu0 %v3036_v24  ;;  %v11522_v24 = vpop.f32.mrf.mxu1 }
 0x551   : > { %v7965_v55 = vpop.f32.mrf.mxu0 }
 0x552   : > { %2154 = vst.msk [vmem:[#allocation3] sm:$0xf] %vm2153_vm3, %v7719_v9  ;;  %v7966_v18 = vadd.f32 %v7965_v55, %v7964_v46 }
 0x553   : > { %3040 = vadd.xlane.f32.xlu1 %v3039_v23  ;;  %v7967_v57 = vpop.f32.mrf.mxu0 }
 0x554   : > { %v7720_v7 = vpack.c.bf16 %v7966_v18, %v7966_v18 }
 0x555   : > { %v7968_v12 = vpop.f32.mrf.mxu0 }
 0x556   : > { %2155 = vst.msk [vmem:[#allocation3 + $0x4] sm:$0xf] %vm2153_vm3, %v7720_v7  ;;  %v7969_v41 = vadd.f32 %v7968_v12, %v7967_v57  ;;  %v11515_v58 = vpop.xlane.xlu1 %2794  ;;  %v11527_v7 = vpop.f32.mrf.mxu1 }
 0x557   : > { %14866 = vst [vmem:[#allocation15_spill] sm:$0xff] %v11515_v58  ;;  %v7970_v43 = vpop.f32.mrf.mxu0 }
 0x558   : > { %v7721_v61 = vpack.c.bf16 %v7969_v41, %v7969_v41 }
 0x559   : > { %v7971_v0 = vpop.f32.mrf.mxu0 }
 0x55a   : > { %2156 = vst.msk [vmem:[#allocation3 + $0x8] sm:$0xf] %vm2153_vm3, %v7721_v61  ;;  %v7972_v26 = vadd.f32 %v7971_v0, %v7970_v43  ;;  %v11520_v25 = vpop.xlane.xlu1 %2800 }
 0x55b   : > { %14867 = vst [vmem:[#allocation56_spill] sm:$0xff] %v11520_v25  ;;  %v7973_v27 = vpop.f32.mrf.mxu0 }
 0x55c   : > { %v7722_v39 = vpack.c.bf16 %v7972_v26, %v7972_v26 }
 0x55d   : > { %v7974_v46 = vpop.f32.mrf.mxu0 }
 0x55e   : > { %2157 = vst.msk [vmem:[#allocation3 + $0xc] sm:$0xf] %vm2153_vm3, %v7722_v39  ;;  %v7975_v9 = vadd.f32 %v7974_v46, %v7973_v27  ;;  %v1672_v55 = vpop.xlane.xlu1 %1671  ;;  %v9582_v39 = vld [vmem:[#allocation2 + $0x38] sm:$0xff]   ;;  %v11533_v27 = vpop.f32.mrf.mxu1 }
 0x55f   : > { %v11525_v23 = vpop.xlane.xlu0 %2797  ;;  %v7976_v18 = vpop.f32.mrf.mxu0  ;;  %8986 = vrcp.f32 %v1672_v55 }
 0x560   : > { %14868 = vst [vmem:[#allocation23_spill] sm:$0xff] %v11525_v23  ;;  %v7723_v57 = vpack.c.bf16 %v7975_v9, %v7975_v9  ;;  %v9583_v9 = vld [vmem:[#allocation2 + $0x60] sm:$0xff]  }
 0x561   : > { %v7977_v12 = vpop.f32.mrf.mxu0  ;;  %v14870_v23 = vld [vmem:[#allocation63_spill] sm:$0xff] }
 0x562   : > { %2158 = vst.msk [vmem:[#allocation3 + $0x10] sm:$0xf] %vm2153_vm3, %v7723_v57  ;;  %v7978_v41 = vadd.f32 %v7977_v12, %v7976_v18  ;;  %v1675_v43 = vpop.xlane.xlu1 %1674 }
 0x563   : > { %v11530_v61 = vpop.xlane.xlu0 %2803  ;;  %8988 = vrcp.f32 %v1675_v43  ;;  %v7979_v0 = vpop.f32.mrf.mxu0 }
 0x564   : > { %14869 = vst [vmem:[#allocation61_spill] sm:$0xff] %v11530_v61  ;;  %v7724_v26 = vpack.c.bf16 %v7978_v41, %v7978_v41  ;;  %3274 = vrot.lane.b32.xlu1 %v9582_v39, %s9682_s27  ;;  %v11540_v41 = vpop.f32.mrf.mxu1 }
 0x565   : > { %v7980_v46 = vpop.f32.mrf.mxu0 }
 0x566   : > { %2159 = vst.msk [vmem:[#allocation3 + $0x14] sm:$0xf] %vm2153_vm3, %v7724_v26  ;;  %5435 = vrot.lane.b32.xlu0 %v9583_v9, %s9681_s26  ;;  %v7981_v55 = vadd.f32 %v7980_v46, %v7979_v0  ;;  %v5430_v57 = vpop.permute.xlu1 %5429 }
 0x567   : > { %v1678_v18 = vpop.xlane.xlu0 %1677  ;;  %v7982_v12 = vpop.f32.mrf.mxu0  ;;  %8411 = vmatprep.mubr.msk.bf16.mxu1 %vm1014_vm2, %v5430_v57 }
 0x568   : > { %v7725_v43 = vpack.c.bf16 %v7981_v55, %v7981_v55  ;;  %3288 = vrot.lane.b32.xlu1 %v9584_v20, %s9682_s27  ;;  %8412 = vmatmul.mubr.msk.bf16.gmra.mxu1 %vm1014_vm2, %v5430_v57  ;;  %8990 = vrcp.f32 %v1678_v18  ;;  %v11544_v55 = vpop.f32.mrf.mxu1  ;;  %v14871_v57 = vld [vmem:[#allocation52_spill] sm:$0xff]  ;;  %v14872_v18 = vld [vmem:[#allocation51_spill] sm:$0xff] }
 0x569   : > { %v7983_v39 = vpop.f32.mrf.mxu0  ;;  %v2848_v6 = vsub.f32 %v14871_v57, %v14870_v23 }
 0x56a   : > { %2160 = vst.msk [vmem:[#allocation3 + $0x18] sm:$0xf] %vm2153_vm3, %v7725_v43  ;;  %v7984_v26 = vadd.f32 %v7983_v39, %v7982_v12  ;;  %v2849_v12 = vsub.f32 %v14872_v18, %v14870_v23  ;;  %v11554_v25 = vpop.f32.mrf.mxu1 }
 0x56b   : > { %v1681_v9 = vpop.xlane.xlu0 %1680  ;;  %v7985_v0 = vpop.f32.mrf.mxu0  ;;  %v2916_v18 = vmul.f32 1.442695, %v2848_v6 }
 0x56c   : > { %v7726_v46 = vpack.c.bf16 %v7984_v26, %v7984_v26  ;;  %8992 = vrcp.f32 %v1681_v9  ;;  %3272 = vrot.lane.b32.xlu1 %v9585_v16, %s9682_s27  ;;  %v8987_v20 = vpop.eup %8986  ;;  %v14873_v9 = vld [vmem:[#allocation28_spill] sm:$0xff] }
 0x56d   : > { %v7986_v61 = vpop.f32.mrf.mxu0  ;;  %v2850_v11 = vsub.f32 %v14873_v9, %v11231_v8  ;;  %v1772_v23 = vmul.f32 %v8987_v20, %v11337_v28  ;;  %8994 = vpow2.f32 %v2916_v18 }
 0x56e   : > { %2161 = vst.msk [vmem:[#allocation3 + $0x1c] sm:$0xf] %vm2153_vm3, %v7726_v46  ;;  %v7987_v30 = vadd.f32 %v7986_v61, %v7985_v0  ;;  %v1773_v46 = vmul.f32 %v8987_v20, %v11341_v29 }
 0x56f   : > { %v5432_v43 = vpop.permute.xlu0 %5431  ;;  %v7988_v39 = vpop.f32.mrf.mxu0  ;;  %v2920_v58 = vmul.f32 1.442695, %v2850_v11 }
 0x570   : > { %v8989_v26 = vpop.eup %8988  ;;  %v7727_v16 = vpack.c.bf16 %v7987_v30, %v7987_v30  ;;  %8413 = vmatprep.mubr.msk.bf16.mxu1 %vm1014_vm2, %v5432_v43  ;;  %v2918_v30 = vmul.f32 1.442695, %v2849_v12 }
 0x571   : > { %8414 = vmatmul.mubr.msk.bf16.gmra.mxu1 %vm1014_vm2, %v5432_v43  ;;  %v7989_v57 = vpop.f32.mrf.mxu0  ;;  %v1775_v61 = vmul.f32 %v8989_v26, %v11353_v36  ;;  %v1774_v0 = vmul.f32 %v8989_v26, %v11349_v63  ;;  %v2922_v36 = vmul.f32 1.442695, %v2851_v4 }
 0x572   : > { %2162 = vst.msk [vmem:[#allocation3 + $0x20] sm:$0xf] %vm2153_vm3, %v7727_v16  ;;  %v7990_v9 = vadd.f32 %v7989_v57, %v7988_v39  ;;  %8996 = vpow2.f32 %v2918_v30  ;;  %v2244_v39 = vld [vmem:[#allocation4 + $0x1c8] sm:$0xff] }
 0x573   : > { %v7991_v31 = vpop.f32.mrf.mxu0  ;;  %v1811_v53 = vpack.c.bf16 %v1775_v61, %v1773_v46  ;;  %v1810_v43 = vpack.c.bf16 %v1774_v0, %v1772_v23  ;;  %8998 = vpow2.f32 %v2920_v58  ;;  %v2302_v26 = vunpack.c.h.bf16 %v2244_v39 }
 0x574   : > { %v7728_v42 = vpack.c.bf16 %v7990_v9, %v7990_v9  ;;  %9000 = vpow2.f32 %v2922_v36  ;;  %v2301_v58 = vunpack.c.l.bf16 %v2244_v39 }
 0x575   : > { %v7992_v29 = vpop.f32.mrf.mxu0  ;;  %2000 = vmatprep.mubr.bf16.mxu0 %v1811_v53  ;;  %v8991_v63 = vpop.eup %8990  ;;  %v11572_v23 = vadd.f32 %v11472_v21, %v2302_v26 }
 0x576   : > { %2163 = vst.msk [vmem:[#allocation3 + $0x24] sm:$0xf] %vm2153_vm3, %v7728_v42  ;;  %v7993_v28 = vadd.f32 %v7992_v29, %v7991_v31  ;;  %2001 = vmatmul.mubr.bf16.gmra.mxu0 %v1810_v43  ;;  %v1777_v8 = vmul.f32 %v8991_v63, %v11371_v54  ;;  %v1776_v42 = vmul.f32 %v8991_v63, %v11365_v56 }
 0x577   : > { %v7994_v6 = vpop.f32.mrf.mxu0 }
 0x578   : > { %v7729_v20 = vpack.c.bf16 %v7993_v28, %v7993_v28  ;;  %v2243_v28 = vld [vmem:[#allocation4 + $0x1c0] sm:$0xff] }
 0x579   : > { %v8993_v12 = vpop.eup %8992  ;;  %v7995_v52 = vpop.f32.mrf.mxu0 }
 0x57a   : > { %2164 = vst.msk [vmem:[#allocation3 + $0x28] sm:$0xf] %vm2153_vm3, %v7729_v20  ;;  %v7996_v11 = vadd.f32 %v7995_v52, %v7994_v6  ;;  %v1779_v53 = vmul.f32 %v8993_v12, %v11379_v22  ;;  %v1778_v31 = vmul.f32 %v8993_v12, %v11375_v35  ;;  %v11575_v35 = vadd.f32 %v11469_v3, %v2301_v58  ;;  %v11578_v9 = vpop.eup %8994 }
 0x57b   : > { %v7997_v4 = vpop.f32.mrf.mxu0  ;;  %14875 = vst [vmem:[#allocation66_spill] sm:$0xff] %v11578_v9  ;;  %v2300_v3 = vunpack.c.h.bf16 %v2243_v28 }
 0x57c   : > { %v7730_v16 = vpack.c.bf16 %v7996_v11, %v7996_v11  ;;  %v1813_v57 = vpack.c.bf16 %v1779_v53, %v1777_v8  ;;  %v1812_v46 = vpack.c.bf16 %v1778_v31, %v1776_v42  ;;  %v2823_v30 = vmax.f32 %v11575_v35, %v11572_v23 }
 0x57d   : > { %v7998_v61 = vpop.f32.mrf.mxu0  ;;  %v2299_v8 = vunpack.c.l.bf16 %v2243_v28  ;;  %v11592_v53 = vadd.f32 %v11466_v60, %v2300_v3 }
 0x57e   : > { %2165 = vst.msk [vmem:[#allocation3 + $0x2c] sm:$0xf] %vm2153_vm3, %v7730_v16  ;;  %v7999_v54 = vadd.f32 %v7998_v61, %v7997_v4  ;;  %2008 = vmatprep.mubr.bf16.mxu0 %v1813_v57 }
 0x57f   : > { %2009 = vmatmul.mubr.bf16.gmra.mxu0 %v1812_v46  ;;  %v8000_v22 = vpop.f32.mrf.mxu0  ;;  %v11582_v29 = vpop.eup %8996  ;;  %v11598_v4 = vadd.f32 %v11462_v2, %v2299_v8 }
 0x580   : > { %v7731_v56 = vpack.c.bf16 %v7999_v54, %v7999_v54  ;;  %14876 = vst [vmem:[#allocation60_spill] sm:$0xff] %v11582_v29  ;;  %v11584_v36 = vpop.eup %8998  ;;  %v3042_v12 = vadd.f32 %v11582_v29, %v11578_v9 }
 0x581   : > { %v8001_v0 = vpop.f32.mrf.mxu0  ;;  %14877 = vst [vmem:[#allocation65_spill] sm:$0xff] %v11584_v36  ;;  %v11589_v52 = vpop.eup %9000  ;;  %v2820_v46 = vmax.f32 %v11598_v4, %v11592_v53 }
 0x582   : > { %2166 = vst.msk [vmem:[#allocation3 + $0x30] sm:$0xf] %vm2153_vm3, %v7731_v56  ;;  %v8002_v18 = vadd.f32 %v8001_v0, %v8000_v22  ;;  %14878 = vst [vmem:[#allocation70_spill] sm:$0xff] %v11589_v52  ;;  %v3045_v26 = vadd.f32 %v11589_v52, %v11584_v36 }
 0x583   : > { %v8003_v43 = vpop.f32.mrf.mxu0 }
 0x584   : > { %v7732_v21 = vpack.c.bf16 %v8002_v18, %v8002_v18  ;;  %v11609_v18 = vpop.f32.mrf.mxu1 }
 0x585   : > { %2824 = vmax.xlane.f32.xlu0 %v2823_v30  ;;  %v8004_v63 = vpop.f32.mrf.mxu0 }
 0x586   : > { %2167 = vst.msk [vmem:[#allocation3 + $0x34] sm:$0xf] %vm2153_vm3, %v7732_v21  ;;  %v8005_v6 = vadd.f32 %v8004_v63, %v8003_v43  ;;  %v9586_v21 = vld [vmem:[#allocation2 + $0x68] sm:$0xff]   ;;  %v11614_v28 = vpop.f32.mrf.mxu1 }
 0x587   : > { %v8006_v20 = vpop.f32.mrf.mxu0  ;;  %v9587_v63 = vld [vmem:[#allocation2 + $0x28] sm:$0xff]  }
 0x588   : > { %v7733_v39 = vpack.c.bf16 %v8005_v6, %v8005_v6 }
 0x589   : > { %3043 = vadd.xlane.f32.xlu0 %v3042_v12  ;;  %v8007_v11 = vpop.f32.mrf.mxu0  ;;  %v11620_v12 = vpop.f32.mrf.mxu1 }
 0x58a   : > { %2168 = vst.msk [vmem:[#allocation3 + $0x38] sm:$0xf] %vm2153_vm3, %v7733_v39  ;;  %v8008_v42 = vadd.f32 %v8007_v11, %v8006_v20  ;;  %v9588_v20 = vld [vmem:[#allocation2 + $0x68] sm:$0xff]   ;;  %v9589_v11 = vld [vmem:[#allocation2 + $0x60] sm:$0xff]  }
 0x58b   : > { %v8009_v31 = vpop.f32.mrf.mxu0 }
 0x58c   : > { %v7734_v16 = vpack.c.bf16 %v8008_v42, %v8008_v42  ;;  %v11624_v42 = vpop.f32.mrf.mxu1 }
 0x58d   : > { %3046 = vadd.xlane.f32.xlu0 %v3045_v26  ;;  %v8010_v57 = vpop.f32.mrf.mxu0 }
 0x58e   : > { %2169 = vst.msk [vmem:[#allocation3 + $0x3c] sm:$0xf] %vm2153_vm3, %v7734_v16  ;;  %v8011_v60 = vadd.f32 %v8010_v57, %v8009_v31  ;;  %v14879_v31 = vld [vmem:[#allocation34_spill] sm:$0xff]  ;;  %v14880_v16 = vld [vmem:[#allocation32_spill] sm:$0xff] }
 0x58f   : > { %v8012_v58 = vpop.f32.mrf.mxu0  ;;  %v2852_v26 = vsub.f32 %v14879_v31, %v11259_v45  ;;  %v2853_v57 = vsub.f32 %v14880_v16, %v11259_v45 }
 0x590   : > { %v7735_v61 = vpack.c.bf16 %v8011_v60, %v8011_v60  ;;  %2821 = vmax.xlane.f32.xlu1 %v2820_v46  ;;  %v9590_v46 = vld [vmem:[#allocation2 + $0x20] sm:$0xff]  }
 0x591   : > { %v8013_v54 = vpop.f32.mrf.mxu0 }
 0x592   : > { %2170 = vst.msk [vmem:[#allocation3 + $0x40] sm:$0xf] %vm2153_vm3, %v7735_v61  ;;  %v8014_v22 = vadd.f32 %v8013_v54, %v8012_v58  ;;  %v14881_v58 = vld [vmem:[#allocation29_spill] sm:$0xff]  ;;  %v2924_v54 = vmul.f32 1.442695, %v2852_v26 }
 0x593   : > { %v2854_v61 = vsub.f32 %v14881_v58, %v11247_v17 }
 0x594   : > { %v7736_v56 = vpack.c.bf16 %v8014_v22, %v8014_v22  ;;  %v14882_v22 = vld [vmem:[#allocation21_spill] sm:$0xff] }
 0x596   : > { %2171 = vst.msk [vmem:[#allocation3 + $0x44] sm:$0xf] %vm2153_vm3, %v7736_v56  ;;  %v2855_v56 = vsub.f32 %v14882_v22, %v11247_v17  ;;  %v2246_v17 = vld [vmem:[#allocation4 + $0x1d8] sm:$0xff] }
 0x597   : > { %v11605_v2 = vpop.xlane.xlu1 %2806 }
 0x59b   : > { %v11607_v0 = vpop.xlane.xlu1 %2812 }
 0x59f   : > { %v1684_v30 = vpop.xlane.xlu1 %1683 }
 0x5a0   : > { %v11611_v43 = vpop.xlane.xlu0 %2809  ;;  %9002 = vrcp.f32 %v1684_v30  ;;  %v2926_v30 = vmul.f32 1.442695, %v2853_v57 }
 0x5a1   : > { %3286 = vrot.lane.b32.xlu1 %v9586_v21, %s9682_s27 }
 0x5a3   : > { %3270 = vrot.lane.b32.xlu0 %v9587_v63, %s9682_s27  ;;  %v1687_v3 = vpop.xlane.xlu1 %1686 }
 0x5a4   : > { %v11617_v6 = vpop.xlane.xlu0 %2815  ;;  %9004 = vrcp.f32 %v1687_v3 }
 0x5a5   : > { %5437 = vrot.lane.b32.xlu1 %v9588_v20, %s9681_s26  ;;  %9006 = vpow2.f32 %v2924_v54 }
 0x5a6   : > { %9008 = vpow2.f32 %v2926_v30 }
 0x5a7   : > { %v5434_v8 = vpop.permute.xlu1 %5433 }
 0x5a8   : > { %v3291_v39 = vpop.permute.xlu0 %3290  ;;  %8415 = vmatprep.mubr.msk.bf16.mxu1 %vm1014_vm2, %v5434_v8 }
 0x5a9   : > { %8105 = vmatprep.subr.bf16.mxu0 %v3291_v39  ;;  %3284 = vrot.lane.b32.xlu1 %v9589_v11, %s9682_s27  ;;  %v2930_v39 = vmul.f32 1.442695, %v2855_v56 }
 0x5aa   : > { %8416 = vmatmul.mubr.msk.bf16.gmra.mxu1 %vm1014_vm2, %v5434_v8  ;;  %v2928_v8 = vmul.f32 1.442695, %v2854_v61 }
 0x5ac   : > { %9010 = vpow2.f32 %v2928_v8 }
 0x5ad   : > { %3268 = vrot.lane.b32.xlu1 %v9590_v46, %s9682_s27  ;;  %v9003_v60 = vpop.eup %9002  ;;  %9012 = vpow2.f32 %v2930_v39 }
 0x5ae   : > { %v1781_v63 = vmul.f32 %v9003_v60, %v11428_v59  ;;  %v1780_v20 = vmul.f32 %v9003_v60, %v11424_v48  ;;  %v2306_v59 = vunpack.c.h.bf16 %v2246_v17  ;;  %v2305_v48 = vunpack.c.l.bf16 %v2246_v17 }
 0x5b0   : > { %v11642_v58 = vadd.f32 %v11527_v7, %v2306_v59  ;;  %v11645_v22 = vadd.f32 %v11522_v24, %v2305_v48  ;;  %v11672_v48 = vpop.f32.mrf.mxu1 }
 0x5b1   : > { %v9005_v21 = vpop.eup %9004 }
 0x5b2   : > { %v1783_v3 = vmul.f32 %v9005_v21, %v11440_v32  ;;  %v1782_v45 = vmul.f32 %v9005_v21, %v11436_v49  ;;  %v11648_v30 = vpop.eup %9006  ;;  %v2829_v21 = vmax.f32 %v11645_v22, %v11642_v58 }
 0x5b3   : > { %14883 = vst [vmem:[#allocation72_spill] sm:$0xff] %v11648_v30 }
 0x5b4   : > { %v8015_v11 = vpop.f32.mrf.mxu0  ;;  %v1815_v31 = vpack.c.bf16 %v1783_v3, %v1781_v63  ;;  %v1814_v26 = vpack.c.bf16 %v1782_v45, %v1780_v20  ;;  %v11652_v3 = vpop.eup %9008 }
 0x5b5   : > { %14884 = vst [vmem:[#allocation69_spill] sm:$0xff] %v11652_v3  ;;  %v3048_v39 = vadd.f32 %v11652_v3, %v11648_v30  ;;  %v14903_v3 = vld [vmem:[#allocation62_spill] sm:$0xff] }
 0x5b6   : > { %v8016_v16 = vpop.f32.mrf.mxu0  ;;  %2016 = vmatprep.mubr.bf16.mxu0 %v1815_v31  ;;  %v2245_v31 = vld [vmem:[#allocation4 + $0x1d0] sm:$0xff] }
 0x5b7   : > { %v8017_v57 = vadd.f32 %v8016_v16, %v8015_v11  ;;  %2017 = vmatmul.mubr.bf16.gmra.mxu0 %v1814_v26  ;;  %v2304_v16 = vunpack.c.h.bf16 %v2245_v31 }
 0x5b8   : > { %v8018_v32 = vpop.f32.mrf.mxu0 }
 0x5b9   : > { %v7737_v46 = vpack.c.bf16 %v8017_v57, %v8017_v57  ;;  %v11654_v8 = vpop.eup %9010  ;;  %v2303_v57 = vunpack.c.l.bf16 %v2245_v31  ;;  %v11665_v59 = vadd.f32 %v11517_v15, %v2304_v16  ;;  %v9594_v31 = vld [vmem:[#allocation2 + $0x50] sm:$0xff]  }
 0x5ba   : > { %v8019_v60 = vpop.f32.mrf.mxu0  ;;  %14885 = vst [vmem:[#allocation71_spill] sm:$0xff] %v11654_v8  ;;  %v11659_v11 = vpop.eup %9012 }
 0x5bb   : > { %2172 = vst.msk [vmem:[#allocation3 + $0x48] sm:$0xf] %vm2153_vm3, %v7737_v46  ;;  %v8020_v49 = vadd.f32 %v8019_v60, %v8018_v32  ;;  %14886 = vst [vmem:[#allocation30_spill] sm:$0xff] %v11659_v11  ;;  %v3051_v17 = vadd.f32 %v11659_v11, %v11654_v8  ;;  %v11668_v32 = vadd.f32 %v11512_v1, %v2303_v57  ;;  %v11674_v60 = vpop.f32.mrf.mxu1 }
 0x5bd   : > { %v7738_v61 = vpack.c.bf16 %v8020_v49, %v8020_v49  ;;  %v8021_v54 = vpop.f32.mrf.mxu0  ;;  %v2826_v46 = vmax.f32 %v11668_v32, %v11665_v59 }
 0x5bf   : > { %2173 = vst.msk [vmem:[#allocation3 + $0x4c] sm:$0xf] %vm2153_vm3, %v7738_v61  ;;  %v8022_v56 = vpop.f32.mrf.mxu0 }
 0x5c0   : > { %v8023_v63 = vadd.f32 %v8022_v56, %v8021_v54  ;;  %v11678_v54 = vpop.f32.mrf.mxu1 }
 0x5c1   : > { %v8024_v20 = vpop.f32.mrf.mxu0 }
 0x5c2   : > { %v7739_v45 = vpack.c.bf16 %v8023_v63, %v8023_v63  ;;  %2830 = vmax.xlane.f32.xlu0 %v2829_v21  ;;  %v11681_v1 = vpop.f32.mrf.mxu1  ;;  %v9591_v21 = vld [vmem:[#allocation2 + $0x18] sm:$0xff]  }
 0x5c3   : > { %v8025_v7 = vpop.f32.mrf.mxu0 }
 0x5c4   : > { %2174 = vst.msk [vmem:[#allocation3 + $0x50] sm:$0xf] %vm2153_vm3, %v7739_v45  ;;  %v8026_v24 = vadd.f32 %v8025_v7, %v8024_v20  ;;  %v9592_v20 = vld [vmem:[#allocation2 + $0x58] sm:$0xff]   ;;  %v9593_v7 = vld [vmem:[#allocation2 + $0x70] sm:$0xff]  }
 0x5c6   : > { %v7740_v26 = vpack.c.bf16 %v8026_v24, %v8026_v24  ;;  %3049 = vadd.xlane.f32.xlu0 %v3048_v39 }
 0x5c8   : > { %2175 = vst.msk [vmem:[#allocation3 + $0x54] sm:$0xf] %vm2153_vm3, %v7740_v26 }
 0x5ca   : > { %3052 = vadd.xlane.f32.xlu0 %v3051_v17 }
 0x5d1   : > { %2827 = vmax.xlane.f32.xlu1 %v2826_v46 }
 0x5d8   : > { %v11676_v49 = vpop.xlane.xlu1 %2818 }
 0x5d9   : > { %v3038_v61 = vpop.xlane.xlu0 %3037 }
 0x5da   : > { %9014 = vrcp.f32 %v3038_v61  ;;  %v9595_v61 = vld [vmem:[#allocation2 + $0x10] sm:$0xff]  }
 0x5dc   : > { %v3041_v56 = vpop.xlane.xlu1 %3040 }
 0x5dd   : > { %v5436_v15 = vpop.permute.xlu0 %5435  ;;  %9016 = vrcp.f32 %v3041_v56 }
 0x5de   : > { %8417 = vmatprep.mubr.msk.bf16.mxu1 %vm1014_vm2, %v5436_v15 }
 0x5df   : > { %8418 = vmatmul.mubr.msk.bf16.gmra.mxu1 %vm1014_vm2, %v5436_v15 }
 0x5e0   : > { %3266 = vrot.lane.b32.xlu0 %v9591_v21, %s9682_s27  ;;  %v3275_v63 = vpop.permute.xlu1 %3274  ;;  %v2248_v21 = vld [vmem:[#allocation4 + $0x1e8] sm:$0xff] }
 0x5e1   : > { %8106 = vmatpush3.bf16.msra.mxu0 %v3275_v63  ;;  %v2310_v63 = vunpack.c.h.bf16 %v2248_v21 }
 0x5e2   : > { %3282 = vrot.lane.b32.xlu1 %v9592_v20, %s9682_s27 }
 0x5e4   : > { %v3289_v45 = vpop.permute.xlu1 %3288 }
 0x5e5   : > { %8107 = vmatprep.subr.bf16.mxu0 %v3289_v45 }
 0x5e6   : > { %5439 = vrot.lane.b32.xlu1 %v9593_v7, %s9681_s26 }
 0x5e7   : > { %v9015_v39 = vpop.eup %9014 }
 0x5e8   : > { %v3273_v24 = vpop.permute.xlu1 %3272  ;;  %v3165_v16 = vmul.f32 %v9015_v39, %v11496_v51  ;;  %v11691_v57 = vmul.f32 %v9015_v39, %v11494_v50  ;;  %v2309_v51 = vunpack.c.l.bf16 %v2248_v21  ;;  %v11700_v50 = vadd.f32 %v11554_v25, %v2310_v63  ;;  %v11705_v39 = vpop.f32.mrf.mxu1 }
 0x5e9   : > { %8108 = vmatpush3.bf16.msra.mxu0 %v3273_v24 }
 0x5ea   : > { %3280 = vrot.lane.b32.xlu1 %v9594_v31, %s9682_s27  ;;  %v9017_v26 = vpop.eup %9016  ;;  %14887 = vst [vmem:[#allocation46_spill] sm:$0xff] %v11691_v57  ;;  %14889 = vst [vmem:[#allocation27_spill] sm:$0xff] %v11700_v50  ;;  %v11703_v24 = vadd.f32 %v11544_v55, %v2309_v51  ;;  %v14890_v31 = vld [vmem:[#allocation55_spill] sm:$0xff]  ;;  %v14892_v51 = vld [vmem:[#allocation16_spill] sm:$0xff] }
 0x5eb   : > { %v3167_v17 = vmul.f32 %v9017_v26, %v11505_v19  ;;  %v11694_v46 = vmul.f32 %v9017_v26, %v11501_v34  ;;  %v2856_v26 = vsub.f32 %v14890_v31, %v11272_v10  ;;  %v14893_v31 = vld [vmem:[#allocation7_spill] sm:$0xff]  ;;  %v14905_v57 = vld [vmem:[#allocation12_spill] sm:$0xff] }
 0x5ec   : > { %v2835_v25 = vmax.f32 %v11703_v24, %v11700_v50  ;;  %v2859_v15 = vsub.f32 %v14893_v31, %v11359_v37 }
 0x5ed   : > { %14888 = vst [vmem:[#allocation45_spill] sm:$0xff] %v11694_v46  ;;  %v3229_v56 = vpack.c.bf16 %v3167_v17, %v3165_v16  ;;  %v14891_v17 = vld [vmem:[#allocation54_spill] sm:$0xff]  ;;  %v2932_v55 = vmul.f32 1.442695, %v2856_v26  ;;  %v2863_v46 = vsub.f32 %v14905_v57, %v11369_v47  ;;  %v2867_v57 = vsub.f32 %v11185_v44, %v11446_v62 }
 0x5ee   : > { %3264 = vrot.lane.b32.xlu1 %v9595_v61, %s9682_s27  ;;  %v2857_v61 = vsub.f32 %v14891_v17, %v11272_v10  ;;  %v2938_v26 = vmul.f32 1.442695, %v2859_v15 }
 0x5ef   : > { %3340 = vmatprep.mubr.bf16.mxu0 %v3229_v56  ;;  %9018 = vpow2.f32 %v2932_v55 }
 0x5f5   : > { %v8027_v20 = vpop.f32.mrf.mxu0 }
 0x5f7   : > { %v8028_v45 = vpop.f32.mrf.mxu0 }
 0x5f8   : > { %v8029_v19 = vadd.f32 %v8028_v45, %v8027_v20  ;;  %v11714_v20 = vpop.f32.mrf.mxu1  ;;  %v2858_v45 = vsub.f32 %v14892_v51, %v11359_v37 }
 0x5f9   : > { %v8030_v7 = vpop.f32.mrf.mxu0 }
 0x5fa   : > { %v7741_v34 = vpack.c.bf16 %v8029_v19, %v8029_v19  ;;  %v2934_v19 = vmul.f32 1.442695, %v2857_v61  ;;  %v2936_v17 = vmul.f32 1.442695, %v2858_v45  ;;  %v2247_v61 = vld [vmem:[#allocation4 + $0x1e0] sm:$0xff] }
 0x5fb   : > { %v8031_v16 = vpop.f32.mrf.mxu0 }
 0x5fc   : > { %2176 = vst.msk [vmem:[#allocation3 + $0x58] sm:$0xf] %vm2153_vm3, %v7741_v34  ;;  %v8032_v56 = vadd.f32 %v8031_v16, %v8030_v7  ;;  %v11721_v16 = vpop.f32.mrf.mxu1  ;;  %9020 = vpow2.f32 %v2934_v19  ;;  %v11739_v19 = vpop.eup %9018 }
 0x5fd   : > { %9022 = vpow2.f32 %v2936_v17  ;;  %14896 = vst [vmem:[#allocation24_spill] sm:$0xff] %v11739_v19 }
 0x5fe   : > { %v7742_v21 = vpack.c.bf16 %v8032_v56, %v8032_v56  ;;  %v8033_v63 = vpop.f32.mrf.mxu0  ;;  %v11724_v51 = vpop.f32.mrf.mxu1  ;;  %9024 = vpow2.f32 %v2938_v26  ;;  %v9596_v26 = vld [vmem:[#allocation2 + $0x48] sm:$0xff]  }
 0x5ff   : > { %2836 = vmax.xlane.f32.xlu0 %v2835_v25 }
 0x600   : > { %2177 = vst.msk [vmem:[#allocation3 + $0x5c] sm:$0xf] %vm2153_vm3, %v7742_v21  ;;  %v8034_v10 = vpop.f32.mrf.mxu0  ;;  %v2308_v21 = vunpack.c.h.bf16 %v2247_v61  ;;  %v11727_v31 = vpop.f32.mrf.mxu1 }
 0x601   : > { %v8035_v7 = vadd.f32 %v8034_v10, %v8033_v63  ;;  %v2307_v63 = vunpack.c.l.bf16 %v2247_v61 }
 0x602   : > { %v8036_v34 = vpop.f32.mrf.mxu0  ;;  %v11730_v55 = vadd.f32 %v11540_v41, %v2308_v21  ;;  %v9597_v21 = vld [vmem:[#allocation2 + $0x78] sm:$0xff]  }
 0x603   : > { %v7743_v56 = vpack.c.bf16 %v8035_v7, %v8035_v7  ;;  %v11733_v15 = vadd.f32 %v11533_v27, %v2307_v63 }
 0x604   : > { %v8037_v30 = vpop.f32.mrf.mxu0  ;;  %14894 = vst [vmem:[#allocation43_spill] sm:$0xff] %v11730_v55 }
 0x605   : > { %2178 = vst.msk [vmem:[#allocation3 + $0x60] sm:$0xf] %vm2153_vm3, %v7743_v56  ;;  %v8038_v25 = vadd.f32 %v8037_v30, %v8036_v34  ;;  %14895 = vst [vmem:[#allocation38_spill] sm:$0xff] %v11733_v15  ;;  %v11737_v30 = vpop.f32.mrf.mxu1  ;;  %v2832_v10 = vmax.f32 %v11733_v15, %v11730_v55 }
 0x607   : > { %v7744_v37 = vpack.c.bf16 %v8038_v25, %v8038_v25  ;;  %v11747_v17 = vpop.f32.mrf.mxu1 }
 0x609   : > { %2179 = vst.msk [vmem:[#allocation3 + $0x64] sm:$0xf] %vm2153_vm3, %v7744_v37  ;;  %v11743_v7 = vpop.eup %9020  ;;  %v11756_v25 = vpop.f32.mrf.mxu1 }
 0x60a   : > { %14897 = vst [vmem:[#allocation48_spill] sm:$0xff] %v11743_v7  ;;  %v11749_v41 = vpop.eup %9022  ;;  %v3054_v27 = vadd.f32 %v11743_v7, %v11739_v19  ;;  %v9598_v19 = vld [vmem:[#allocation2 + $0x40] sm:$0xff]  }
 0x60b   : > { %14899 = vst [vmem:[#allocation22_spill] sm:$0xff] %v11749_v41  ;;  %v11753_v56 = vpop.eup %9024 }
 0x60c   : > { %14900 = vst [vmem:[#allocation50_spill] sm:$0xff] %v11753_v56  ;;  %v3057_v37 = vadd.f32 %v11753_v56, %v11749_v41 }
 0x60e   : > { %v11735_v45 = vpop.xlane.xlu0 %2824 }
 0x612   : > { %v11745_v34 = vpop.xlane.xlu0 %3043  ;;  %2833 = vmax.xlane.f32.xlu1 %v2832_v10  ;;  %v11765_v10 = vpop.f32.mrf.mxu1 }
 0x613   : > { %14898 = vst [vmem:[#allocation47_spill] sm:$0xff] %v11745_v34 }
 0x614   : > { %v11768_v7 = vpop.f32.mrf.mxu1 }
 0x615   : > { %3278 = vrot.lane.b32.xlu0 %v9596_v26, %s9682_s27 }
 0x616   : > { %3055 = vadd.xlane.f32.xlu1 %v3054_v27  ;;  %v11758_v61 = vpop.xlane.xlu0 %3046  ;;  %v11771_v41 = vpop.f32.mrf.mxu1 }
 0x617   : > { %14901 = vst [vmem:[#allocation49_spill] sm:$0xff] %v11758_v61 }
 0x618   : > { %v11778_v9 = vpop.f32.mrf.mxu1 }
 0x619   : > { %5441 = vrot.lane.b32.xlu0 %v9597_v21, %s9681_s26  ;;  %v11763_v63 = vpop.xlane.xlu1 %2821 }
 0x61a   : > { %3058 = vadd.xlane.f32.xlu1 %v3057_v37  ;;  %v3271_v27 = vpop.permute.xlu0 %3270  ;;  %v14902_v37 = vld [vmem:[#allocation64_spill] sm:$0xff] }
 0x61b   : > { %v2860_v21 = vsub.f32 %v14902_v37, %v11381_v14  ;;  %v9599_v37 = vld [vmem:[#allocation2 + $0x8] sm:$0xff]  }
 0x61d   : > { %3276 = vrot.lane.b32.xlu0 %v9598_v19, %s9682_s27  ;;  %v3287_v26 = vpop.permute.xlu1 %3286  ;;  %v2861_v19 = vsub.f32 %v14903_v3, %v11381_v14  ;;  %v2940_v11 = vmul.f32 1.442695, %v2860_v21  ;;  %v2946_v14 = vmul.f32 1.442695, %v2863_v46  ;;  %v2249_v21 = vld [vmem:[#allocation4 + $0x1f0] sm:$0xff] }
 0x61e   : > { %8109 = vmatprep.subr.bf16.mxu0 %v3287_v26  ;;  %v14904_v26 = vld [vmem:[#allocation33_spill] sm:$0xff] }
 0x61f   : > { %8110 = vmatpush3.bf16.msra.mxu0 %v3271_v27  ;;  %v2862_v27 = vsub.f32 %v14904_v26, %v11369_v47  ;;  %v2942_v29 = vmul.f32 1.442695, %v2861_v19  ;;  %9026 = vpow2.f32 %v2940_v11  ;;  %v2866_v47 = vsub.f32 %v11194_v33, %v11446_v62 }
 0x620   : > { %v2311_v11 = vunpack.c.l.bf16 %v2249_v21  ;;  %v2954_v26 = vmul.f32 1.442695, %v2867_v57  ;;  %v3728_v57 = vld [vmem:[#allocation4 + $0x208] sm:$0xff] }
 0x621   : > { %v5438_v8 = vpop.permute.xlu1 %5437  ;;  %v2944_v52 = vmul.f32 1.442695, %v2862_v27  ;;  %9028 = vpow2.f32 %v2942_v29  ;;  %v2952_v46 = vmul.f32 1.442695, %v2866_v47  ;;  %v3761_v15 = vunpack.c.l.bf16 %v3728_v57 }
 0x622   : > { %8419 = vmatprep.mubr.msk.bf16.mxu1 %vm1014_vm2, %v5438_v8 }
 0x623   : > { %8420 = vmatmul.mubr.msk.bf16.gmra.mxu1 %vm1014_vm2, %v5438_v8  ;;  %v11784_v8 = vpop.f32.mrf.mxu1  ;;  %9030 = vpow2.f32 %v2944_v52  ;;  %v11802_v52 = vadd.f32 %v11609_v18, %v2311_v11 }
 0x624   : > { %9032 = vpow2.f32 %v2946_v14  ;;  %v2870_v14 = vsub.f32 %v11201_v38, %v11454_v5  ;;  %v3762_v38 = vunpack.c.h.bf16 %v3728_v57 }
 0x625   : > { %v3285_v56 = vpop.permute.xlu1 %3284  ;;  %v11787_v3 = vpop.f32.mrf.mxu1  ;;  %14907 = vst [vmem:[#allocation52_spill] sm:$0xff] %v11802_v52  ;;  %9034 = vpow2.f32 %v2952_v46 }
 0x626   : > { %8111 = vmatprep.subr.bf16.mxu0 %v3285_v56  ;;  %v9600_v56 = vld [vmem:[#allocation2] sm:$0xff]   ;;  %9036 = vpow2.f32 %v2954_v26  ;;  %v2960_v46 = vmul.f32 1.442695, %v2870_v14 }
 0x627   : > { %v11794_v19 = vpop.f32.mrf.mxu1  ;;  %v14913_v14 = vld [vmem:[#allocation67_spill] sm:$0xff] }
 0x628   : > { %9038 = vpow2.f32 %v2960_v46 }
 0x629   : > { %v3269_v36 = vpop.permute.xlu1 %3268 }
 0x62a   : > { %8112 = vmatpush3.bf16.msra.mxu0 %v3269_v36  ;;  %v2312_v36 = vunpack.c.h.bf16 %v2249_v21 }
 0x62b   : > { %3262 = vrot.lane.b32.xlu1 %v9599_v37, %s9682_s27  ;;  %v11799_v37 = vpop.f32.mrf.mxu1 }
 0x62c   : > { %v11797_v29 = vadd.f32 %v11614_v28, %v2312_v36  ;;  %v11806_v62 = vpop.eup %9026  ;;  %v2871_v28 = vsub.f32 %v11196_v13, %v11454_v5 }
 0x62d   : > { %14908 = vst [vmem:[#allocation51_spill] sm:$0xff] %v11806_v62  ;;  %v11814_v18 = vpop.f32.mrf.mxu1 }
 0x62e   : > { %14906 = vst [vmem:[#allocation63_spill] sm:$0xff] %v11797_v29  ;;  %v11812_v47 = vpop.eup %9028  ;;  %v2962_v26 = vmul.f32 1.442695, %v2871_v28  ;;  %v14915_v28 = vld [vmem:[#allocation15_spill] sm:$0xff] }
 0x62f   : > { %3260 = vrot.lane.b32.xlu1 %v9600_v56, %s9682_s27  ;;  %v2838_v56 = vmax.f32 %v11802_v52, %v11797_v29  ;;  %14909 = vst [vmem:[#allocation28_spill] sm:$0xff] %v11812_v47  ;;  %v3060_v13 = vadd.f32 %v11812_v47, %v11806_v62  ;;  %v11823_v29 = vpop.f32.mrf.mxu1 }
 0x630   : > { %9040 = vpow2.f32 %v2962_v26 }
 0x636   : > { %v8039_v27 = vpop.f32.mrf.mxu0 }
 0x638   : > { %v8040_v33 = vpop.f32.mrf.mxu0 }
 0x639   : > { %v8041_v44 = vadd.f32 %v8040_v33, %v8039_v27  ;;  %v11817_v33 = vpop.eup %9030 }
 0x63a   : > { %v8042_v21 = vpop.f32.mrf.mxu0  ;;  %14910 = vst [vmem:[#allocation11_spill] sm:$0xff] %v11817_v33  ;;  %v11821_v5 = vpop.eup %9032 }
 0x63b   : > { %v7745_v36 = vpack.c.bf16 %v8041_v44, %v8041_v44  ;;  %14911 = vst [vmem:[#allocation34_spill] sm:$0xff] %v11821_v5  ;;  %v14912_v44 = vld [vmem:[#allocation68_spill] sm:$0xff]  ;;  %v3063_v57 = vadd.f32 %v11821_v5, %v11817_v33  ;;  %v11844_v61 = vpop.eup %9034 }
 0x63c   : > { %2839 = vmax.xlane.f32.xlu0 %v2838_v56  ;;  %v8043_v11 = vpop.f32.mrf.mxu0  ;;  %v2864_v52 = vsub.f32 %v14912_v44, %v11385_v40  ;;  %v14917_v44 = vld [vmem:[#allocation37_spill] sm:$0xff]  ;;  %14919 = vst [vmem:[#allocation21_spill] sm:$0xff] %v11844_v61  ;;  %v14923_v33 = vld [vmem:[#allocation36_spill] sm:$0xff] }
 0x63d   : > { %2180 = vst.msk [vmem:[#allocation3 + $0x68] sm:$0xf] %vm2153_vm3, %v7745_v36  ;;  %v8044_v27 = vadd.f32 %v8043_v11, %v8042_v21  ;;  %v2865_v36 = vsub.f32 %v14913_v14, %v11385_v40  ;;  %v11830_v21 = vadd.f32 %v11681_v1, %v3762_v38  ;;  %v14916_v11 = vld [vmem:[#allocation14_spill] sm:$0xff]  ;;  %v11839_v40 = vpop.f32.mrf.mxu1  ;;  %v11842_v38 = vadd.f32 %v11678_v54, %v3761_v15  ;;  %v14921_v15 = vld [vmem:[#allocation17_spill] sm:$0xff] }
 0x63e   : > { %v2874_v62 = vsub.f32 %v14916_v11, %v14915_v28  ;;  %v2869_v5 = vsub.f32 %v14923_v33, %v14921_v15 }
 0x63f   : > { %v7746_v56 = vpack.c.bf16 %v8044_v27, %v8044_v27  ;;  %v8045_v55 = vpop.f32.mrf.mxu0  ;;  %14914 = vst [vmem:[#allocation32_spill] sm:$0xff] %v11830_v21  ;;  %v2875_v27 = vsub.f32 %v14917_v44, %v14915_v28  ;;  %14918 = vst [vmem:[#allocation29_spill] sm:$0xff] %v11842_v38  ;;  %v2950_v46 = vmul.f32 1.442695, %v2865_v36  ;;  %v11849_v44 = vpop.eup %9036 }
 0x640   : > { %3061 = vadd.xlane.f32.xlu0 %v3060_v13  ;;  %v2948_v13 = vmul.f32 1.442695, %v2864_v52  ;;  %v2968_v11 = vmul.f32 1.442695, %v2874_v62  ;;  %14920 = vst [vmem:[#allocation55_spill] sm:$0xff] %v11849_v44  ;;  %v11851_v54 = vpop.f32.mrf.mxu1  ;;  %v2250_v62 = vld [vmem:[#allocation4 + $0x1f8] sm:$0xff] }
 0x641   : > { %2181 = vst.msk [vmem:[#allocation3 + $0x6c] sm:$0xf] %vm2153_vm3, %v7746_v56  ;;  %v8046_v47 = vpop.f32.mrf.mxu0  ;;  %v3730_v56 = vld [vmem:[#allocation4 + $0x218] sm:$0xff]  ;;  %v2970_v28 = vmul.f32 1.442695, %v2875_v27  ;;  %v2314_v27 = vunpack.c.h.bf16 %v2250_v62  ;;  %v2313_v33 = vunpack.c.l.bf16 %v2250_v62 }
 0x642   : > { %v8047_v34 = vadd.f32 %v8046_v47, %v8045_v55  ;;  %v4259_v55 = vmax.f32 %v11842_v38, %v11830_v21  ;;  %v3766_v47 = vunpack.c.h.bf16 %v3730_v56  ;;  %9042 = vpow2.f32 %v2948_v13  ;;  %v14927_v13 = vld [vmem:[#allocation19_spill] sm:$0xff] }
 0x643   : > { %v8048_v1 = vpop.f32.mrf.mxu0  ;;  %9044 = vpow2.f32 %v2950_v46  ;;  %v3069_v46 = vadd.f32 %v11849_v44, %v11844_v61  ;;  %v14933_v44 = vld [vmem:[#allocation40_spill] sm:$0xff] }
 0x644   : > { %v7747_v14 = vpack.c.bf16 %v8047_v34, %v8047_v34  ;;  %3064 = vadd.xlane.f32.xlu0 %v3063_v57  ;;  %v14922_v34 = vld [vmem:[#allocation26_spill] sm:$0xff]  ;;  %v3765_v57 = vunpack.c.l.bf16 %v3730_v56  ;;  %9046 = vpow2.f32 %v2968_v11  ;;  %v11860_v38 = vadd.f32 %v11724_v51, %v3766_v47  ;;  %v11867_v56 = vpop.f32.mrf.mxu1  ;;  %v3727_v11 = vld [vmem:[#allocation4 + $0x200] sm:$0xff] }
 0x645   : > { %v8049_v26 = vpop.f32.mrf.mxu0  ;;  %v2868_v36 = vsub.f32 %v14922_v34, %v14921_v15  ;;  %9048 = vpow2.f32 %v2970_v28  ;;  %v2958_v15 = vmul.f32 1.442695, %v2869_v5  ;;  %v11873_v51 = vadd.f32 %v11624_v42, %v2314_v27  ;;  %v3732_v28 = vld [vmem:[#allocation4 + $0x228] sm:$0xff]  ;;  %v14932_v27 = vld [vmem:[#allocation31_spill] sm:$0xff] }
 0x646   : > { %2182 = vst.msk [vmem:[#allocation3 + $0x70] sm:$0xf] %vm2153_vm3, %v7747_v14  ;;  %v8050_v52 = vadd.f32 %v8049_v26, %v8048_v1  ;;  %v14924_v14 = vld [vmem:[#allocation56_spill] sm:$0xff]  ;;  %14926 = vst [vmem:[#allocation54_spill] sm:$0xff] %v11860_v38  ;;  %v3760_v47 = vunpack.c.h.bf16 %v3727_v11  ;;  %v3759_v5 = vunpack.c.l.bf16 %v3727_v11  ;;  %v11886_v42 = vpop.f32.mrf.mxu1  ;;  %v14937_v11 = vld [vmem:[#allocation53_spill] sm:$0xff] }
 0x647   : > { %v14925_v1 = vld [vmem:[#allocation8_spill] sm:$0xff]  ;;  %v2879_v34 = vsub.f32 %v14927_v13, %v14924_v14 }
 0x648   : > { %v7748_v21 = vpack.c.bf16 %v8050_v52, %v8050_v52  ;;  %4260 = vmax.xlane.f32.xlu0 %v4259_v55  ;;  %v2878_v26 = vsub.f32 %v14925_v1, %v14924_v14  ;;  %v2956_v55 = vmul.f32 1.442695, %v2868_v36  ;;  %v11870_v52 = vadd.f32 %v11721_v16, %v3765_v57  ;;  %v11877_v1 = vpop.eup %9038  ;;  %v14931_v57 = vld [vmem:[#allocation41_spill] sm:$0xff] }
 0x649   : > { %14929 = vst [vmem:[#allocation7_spill] sm:$0xff] %v11877_v1  ;;  %v3770_v36 = vunpack.c.h.bf16 %v3732_v28  ;;  %v2978_v13 = vmul.f32 1.442695, %v2879_v34  ;;  %v11881_v61 = vpop.eup %9040  ;;  %v11884_v16 = vadd.f32 %v11620_v12, %v2313_v33  ;;  %v2873_v50 = vsub.f32 %v14933_v44, %v14931_v57  ;;  %v14935_v12 = vld [vmem:[#allocation25_spill] sm:$0xff] }
 0x64a   : > { %2183 = vst.msk [vmem:[#allocation3 + $0x74] sm:$0xf] %vm2153_vm3, %v7748_v21  ;;  %14928 = vst [vmem:[#allocation16_spill] sm:$0xff] %v11870_v52  ;;  %v2976_v14 = vmul.f32 1.442695, %v2878_v26  ;;  %v4265_v62 = vmax.f32 %v11870_v52, %v11860_v38  ;;  %9050 = vpow2.f32 %v2956_v55  ;;  %v2872_v26 = vsub.f32 %v14932_v27, %v14931_v57  ;;  %v3734_v57 = vld [vmem:[#allocation4 + $0x238] sm:$0xff] }
 0x64b   : > { %v11875_v21 = vpop.xlane.xlu0 %2830  ;;  %14930 = vst [vmem:[#allocation64_spill] sm:$0xff] %v11881_v61  ;;  %9052 = vpow2.f32 %v2958_v15  ;;  %v2841_v34 = vmax.f32 %v11884_v16, %v11873_v51  ;;  %v11895_v38 = vadd.f32 %v11674_v60, %v3760_v47  ;;  %v2882_v33 = vsub.f32 %v14935_v12, %v11605_v2 }
 0x64c   : > { %3070 = vadd.xlane.f32.xlu0 %v3069_v46  ;;  %v3769_v46 = vunpack.c.l.bf16 %v3732_v28  ;;  %9054 = vpow2.f32 %v2976_v14  ;;  %v11900_v55 = vadd.f32 %v11756_v25, %v3770_v36  ;;  %v2883_v15 = vsub.f32 %v14937_v11, %v11605_v2  ;;  %v3729_v25 = vld [vmem:[#allocation4 + $0x210] sm:$0xff] }
 0x64d   : > { %14934 = vst [vmem:[#allocation62_spill] sm:$0xff] %v11895_v38  ;;  %9056 = vpow2.f32 %v2978_v13  ;;  %v3075_v44 = vadd.f32 %v11881_v61, %v11877_v1  ;;  %v11907_v28 = vadd.f32 %v11672_v48, %v3759_v5  ;;  %v2964_v60 = vmul.f32 1.442695, %v2872_v26 }
 0x64e   : > { %14936 = vst [vmem:[#allocation33_spill] sm:$0xff] %v11900_v55  ;;  %v11916_v36 = vadd.f32 %v11747_v17, %v3769_v46  ;;  %v2966_v13 = vmul.f32 1.442695, %v2873_v50  ;;  %v3764_v5 = vunpack.c.h.bf16 %v3729_v25  ;;  %v2984_v27 = vmul.f32 1.442695, %v2882_v33  ;;  %v14943_v46 = vld [vmem:[#allocation23_spill] sm:$0xff] }
 0x64f   : > { %v11911_v47 = vpop.xlane.xlu0 %3049  ;;  %v11913_v14 = vpop.eup %9042  ;;  %v4256_v48 = vmax.f32 %v11907_v28, %v11895_v38  ;;  %v3774_v12 = vunpack.c.h.bf16 %v3734_v57  ;;  %v2986_v11 = vmul.f32 1.442695, %v2883_v15  ;;  %v3763_v17 = vunpack.c.l.bf16 %v3729_v25  ;;  %v14945_v33 = vld [vmem:[#allocation42_spill] sm:$0xff]  ;;  %v14947_v15 = vld [vmem:[#allocation59_spill] sm:$0xff] }
 0x650   : > { %4266 = vmax.xlane.f32.xlu0 %v4265_v62  ;;  %v11909_v62 = vpop.f32.mrf.mxu1  ;;  %14938 = vst [vmem:[#allocation12_spill] sm:$0xff] %v11913_v14  ;;  %14939 = vst [vmem:[#allocation68_spill] sm:$0xff] %v11916_v36  ;;  %v11918_v2 = vpop.eup %9044  ;;  %9058 = vpow2.f32 %v2964_v60  ;;  %v3773_v61 = vunpack.c.l.bf16 %v3734_v57  ;;  %v2877_v38 = vsub.f32 %v14945_v33, %v14943_v46  ;;  %v2886_v25 = vsub.f32 %v14947_v15, %v11607_v0 }
 0x651   : > { %14940 = vst [vmem:[#allocation67_spill] sm:$0xff] %v11918_v2  ;;  %v11922_v26 = vpop.eup %9046  ;;  %9060 = vpow2.f32 %v2966_v13  ;;  %v3066_v60 = vadd.f32 %v11918_v2, %v11913_v14  ;;  %v14949_v13 = vld [vmem:[#allocation39_spill] sm:$0xff]  ;;  %v14953_v14 = vld [vmem:[#allocation10_spill] sm:$0xff]  ;;  %v14954_v2 = vld [vmem:[#allocation20_spill] sm:$0xff] }
 0x652   : > { %14941 = vst [vmem:[#allocation15_spill] sm:$0xff] %v11922_v26  ;;  %v11926_v52 = vpop.eup %9048  ;;  %v11928_v50 = vpop.f32.mrf.mxu1  ;;  %9062 = vpow2.f32 %v2984_v27  ;;  %v2887_v57 = vsub.f32 %v14949_v13, %v11607_v0 }
 0x653   : > { %2842 = vmax.xlane.f32.xlu1 %v2841_v34  ;;  %v4271_v34 = vmax.f32 %v11916_v36, %v11900_v55  ;;  %14942 = vst [vmem:[#allocation14_spill] sm:$0xff] %v11926_v52  ;;  %v11935_v55 = vadd.f32 %v11714_v20, %v3764_v5  ;;  %v11939_v36 = vpop.xlane.xlu0 %3052  ;;  %9064 = vpow2.f32 %v2986_v11  ;;  %v3081_v20 = vadd.f32 %v11926_v52, %v11922_v26 }
 0x654   : > { %3076 = vadd.xlane.f32.xlu0 %v3075_v44  ;;  %v14944_v44 = vld [vmem:[#allocation35_spill] sm:$0xff]  ;;  %v11953_v5 = vadd.f32 %v11705_v39, %v3763_v17  ;;  %v11955_v27 = vpop.f32.mrf.mxu1  ;;  %v2974_v11 = vmul.f32 1.442695, %v2877_v38  ;;  %v3736_v39 = vld [vmem:[#allocation4 + $0x248] sm:$0xff]  ;;  %v2992_v17 = vmul.f32 1.442695, %v2886_v25 }
 0x655   : > { %v2876_v1 = vsub.f32 %v14944_v44, %v14943_v46  ;;  %14946 = vst [vmem:[#allocation37_spill] sm:$0xff] %v11935_v55  ;;  %v2994_v26 = vmul.f32 1.442695, %v2887_v57  ;;  %v3777_v25 = vunpack.c.l.bf16 %v3736_v39 }
 0x656   : > { %14950 = vst [vmem:[#allocation26_spill] sm:$0xff] %v11953_v5  ;;  %v4262_v33 = vmax.f32 %v11953_v5, %v11935_v55  ;;  %v11972_v38 = vpop.f32.mrf.mxu1 }
 0x657   : > { %4257 = vmax.xlane.f32.xlu1 %v4256_v48  ;;  %v11944_v48 = vadd.f32 %v11778_v9, %v3774_v12  ;;  %v2972_v46 = vmul.f32 1.442695, %v2876_v1  ;;  %v11957_v44 = vpop.eup %9050  ;;  %v3731_v9 = vld [vmem:[#allocation4 + $0x220] sm:$0xff]  ;;  %v11960_v12 = vadd.f32 %v11771_v41, %v3773_v61  ;;  %v3267_v5 = vpop.permute.xlu0 %3266 }
 0x658   : > { %4272 = vmax.xlane.f32.xlu0 %v4271_v34  ;;  %v11962_v0 = vpop.eup %9052  ;;  %v3768_v15 = vunpack.c.h.bf16 %v3731_v9  ;;  %v3767_v61 = vunpack.c.l.bf16 %v3731_v9  ;;  %v14956_v9 = vld [vmem:[#allocation18_spill] sm:$0xff] }
 0x659   : > { %14948 = vst [vmem:[#allocation17_spill] sm:$0xff] %v11944_v48  ;;  %14951 = vst [vmem:[#allocation36_spill] sm:$0xff] %v11960_v12  ;;  %v11966_v13 = vpop.eup %9054  ;;  %v4277_v1 = vmax.f32 %v11960_v12, %v11944_v48  ;;  %9066 = vpow2.f32 %v2972_v46  ;;  %v2890_v46 = vsub.f32 %v14956_v9, %v11676_v49 }
 0x65a   : > { %v11948_v34 = vpop.xlane.xlu1 %2827  ;;  %v11970_v41 = vpop.eup %9056  ;;  %9068 = vpow2.f32 %v2974_v11  ;;  %v11979_v57 = vadd.f32 %v11737_v30, %v3768_v15  ;;  %v11993_v30 = vadd.f32 %v11727_v31, %v3767_v61 }
 0x65b   : > { %3067 = vadd.xlane.f32.xlu1 %v3066_v60  ;;  %v3778_v60 = vunpack.c.h.bf16 %v3736_v39  ;;  %9070 = vpow2.f32 %v2992_v17  ;;  %v11995_v15 = vpop.f32.mrf.mxu1  ;;  %v3000_v61 = vmul.f32 1.442695, %v2890_v46 }
 0x65c   : > { %3082 = vadd.xlane.f32.xlu0 %v3081_v20  ;;  %v14952_v20 = vld [vmem:[#allocation61_spill] sm:$0xff]  ;;  %14955 = vst [vmem:[#allocation56_spill] sm:$0xff] %v11979_v57  ;;  %9072 = vpow2.f32 %v2994_v26  ;;  %14959 = vst [vmem:[#allocation19_spill] sm:$0xff] %v11993_v30  ;;  %v12001_v26 = vadd.f32 %v11794_v19, %v3777_v25  ;;  %v4268_v31 = vmax.f32 %v11993_v30, %v11979_v57 }
 0x65d   : > { %v2880_v55 = vsub.f32 %v14953_v14, %v14952_v20  ;;  %v2881_v48 = vsub.f32 %v14954_v2, %v14952_v20  ;;  %v3072_v14 = vadd.f32 %v11962_v0, %v11957_v44  ;;  %v11998_v17 = vpop.eup %9058  ;;  %v14962_v57 = vld [vmem:[#allocation13_spill] sm:$0xff] }
 0x65e   : > { %v3283_v52 = vpop.permute.xlu1 %3282  ;;  %14960 = vst [vmem:[#allocation41_spill] sm:$0xff] %v12001_v26  ;;  %v2885_v30 = vsub.f32 %v14962_v57, %v11611_v43 }
 0x65f   : > { %4263 = vmax.xlane.f32.xlu1 %v4262_v33  ;;  %8113 = vmatprep.subr.bf16.mxu0 %v3283_v52  ;;  %v11986_v33 = vadd.f32 %v11799_v37, %v3778_v60  ;;  %v14958_v52 = vld [vmem:[#allocation58_spill] sm:$0xff]  ;;  %v2980_v39 = vmul.f32 1.442695, %v2880_v55  ;;  %v3733_v37 = vld [vmem:[#allocation4 + $0x230] sm:$0xff] }
 0x660   : > { %4278 = vmax.xlane.f32.xlu0 %v4277_v1  ;;  %8114 = vmatpush3.bf16.msra.mxu0 %v3267_v5  ;;  %v2891_v11 = vsub.f32 %v14958_v52, %v11676_v49  ;;  %v3087_v5 = vadd.f32 %v11970_v41, %v11966_v13  ;;  %v2982_v49 = vmul.f32 1.442695, %v2881_v48  ;;  %v12004_v1 = vpop.eup %9060  ;;  %v3772_v60 = vunpack.c.h.bf16 %v3733_v37  ;;  %v3738_v55 = vld [vmem:[#allocation4 + $0x258] sm:$0xff] }
 0x661   : > { %14957 = vst [vmem:[#allocation8_spill] sm:$0xff] %v11986_v33  ;;  %v12008_v20 = vpop.eup %9062  ;;  %v4283_v9 = vmax.f32 %v12001_v26, %v11986_v33  ;;  %v3771_v52 = vunpack.c.l.bf16 %v3733_v37  ;;  %9074 = vpow2.f32 %v2980_v39  ;;  %v3781_v46 = vunpack.c.l.bf16 %v3738_v55 }
 0x662   : > { %v5440_v2 = vpop.permute.xlu1 %5439  ;;  %v3002_v19 = vmul.f32 1.442695, %v2891_v11  ;;  %v12012_v48 = vpop.eup %9064  ;;  %9076 = vpow2.f32 %v2982_v49  ;;  %v12021_v11 = vadd.f32 %v11768_v7, %v3772_v60  ;;  %v2894_v37 = vsub.f32 %v11575_v35, %v11735_v45 }
 0x663   : > { %3073 = vadd.xlane.f32.xlu1 %v3072_v14  ;;  %8421 = vmatprep.mubr.msk.bf16.mxu1 %vm1014_vm2, %v5440_v2  ;;  %v3782_v14 = vunpack.c.h.bf16 %v3738_v55  ;;  %9078 = vpow2.f32 %v3000_v61  ;;  %v3078_v39 = vadd.f32 %v12004_v1, %v11998_v17  ;;  %v2895_v49 = vsub.f32 %v11572_v23, %v11735_v45 }
 0x664   : > { %3088 = vadd.xlane.f32.xlu0 %v3087_v5  ;;  %8422 = vmatmul.mubr.msk.bf16.gmra.mxu1 %vm1014_vm2, %v5440_v2  ;;  %v12014_v2 = vpop.f32.mrf.mxu1  ;;  %v14961_v5 = vld [vmem:[#allocation44_spill] sm:$0xff]  ;;  %14963 = vst [vmem:[#allocation31_spill] sm:$0xff] %v12021_v11  ;;  %9080 = vpow2.f32 %v3002_v19  ;;  %v12035_v7 = vadd.f32 %v11765_v10, %v3771_v52  ;;  %v12042_v55 = vadd.f32 %v11839_v40, %v3781_v46  ;;  %v2990_v61 = vmul.f32 1.442695, %v2885_v30  ;;  %v14966_v46 = vld [vmem:[#allocation9_spill] sm:$0xff] }
 0x665   : > { %v2884_v12 = vsub.f32 %v14961_v5, %v11611_v43  ;;  %v12028_v5 = vadd.f32 %v11851_v54, %v3782_v14  ;;  %v3093_v43 = vadd.f32 %v12012_v48, %v12008_v20  ;;  %v3735_v54 = vld [vmem:[#allocation4 + $0x240] sm:$0xff]  ;;  %v3008_v14 = vmul.f32 1.442695, %v2894_v37  ;;  %v14967_v37 = vld [vmem:[#allocation57_spill] sm:$0xff] }
 0x666   : > { %v3281_v25 = vpop.permute.xlu1 %3280  ;;  %v12037_v57 = vpop.f32.mrf.mxu1  ;;  %14965 = vst [vmem:[#allocation25_spill] sm:$0xff] %v12042_v55  ;;  %v4274_v45 = vmax.f32 %v12035_v7, %v12021_v11  ;;  %v3776_v10 = vunpack.c.h.bf16 %v3735_v54  ;;  %v3010_v52 = vmul.f32 1.442695, %v2895_v49  ;;  %v3775_v40 = vunpack.c.l.bf16 %v3735_v54 }
 0x667   : > { %4269 = vmax.xlane.f32.xlu1 %v4268_v31  ;;  %8115 = vmatprep.subr.bf16.mxu0 %v3281_v25  ;;  %14964 = vst [vmem:[#allocation40_spill] sm:$0xff] %v12028_v5  ;;  %v2988_v35 = vmul.f32 1.442695, %v2884_v12  ;;  %v12039_v60 = vpop.eup %9066  ;;  %v4289_v12 = vmax.f32 %v12042_v55, %v12028_v5  ;;  %v2889_v33 = vsub.f32 %v14967_v37, %v11617_v6 }
 0x668   : > { %4284 = vmax.xlane.f32.xlu0 %v4283_v9  ;;  %v12044_v23 = vpop.eup %9068  ;;  %v3740_v9 = vld [vmem:[#allocation4 + $0x268] sm:$0xff]  ;;  %v12054_v30 = vpop.f32.mrf.mxu1  ;;  %v12061_v5 = vadd.f32 %v11787_v3, %v3776_v10  ;;  %v2898_v49 = vsub.f32 %v11645_v22, %v11875_v21  ;;  %v12075_v3 = vadd.f32 %v11784_v8, %v3775_v40  ;;  %v3742_v8 = vld [vmem:[#allocation4 + $0x278] sm:$0xff] }
 0x669   : > { %v12048_v19 = vpop.eup %9070  ;;  %v3786_v25 = vunpack.c.h.bf16 %v3740_v9  ;;  %9082 = vpow2.f32 %v2988_v35  ;;  %v3084_v35 = vadd.f32 %v12044_v23, %v12039_v60 }
 0x66a   : > { %v3265_v31 = vpop.permute.xlu1 %3264  ;;  %9084 = vpow2.f32 %v2990_v61  ;;  %14968 = vst [vmem:[#allocation53_spill] sm:$0xff] %v12061_v5  ;;  %v2899_v61 = vsub.f32 %v11642_v58, %v11875_v21  ;;  %14970 = vst [vmem:[#allocation35_spill] sm:$0xff] %v12075_v3  ;;  %v4280_v58 = vmax.f32 %v12075_v3, %v12061_v5 }
 0x66b   : > { %3079 = vadd.xlane.f32.xlu1 %v3078_v39  ;;  %8116 = vmatpush3.bf16.msra.mxu0 %v3265_v31  ;;  %v12052_v39 = vpop.eup %9072  ;;  %v2888_v31 = vsub.f32 %v14966_v46, %v11617_v6  ;;  %9086 = vpow2.f32 %v3008_v14  ;;  %v12068_v54 = vadd.f32 %v11928_v50, %v3786_v25  ;;  %v2998_v14 = vmul.f32 1.442695, %v2889_v33 }
 0x66c   : > { %3094 = vadd.xlane.f32.xlu0 %v3093_v43  ;;  %v3785_v43 = vunpack.c.l.bf16 %v3740_v9  ;;  %9088 = vpow2.f32 %v3010_v52  ;;  %v3099_v6 = vadd.f32 %v12052_v39, %v12048_v19  ;;  %v3737_v9 = vld [vmem:[#allocation4 + $0x250] sm:$0xff]  ;;  %v3016_v25 = vmul.f32 1.442695, %v2898_v49 }
 0x66d   : > { %14969 = vst [vmem:[#allocation23_spill] sm:$0xff] %v12068_v54  ;;  %v2996_v10 = vmul.f32 1.442695, %v2888_v31  ;;  %v3780_v21 = vunpack.c.h.bf16 %v3737_v9  ;;  %v3790_v46 = vunpack.c.h.bf16 %v3742_v8  ;;  %v3018_v31 = vmul.f32 1.442695, %v2899_v61 }
 0x66e   : > { %v12079_v22 = vpop.eup %9074  ;;  %v12082_v50 = vadd.f32 %v11909_v62, %v3785_v43  ;;  %v3779_v62 = vunpack.c.l.bf16 %v3737_v9 }
 0x66f   : > { %4275 = vmax.xlane.f32.xlu1 %v4274_v45  ;;  %v12077_v45 = vpop.f32.mrf.mxu1  ;;  %9090 = vpow2.f32 %v2996_v10  ;;  %v12097_v49 = vadd.f32 %v11823_v29, %v3780_v21  ;;  %v12104_v10 = vadd.f32 %v12014_v2, %v3790_v46  ;;  %v3739_v21 = vld [vmem:[#allocation4 + $0x260] sm:$0xff] }
 0x670   : > { %4290 = vmax.xlane.f32.xlu0 %v4289_v12  ;;  %14971 = vst [vmem:[#allocation42_spill] sm:$0xff] %v12082_v50  ;;  %v12084_v12 = vpop.eup %9076  ;;  %v4295_v40 = vmax.f32 %v12082_v50, %v12068_v54  ;;  %9092 = vpow2.f32 %v2998_v14  ;;  %v2893_v54 = vsub.f32 %v11592_v53, %v11763_v63 }
 0x671   : > { %v12088_v52 = vpop.eup %9078  ;;  %v4183_v33 = vpop.f32.mrf.mxu1  ;;  %14972 = vst [vmem:[#allocation59_spill] sm:$0xff] %v12097_v49  ;;  %9094 = vpow2.f32 %v3016_v25  ;;  %v3090_v9 = vadd.f32 %v12084_v12, %v12079_v22  ;;  %14973 = vst [vmem:[#allocation39_spill] sm:$0xff] %v12104_v10 }
 0x672   : > { %v12092_v37 = vpop.eup %9080  ;;  %9096 = vpow2.f32 %v3018_v31  ;;  %v3744_v31 = vld [vmem:[#allocation4 + $0x288] sm:$0xff] }
 0x673   : > { %3085 = vadd.xlane.f32.xlu1 %v3084_v35  ;;  %v3789_v35 = vunpack.c.l.bf16 %v3742_v8  ;;  %v12111_v29 = vpop.f32.mrf.mxu1  ;;  %v3794_v50 = vunpack.c.h.bf16 %v3744_v31 }
 0x674   : > { %3100 = vadd.xlane.f32.xlu0 %v3099_v6  ;;  %v2892_v6 = vsub.f32 %v11598_v4, %v11763_v63  ;;  %v3105_v4 = vadd.f32 %v12092_v37, %v12088_v52 }
 0x675   : > { %v12116_v8 = vadd.f32 %v11995_v15, %v3789_v35 }
 0x676   : > { %v12113_v63 = vpop.eup %9082  ;;  %v3004_v2 = vmul.f32 1.442695, %v2892_v6  ;;  %v3783_v6 = vunpack.c.l.bf16 %v3739_v21 }
 0x677   : > { %4281 = vmax.xlane.f32.xlu1 %v4280_v58  ;;  %v8051_v43 = vpop.f32.mrf.mxu0  ;;  %v12109_v58 = vadd.f32 %v11814_v18, %v3779_v62  ;;  %14975 = vst [vmem:[#allocation10_spill] sm:$0xff] %v12116_v8  ;;  %v3784_v18 = vunpack.c.h.bf16 %v3739_v21  ;;  %v3006_v62 = vmul.f32 1.442695, %v2893_v54  ;;  %v2896_v54 = vsub.f32 %v11668_v32, %v11948_v34 }
 0x678   : > { %4296 = vmax.xlane.f32.xlu0 %v4295_v40  ;;  %v12118_v40 = vpop.eup %9084  ;;  %9098 = vpow2.f32 %v3004_v2  ;;  %v12146_v32 = vadd.f32 %v11867_v56, %v3783_v6 }
 0x679   : > { %v8052_v61 = vpop.f32.mrf.mxu0  ;;  %14974 = vst [vmem:[#allocation61_spill] sm:$0xff] %v12109_v58  ;;  %v4286_v46 = vmax.f32 %v12109_v58, %v12097_v49  ;;  %v12134_v26 = vadd.f32 %v11886_v42, %v3784_v18  ;;  %9100 = vpow2.f32 %v3006_v62  ;;  %v3096_v21 = vadd.f32 %v12118_v40, %v12113_v63 }
 0x67a   : > { %v8053_v14 = vadd.f32 %v8052_v61, %v8051_v43  ;;  %v12122_v61 = vpop.eup %9086  ;;  %14978 = vst [vmem:[#allocation58_spill] sm:$0xff] %v12146_v32 }
 0x67b   : > { %3091 = vadd.xlane.f32.xlu1 %v3090_v9  ;;  %v8054_v53 = vpop.f32.mrf.mxu0  ;;  %v4301_v9 = vmax.f32 %v12116_v8, %v12104_v10  ;;  %v12127_v35 = vpop.eup %9088  ;;  %14976 = vst [vmem:[#allocation20_spill] sm:$0xff] %v12134_v26 }
 0x67c   : > { %v7749_v25 = vpack.c.bf16 %v8053_v14, %v8053_v14  ;;  %3106 = vadd.xlane.f32.xlu0 %v3105_v4  ;;  %v12129_v14 = vpop.f32.mrf.mxu1  ;;  %v3793_v4 = vunpack.c.l.bf16 %v3744_v31  ;;  %v3111_v2 = vadd.f32 %v12127_v35, %v12122_v61  ;;  %v12148_v18 = vpop.eup %9090 }
 0x67d   : > { %v8055_v43 = vpop.f32.mrf.mxu0 }
 0x67e   : > { %2184 = vst.msk [vmem:[#allocation3 + $0x78] sm:$0xf] %vm2153_vm3, %v7749_v25  ;;  %v8056_v15 = vadd.f32 %v8055_v43, %v8054_v53  ;;  %v2897_v53 = vsub.f32 %v11665_v59, %v11948_v34  ;;  %v12140_v25 = vadd.f32 %v4183_v33, %v3794_v50  ;;  %v4191_v42 = vpop.f32.mrf.mxu1  ;;  %v12151_v59 = vadd.f32 %v12077_v45, %v3793_v4  ;;  %v12153_v50 = vpop.eup %9092  ;;  %v3746_v33 = vld [vmem:[#allocation4 + $0x298] sm:$0xff] }
 0x67f   : > { %4287 = vmax.xlane.f32.xlu1 %v4286_v46  ;;  %v3741_v46 = vld [vmem:[#allocation4 + $0x270] sm:$0xff]  ;;  %v3012_v34 = vmul.f32 1.442695, %v2896_v54  ;;  %v12157_v56 = vpop.eup %9094  ;;  %v3797_v54 = vunpack.c.l.bf16 %v3746_v33 }
 0x680   : > { %v7750_v55 = vpack.c.bf16 %v8056_v15, %v8056_v15  ;;  %4302 = vmax.xlane.f32.xlu0 %v4301_v9  ;;  %14977 = vst [vmem:[#allocation18_spill] sm:$0xff] %v12140_v25  ;;  %v3788_v31 = vunpack.c.h.bf16 %v3741_v46  ;;  %14979 = vst [vmem:[#allocation44_spill] sm:$0xff] %v12151_v59  ;;  %v3014_v62 = vmul.f32 1.442695, %v2897_v53  ;;  %v4307_v43 = vmax.f32 %v12151_v59, %v12140_v25  ;;  %v12161_v15 = vpop.eup %9096  ;;  %v4193_v45 = vpop.f32.mrf.mxu1 }
 0x681   : > { %v3798_v9 = vunpack.c.h.bf16 %v3746_v33  ;;  %v3787_v6 = vunpack.c.l.bf16 %v3741_v46  ;;  %9102 = vpow2.f32 %v3012_v34  ;;  %v3102_v25 = vadd.f32 %v12153_v50, %v12148_v18 }
 0x682   : > { %2185 = vst.msk [vmem:[#allocation3 + $0x7c] sm:$0xf] %vm2153_vm3, %v7750_v55  ;;  %v4292_v55 = vmax.f32 %v12146_v32, %v12134_v26  ;;  %v12164_v4 = vadd.f32 %v11972_v38, %v3788_v31  ;;  %9104 = vpow2.f32 %v3014_v62  ;;  %v3117_v46 = vadd.f32 %v12161_v15, %v12157_v56  ;;  %v15007_v26 = vld [vmem:[#allocation50_spill] sm:$0xff]  ;;  %v15009_v32 = vld [vmem:[#allocation48_spill] sm:$0xff] }
 0x683   : > { %3097 = vadd.xlane.f32.xlu1 %v3096_v21  ;;  %v12170_v59 = vadd.f32 %v4193_v45, %v3798_v9  ;;  %v12175_v38 = vadd.f32 %v11955_v27, %v3787_v6  ;;  %v12177_v33 = vadd.f32 %v4191_v42, %v3797_v54 }
 0x684   : > { %3112 = vadd.xlane.f32.xlu0 %v3111_v2  ;;  %14980 = vst [vmem:[#allocation13_spill] sm:$0xff] %v12164_v4  ;;  %v14981_v2 = vld [vmem:[#allocation27_spill] sm:$0xff] }
 0x685   : > { %14982 = vst [vmem:[#allocation9_spill] sm:$0xff] %v12170_v59  ;;  %14983 = vst [vmem:[#allocation57_spill] sm:$0xff] %v12175_v38  ;;  %v4298_v9 = vmax.f32 %v12175_v38, %v12164_v4 }
 0x686   : > { %14984 = vst [vmem:[#allocation27_spill] sm:$0xff] %v12177_v33 }
 0x687   : > { %4293 = vmax.xlane.f32.xlu1 %v4292_v55  ;;  %v3743_v55 = vld [vmem:[#allocation4 + $0x280] sm:$0xff] }
 0x688   : > { %v2837_v21 = vpop.xlane.xlu0 %2836  ;;  %4308 = vmax.xlane.f32.xlu0 %v4307_v43  ;;  %v12181_v43 = vpop.eup %9098  ;;  %v3792_v45 = vunpack.c.h.bf16 %v3743_v55 }
 0x689   : > { %v2902_v53 = vsub.f32 %v11703_v24, %v2837_v21  ;;  %v2903_v10 = vsub.f32 %v14981_v2, %v2837_v21  ;;  %v12179_v24 = vpop.f32.mrf.mxu1  ;;  %v12185_v27 = vpop.eup %9100  ;;  %v3745_v2 = vld [vmem:[#allocation4 + $0x290] sm:$0xff] }
 0x68a   : > { %v12192_v54 = vadd.f32 %v12054_v30, %v3792_v45  ;;  %v3108_v21 = vadd.f32 %v12185_v27, %v12181_v43  ;;  %v3796_v30 = vunpack.c.h.bf16 %v3745_v2 }
 0x68b   : > { %v3024_v31 = vmul.f32 1.442695, %v2902_v53  ;;  %v3026_v34 = vmul.f32 1.442695, %v2903_v10  ;;  %3103 = vadd.xlane.f32.xlu1 %v3102_v25  ;;  %v4313_v10 = vmax.f32 %v12177_v33, %v12170_v59  ;;  %v3791_v25 = vunpack.c.l.bf16 %v3743_v55  ;;  %v12189_v42 = vpop.f32.mrf.mxu1  ;;  %v14988_v59 = vld [vmem:[#allocation49_spill] sm:$0xff] }
 0x68c   : > { %v3279_v62 = vpop.permute.xlu0 %3278  ;;  %3118 = vadd.xlane.f32.xlu0 %v3117_v46  ;;  %14985 = vst [vmem:[#allocation73_spill] sm:$0xff] %v12192_v54 }
 0x68d   : > { %9106 = vpow2.f32 %v3024_v31  ;;  %8117 = vmatprep.subr.bf16.mxu0 %v3279_v62  ;;  %v12199_v53 = vadd.f32 %v12037_v57, %v3791_v25  ;;  %v4201_v46 = vpop.f32.mrf.mxu1  ;;  %v3748_v62 = vld [vmem:[#allocation4 + $0x2a8] sm:$0xff] }
 0x68e   : > { %9108 = vpow2.f32 %v3026_v34  ;;  %v12201_v31 = vpop.eup %9102  ;;  %v3802_v45 = vunpack.c.h.bf16 %v3748_v62 }
 0x68f   : > { %4299 = vmax.xlane.f32.xlu1 %v4298_v9  ;;  %14986 = vst [vmem:[#allocation74_spill] sm:$0xff] %v12199_v53  ;;  %v4304_v34 = vmax.f32 %v12199_v53, %v12192_v54  ;;  %v12205_v55 = vpop.eup %9104  ;;  %v3795_v9 = vunpack.c.l.bf16 %v3745_v2  ;;  %9110 = vrcp.f32 %v14988_v59  ;;  %v14991_v54 = vld [vmem:[#allocation47_spill] sm:$0xff] }
 0x690   : > { %v5442_v6 = vpop.permute.xlu0 %5441  ;;  %4314 = vmax.xlane.f32.xlu0 %v4313_v10  ;;  %v4203_v10 = vpop.f32.mrf.mxu1  ;;  %v3114_v57 = vadd.f32 %v12205_v55, %v12201_v31  ;;  %9112 = vrcp.f32 %v14991_v54  ;;  %v14993_v53 = vld [vmem:[#allocation43_spill] sm:$0xff] }
 0x691   : > { %8423 = vmatprep.mubr.msk.bf16.mxu1 %vm1014_vm2, %v5442_v6  ;;  %v12218_v8 = vadd.f32 %v12111_v29, %v3795_v9  ;;  %v12220_v2 = vadd.f32 %v4203_v10, %v3802_v45 }
 0x692   : > { %8424 = vmatmul.mubr.msk.bf16.gmra.mxu1 %vm1014_vm2, %v5442_v6  ;;  %v12208_v6 = vadd.f32 %v12129_v14, %v3796_v30  ;;  %v14992_v14 = vld [vmem:[#allocation38_spill] sm:$0xff] }
 0x693   : > { %3109 = vadd.xlane.f32.xlu1 %v3108_v21  ;;  %v3801_v21 = vunpack.c.l.bf16 %v3748_v62  ;;  %14989 = vst [vmem:[#allocation49_spill] sm:$0xff] %v12218_v8  ;;  %14990 = vst [vmem:[#allocation76_spill] sm:$0xff] %v12220_v2 }
 0x694   : > { %14987 = vst [vmem:[#allocation75_spill] sm:$0xff] %v12208_v6  ;;  %v4310_v59 = vmax.f32 %v12218_v8, %v12208_v6 }
 0x695   : > { %v12229_v38 = vadd.f32 %v4201_v46, %v3801_v21  ;;  %v3277_v46 = vpop.permute.xlu0 %3276 }
 0x697   : > { %4305 = vmax.xlane.f32.xlu1 %v4304_v34  ;;  %14994 = vst [vmem:[#allocation47_spill] sm:$0xff] %v12229_v38  ;;  %v4319_v54 = vmax.f32 %v12229_v38, %v12220_v2 }
 0x69a   : > { %v12212_v25 = vpop.eup %9106 }
 0x69b   : > { %v12215_v33 = vpop.eup %9108  ;;  %3115 = vadd.xlane.f32.xlu1 %v3114_v57  ;;  %v2834_v34 = vpop.xlane.xlu1 %2833 }
 0x69c   : > { %v2900_v30 = vsub.f32 %v14992_v14, %v2834_v34  ;;  %v2901_v4 = vsub.f32 %v14993_v53, %v2834_v34  ;;  %v3123_v62 = vadd.f32 %v12215_v33, %v12212_v25  ;;  %v9111_v10 = vpop.eup %9110  ;;  %v14995_v34 = vld [vmem:[#allocation70_spill] sm:$0xff] }
 0x69d   : > { %v9113_v21 = vpop.eup %9112  ;;  %v3171_v14 = vmul.f32 %v9111_v10, %v14995_v34 }
 0x69e   : > { %v3020_v29 = vmul.f32 1.442695, %v2900_v30  ;;  %v3022_v9 = vmul.f32 1.442695, %v2901_v4  ;;  %3124 = vadd.xlane.f32.xlu0 %v3123_v62  ;;  %v3747_v4 = vld [vmem:[#allocation4 + $0x2a0] sm:$0xff] }
 0x69f   : > { %4311 = vmax.xlane.f32.xlu1 %v4310_v59  ;;  %v3056_v45 = vpop.xlane.xlu1 %3055  ;;  %v3800_v30 = vunpack.c.h.bf16 %v3747_v4  ;;  %v14996_v59 = vld [vmem:[#allocation60_spill] sm:$0xff] }
 0x6a0   : > { %9114 = vpow2.f32 %v3020_v29 }
 0x6a1   : > { %9116 = vpow2.f32 %v3022_v9  ;;  %v3799_v9 = vunpack.c.l.bf16 %v3747_v4  ;;  %v15002_v4 = vld [vmem:[#allocation65_spill] sm:$0xff] }
 0x6a2   : > { %9118 = vrcp.f32 %v11939_v36  ;;  %4320 = vmax.xlane.f32.xlu0 %v4319_v54  ;;  %v3169_v36 = vmul.f32 %v9113_v21, %v14996_v59  ;;  %v3170_v59 = vmul.f32 %v9111_v10, %v15002_v4  ;;  %v15008_v4 = vld [vmem:[#allocation72_spill] sm:$0xff] }
 0x6a3   : > { %v3059_v53 = vpop.xlane.xlu1 %3058  ;;  %9120 = vrcp.f32 %v11911_v47 }
 0x6a4   : > { %9122 = vrcp.f32 %v3059_v53  ;;  %v3231_v54 = vpack.c.bf16 %v3171_v14, %v3169_v36  ;;  %v14999_v53 = vld [vmem:[#allocation46_spill] sm:$0xff] }
 0x6a5   : > { %9124 = vrcp.f32 %v3056_v45  ;;  %v15003_v14 = vld [vmem:[#allocation30_spill] sm:$0xff] }
 0x6a7   : > { %v3263_v57 = vpop.permute.xlu1 %3262 }
 0x6a8   : > { %8118 = vmatpush3.bf16.msra.mxu0 %v3263_v57  ;;  %v12242_v57 = vadd.f32 %v12189_v42, %v3800_v30  ;;  %v15004_v30 = vld [vmem:[#allocation66_spill] sm:$0xff] }
 0x6a9   : > { %8119 = vmatprep.subr.bf16.mxu0 %v3277_v46  ;;  %v14998_v46 = vld [vmem:[#allocation45_spill] sm:$0xff]  ;;  %v3168_v6 = vmul.f32 %v9113_v21, %v15004_v30  ;;  %v15010_v21 = vld [vmem:[#allocation22_spill] sm:$0xff] }
 0x6aa   : > { %14997 = vst [vmem:[#allocation38_spill] sm:$0xff] %v12242_v57  ;;  %v15000_v38 = vpack.c.bf16 %v14998_v46, %v14999_v53  ;;  %v15005_v46 = vld [vmem:[#allocation69_spill] sm:$0xff] }
 0x6ab   : > { %v3261_v62 = vpop.permute.xlu1 %3260  ;;  %v3230_v53 = vpack.c.bf16 %v3170_v59, %v3168_v6  ;;  %v15011_v6 = vld [vmem:[#allocation24_spill] sm:$0xff] }
 0x6ac   : > { %8120 = vmatpush3.bf16.msra.mxu0 %v3261_v62  ;;  %v12250_v62 = vadd.f32 %v12179_v24, %v3799_v9  ;;  %v15006_v9 = vld [vmem:[#allocation71_spill] sm:$0xff] }
 0x6ad   : > { %v12237_v29 = vpop.eup %9114 }
 0x6ae   : > { %v12239_v47 = vpop.eup %9116  ;;  %15001 = vst [vmem:[#allocation43_spill] sm:$0xff] %v12250_v62  ;;  %v4316_v42 = vmax.f32 %v12250_v62, %v12242_v57 }
 0x6af   : > { %v9119_v2 = vpop.eup %9118  ;;  %3341 = vmatmul.mubr.bf16.vlgmr.msra.gmra.mxu0 %v15000_v38  ;;  %v3120_v45 = vadd.f32 %v12239_v47, %v12237_v29 }
 0x6b0   : > { %3348 = vmatprep.mubr.bf16.mxu0 %v3231_v54  ;;  %v9121_v34 = vpop.eup %9120  ;;  %v3175_v36 = vmul.f32 %v9119_v2, %v15003_v14 }
 0x6b1   : > { %3121 = vadd.xlane.f32.xlu1 %v3120_v45  ;;  %v3173_v38 = vmul.f32 %v9121_v34, %v15005_v46  ;;  %v9123_v54 = vpop.eup %9122  ;;  %v3174_v45 = vmul.f32 %v9119_v2, %v15006_v9  ;;  %v3172_v14 = vmul.f32 %v9121_v34, %v15008_v4 }
 0x6b2   : > { %v9125_v24 = vpop.eup %9124  ;;  %v3179_v10 = vmul.f32 %v9123_v54, %v15007_v26 }
 0x6b3   : > { %v3233_v8 = vpack.c.bf16 %v3175_v36, %v3173_v38  ;;  %v3177_v49 = vmul.f32 %v9125_v24, %v15009_v32  ;;  %v3232_v57 = vpack.c.bf16 %v3174_v45, %v3172_v14  ;;  %v3176_v59 = vmul.f32 %v9125_v24, %v15011_v6  ;;  %v15013_v38 = vld [vmem:[#allocation63_spill] sm:$0xff] }
 0x6b5   : > { %4317 = vmax.xlane.f32.xlu1 %v4316_v42  ;;  %v3235_v62 = vpack.c.bf16 %v3179_v10, %v3177_v49  ;;  %v3178_v42 = vmul.f32 %v9123_v54, %v15010_v21 }
 0x6b7   : > { %3349 = vmatmul.mubr.bf16.gmra.mxu0 %v3230_v53  ;;  %v3234_v30 = vpack.c.bf16 %v3178_v42, %v3176_v59 }
 0x6b8   : > { %3356 = vmatprep.mubr.bf16.mxu0 %v3233_v8  ;;  %v15012_v8 = vld [vmem:[#allocation52_spill] sm:$0xff] }
 0x6bf   : > { %3357 = vmatmul.mubr.bf16.gmra.mxu0 %v3232_v57  ;;  %v4207_v57 = vpop.f32.mrf.mxu1 }
 0x6c0   : > { %3364 = vmatprep.mubr.bf16.mxu0 %v3235_v62  ;;  %v3749_v62 = vld [vmem:[#allocation4 + $0x2b0] sm:$0xff] }
 0x6c1   : > { %v3804_v54 = vunpack.c.h.bf16 %v3749_v62  ;;  %v4209_v9 = vpop.f32.mrf.mxu1  ;;  %v3803_v10 = vunpack.c.l.bf16 %v3749_v62 }
 0x6c3   : > { %v12270_v21 = vadd.f32 %v4209_v9, %v3804_v54 }
 0x6c5   : > { %v2840_v36 = vpop.xlane.xlu0 %2839  ;;  %15014 = vst [vmem:[#allocation70_spill] sm:$0xff] %v12270_v21 }
 0x6c6   : > { %v2904_v46 = vsub.f32 %v15012_v8, %v2840_v36  ;;  %v2905_v2 = vsub.f32 %v15013_v38, %v2840_v36  ;;  %v12276_v36 = vadd.f32 %v4207_v57, %v3803_v10  ;;  %v15016_v8 = vld [vmem:[#allocation28_spill] sm:$0xff]  ;;  %v15017_v38 = vld [vmem:[#allocation34_spill] sm:$0xff] }
 0x6c7   : > { %3365 = vmatmul.mubr.bf16.gmra.mxu0 %v3234_v30 }
 0x6c8   : > { %v3028_v26 = vmul.f32 1.442695, %v2904_v46  ;;  %v3030_v53 = vmul.f32 1.442695, %v2905_v2  ;;  %15015 = vst [vmem:[#allocation60_spill] sm:$0xff] %v12276_v36  ;;  %v4322_v62 = vmax.f32 %v12276_v36, %v12270_v21 }
 0x6c9   : > { %v3062_v34 = vpop.xlane.xlu0 %3061 }
 0x6ca   : > { %9126 = vpow2.f32 %v3028_v26  ;;  %v15018_v26 = vld [vmem:[#allocation51_spill] sm:$0xff] }
 0x6cb   : > { %9128 = vpow2.f32 %v3030_v53 }
 0x6cc   : > { %9130 = vrcp.f32 %v3062_v34  ;;  %v15019_v34 = vld [vmem:[#allocation11_spill] sm:$0xff] }
 0x6cd   : > { %v3065_v49 = vpop.xlane.xlu0 %3064 }
 0x6ce   : > { %9132 = vrcp.f32 %v3065_v49 }
 0x6d1   : > { %v4261_v32 = vpop.xlane.xlu0 %4260 }
 0x6d5   : > { %v3071_v24 = vpop.xlane.xlu0 %3070 }
 0x6d7   : > { %v12266_v45 = vpop.eup %9126 }
 0x6d8   : > { %v12268_v4 = vpop.eup %9128 }
 0x6d9   : > { %v9131_v14 = vpop.eup %9130  ;;  %v12272_v42 = vpop.xlane.xlu0 %4266  ;;  %v3126_v6 = vadd.f32 %v12268_v4, %v12266_v45 }
 0x6da   : > { %v3181_v46 = vmul.f32 %v9131_v14, %v15016_v8  ;;  %v3180_v53 = vmul.f32 %v9131_v14, %v15018_v26 }
 0x6db   : > { %v9133_v59 = vpop.eup %9132  ;;  %3127 = vadd.xlane.f32.xlu1 %v3126_v6 }
 0x6dc   : > { %v2843_v30 = vpop.xlane.xlu1 %2842  ;;  %v3183_v2 = vmul.f32 %v9133_v59, %v15017_v38  ;;  %v3182_v49 = vmul.f32 %v9133_v59, %v15019_v34  ;;  %v15020_v59 = vld [vmem:[#allocation62_spill] sm:$0xff]  ;;  %v15021_v34 = vld [vmem:[#allocation29_spill] sm:$0xff] }
 0x6dd   : > { %v3077_v54 = vpop.xlane.xlu0 %3076  ;;  %v2906_v9 = vsub.f32 %v11884_v16, %v2843_v30  ;;  %v2907_v58 = vsub.f32 %v11873_v51, %v2843_v30  ;;  %v4354_v16 = vsub.f32 %v15021_v34, %v4261_v32  ;;  %v15022_v51 = vld [vmem:[#allocation32_spill] sm:$0xff] }
 0x6de   : > { %v3237_v57 = vpack.c.bf16 %v3183_v2, %v3181_v46  ;;  %v3236_v10 = vpack.c.bf16 %v3182_v49, %v3180_v53  ;;  %v4355_v30 = vsub.f32 %v15022_v51, %v4261_v32 }
 0x6df   : > { %v3032_v6 = vmul.f32 1.442695, %v2906_v9  ;;  %v3034_v5 = vmul.f32 1.442695, %v2907_v58  ;;  %4323 = vmax.xlane.f32.xlu1 %v4322_v62  ;;  %v4420_v53 = vmul.f32 1.442695, %v4354_v16  ;;  %v4211_v9 = vpop.f32.mrf.mxu1 }
 0x6e0   : > { %3372 = vmatprep.mubr.bf16.mxu0 %v3237_v57  ;;  %v4258_v8 = vpop.xlane.xlu1 %4257  ;;  %v4422_v49 = vmul.f32 1.442695, %v4355_v30 }
 0x6e1   : > { %9134 = vpow2.f32 %v3032_v6  ;;  %v12286_v38 = vpop.xlane.xlu0 %4272  ;;  %3373 = vmatmul.mubr.bf16.gmra.mxu0 %v3236_v10  ;;  %v4352_v14 = vsub.f32 %v11907_v28, %v4258_v8  ;;  %v4353_v26 = vsub.f32 %v15020_v59, %v4258_v8  ;;  %v4213_v32 = vpop.f32.mrf.mxu1  ;;  %v9601_v59 = vld [vmem:[#allocation2 + $0x78] sm:$0xff]  }
 0x6e2   : > { %9136 = vpow2.f32 %v3034_v5  ;;  %v3750_v5 = vld [vmem:[#allocation4 + $0x2b8] sm:$0xff] }
 0x6e3   : > { %v4416_v21 = vmul.f32 1.442695, %v4352_v14  ;;  %v4418_v46 = vmul.f32 1.442695, %v4353_v26  ;;  %9138 = vrcp.f32 %v3071_v24  ;;  %v3806_v57 = vunpack.c.h.bf16 %v3750_v5 }
 0x6e4   : > { %v3068_v2 = vpop.xlane.xlu1 %3067  ;;  %v3805_v24 = vunpack.c.l.bf16 %v3750_v5 }
 0x6e5   : > { %v3083_v58 = vpop.xlane.xlu0 %3082  ;;  %9140 = vpow2.f32 %v4416_v21  ;;  %v12300_v21 = vadd.f32 %v4213_v32, %v3806_v57  ;;  %v15029_v32 = vld [vmem:[#allocation55_spill] sm:$0xff] }
 0x6e6   : > { %9142 = vpow2.f32 %v4418_v46  ;;  %v12309_v51 = vadd.f32 %v4211_v9, %v3805_v24 }
 0x6e7   : > { %9144 = vrcp.f32 %v3068_v2  ;;  %15024 = vst [vmem:[#allocation46_spill] sm:$0xff] %v12300_v21  ;;  %v9602_v2 = vld [vmem:[#allocation2 + $0x70] sm:$0xff]  }
 0x6e8   : > { %v12292_v62 = vpop.xlane.xlu1 %4263  ;;  %9146 = vpow2.f32 %v4420_v53  ;;  %15026 = vst [vmem:[#allocation30_spill] sm:$0xff] %v12309_v51 }
 0x6e9   : > { %v12294_v28 = vpop.xlane.xlu0 %4278  ;;  %9148 = vpow2.f32 %v4422_v49 }
 0x6ea   : > { %15023 = vst [vmem:[#allocation45_spill] sm:$0xff] %v12294_v28  ;;  %9150 = vrcp.f32 %v3077_v54  ;;  %v4325_v54 = vmax.f32 %v12309_v51, %v12300_v21  ;;  %v15031_v21 = vld [vmem:[#allocation12_spill] sm:$0xff] }
 0x6ec   : > { %v3074_v10 = vpop.xlane.xlu1 %3073 }
 0x6ed   : > { %v3089_v6 = vpop.xlane.xlu0 %3088  ;;  %9152 = vrcp.f32 %v3074_v10  ;;  %v9603_v10 = vld [vmem:[#allocation2 + $0x30] sm:$0xff]  }
 0x6ee   : > { %v12296_v8 = vpop.eup %9134  ;;  %9154 = vrcp.f32 %v3083_v58 }
 0x6ef   : > { %v12298_v14 = vpop.eup %9136 }
 0x6f0   : > { %4798 = vrot.lane.b32.xlu1 %v9601_v59, %s9683_s28  ;;  %v12303_v26 = vpop.xlane.xlu1 %4269  ;;  %v3129_v34 = vadd.f32 %v12298_v14, %v12296_v8  ;;  %v9139_v30 = vpop.eup %9138  ;;  %v15030_v59 = vld [vmem:[#allocation67_spill] sm:$0xff] }
 0x6f1   : > { %v12307_v16 = vpop.xlane.xlu0 %4284  ;;  %v3187_v9 = vmul.f32 %v9139_v30, %v15029_v32  ;;  %v15033_v32 = vld [vmem:[#allocation21_spill] sm:$0xff] }
 0x6f2   : > { %15025 = vst [vmem:[#allocation65_spill] sm:$0xff] %v12307_v16  ;;  %3130 = vadd.xlane.f32.xlu0 %v3129_v34  ;;  %v12311_v46 = vpop.eup %9140  ;;  %v3186_v3 = vmul.f32 %v9139_v30, %v15033_v32 }
 0x6f3   : > { %15027 = vst [vmem:[#allocation66_spill] sm:$0xff] %v12311_v46  ;;  %v12316_v49 = vpop.eup %9142 }
 0x6f4   : > { %4796 = vrot.lane.b32.xlu1 %v9602_v2, %s9683_s28  ;;  %v3080_v53 = vpop.xlane.xlu1 %3079  ;;  %15028 = vst [vmem:[#allocation69_spill] sm:$0xff] %v12316_v49  ;;  %v9145_v57 = vpop.eup %9144  ;;  %v4544_v2 = vadd.f32 %v12316_v49, %v12311_v46 }
 0x6f5   : > { %v3095_v5 = vpop.xlane.xlu0 %3094  ;;  %v12319_v24 = vpop.eup %9146  ;;  %v3185_v34 = vmul.f32 %v9145_v57, %v15030_v59  ;;  %v3184_v51 = vmul.f32 %v9145_v57, %v15031_v21  ;;  %9156 = vrcp.f32 %v3080_v53 }
 0x6f6   : > { %4326 = vmax.xlane.f32.xlu0 %v4325_v54  ;;  %v12328_v16 = vpop.eup %9148  ;;  %9158 = vrcp.f32 %v3089_v6 }
 0x6f7   : > { %v3239_v58 = vpack.c.bf16 %v3187_v9, %v3185_v34  ;;  %v3238_v28 = vpack.c.bf16 %v3186_v3, %v3184_v51  ;;  %v4547_v21 = vadd.f32 %v12328_v16, %v12319_v24  ;;  %v9151_v57 = vpop.eup %9150  ;;  %v15035_v3 = vld [vmem:[#allocation7_spill] sm:$0xff] }
 0x6f8   : > { %4780 = vrot.lane.b32.xlu1 %v9603_v10, %s9683_s28  ;;  %v12324_v36 = vpop.xlane.xlu1 %4275  ;;  %v3190_v51 = vmul.f32 %v9151_v57, %v15035_v3 }
 0x6f9   : > { %v12330_v54 = vpop.xlane.xlu0 %4290  ;;  %3380 = vmatprep.mubr.bf16.mxu0 %v3239_v58 }
 0x6fa   : > { %15032 = vst [vmem:[#allocation71_spill] sm:$0xff] %v12330_v54  ;;  %4545 = vadd.xlane.f32.xlu0 %v4544_v2  ;;  %3381 = vmatmul.mubr.bf16.gmra.mxu0 %v3238_v28  ;;  %v9153_v11 = vpop.eup %9152  ;;  %v15034_v54 = vld [vmem:[#allocation64_spill] sm:$0xff] }
 0x6fb   : > { %v3189_v49 = vmul.f32 %v9153_v11, %v11962_v0  ;;  %v3191_v46 = vmul.f32 %v9151_v57, %v15034_v54  ;;  %v3188_v30 = vmul.f32 %v9153_v11, %v11957_v44  ;;  %v9155_v32 = vpop.eup %9154  ;;  %v15036_v54 = vld [vmem:[#allocation14_spill] sm:$0xff] }
 0x6fc   : > { %v3086_v10 = vpop.xlane.xlu1 %3085  ;;  %v3195_v58 = vmul.f32 %v9155_v32, %v15036_v54 }
 0x6fd   : > { %v3101_v59 = vpop.xlane.xlu0 %3100  ;;  %9160 = vrcp.f32 %v3086_v10  ;;  %v3241_v9 = vpack.c.bf16 %v3191_v46, %v3189_v49  ;;  %v3240_v34 = vpack.c.bf16 %v3190_v51, %v3188_v30 }
 0x6fe   : > { %4548 = vadd.xlane.f32.xlu0 %v4547_v21  ;;  %9162 = vrcp.f32 %v3095_v5  ;;  %v15037_v21 = vld [vmem:[#allocation15_spill] sm:$0xff]  ;;  %v4217_v5 = vpop.f32.mrf.mxu1 }
 0x6ff   : > { %3388 = vmatprep.mubr.bf16.mxu0 %v3241_v9  ;;  %v3194_v10 = vmul.f32 %v9155_v32, %v15037_v21  ;;  %v3751_v9 = vld [vmem:[#allocation4 + $0x2c0] sm:$0xff] }
 0x700   : > { %v12338_v53 = vpop.xlane.xlu1 %4281 }
 0x701   : > { %v12341_v2 = vpop.xlane.xlu0 %4296 }
 0x702   : > { %3389 = vmatmul.mubr.bf16.gmra.mxu0 %v3240_v34  ;;  %v9157_v6 = vpop.eup %9156 }
 0x703   : > { %v3193_v0 = vmul.f32 %v9157_v6, %v12004_v1  ;;  %v3192_v44 = vmul.f32 %v9157_v6, %v11998_v17  ;;  %v9159_v3 = vpop.eup %9158 }
 0x704   : > { %v3092_v28 = vpop.xlane.xlu1 %3091  ;;  %v3199_v34 = vmul.f32 %v9159_v3, %v11970_v41 }
 0x705   : > { %v3107_v46 = vpop.xlane.xlu0 %3106  ;;  %9164 = vrcp.f32 %v3092_v28  ;;  %v3243_v49 = vpack.c.bf16 %v3195_v58, %v3193_v0  ;;  %v3242_v57 = vpack.c.bf16 %v3194_v10, %v3192_v44  ;;  %v3198_v28 = vmul.f32 %v9159_v3, %v11966_v13  ;;  %v4219_v44 = vpop.f32.mrf.mxu1 }
 0x706   : > { %9166 = vrcp.f32 %v3101_v59  ;;  %v3808_v0 = vunpack.c.h.bf16 %v3751_v9  ;;  %v3807_v58 = vunpack.c.l.bf16 %v3751_v9  ;;  %v9604_v59 = vld [vmem:[#allocation2 + $0x38] sm:$0xff]  }
 0x707   : > { %3396 = vmatprep.mubr.bf16.mxu0 %v3243_v49 }
 0x708   : > { %v12346_v11 = vpop.xlane.xlu1 %4287  ;;  %v12358_v41 = vadd.f32 %v4219_v44, %v3808_v0 }
 0x709   : > { %v12349_v1 = vpop.xlane.xlu0 %4302 }
 0x70a   : > { %3397 = vmatmul.mubr.bf16.gmra.mxu0 %v3242_v57  ;;  %v9161_v51 = vpop.eup %9160  ;;  %v12360_v57 = vadd.f32 %v4217_v5, %v3807_v58 }
 0x70b   : > { %v3197_v17 = vmul.f32 %v9161_v51, %v12044_v23  ;;  %v3196_v32 = vmul.f32 %v9161_v51, %v12039_v60  ;;  %v9163_v23 = vpop.eup %9162 }
 0x70c   : > { %v3098_v30 = vpop.xlane.xlu1 %3097  ;;  %v3202_v9 = vmul.f32 %v9163_v23, %v12008_v20  ;;  %v15040_v20 = vld [vmem:[#allocation16_spill] sm:$0xff] }
 0x70d   : > { %9168 = vrcp.f32 %v3098_v30  ;;  %v3245_v54 = vpack.c.bf16 %v3199_v34, %v3197_v17  ;;  %v3244_v21 = vpack.c.bf16 %v3198_v28, %v3196_v32  ;;  %v3113_v60 = vpop.xlane.xlu0 %3112  ;;  %v3203_v30 = vmul.f32 %v9163_v23, %v12012_v48  ;;  %v15038_v32 = vld [vmem:[#allocation26_spill] sm:$0xff] }
 0x70e   : > { %9170 = vrcp.f32 %v3107_v46  ;;  %v4328_v17 = vmax.f32 %v12360_v57, %v12358_v41  ;;  %v4356_v5 = vsub.f32 %v15038_v32, %v12292_v62  ;;  %v15039_v46 = vld [vmem:[#allocation37_spill] sm:$0xff]  ;;  %v3752_v32 = vld [vmem:[#allocation4 + $0x2c8] sm:$0xff] }
 0x70f   : > { %3404 = vmatprep.mubr.bf16.mxu0 %v3245_v54  ;;  %v4357_v28 = vsub.f32 %v15039_v46, %v12292_v62  ;;  %v4358_v54 = vsub.f32 %v15040_v20, %v12272_v42 }
 0x710   : > { %v12354_v6 = vpop.xlane.xlu1 %4293  ;;  %v4424_v44 = vmul.f32 1.442695, %v4356_v5 }
 0x711   : > { %v12374_v0 = vpop.xlane.xlu0 %4308 }
 0x712   : > { %3405 = vmatmul.mubr.bf16.gmra.mxu0 %v3244_v21  ;;  %v9165_v49 = vpop.eup %9164  ;;  %v4426_v21 = vmul.f32 1.442695, %v4357_v28 }
 0x713   : > { %v3201_v13 = vmul.f32 %v9165_v49, %v12084_v12  ;;  %v3200_v3 = vmul.f32 %v9165_v49, %v12079_v22  ;;  %v9167_v22 = vpop.eup %9166 }
 0x714   : > { %4782 = vrot.lane.b32.xlu0 %v9604_v59, %s9683_s28  ;;  %v3104_v10 = vpop.xlane.xlu1 %3103  ;;  %v3206_v23 = vmul.f32 %v9167_v22, %v12048_v19 }
 0x715   : > { %9172 = vrcp.f32 %v3104_v10  ;;  %v3247_v34 = vpack.c.bf16 %v3203_v30, %v3201_v13  ;;  %v3246_v12 = vpack.c.bf16 %v3202_v9, %v3200_v3  ;;  %v3207_v10 = vmul.f32 %v9167_v22, %v12052_v39  ;;  %v15041_v13 = vld [vmem:[#allocation54_spill] sm:$0xff]  ;;  %v3119_v9 = vpop.xlane.xlu0 %3118 }
 0x716   : > { %9174 = vrcp.f32 %v3113_v60  ;;  %v4359_v30 = vsub.f32 %v15041_v13, %v12272_v42  ;;  %v4428_v3 = vmul.f32 1.442695, %v4358_v54 }
 0x717   : > { %3412 = vmatprep.mubr.bf16.mxu0 %v3247_v34 }
 0x718   : > { %v12365_v51 = vpop.xlane.xlu1 %4299  ;;  %v4430_v39 = vmul.f32 1.442695, %v4359_v30  ;;  %v9606_v30 = vld [vmem:[#allocation2 + $0x60] sm:$0xff]  }
 0x71a   : > { %3413 = vmatmul.mubr.bf16.gmra.mxu0 %v3246_v12  ;;  %v9169_v58 = vpop.eup %9168  ;;  %v3810_v12 = vunpack.c.h.bf16 %v3752_v32 }
 0x71b   : > { %v3205_v59 = vmul.f32 %v9169_v58, %v12118_v40  ;;  %v3204_v62 = vmul.f32 %v9169_v58, %v12113_v63  ;;  %v9171_v60 = vpop.eup %9170  ;;  %v4221_v63 = vpop.f32.mrf.mxu1 }
 0x71c   : > { %4329 = vmax.xlane.f32.xlu1 %v4328_v17  ;;  %v3110_v48 = vpop.xlane.xlu1 %3109  ;;  %v3211_v5 = vmul.f32 %v9171_v60, %v12092_v37  ;;  %v3210_v28 = vmul.f32 %v9171_v60, %v12088_v52 }
 0x71d   : > { %9176 = vrcp.f32 %v3110_v48  ;;  %v3249_v17 = vpack.c.bf16 %v3207_v10, %v3205_v59  ;;  %v3248_v34 = vpack.c.bf16 %v3206_v23, %v3204_v62  ;;  %v3809_v48 = vunpack.c.l.bf16 %v3752_v32  ;;  %v4223_v22 = vpop.f32.mrf.mxu1 }
 0x71e   : > { %9178 = vpow2.f32 %v4424_v44  ;;  %v12390_v44 = vadd.f32 %v4223_v22, %v3810_v12 }
 0x71f   : > { %9180 = vpow2.f32 %v4426_v21  ;;  %3420 = vmatprep.mubr.bf16.mxu0 %v3249_v17  ;;  %v9605_v21 = vld [vmem:[#allocation2 + $0x68] sm:$0xff]   ;;  %v12393_v37 = vadd.f32 %v4221_v63, %v3809_v48 }
 0x720   : > { %v12382_v49 = vpop.xlane.xlu1 %4305  ;;  %9182 = vrcp.f32 %v3119_v9 }
 0x721   : > { %9184 = vpow2.f32 %v4428_v3  ;;  %v4331_v13 = vmax.f32 %v12393_v37, %v12390_v44 }
 0x722   : > { %3421 = vmatmul.mubr.bf16.gmra.mxu0 %v3248_v34  ;;  %v9173_v19 = vpop.eup %9172  ;;  %v9607_v34 = vld [vmem:[#allocation2 + $0x20] sm:$0xff]  }
 0x723   : > { %v3209_v42 = vmul.f32 %v9173_v19, %v12153_v50  ;;  %v3208_v46 = vmul.f32 %v9173_v19, %v12148_v18  ;;  %v9175_v58 = vpop.eup %9174 }
 0x724   : > { %v3116_v40 = vpop.xlane.xlu1 %3115  ;;  %v3215_v52 = vmul.f32 %v9175_v58, %v12127_v35  ;;  %v3214_v10 = vmul.f32 %v9175_v58, %v12122_v61  ;;  %v4227_v58 = vpop.f32.mrf.mxu1 }
 0x725   : > { %9186 = vrcp.f32 %v3116_v40  ;;  %v3251_v20 = vpack.c.bf16 %v3211_v5, %v3209_v42  ;;  %v3250_v54 = vpack.c.bf16 %v3210_v28, %v3208_v46 }
 0x726   : > { %9188 = vpow2.f32 %v4430_v39 }
 0x727   : > { %3428 = vmatprep.mubr.bf16.mxu0 %v3251_v20 }
 0x728   : > { %v12418_v32 = vpop.xlane.xlu1 %4311 }
 0x72a   : > { %3429 = vmatmul.mubr.bf16.gmra.mxu0 %v3250_v54  ;;  %v9177_v50 = vpop.eup %9176 }
 0x72b   : > { %v3213_v18 = vmul.f32 %v9177_v50, %v12185_v27  ;;  %v3212_v59 = vmul.f32 %v9177_v50, %v12181_v43  ;;  %v12399_v62 = vpop.eup %9178  ;;  %v12406_v27 = vpop.xlane.xlu0 %4314 }
 0x72c   : > { %15042 = vst [vmem:[#allocation50_spill] sm:$0xff] %v12399_v62  ;;  %v12401_v23 = vpop.eup %9180 }
 0x72d   : > { %4794 = vrot.lane.b32.xlu1 %v9605_v21, %s9683_s28  ;;  %15043 = vst [vmem:[#allocation72_spill] sm:$0xff] %v12401_v23  ;;  %v3253_v3 = vpack.c.bf16 %v3215_v52, %v3213_v18  ;;  %v3252_v9 = vpack.c.bf16 %v3214_v10, %v3212_v59  ;;  %v9183_v17 = vpop.eup %9182  ;;  %v4550_v43 = vadd.f32 %v12401_v23, %v12399_v62  ;;  %v3753_v21 = vld [vmem:[#allocation4 + $0x2d0] sm:$0xff]  ;;  %v4229_v18 = vpop.f32.mrf.mxu1  ;;  %v9608_v59 = vld [vmem:[#allocation2 + $0x28] sm:$0xff]  }
 0x72e   : > { %v12408_v35 = vpop.eup %9184  ;;  %v3219_v60 = vmul.f32 %v9183_v17, %v12161_v15  ;;  %v3218_v5 = vmul.f32 %v9183_v17, %v12157_v56  ;;  %v3812_v50 = vunpack.c.h.bf16 %v3753_v21  ;;  %v3811_v52 = vunpack.c.l.bf16 %v3753_v21 }
 0x72f   : > { %15044 = vst [vmem:[#allocation48_spill] sm:$0xff] %v12408_v35  ;;  %3436 = vmatprep.mubr.bf16.mxu0 %v3253_v3  ;;  %v3125_v19 = vpop.xlane.xlu0 %3124  ;;  %v15048_v3 = vld [vmem:[#allocation68_spill] sm:$0xff] }
 0x730   : > { %9190 = vrcp.f32 %v3125_v19  ;;  %v12428_v10 = vadd.f32 %v4229_v18, %v3812_v50  ;;  %v4231_v19 = vpop.f32.mrf.mxu1  ;;  %v9611_v50 = vld [vmem:[#allocation2 + $0x10] sm:$0xff]  }
 0x731   : > { %4792 = vrot.lane.b32.xlu1 %v9606_v30, %s9683_s28 }
 0x732   : > { %v9187_v61 = vpop.eup %9186  ;;  %3437 = vmatmul.mubr.bf16.gmra.mxu0 %v3252_v9  ;;  %v4362_v9 = vsub.f32 %v15048_v3, %v12286_v38 }
 0x733   : > { %4332 = vmax.xlane.f32.xlu0 %v4331_v13  ;;  %v3217_v40 = vmul.f32 %v9187_v61, %v12205_v55  ;;  %v3216_v39 = vmul.f32 %v9187_v61, %v12201_v31  ;;  %v12416_v63 = vpop.eup %9188  ;;  %v15047_v13 = vld [vmem:[#allocation56_spill] sm:$0xff]  ;;  %v15049_v61 = vld [vmem:[#allocation33_spill] sm:$0xff] }
 0x734   : > { %15045 = vst [vmem:[#allocation22_spill] sm:$0xff] %v12416_v63  ;;  %v4553_v28 = vadd.f32 %v12416_v63, %v12408_v35  ;;  %v4361_v30 = vsub.f32 %v15047_v13, %v12303_v26 }
 0x735   : > { %4776 = vrot.lane.b32.xlu1 %v9607_v34, %s9683_s28  ;;  %v3255_v42 = vpack.c.bf16 %v3219_v60, %v3217_v40  ;;  %v3254_v46 = vpack.c.bf16 %v3218_v5, %v3216_v39  ;;  %v4436_v60 = vmul.f32 1.442695, %v4362_v9  ;;  %v3754_v5 = vld [vmem:[#allocation4 + $0x2d8] sm:$0xff] }
 0x736   : > { %v4434_v34 = vmul.f32 1.442695, %v4361_v30  ;;  %v12473_v30 = vpop.xlane.xlu0 %4320 }
 0x737   : > { %4551 = vadd.xlane.f32.xlu0 %v4550_v43  ;;  %3444 = vmatprep.mubr.bf16.mxu0 %v3255_v42  ;;  %v4363_v43 = vsub.f32 %v15049_v61, %v12286_v38  ;;  %v9609_v38 = vld [vmem:[#allocation2 + $0x58] sm:$0xff]  }
 0x739   : > { %v4438_v39 = vmul.f32 1.442695, %v4363_v43 }
 0x73a   : > { %v3122_v55 = vpop.xlane.xlu1 %3121  ;;  %3445 = vmatmul.mubr.bf16.gmra.mxu0 %v3254_v46  ;;  %v3814_v46 = vunpack.c.h.bf16 %v3754_v5 }
 0x73b   : > { %9192 = vrcp.f32 %v3122_v55  ;;  %4554 = vadd.xlane.f32.xlu0 %v4553_v28  ;;  %v3813_v28 = vunpack.c.l.bf16 %v3754_v5 }
 0x73d   : > { %v9191_v15 = vpop.eup %9190 }
 0x73e   : > { %v3223_v48 = vmul.f32 %v9191_v15, %v12215_v33  ;;  %v3222_v56 = vmul.f32 %v9191_v15, %v12212_v25  ;;  %v15046_v25 = vld [vmem:[#allocation19_spill] sm:$0xff]  ;;  %v12442_v40 = vpop.xlane.xlu1 %4317 }
 0x748   : > { %v9193_v31 = vpop.eup %9192 }
 0x749   : > { %v3221_v12 = vmul.f32 %v9193_v31, %v12239_v47  ;;  %v3220_v22 = vmul.f32 %v9193_v31, %v12237_v29  ;;  %v12430_v47 = vadd.f32 %v4227_v58, %v3811_v52  ;;  %v4360_v29 = vsub.f32 %v15046_v25, %v12303_v26  ;;  %v4233_v26 = vpop.f32.mrf.mxu1 }
 0x74a   : > { %v12446_v15 = vadd.f32 %v4233_v26, %v3814_v46  ;;  %v12449_v31 = vadd.f32 %v4231_v19, %v3813_v28 }
 0x74b   : > { %v3257_v20 = vpack.c.bf16 %v3223_v48, %v3221_v12  ;;  %v3256_v54 = vpack.c.bf16 %v3222_v56, %v3220_v22  ;;  %v4334_v33 = vmax.f32 %v12430_v47, %v12428_v10  ;;  %v4432_v17 = vmul.f32 1.442695, %v4360_v29  ;;  %v9610_v56 = vld [vmem:[#allocation2 + $0x50] sm:$0xff]   ;;  %v4237_v25 = vpop.f32.mrf.mxu1 }
 0x74c   : > { %v4337_v22 = vmax.f32 %v12449_v31, %v12446_v15 }
 0x74d   : > { %3452 = vmatprep.mubr.bf16.mxu0 %v3257_v20  ;;  %9194 = vpow2.f32 %v4432_v17  ;;  %v4239_v9 = vpop.f32.mrf.mxu1 }
 0x74e   : > { %3453 = vmatmul.mubr.bf16.gmra.mxu0 %v3256_v54  ;;  %9196 = vpow2.f32 %v4434_v34 }
 0x74f   : > { %9198 = vpow2.f32 %v4436_v60  ;;  %v12479_v60 = vpop.f32.mrf.mxu1 }
 0x750   : > { %9200 = vpow2.f32 %v4438_v39 }
 0x751   : > { %4778 = vrot.lane.b32.xlu0 %v9608_v59, %s9683_s28  ;;  %v12485_v46 = vpop.f32.mrf.mxu1 }
 0x753   : > { %v12487_v28 = vpop.f32.mrf.mxu1 }
 0x759   : > { %4335 = vmax.xlane.f32.xlu1 %v4334_v33 }
 0x75a   : > { %v12451_v48 = vpop.eup %9194 }
 0x75b   : > { %15050 = vst [vmem:[#allocation24_spill] sm:$0xff] %v12451_v48  ;;  %v12456_v20 = vpop.eup %9196 }
 0x75c   : > { %15051 = vst [vmem:[#allocation52_spill] sm:$0xff] %v12456_v20  ;;  %v12458_v21 = vpop.eup %9198  ;;  %v4556_v52 = vadd.f32 %v12456_v20, %v12451_v48 }
 0x75d   : > { %15052 = vst [vmem:[#allocation63_spill] sm:$0xff] %v12458_v21  ;;  %v12465_v59 = vpop.eup %9200 }
 0x75e   : > { %15054 = vst [vmem:[#allocation34_spill] sm:$0xff] %v12465_v59  ;;  %v4559_v13 = vadd.f32 %v12465_v59, %v12458_v21  ;;  %v15089_v59 = vld [vmem:[#allocation61_spill] sm:$0xff] }
 0x764   : > { %v3128_v42 = vpop.xlane.xlu1 %3127 }
 0x765   : > { %9202 = vrcp.f32 %v3128_v42 }
 0x768   : > { %v12444_v55 = vpop.xlane.xlu1 %4323 }
 0x76a   : > { %4790 = vrot.lane.b32.xlu1 %v9609_v38, %s9683_s28 }
 0x76c   : > { %v4799_v12 = vpop.permute.xlu1 %4798 }
 0x76d   : > { %8265 = vmatprep.subr.bf16.mxu0 %v4799_v12 }
 0x76e   : > { %4788 = vrot.lane.b32.xlu1 %v9610_v56, %s9683_s28 }
 0x76f   : > { %v8121_v54 = vpop.f32.mrf.mxu0 }
 0x770   : > { %4338 = vmax.xlane.f32.xlu0 %v4337_v22 }
 0x771   : > { %v8122_v58 = vpop.f32.mrf.mxu0 }
 0x772   : > { %4772 = vrot.lane.b32.xlu1 %v9611_v50, %s9683_s28  ;;  %v12461_v18 = vadd.f32 %v8122_v58, %v8121_v54  ;;  %v9203_v56 = vpop.eup %9202  ;;  %v12495_v54 = vpop.f32.mrf.mxu1 }
 0x773   : > { %v12467_v33 = vpop.f32.mrf.mxu0 }
 0x774   : > { %15053 = vst [vmem:[#allocation28_spill] sm:$0xff] %v12461_v18  ;;  %15055 = vst [vmem:[#allocation51_spill] sm:$0xff] %v12467_v33  ;;  %4557 = vadd.xlane.f32.xlu0 %v4556_v52  ;;  %v15083_v33 = vld [vmem:[#allocation35_spill] sm:$0xff] }
 0x775   : > { %v12469_v29 = vpop.f32.mrf.mxu0  ;;  %v4368_v18 = vsub.f32 %v15083_v33, %v12338_v53 }
 0x776   : > { %15056 = vst [vmem:[#allocation11_spill] sm:$0xff] %v12469_v29 }
 0x777   : > { %v8127_v3 = vpop.f32.mrf.mxu0 }
 0x778   : > { %4560 = vadd.xlane.f32.xlu0 %v4559_v13  ;;  %v4797_v13 = vpop.permute.xlu1 %4796 }
 0x779   : > { %v8128_v17 = vpop.f32.mrf.mxu0 }
 0x77a   : > { %v12475_v61 = vadd.f32 %v8128_v17, %v8127_v3  ;;  %v3225_v17 = vmul.f32 %v9203_v56, %v12268_v4  ;;  %v9612_v4 = vld [vmem:[#allocation2 + $0x18] sm:$0xff]  }
 0x77b   : > { %v3131_v43 = vpop.xlane.xlu0 %3130  ;;  %v12477_v34 = vpop.f32.mrf.mxu0 }
 0x77c   : > { %15057 = vst [vmem:[#allocation62_spill] sm:$0xff] %v12475_v61  ;;  %15058 = vst [vmem:[#allocation29_spill] sm:$0xff] %v12477_v34  ;;  %9204 = vrcp.f32 %v3131_v43  ;;  %v12498_v43 = vpop.f32.mrf.mxu1 }
 0x77d   : > { %v12481_v39 = vpop.f32.mrf.mxu0 }
 0x77e   : > { %15059 = vst [vmem:[#allocation32_spill] sm:$0xff] %v12481_v39  ;;  %v12505_v29 = vpop.f32.mrf.mxu1 }
 0x77f   : > { %v12483_v19 = vpop.xlane.xlu0 %4326  ;;  %v8133_v5 = vpop.f32.mrf.mxu0 }
 0x781   : > { %v8134_v26 = vpop.f32.mrf.mxu0 }
 0x782   : > { %v12489_v42 = vadd.f32 %v8134_v26, %v8133_v5 }
 0x783   : > { %v4546_v38 = vpop.xlane.xlu0 %4545  ;;  %v12491_v12 = vpop.f32.mrf.mxu0 }
 0x784   : > { %15060 = vst [vmem:[#allocation55_spill] sm:$0xff] %v12489_v42  ;;  %15061 = vst [vmem:[#allocation67_spill] sm:$0xff] %v12491_v12  ;;  %9206 = vrcp.f32 %v4546_v38  ;;  %v3755_v42 = vld [vmem:[#allocation4 + $0x2e0] sm:$0xff] }
 0x785   : > { %v12493_v22 = vpop.f32.mrf.mxu0  ;;  %v3816_v39 = vunpack.c.h.bf16 %v3755_v42  ;;  %v3815_v61 = vunpack.c.l.bf16 %v3755_v42 }
 0x786   : > { %15062 = vst [vmem:[#allocation12_spill] sm:$0xff] %v12493_v22  ;;  %v3224_v22 = vmul.f32 %v9203_v56, %v12266_v45  ;;  %v12510_v45 = vpop.f32.mrf.mxu1 }
 0x787   : > { %v4549_v58 = vpop.xlane.xlu0 %4548  ;;  %v8139_v50 = vpop.f32.mrf.mxu0 }
 0x788   : > { %9208 = vrcp.f32 %v4549_v58  ;;  %v12516_v42 = vpop.f32.mrf.mxu1 }
 0x789   : > { %v9205_v52 = vpop.eup %9204  ;;  %v8140_v3 = vpop.f32.mrf.mxu0 }
 0x78a   : > { %v12500_v5 = vadd.f32 %v8140_v3, %v8139_v50  ;;  %v3227_v26 = vmul.f32 %v9205_v52, %v12298_v14  ;;  %v3226_v12 = vmul.f32 %v9205_v52, %v12296_v8  ;;  %v4781_v50 = vpop.permute.xlu1 %4780  ;;  %v12508_v14 = vadd.f32 %v4239_v9, %v3816_v39  ;;  %v15068_v39 = vld [vmem:[#allocation31_spill] sm:$0xff] }
 0x78b   : > { %v4783_v38 = vpop.permute.xlu0 %4782  ;;  %v12512_v8 = vadd.f32 %v4237_v25, %v3815_v61  ;;  %v4364_v52 = vsub.f32 %v12035_v7, %v12324_v36 }
 0x78c   : > { %15063 = vst [vmem:[#allocation21_spill] sm:$0xff] %v12500_v5  ;;  %8266 = vmatpush3.bf16.msra.mxu0 %v4783_v38  ;;  %v3259_v58 = vpack.c.bf16 %v3227_v26, %v3225_v17  ;;  %v3258_v34 = vpack.c.bf16 %v3226_v12, %v3224_v22  ;;  %v4365_v17 = vsub.f32 %v15068_v39, %v12324_v36  ;;  %v12530_v26 = vpop.f32.mrf.mxu1 }
 0x78d   : > { %8267 = vmatprep.subr.bf16.mxu0 %v4797_v13  ;;  %v4340_v12 = vmax.f32 %v12512_v8, %v12508_v14  ;;  %v15064_v13 = vld [vmem:[#allocation66_spill] sm:$0xff] }
 0x78e   : > { %4774 = vrot.lane.b32.xlu0 %v9612_v4, %s9683_s28  ;;  %3460 = vmatprep.mubr.bf16.mxu0 %v3259_v58  ;;  %v15069_v58 = vld [vmem:[#allocation45_spill] sm:$0xff]  ;;  %v15070_v4 = vld [vmem:[#allocation36_spill] sm:$0xff] }
 0x78f   : > { %3461 = vmatmul.mubr.bf16.gmra.mxu0 %v3258_v34  ;;  %v15067_v34 = vld [vmem:[#allocation69_spill] sm:$0xff] }
 0x790   : > { %8268 = vmatpush3.bf16.msra.mxu0 %v4781_v50  ;;  %v4366_v50 = vsub.f32 %v15070_v4, %v15069_v58  ;;  %v3756_v4 = vld [vmem:[#allocation4 + $0x2e8] sm:$0xff] }
 0x791   : > { %v9207_v56 = vpop.eup %9206 }
 0x792   : > { %v12521_v3 = vmul.f32 %v9207_v56, %v15064_v13  ;;  %v4673_v25 = vmul.f32 %v9207_v56, %v15067_v34  ;;  %v4440_v13 = vmul.f32 1.442695, %v4364_v52  ;;  %v4442_v56 = vmul.f32 1.442695, %v4365_v17  ;;  %v12538_v34 = vpop.f32.mrf.mxu0 }
 0x793   : > { %15072 = vst [vmem:[#allocation14_spill] sm:$0xff] %v12538_v34  ;;  %v4444_v36 = vmul.f32 1.442695, %v4366_v50  ;;  %v3818_v52 = vunpack.c.h.bf16 %v3756_v4 }
 0x794   : > { %15065 = vst [vmem:[#allocation64_spill] sm:$0xff] %v12521_v3  ;;  %9210 = vpow2.f32 %v4440_v13  ;;  %v9613_v13 = vld [vmem:[#allocation2 + $0x48] sm:$0xff]  }
 0x795   : > { %v9209_v22 = vpop.eup %9208  ;;  %9212 = vpow2.f32 %v4442_v56  ;;  %v12553_v50 = vadd.f32 %v12485_v46, %v3818_v52 }
 0x796   : > { %v12524_v9 = vmul.f32 %v9209_v22, %v12319_v24  ;;  %4341 = vmax.xlane.f32.xlu1 %v4340_v12  ;;  %v4675_v61 = vmul.f32 %v9209_v22, %v12328_v16  ;;  %v15071_v24 = vld [vmem:[#allocation17_spill] sm:$0xff]  ;;  %v12540_v16 = vpop.f32.mrf.mxu1  ;;  %9214 = vpow2.f32 %v4444_v36 }
 0x797   : > { %v4367_v12 = vsub.f32 %v15071_v24, %v15069_v58  ;;  %v3817_v24 = vunpack.c.l.bf16 %v3756_v4  ;;  %15075 = vst [vmem:[#allocation37_spill] sm:$0xff] %v12553_v50  ;;  %v9614_v4 = vld [vmem:[#allocation2 + $0x40] sm:$0xff]  }
 0x798   : > { %15066 = vst [vmem:[#allocation7_spill] sm:$0xff] %v12524_v9  ;;  %v4737_v38 = vpack.c.bf16 %v4675_v61, %v4673_v25  ;;  %v12542_v25 = vpop.f32.mrf.mxu0  ;;  %v12544_v61 = vpop.f32.mrf.mxu1 }
 0x799   : > { %v4446_v22 = vmul.f32 1.442695, %v4367_v12  ;;  %15073 = vst [vmem:[#allocation15_spill] sm:$0xff] %v12542_v25  ;;  %v12559_v56 = vadd.f32 %v12479_v60, %v3817_v24  ;;  %v9615_v60 = vld [vmem:[#allocation2] sm:$0xff]  }
 0x79a   : > { %4848 = vmatprep.mubr.bf16.mxu0 %v4737_v38  ;;  %v12546_v58 = vpop.f32.mrf.mxu1 }
 0x79b   : > { %9216 = vpow2.f32 %v4446_v22  ;;  %15076 = vst [vmem:[#allocation16_spill] sm:$0xff] %v12559_v56 }
 0x79c   : > { %v12556_v12 = vpop.f32.mrf.mxu1 }
 0x79e   : > { %v12568_v52 = vpop.f32.mrf.mxu1 }
 0x7a1   : > { %v8145_v39 = vpop.f32.mrf.mxu0  ;;  %v12561_v22 = vpop.eup %9210 }
 0x7a2   : > { %15077 = vst [vmem:[#allocation54_spill] sm:$0xff] %v12561_v22  ;;  %v12566_v46 = vpop.eup %9212 }
 0x7a3   : > { %v8146_v38 = vpop.f32.mrf.mxu0  ;;  %15078 = vst [vmem:[#allocation19_spill] sm:$0xff] %v12566_v46  ;;  %v4562_v24 = vadd.f32 %v12566_v46, %v12561_v22  ;;  %v15084_v22 = vld [vmem:[#allocation53_spill] sm:$0xff] }
 0x7a4   : > { %v12548_v17 = vadd.f32 %v8146_v38, %v8145_v39  ;;  %v4343_v39 = vmax.f32 %v12559_v56, %v12553_v50  ;;  %v12570_v38 = vpop.f32.mrf.mxu1  ;;  %v4369_v46 = vsub.f32 %v15084_v22, %v12338_v53  ;;  %v4372_v53 = vsub.f32 %v15089_v59, %v12346_v11 }
 0x7a5   : > { %v12550_v7 = vpop.xlane.xlu1 %4329  ;;  %v12585_v25 = vpop.f32.mrf.mxu0 }
 0x7a6   : > { %15074 = vst [vmem:[#allocation26_spill] sm:$0xff] %v12548_v17  ;;  %v12579_v17 = vpop.f32.mrf.mxu1  ;;  %15081 = vst [vmem:[#allocation33_spill] sm:$0xff] %v12585_v25 }
 0x7a7   : > { %4786 = vrot.lane.b32.xlu1 %v9613_v13, %s9683_s28  ;;  %v12572_v13 = vpop.eup %9214  ;;  %v12589_v5 = vpop.f32.mrf.mxu0 }
 0x7a8   : > { %15079 = vst [vmem:[#allocation56_spill] sm:$0xff] %v12572_v13  ;;  %15082 = vst [vmem:[#allocation66_spill] sm:$0xff] %v12589_v5  ;;  %v4450_v5 = vmul.f32 1.442695, %v4369_v46  ;;  %v3757_v46 = vld [vmem:[#allocation4 + $0x2f0] sm:$0xff] }
 0x7a9   : > { %v4795_v36 = vpop.permute.xlu1 %4794  ;;  %v3819_v59 = vunpack.c.l.bf16 %v3757_v46 }
 0x7aa   : > { %8269 = vmatprep.subr.bf16.mxu0 %v4795_v36  ;;  %v12577_v36 = vpop.eup %9216 }
 0x7ab   : > { %4784 = vrot.lane.b32.xlu1 %v9614_v4, %s9683_s28  ;;  %15080 = vst [vmem:[#allocation68_spill] sm:$0xff] %v12577_v36  ;;  %v4565_v4 = vadd.f32 %v12577_v36, %v12572_v13  ;;  %v4448_v36 = vmul.f32 1.442695, %v4368_v18  ;;  %v15091_v18 = vld [vmem:[#allocation59_spill] sm:$0xff] }
 0x7ad   : > { %4344 = vmax.xlane.f32.xlu0 %v4343_v39  ;;  %v12583_v39 = vpop.f32.mrf.mxu1  ;;  %9218 = vpow2.f32 %v4448_v36  ;;  %v3820_v36 = vunpack.c.h.bf16 %v3757_v46  ;;  %v12636_v46 = vadd.f32 %v12487_v28, %v3819_v59  ;;  %v15103_v28 = vld [vmem:[#allocation65_spill] sm:$0xff] }
 0x7ae   : > { %9220 = vpow2.f32 %v4450_v5  ;;  %v15104_v59 = vld [vmem:[#allocation41_spill] sm:$0xff] }
 0x7af   : > { %4768 = vrot.lane.b32.xlu1 %v9615_v60, %s9683_s28  ;;  %v12587_v34 = vpop.f32.mrf.mxu1 }
 0x7b1   : > { %4563 = vadd.xlane.f32.xlu0 %v4562_v24  ;;  %v12591_v60 = vpop.f32.mrf.mxu1 }
 0x7b3   : > { %v12599_v48 = vpop.f32.mrf.mxu1 }
 0x7b5   : > { %4566 = vadd.xlane.f32.xlu0 %v4565_v4  ;;  %v12609_v33 = vpop.f32.mrf.mxu1 }
 0x7b7   : > { %v12617_v3 = vpop.f32.mrf.mxu1 }
 0x7ba   : > { %v8151_v13 = vpop.f32.mrf.mxu0 }
 0x7bc   : > { %v12595_v24 = vpop.xlane.xlu0 %4332  ;;  %v8152_v4 = vpop.f32.mrf.mxu0 }
 0x7bd   : > { %v12601_v25 = vadd.f32 %v8152_v4, %v8151_v13  ;;  %v4373_v13 = vsub.f32 %v15091_v18, %v12346_v11  ;;  %v9616_v11 = vld [vmem:[#allocation2 + $0x8] sm:$0xff]   ;;  %v12626_v18 = vpop.f32.mrf.mxu1 }
 0x7be   : > { %v12605_v20 = vpop.f32.mrf.mxu0 }
 0x7bf   : > { %15085 = vst [vmem:[#allocation69_spill] sm:$0xff] %v12601_v25  ;;  %15087 = vst [vmem:[#allocation45_spill] sm:$0xff] %v12605_v20  ;;  %v4793_v25 = vpop.permute.xlu1 %4792  ;;  %v4456_v20 = vmul.f32 1.442695, %v4372_v53  ;;  %v4458_v23 = vmul.f32 1.442695, %v4373_v13 }
 0x7c0   : > { %v12603_v21 = vpop.xlane.xlu0 %4551  ;;  %v12607_v62 = vpop.f32.mrf.mxu0  ;;  %v15095_v53 = vld [vmem:[#allocation58_spill] sm:$0xff] }
 0x7c1   : > { %15086 = vst [vmem:[#allocation31_spill] sm:$0xff] %v12603_v21  ;;  %15088 = vst [vmem:[#allocation36_spill] sm:$0xff] %v12607_v62  ;;  %9222 = vpow2.f32 %v4456_v20  ;;  %v15105_v21 = vld [vmem:[#allocation8_spill] sm:$0xff] }
 0x7c2   : > { %v8157_v4 = vpop.f32.mrf.mxu0  ;;  %9224 = vpow2.f32 %v4458_v23  ;;  %15098 = vst [vmem:[#allocation58_spill] sm:$0xff] %v12636_v46 }
 0x7c4   : > { %v12613_v22 = vpop.xlane.xlu0 %4554  ;;  %v8158_v35 = vpop.f32.mrf.mxu0 }
 0x7c5   : > { %15090 = vst [vmem:[#allocation17_spill] sm:$0xff] %v12613_v22  ;;  %v12619_v62 = vadd.f32 %v8158_v35, %v8157_v4  ;;  %v4376_v35 = vsub.f32 %v15095_v53, %v12354_v6  ;;  %v4777_v4 = vpop.permute.xlu1 %4776  ;;  %v12642_v53 = vpop.eup %9218 }
 0x7c6   : > { %v12621_v63 = vpop.f32.mrf.mxu0  ;;  %15100 = vst [vmem:[#allocation77_spill] sm:$0xff] %v12642_v53 }
 0x7c7   : > { %15092 = vst [vmem:[#allocation35_spill] sm:$0xff] %v12619_v62  ;;  %15093 = vst [vmem:[#allocation53_spill] sm:$0xff] %v12621_v63  ;;  %v12631_v62 = vadd.f32 %v12495_v54, %v3820_v36  ;;  %v12638_v63 = vpop.f32.mrf.mxu1  ;;  %v4464_v20 = vmul.f32 1.442695, %v4376_v35  ;;  %v4371_v35 = vsub.f32 %v15105_v21, %v15103_v28 }
 0x7c8   : > { %v4779_v9 = vpop.permute.xlu0 %4778  ;;  %v12623_v5 = vpop.f32.mrf.mxu0 }
 0x7c9   : > { %8270 = vmatpush3.bf16.msra.mxu0 %v4779_v9  ;;  %15094 = vst [vmem:[#allocation61_spill] sm:$0xff] %v12623_v5  ;;  %15096 = vst [vmem:[#allocation59_spill] sm:$0xff] %v12631_v62  ;;  %v15097_v9 = vld [vmem:[#allocation20_spill] sm:$0xff]  ;;  %v5235_v5 = vld [vmem:[#allocation4 + $0x300] sm:$0xff]  ;;  %v4346_v23 = vmax.f32 %v12636_v46, %v12631_v62  ;;  %9226 = vpow2.f32 %v4464_v20 }
 0x7ca   : > { %8271 = vmatprep.subr.bf16.mxu0 %v4793_v25  ;;  %v4377_v25 = vsub.f32 %v15097_v9, %v12354_v6  ;;  %v8163_v13 = vpop.f32.mrf.mxu0  ;;  %v5268_v54 = vunpack.c.h.bf16 %v5235_v5  ;;  %v4370_v9 = vsub.f32 %v15104_v59, %v15103_v28  ;;  %v5267_v56 = vunpack.c.l.bf16 %v5235_v5  ;;  %v15109_v62 = vld [vmem:[#allocation13_spill] sm:$0xff] }
 0x7cb   : > { %4770 = vrot.lane.b32.xlu0 %v9616_v11, %s9683_s28  ;;  %v4381_v59 = vsub.f32 %v15109_v62, %v12365_v51  ;;  %v5237_v46 = vld [vmem:[#allocation4 + $0x310] sm:$0xff] }
 0x7cc   : > { %v8164_v11 = vpop.f32.mrf.mxu0  ;;  %v4466_v36 = vmul.f32 1.442695, %v4377_v25  ;;  %v4452_v28 = vmul.f32 1.442695, %v4370_v9  ;;  %v5272_v62 = vunpack.c.h.bf16 %v5237_v46 }
 0x7cd   : > { %8272 = vmatpush3.bf16.msra.mxu0 %v4777_v4  ;;  %v12640_v50 = vadd.f32 %v8164_v11, %v8163_v13  ;;  %v12648_v4 = vpop.eup %9220  ;;  %v12656_v11 = vpop.f32.mrf.mxu1 }
 0x7ce   : > { %v12646_v6 = vpop.f32.mrf.mxu0  ;;  %15102 = vst [vmem:[#allocation79_spill] sm:$0xff] %v12648_v4  ;;  %9228 = vpow2.f32 %v4466_v36  ;;  %v4568_v21 = vadd.f32 %v12648_v4, %v12642_v53  ;;  %v12674_v36 = vpop.eup %9222  ;;  %v4474_v53 = vmul.f32 1.442695, %v4381_v59  ;;  %v15119_v59 = vld [vmem:[#allocation74_spill] sm:$0xff] }
 0x7cf   : > { %15099 = vst [vmem:[#allocation20_spill] sm:$0xff] %v12640_v50  ;;  %15101 = vst [vmem:[#allocation78_spill] sm:$0xff] %v12646_v6  ;;  %v15107_v50 = vld [vmem:[#allocation57_spill] sm:$0xff]  ;;  %v12661_v6 = vadd.f32 %v12516_v42, %v5268_v54  ;;  %9230 = vpow2.f32 %v4452_v28 }
 0x7d0   : > { %v12654_v13 = vpop.f32.mrf.mxu0  ;;  %v4380_v25 = vsub.f32 %v15107_v50, %v12365_v51  ;;  %v12670_v50 = vpop.f32.mrf.mxu1  ;;  %15112 = vst [vmem:[#allocation13_spill] sm:$0xff] %v12674_v36  ;;  %v15121_v28 = vld [vmem:[#allocation73_spill] sm:$0xff] }
 0x7d1   : > { %15106 = vst [vmem:[#allocation65_spill] sm:$0xff] %v12654_v13  ;;  %15108 = vst [vmem:[#allocation41_spill] sm:$0xff] %v12661_v6  ;;  %v4454_v13 = vmul.f32 1.442695, %v4371_v35  ;;  %v15115_v35 = vld [vmem:[#allocation71_spill] sm:$0xff] }
 0x7d2   : > { %v8169_v5 = vpop.f32.mrf.mxu0  ;;  %v4472_v42 = vmul.f32 1.442695, %v4380_v25  ;;  %v5271_v25 = vunpack.c.l.bf16 %v5237_v46 }
 0x7d3   : > { %4347 = vmax.xlane.f32.xlu1 %v4346_v23  ;;  %v12668_v23 = vadd.f32 %v12510_v45, %v5267_v56  ;;  %v12680_v45 = vpop.eup %9224  ;;  %v12682_v56 = vpop.f32.mrf.mxu1  ;;  %9232 = vpow2.f32 %v4454_v13 }
 0x7d4   : > { %v8170_v20 = vpop.f32.mrf.mxu0  ;;  %15114 = vst [vmem:[#allocation81_spill] sm:$0xff] %v12680_v45  ;;  %9234 = vpow2.f32 %v4472_v42  ;;  %v4574_v46 = vadd.f32 %v12680_v45, %v12674_v36  ;;  %v12702_v42 = vadd.f32 %v12544_v61, %v5271_v25 }
 0x7d5   : > { %15110 = vst [vmem:[#allocation8_spill] sm:$0xff] %v12668_v23  ;;  %v12672_v54 = vadd.f32 %v8170_v20, %v8169_v5  ;;  %v5764_v51 = vmax.f32 %v12668_v23, %v12661_v6  ;;  %v15117_v5 = vld [vmem:[#allocation40_spill] sm:$0xff]  ;;  %v12693_v6 = vadd.f32 %v12546_v58, %v5272_v62  ;;  %9236 = vpow2.f32 %v4474_v53  ;;  %v12699_v13 = vpop.f32.mrf.mxu1  ;;  %v5239_v62 = vld [vmem:[#allocation4 + $0x320] sm:$0xff] }
 0x7d6   : > { %v12678_v9 = vpop.f32.mrf.mxu0  ;;  %v4375_v20 = vsub.f32 %v15117_v5, %v15115_v35  ;;  %v4385_v23 = vsub.f32 %v15121_v28, %v12382_v49  ;;  %v3758_v5 = vld [vmem:[#allocation4 + $0x2f8] sm:$0xff]  ;;  %15122 = vst [vmem:[#allocation40_spill] sm:$0xff] %v12702_v42  ;;  %v5276_v36 = vunpack.c.h.bf16 %v5239_v62 }
 0x7d7   : > { %4569 = vadd.xlane.f32.xlu1 %v4568_v21  ;;  %15111 = vst [vmem:[#allocation57_spill] sm:$0xff] %v12672_v54  ;;  %15113 = vst [vmem:[#allocation80_spill] sm:$0xff] %v12678_v9  ;;  %v15116_v21 = vld [vmem:[#allocation25_spill] sm:$0xff]  ;;  %v4384_v9 = vsub.f32 %v15119_v59, %v12382_v49  ;;  %v3822_v58 = vunpack.c.h.bf16 %v3758_v5  ;;  %v12706_v49 = vpop.eup %9226  ;;  %v5770_v28 = vmax.f32 %v12702_v42, %v12693_v6  ;;  %v3821_v61 = vunpack.c.l.bf16 %v3758_v5  ;;  %v12714_v25 = vpop.f32.mrf.mxu1 }
 0x7d8   : > { %v4374_v4 = vsub.f32 %v15116_v21, %v15115_v35  ;;  %v12688_v54 = vpop.f32.mrf.mxu0  ;;  %15120 = vst [vmem:[#allocation25_spill] sm:$0xff] %v12693_v6  ;;  %15124 = vst [vmem:[#allocation73_spill] sm:$0xff] %v12706_v49  ;;  %v4482_v45 = vmul.f32 1.442695, %v4385_v23  ;;  %v15131_v5 = vld [vmem:[#allocation49_spill] sm:$0xff] }
 0x7d9   : > { %15118 = vst [vmem:[#allocation71_spill] sm:$0xff] %v12688_v54  ;;  %v4480_v53 = vmul.f32 1.442695, %v4384_v9  ;;  %v12725_v23 = vadd.f32 %v12505_v29, %v3822_v58  ;;  %v12739_v29 = vpop.f32.mrf.mxu1 }
 0x7da   : > { %v8175_v21 = vpop.f32.mrf.mxu0  ;;  %v4460_v35 = vmul.f32 1.442695, %v4374_v4 }
 0x7db   : > { %5765 = vmax.xlane.f32.xlu1 %v5764_v51  ;;  %v4462_v51 = vmul.f32 1.442695, %v4375_v20  ;;  %v12712_v22 = vpop.eup %9228  ;;  %v15127_v20 = vld [vmem:[#allocation42_spill] sm:$0xff] }
 0x7dc   : > { %v8176_v59 = vpop.f32.mrf.mxu0  ;;  %15126 = vst [vmem:[#allocation83_spill] sm:$0xff] %v12712_v22  ;;  %9238 = vpow2.f32 %v4460_v35  ;;  %v4378_v9 = vsub.f32 %v15127_v20, %v12341_v2  ;;  %v4388_v35 = vsub.f32 %v15131_v5, %v12418_v32  ;;  %v5236_v5 = vld [vmem:[#allocation4 + $0x308] sm:$0xff] }
 0x7dd   : > { %v12704_v54 = vadd.f32 %v8176_v59, %v8175_v21  ;;  %9240 = vpow2.f32 %v4462_v51  ;;  %v15128_v59 = vld [vmem:[#allocation23_spill] sm:$0xff] }
 0x7de   : > { %v12710_v4 = vpop.f32.mrf.mxu0  ;;  %15130 = vst [vmem:[#allocation23_spill] sm:$0xff] %v12725_v23  ;;  %9242 = vpow2.f32 %v4480_v53  ;;  %v4468_v58 = vmul.f32 1.442695, %v4378_v9 }
 0x7df   : > { %4575 = vadd.xlane.f32.xlu1 %v4574_v46  ;;  %15123 = vst [vmem:[#allocation74_spill] sm:$0xff] %v12704_v54  ;;  %15125 = vst [vmem:[#allocation82_spill] sm:$0xff] %v12710_v4  ;;  %v5275_v46 = vunpack.c.l.bf16 %v5239_v62  ;;  %v4379_v54 = vsub.f32 %v15128_v59, %v12341_v2  ;;  %v12730_v4 = vadd.f32 %v12579_v17, %v5276_v36  ;;  %9244 = vpow2.f32 %v4482_v45  ;;  %v15133_v62 = vld [vmem:[#allocation75_spill] sm:$0xff]  ;;  %v12741_v59 = vpop.eup %9230 }
 0x7e0   : > { %v12722_v6 = vpop.f32.mrf.mxu0  ;;  %v4389_v51 = vsub.f32 %v15133_v62, %v12418_v32  ;;  %v4580_v2 = vadd.f32 %v12712_v22, %v12706_v49  ;;  %v12746_v32 = vpop.eup %9232  ;;  %v5241_v62 = vld [vmem:[#allocation4 + $0x330] sm:$0xff]  ;;  %9246 = vpow2.f32 %v4468_v58 }
 0x7e1   : > { %15129 = vst [vmem:[#allocation42_spill] sm:$0xff] %v12722_v6  ;;  %15132 = vst [vmem:[#allocation49_spill] sm:$0xff] %v12730_v4  ;;  %v12744_v17 = vadd.f32 %v12570_v38, %v5275_v46  ;;  %v4470_v36 = vmul.f32 1.442695, %v4379_v54  ;;  %v4488_v6 = vmul.f32 1.442695, %v4388_v35  ;;  %v12752_v42 = vpop.eup %9234  ;;  %v5280_v46 = vunpack.c.h.bf16 %v5241_v62  ;;  %v12760_v22 = vpop.f32.mrf.mxu1 }
 0x7e2   : > { %v12718_v21 = vpop.xlane.xlu1 %4335  ;;  %v8181_v20 = vpop.f32.mrf.mxu0  ;;  %15136 = vst [vmem:[#allocation85_spill] sm:$0xff] %v12752_v42  ;;  %v4490_v54 = vmul.f32 1.442695, %v4389_v51  ;;  %v4571_v58 = vadd.f32 %v12746_v32, %v12741_v59 }
 0x7e3   : > { %5771 = vmax.xlane.f32.xlu1 %v5770_v28  ;;  %v12737_v28 = vadd.f32 %v12498_v43, %v3821_v61  ;;  %15134 = vst [vmem:[#allocation75_spill] sm:$0xff] %v12744_v17  ;;  %v5270_v61 = vunpack.c.h.bf16 %v5236_v5  ;;  %v5776_v38 = vmax.f32 %v12744_v17, %v12730_v4  ;;  %9248 = vpow2.f32 %v4470_v36  ;;  %v15144_v36 = vld [vmem:[#allocation38_spill] sm:$0xff] }
 0x7e4   : > { %v8182_v45 = vpop.f32.mrf.mxu0  ;;  %9250 = vpow2.f32 %v4488_v6  ;;  %v12785_v6 = vpop.f32.mrf.mxu1 }
 0x7e5   : > { %v4349_v43 = vmax.f32 %v12737_v28, %v12725_v23  ;;  %v12750_v9 = vadd.f32 %v8182_v45, %v8181_v20  ;;  %v15139_v23 = vld [vmem:[#allocation10_spill] sm:$0xff]  ;;  %v5279_v20 = vunpack.c.l.bf16 %v5241_v62  ;;  %v15140_v45 = vld [vmem:[#allocation39_spill] sm:$0xff]  ;;  %v12769_v51 = vadd.f32 %v12540_v16, %v5270_v61 }
 0x7e6   : > { %v4791_v53 = vpop.permute.xlu1 %4790  ;;  %v12756_v49 = vpop.f32.mrf.mxu0  ;;  %v4382_v35 = vsub.f32 %v15139_v23, %v12349_v1  ;;  %v12776_v23 = vadd.f32 %v12599_v48, %v5280_v46  ;;  %9252 = vpow2.f32 %v4490_v54 }
 0x7e7   : > { %4581 = vadd.xlane.f32.xlu1 %v4580_v2  ;;  %8273 = vmatprep.subr.bf16.mxu0 %v4791_v53  ;;  %15135 = vst [vmem:[#allocation84_spill] sm:$0xff] %v12750_v9  ;;  %15137 = vst [vmem:[#allocation86_spill] sm:$0xff] %v12756_v49  ;;  %v12758_v2 = vpop.eup %9236  ;;  %v5269_v53 = vunpack.c.l.bf16 %v5236_v5  ;;  %v4383_v9 = vsub.f32 %v15140_v45, %v12349_v1  ;;  %v15142_v5 = vld [vmem:[#allocation43_spill] sm:$0xff]  ;;  %v4393_v1 = vsub.f32 %v15144_v36, %v12442_v40  ;;  %v5238_v45 = vld [vmem:[#allocation4 + $0x318] sm:$0xff] }
 0x7e8   : > { %15138 = vst [vmem:[#allocation87_spill] sm:$0xff] %v12758_v2  ;;  %v12766_v4 = vpop.f32.mrf.mxu0  ;;  %v4392_v49 = vsub.f32 %v15142_v5, %v12442_v40  ;;  %15143 = vst [vmem:[#allocation39_spill] sm:$0xff] %v12776_v23  ;;  %v4586_v62 = vadd.f32 %v12758_v2, %v12752_v42  ;;  %v4476_v61 = vmul.f32 1.442695, %v4382_v35  ;;  %v12790_v48 = vadd.f32 %v12591_v60, %v5279_v20  ;;  %v12806_v42 = vpop.f32.mrf.mxu1  ;;  %v15149_v2 = vld [vmem:[#allocation44_spill] sm:$0xff] }
 0x7e9   : > { %15141 = vst [vmem:[#allocation10_spill] sm:$0xff] %v12766_v4  ;;  %v12783_v16 = vadd.f32 %v12530_v26, %v5269_v53  ;;  %v4478_v46 = vmul.f32 1.442695, %v4383_v9  ;;  %v5274_v26 = vunpack.c.h.bf16 %v5238_v45  ;;  %v5243_v53 = vld [vmem:[#allocation4 + $0x340] sm:$0xff]  ;;  %v4498_v20 = vmul.f32 1.442695, %v4393_v1 }
 0x7ea   : > { %4350 = vmax.xlane.f32.xlu0 %v4349_v43  ;;  %v8187_v43 = vpop.f32.mrf.mxu0  ;;  %15145 = vst [vmem:[#allocation43_spill] sm:$0xff] %v12790_v48  ;;  %v4496_v36 = vmul.f32 1.442695, %v4392_v49  ;;  %v5284_v60 = vunpack.c.h.bf16 %v5243_v53  ;;  %v5273_v17 = vunpack.c.l.bf16 %v5238_v45  ;;  %9254 = vpow2.f32 %v4476_v61  ;;  %v15153_v45 = vld [vmem:[#allocation60_spill] sm:$0xff] }
 0x7eb   : > { %5777 = vmax.xlane.f32.xlu1 %v5776_v38  ;;  %v12787_v38 = vpop.eup %9238  ;;  %v5767_v5 = vmax.f32 %v12783_v16, %v12769_v51  ;;  %v4386_v49 = vsub.f32 %v15149_v2, %v12374_v0  ;;  %9256 = vpow2.f32 %v4478_v46  ;;  %v12815_v1 = vadd.f32 %v12568_v52, %v5274_v26  ;;  %v15155_v46 = vld [vmem:[#allocation70_spill] sm:$0xff]  ;;  %v12831_v26 = vpop.f32.mrf.mxu1 }
 0x7ec   : > { %v8188_v54 = vpop.f32.mrf.mxu0  ;;  %v12792_v40 = vpop.eup %9240  ;;  %9258 = vpow2.f32 %v4496_v36  ;;  %v12822_v2 = vadd.f32 %v12638_v63, %v5284_v60  ;;  %v12829_v52 = vadd.f32 %v12556_v12, %v5273_v17  ;;  %v5245_v17 = vld [vmem:[#allocation4 + $0x350] sm:$0xff] }
 0x7ed   : > { %v12796_v4 = vadd.f32 %v8188_v54, %v8187_v43  ;;  %v12798_v35 = vpop.eup %9242  ;;  %v5283_v43 = vunpack.c.l.bf16 %v5243_v53  ;;  %v15150_v54 = vld [vmem:[#allocation18_spill] sm:$0xff]  ;;  %v4577_v61 = vadd.f32 %v12792_v40, %v12787_v38  ;;  %9260 = vpow2.f32 %v4498_v20 }
 0x7ee   : > { %4572 = vadd.xlane.f32.xlu0 %v4571_v58  ;;  %15147 = vst [vmem:[#allocation88_spill] sm:$0xff] %v12798_v35  ;;  %v5782_v58 = vmax.f32 %v12790_v48, %v12776_v23  ;;  %v12802_v9 = vpop.f32.mrf.mxu0  ;;  %15152 = vst [vmem:[#allocation18_spill] sm:$0xff] %v12815_v1  ;;  %v4484_v36 = vmul.f32 1.442695, %v4386_v49 }
 0x7ef   : > { %4587 = vadd.xlane.f32.xlu1 %v4586_v62  ;;  %15146 = vst [vmem:[#allocation38_spill] sm:$0xff] %v12796_v4  ;;  %15148 = vst [vmem:[#allocation89_spill] sm:$0xff] %v12802_v9  ;;  %v12804_v62 = vpop.eup %9244  ;;  %v4387_v4 = vsub.f32 %v15150_v54, %v12374_v0  ;;  %v4396_v9 = vsub.f32 %v15153_v45, %v12444_v55  ;;  %v4397_v0 = vsub.f32 %v15155_v46, %v12444_v55  ;;  %v5240_v54 = vld [vmem:[#allocation4 + $0x328] sm:$0xff]  ;;  %v12842_v46 = vpop.f32.mrf.mxu1 }
 0x7f0   : > { %v12812_v23 = vpop.f32.mrf.mxu0  ;;  %15154 = vst [vmem:[#allocation60_spill] sm:$0xff] %v12822_v2  ;;  %v4592_v53 = vadd.f32 %v12804_v62, %v12798_v35  ;;  %15156 = vst [vmem:[#allocation70_spill] sm:$0xff] %v12829_v52  ;;  %v12836_v63 = vadd.f32 %v12626_v18, %v5283_v43  ;;  %v5773_v45 = vmax.f32 %v12829_v52, %v12815_v1  ;;  %v5278_v12 = vunpack.c.h.bf16 %v5240_v54  ;;  %v15160_v52 = vld [vmem:[#allocation27_spill] sm:$0xff] }
 0x7f1   : > { %15151 = vst [vmem:[#allocation44_spill] sm:$0xff] %v12812_v23  ;;  %v4486_v60 = vmul.f32 1.442695, %v4387_v4  ;;  %v4504_v49 = vmul.f32 1.442695, %v4396_v9  ;;  %v5288_v4 = vunpack.c.h.bf16 %v5245_v17  ;;  %v5277_v1 = vunpack.c.l.bf16 %v5240_v54 }
 0x7f2   : > { %5768 = vmax.xlane.f32.xlu0 %v5767_v5  ;;  %v8193_v5 = vpop.f32.mrf.mxu0  ;;  %15157 = vst [vmem:[#allocation90_spill] sm:$0xff] %v12836_v63  ;;  %v5788_v18 = vmax.f32 %v12836_v63, %v12822_v2  ;;  %v4506_v43 = vmul.f32 1.442695, %v4397_v0  ;;  %9262 = vpow2.f32 %v4484_v36  ;;  %v4390_v9 = vsub.f32 %v15160_v52, %v12406_v27 }
 0x7f3   : > { %5783 = vmax.xlane.f32.xlu1 %v5782_v58  ;;  %v12833_v58 = vpop.eup %9246  ;;  %9264 = vpow2.f32 %v4486_v60  ;;  %v12863_v0 = vadd.f32 %v12587_v34, %v5278_v12  ;;  %v4400_v36 = vsub.f32 %v12360_v57, %v12550_v7  ;;  %v12872_v54 = vadd.f32 %v12699_v13, %v5288_v4 }
 0x7f4   : > { %v8194_v20 = vpop.f32.mrf.mxu0  ;;  %v12838_v55 = vpop.eup %9248  ;;  %9266 = vpow2.f32 %v4504_v49  ;;  %v12881_v12 = vadd.f32 %v12583_v39, %v5277_v1  ;;  %v4492_v57 = vmul.f32 1.442695, %v4390_v9  ;;  %v5242_v49 = vld [vmem:[#allocation4 + $0x338] sm:$0xff] }
 0x7f5   : > { %v12846_v23 = vpop.eup %9250  ;;  %v4583_v52 = vadd.f32 %v12838_v55, %v12833_v58  ;;  %15164 = vst [vmem:[#allocation93_spill] sm:$0xff] %v12872_v54  ;;  %9268 = vpow2.f32 %v4506_v43  ;;  %v5282_v43 = vunpack.c.h.bf16 %v5242_v49  ;;  %v4512_v1 = vmul.f32 1.442695, %v4400_v36 }
 0x7f6   : > { %4578 = vadd.xlane.f32.xlu0 %v4577_v61  ;;  %v12844_v61 = vadd.f32 %v8194_v20, %v8193_v5  ;;  %v12854_v35 = vpop.eup %9252  ;;  %v5287_v5 = vunpack.c.l.bf16 %v5245_v17  ;;  %v15161_v20 = vld [vmem:[#allocation9_spill] sm:$0xff]  ;;  %15165 = vst [vmem:[#allocation94_spill] sm:$0xff] %v12881_v12  ;;  %v5281_v63 = vunpack.c.l.bf16 %v5242_v49  ;;  %9270 = vpow2.f32 %v4492_v57 }
 0x7f7   : > { %4593 = vadd.xlane.f32.xlu1 %v4592_v53  ;;  %v12850_v53 = vpop.f32.mrf.mxu0  ;;  %15163 = vst [vmem:[#allocation9_spill] sm:$0xff] %v12863_v0  ;;  %v4598_v34 = vadd.f32 %v12854_v35, %v12846_v23  ;;  %v12883_v17 = vpop.eup %9254  ;;  %v4404_v57 = vsub.f32 %v12430_v47, %v12718_v21 }
 0x7f8   : > { %15158 = vst [vmem:[#allocation91_spill] sm:$0xff] %v12844_v61  ;;  %15159 = vst [vmem:[#allocation92_spill] sm:$0xff] %v12850_v53  ;;  %v4391_v61 = vsub.f32 %v15161_v20, %v12406_v27  ;;  %v12865_v53 = vpop.f32.mrf.mxu1  ;;  %v4401_v27 = vsub.f32 %v12358_v41, %v12550_v7  ;;  %v12886_v13 = vadd.f32 %v12682_v56, %v5287_v5  ;;  %v12888_v41 = vpop.eup %9256  ;;  %v5247_v20 = vld [vmem:[#allocation4 + $0x360] sm:$0xff] }
 0x7f9   : > { %v12852_v48 = vpop.xlane.xlu0 %4338  ;;  %v12860_v2 = vpop.f32.mrf.mxu0  ;;  %v5779_v7 = vmax.f32 %v12881_v12, %v12863_v0  ;;  %v15168_v0 = vld [vmem:[#allocation47_spill] sm:$0xff]  ;;  %v5291_v36 = vunpack.c.l.bf16 %v5247_v20 }
 0x7fa   : > { %5774 = vmax.xlane.f32.xlu0 %v5773_v45  ;;  %15162 = vst [vmem:[#allocation27_spill] sm:$0xff] %v12860_v2  ;;  %15166 = vst [vmem:[#allocation95_spill] sm:$0xff] %v12886_v13  ;;  %v12892_v39 = vpop.f32.mrf.mxu1  ;;  %v5794_v56 = vmax.f32 %v12886_v13, %v12872_v54  ;;  %v4514_v5 = vmul.f32 1.442695, %v4401_v27  ;;  %v4394_v12 = vsub.f32 %v15168_v0, %v12473_v30 }
 0x7fb   : > { %5789 = vmax.xlane.f32.xlu1 %v5788_v18  ;;  %v8199_v60 = vpop.f32.mrf.mxu0  ;;  %v4494_v18 = vmul.f32 1.442695, %v4391_v61  ;;  %v5292_v61 = vunpack.c.h.bf16 %v5247_v20  ;;  %v12909_v54 = vadd.f32 %v12617_v3, %v5282_v43  ;;  %v4589_v0 = vadd.f32 %v12888_v41, %v12883_v17  ;;  %v5244_v20 = vld [vmem:[#allocation4 + $0x348] sm:$0xff] }
 0x7fc   : > { %v12911_v27 = vpop.f32.mrf.mxu1  ;;  %v4500_v43 = vmul.f32 1.442695, %v4394_v12  ;;  %v4520_v12 = vmul.f32 1.442695, %v4404_v57  ;;  %v15175_v57 = vld [vmem:[#allocation30_spill] sm:$0xff] }
 0x7fd   : > { %v12876_v45 = vpop.xlane.xlu0 %4557  ;;  %v8200_v4 = vpop.f32.mrf.mxu0  ;;  %9272 = vpow2.f32 %v4494_v18  ;;  %15170 = vst [vmem:[#allocation47_spill] sm:$0xff] %v12909_v54  ;;  %v12918_v49 = vadd.f32 %v12785_v6, %v5292_v61  ;;  %v12930_v6 = vadd.f32 %v12760_v22, %v5291_v36 }
 0x7fe   : > { %4584 = vadd.xlane.f32.xlu0 %v4583_v52  ;;  %v12894_v9 = vadd.f32 %v8200_v4, %v8199_v60  ;;  %v12896_v52 = vpop.eup %9258  ;;  %v15169_v60 = vld [vmem:[#allocation76_spill] sm:$0xff]  ;;  %9274 = vpow2.f32 %v4512_v1 }
 0x7ff   : > { %4599 = vadd.xlane.f32.xlu1 %v4598_v34  ;;  %v12902_v2 = vpop.eup %9260  ;;  %v4395_v4 = vsub.f32 %v15169_v60, %v12473_v30  ;;  %15171 = vst [vmem:[#allocation76_spill] sm:$0xff] %v12918_v49  ;;  %9276 = vpow2.f32 %v4514_v5  ;;  %v4405_v30 = vsub.f32 %v12428_v10, %v12718_v21  ;;  %15173 = vst [vmem:[#allocation98_spill] sm:$0xff] %v12930_v6  ;;  %v12938_v61 = vpop.f32.mrf.mxu0 }
 0x800   : > { %15167 = vst [vmem:[#allocation96_spill] sm:$0xff] %v12894_v9  ;;  %v4789_v9 = vpop.permute.xlu1 %4788  ;;  %v4604_v3 = vadd.f32 %v12902_v2, %v12896_v52  ;;  %v12927_v47 = vpop.eup %9262  ;;  %15174 = vst [vmem:[#allocation99_spill] sm:$0xff] %v12938_v61  ;;  %v5800_v22 = vmax.f32 %v12930_v6, %v12918_v49  ;;  %9278 = vpow2.f32 %v4500_v43  ;;  %v15177_v49 = vld [vmem:[#allocation46_spill] sm:$0xff] }
 0x801   : > { %v12900_v34 = vpop.xlane.xlu0 %4560  ;;  %v4502_v1 = vmul.f32 1.442695, %v4395_v4  ;;  %v12932_v10 = vpop.eup %9264  ;;  %v4522_v60 = vmul.f32 1.442695, %v4405_v30  ;;  %v4399_v30 = vsub.f32 %v15177_v49, %v12483_v19 }
 0x802   : > { %5780 = vmax.xlane.f32.xlu0 %v5779_v7  ;;  %v12925_v7 = vadd.f32 %v12609_v33, %v5281_v63  ;;  %v5249_v33 = vld [vmem:[#allocation4 + $0x370] sm:$0xff]  ;;  %v12936_v63 = vpop.f32.mrf.mxu1  ;;  %v12940_v5 = vpop.eup %9266  ;;  %v4595_v43 = vadd.f32 %v12932_v10, %v12927_v47 }
 0x803   : > { %5795 = vmax.xlane.f32.xlu1 %v5794_v56  ;;  %v5286_v56 = vunpack.c.h.bf16 %v5244_v20  ;;  %v5296_v36 = vunpack.c.h.bf16 %v5249_v33  ;;  %v12944_v4 = vpop.eup %9268  ;;  %9280 = vpow2.f32 %v4502_v1  ;;  %v12953_v6 = vpop.f32.mrf.mxu0 }
 0x804   : > { %15172 = vst [vmem:[#allocation97_spill] sm:$0xff] %v12925_v7  ;;  %v5785_v21 = vmax.f32 %v12925_v7, %v12909_v54  ;;  %v5687_v13 = vpop.f32.mrf.mxu1  ;;  %9282 = vpow2.f32 %v4520_v12  ;;  %15178 = vst [vmem:[#allocation46_spill] sm:$0xff] %v12953_v6  ;;  %v4610_v1 = vadd.f32 %v12944_v4, %v12940_v5  ;;  %v4402_v6 = vsub.f32 %v12393_v37, %v12595_v24 }
 0x805   : > { %v4775_v18 = vpop.permute.xlu0 %4774  ;;  %v12949_v61 = vadd.f32 %v12670_v50, %v5286_v56  ;;  %9284 = vpow2.f32 %v4522_v60  ;;  %v12965_v56 = vpop.eup %9270 }
 0x806   : > { %4590 = vadd.xlane.f32.xlu0 %v4589_v0  ;;  %8274 = vmatpush3.bf16.msra.mxu0 %v4775_v18  ;;  %v5285_v0 = vunpack.c.l.bf16 %v5244_v20  ;;  %v5295_v18 = vunpack.c.l.bf16 %v5249_v33  ;;  %v12958_v20 = vadd.f32 %v12865_v53, %v5296_v36  ;;  %v5251_v36 = vld [vmem:[#allocation4 + $0x380] sm:$0xff]  ;;  %v12974_v60 = vpop.f32.mrf.mxu1 }
 0x807   : > { %4605 = vadd.xlane.f32.xlu1 %v4604_v3  ;;  %8275 = vmatprep.subr.bf16.mxu0 %v4789_v9  ;;  %v4773_v9 = vpop.permute.xlu1 %4772  ;;  %v4398_v3 = vsub.f32 %v15175_v57, %v12483_v19  ;;  %15176 = vst [vmem:[#allocation30_spill] sm:$0xff] %v12949_v61  ;;  %v5246_v19 = vld [vmem:[#allocation4 + $0x358] sm:$0xff] }
 0x808   : > { %15179 = vst [vmem:[#allocation100_spill] sm:$0xff] %v12958_v20  ;;  %v12963_v50 = vadd.f32 %v12656_v11, %v5285_v0  ;;  %v12968_v49 = vadd.f32 %v12842_v46, %v5295_v18  ;;  %v4510_v11 = vmul.f32 1.442695, %v4399_v30  ;;  %v5300_v46 = vunpack.c.h.bf16 %v5251_v36 }
 0x809   : > { %v4508_v33 = vmul.f32 1.442695, %v4398_v3 }
 0x80a   : > { %5786 = vmax.xlane.f32.xlu0 %v5785_v21  ;;  %8276 = vmatpush3.bf16.msra.mxu0 %v4773_v9  ;;  %15180 = vst [vmem:[#allocation101_spill] sm:$0xff] %v12963_v50  ;;  %15181 = vst [vmem:[#allocation102_spill] sm:$0xff] %v12968_v49  ;;  %v12970_v12 = vpop.eup %9272  ;;  %v5791_v53 = vmax.f32 %v12963_v50, %v12949_v61  ;;  %v5806_v57 = vmax.f32 %v12968_v49, %v12958_v20  ;;  %v12989_v61 = vpop.f32.mrf.mxu1 }
 0x80b   : > { %5801 = vmax.xlane.f32.xlu1 %v5800_v22  ;;  %v5290_v22 = vunpack.c.h.bf16 %v5246_v19  ;;  %v12976_v0 = vpop.eup %9274  ;;  %9286 = vpow2.f32 %v4508_v33 }
 0x80c   : > { %v12982_v3 = vpop.eup %9276  ;;  %9288 = vpow2.f32 %v4510_v11 }
 0x80d   : > { %v12987_v30 = vadd.f32 %v12739_v29, %v5290_v22  ;;  %v4616_v33 = vadd.f32 %v12982_v3, %v12976_v0  ;;  %v13002_v29 = vpop.eup %9278  ;;  %v5248_v22 = vld [vmem:[#allocation4 + $0x368] sm:$0xff] }
 0x80e   : > { %4596 = vadd.xlane.f32.xlu0 %v4595_v43  ;;  %v8205_v21 = vpop.f32.mrf.mxu0  ;;  %v5289_v43 = vunpack.c.l.bf16 %v5246_v19  ;;  %v12995_v19 = vadd.f32 %v5687_v13, %v5300_v46  ;;  %v5294_v11 = vunpack.c.h.bf16 %v5248_v22 }
 0x80f   : > { %4611 = vadd.xlane.f32.xlu1 %v4610_v1  ;;  %v5299_v1 = vunpack.c.l.bf16 %v5251_v36  ;;  %15183 = vst [vmem:[#allocation104_spill] sm:$0xff] %v12987_v30 }
 0x810   : > { %v8206_v9 = vpop.f32.mrf.mxu0  ;;  %15184 = vst [vmem:[#allocation105_spill] sm:$0xff] %v12995_v19  ;;  %v13000_v37 = vadd.f32 %v12714_v25, %v5289_v43 }
 0x811   : > { %v12980_v18 = vadd.f32 %v8206_v9, %v8205_v21  ;;  %v4403_v21 = vsub.f32 %v12390_v44, %v12595_v24  ;;  %v4601_v9 = vadd.f32 %v12970_v12, %v12965_v56  ;;  %v13005_v36 = vadd.f32 %v12936_v63, %v5299_v1  ;;  %v13007_v24 = vpop.eup %9280 }
 0x812   : > { %5792 = vmax.xlane.f32.xlu0 %v5791_v53  ;;  %15185 = vst [vmem:[#allocation106_spill] sm:$0xff] %v13000_v37  ;;  %v5695_v53 = vpop.f32.mrf.mxu1  ;;  %v4516_v44 = vmul.f32 1.442695, %v4402_v6  ;;  %v5797_v13 = vmax.f32 %v13000_v37, %v12987_v30  ;;  %v13011_v25 = vpop.eup %9282  ;;  %v5293_v63 = vunpack.c.l.bf16 %v5248_v22  ;;  %v4406_v6 = vsub.f32 %v12449_v31, %v12852_v48 }
 0x813   : > { %15182 = vst [vmem:[#allocation103_spill] sm:$0xff] %v12980_v18  ;;  %5807 = vmax.xlane.f32.xlu1 %v5806_v57  ;;  %15186 = vst [vmem:[#allocation107_spill] sm:$0xff] %v13005_v36  ;;  %v5253_v57 = vld [vmem:[#allocation4 + $0x390] sm:$0xff]  ;;  %v4518_v46 = vmul.f32 1.442695, %v4403_v21  ;;  %v5812_v43 = vmax.f32 %v13005_v36, %v12995_v19  ;;  %v13015_v18 = vpop.eup %9284  ;;  %v4407_v30 = vsub.f32 %v12446_v15, %v12852_v48 }
 0x814   : > { %v5697_v1 = vpop.f32.mrf.mxu1  ;;  %9290 = vpow2.f32 %v4516_v44  ;;  %v13022_v21 = vadd.f32 %v12831_v26, %v5294_v11  ;;  %v4607_v37 = vadd.f32 %v13007_v24, %v13002_v29  ;;  %v4622_v22 = vadd.f32 %v13015_v18, %v13011_v25 }
 0x815   : > { %9292 = vpow2.f32 %v4518_v46  ;;  %v13031_v31 = vadd.f32 %v12806_v42, %v5293_v63  ;;  %v4524_v44 = vmul.f32 1.442695, %v4406_v6  ;;  %v4526_v48 = vmul.f32 1.442695, %v4407_v30 }
 0x816   : > { %4602 = vadd.xlane.f32.xlu0 %v4601_v9  ;;  %v5304_v9 = vunpack.c.h.bf16 %v5253_v57  ;;  %15187 = vst [vmem:[#allocation108_spill] sm:$0xff] %v13022_v21 }
 0x817   : > { %4617 = vadd.xlane.f32.xlu1 %v4616_v33  ;;  %v5303_v33 = vunpack.c.l.bf16 %v5253_v57  ;;  %15189 = vst [vmem:[#allocation110_spill] sm:$0xff] %v13031_v31  ;;  %v5803_v57 = vmax.f32 %v13031_v31, %v13022_v21  ;;  %9294 = vpow2.f32 %v4524_v44 }
 0x818   : > { %v13026_v50 = vadd.f32 %v5697_v1, %v5304_v9  ;;  %v13035_v11 = vpop.eup %9286  ;;  %9296 = vpow2.f32 %v4526_v48 }
 0x819   : > { %v13033_v15 = vadd.f32 %v5695_v53, %v5303_v33  ;;  %v13041_v42 = vpop.eup %9288  ;;  %v5699_v33 = vpop.f32.mrf.mxu1 }
 0x81a   : > { %5798 = vmax.xlane.f32.xlu0 %v5797_v13  ;;  %15188 = vst [vmem:[#allocation109_spill] sm:$0xff] %v13026_v50  ;;  %v5250_v13 = vld [vmem:[#allocation4 + $0x378] sm:$0xff] }
 0x81b   : > { %5813 = vmax.xlane.f32.xlu1 %v5812_v43  ;;  %15190 = vst [vmem:[#allocation111_spill] sm:$0xff] %v13033_v15  ;;  %v5298_v46 = vunpack.c.h.bf16 %v5250_v13  ;;  %v5297_v53 = vunpack.c.l.bf16 %v5250_v13 }
 0x81d   : > { %v13046_v6 = vadd.f32 %v12911_v27, %v5298_v46  ;;  %v5701_v27 = vpop.f32.mrf.mxu1 }
 0x81e   : > { %4608 = vadd.xlane.f32.xlu0 %v4607_v37  ;;  %v5818_v37 = vmax.f32 %v13033_v15, %v13026_v50 }
 0x81f   : > { %4623 = vadd.xlane.f32.xlu1 %v4622_v22  ;;  %v4342_v26 = vpop.xlane.xlu1 %4341  ;;  %15191 = vst [vmem:[#allocation112_spill] sm:$0xff] %v13046_v6  ;;  %v5252_v22 = vld [vmem:[#allocation4 + $0x388] sm:$0xff] }
 0x820   : > { %v4408_v43 = vsub.f32 %v12512_v8, %v4342_v26  ;;  %v4409_v9 = vsub.f32 %v12508_v14, %v4342_v26  ;;  %v4613_v14 = vadd.f32 %v13041_v42, %v13035_v11  ;;  %v13051_v8 = vadd.f32 %v12892_v39, %v5297_v53 }
 0x821   : > { %v13053_v44 = vpop.eup %9290  ;;  %v5302_v48 = vunpack.c.h.bf16 %v5252_v22 }
 0x822   : > { %v4528_v30 = vmul.f32 1.442695, %v4408_v43  ;;  %v4530_v63 = vmul.f32 1.442695, %v4409_v9  ;;  %5804 = vmax.xlane.f32.xlu0 %v5803_v57  ;;  %15192 = vst [vmem:[#allocation113_spill] sm:$0xff] %v13051_v8  ;;  %v5809_v13 = vmax.f32 %v13051_v8, %v13046_v6  ;;  %v13057_v26 = vpop.eup %9292  ;;  %v5301_v57 = vunpack.c.l.bf16 %v5252_v22  ;;  %v5705_v43 = vpop.f32.mrf.mxu1 }
 0x823   : > { %5819 = vmax.xlane.f32.xlu1 %v5818_v37  ;;  %v4787_v1 = vpop.permute.xlu1 %4786  ;;  %v13060_v46 = vadd.f32 %v12989_v61, %v5302_v48  ;;  %v4619_v39 = vadd.f32 %v13057_v26, %v13053_v44  ;;  %v5255_v37 = vld [vmem:[#allocation4 + $0x3a0] sm:$0xff] }
 0x824   : > { %9298 = vpow2.f32 %v4528_v30  ;;  %8277 = vmatprep.subr.bf16.mxu0 %v4787_v1  ;;  %v13065_v9 = vadd.f32 %v12974_v60, %v5301_v57  ;;  %v13067_v53 = vpop.eup %9294  ;;  %v5254_v30 = vld [vmem:[#allocation4 + $0x398] sm:$0xff]  ;;  %v5707_v22 = vpop.f32.mrf.mxu1  ;;  %v5307_v48 = vunpack.c.l.bf16 %v5255_v37 }
 0x825   : > { %9300 = vpow2.f32 %v4530_v63  ;;  %15193 = vst [vmem:[#allocation114_spill] sm:$0xff] %v13060_v46  ;;  %v5308_v63 = vunpack.c.h.bf16 %v5255_v37  ;;  %v13069_v1 = vpop.eup %9296  ;;  %v5306_v61 = vunpack.c.h.bf16 %v5254_v30  ;;  %v5305_v60 = vunpack.c.l.bf16 %v5254_v30 }
 0x826   : > { %4614 = vadd.xlane.f32.xlu0 %v4613_v14  ;;  %15194 = vst [vmem:[#allocation115_spill] sm:$0xff] %v13065_v9  ;;  %v5815_v14 = vmax.f32 %v13065_v9, %v13060_v46  ;;  %v4625_v21 = vadd.f32 %v13069_v1, %v13067_v53  ;;  %v13085_v46 = vadd.f32 %v5705_v43, %v5307_v48  ;;  %v15198_v9 = vld [vmem:[#allocation17_spill] sm:$0xff] }
 0x827   : > { %v13077_v57 = vadd.f32 %v5707_v22, %v5308_v63  ;;  %v13081_v8 = vadd.f32 %v5701_v27, %v5306_v61  ;;  %9302 = vrcp.f32 %v15198_v9  ;;  %v13088_v37 = vadd.f32 %v5699_v33, %v5305_v60  ;;  %v15200_v63 = vld [vmem:[#allocation31_spill] sm:$0xff]  ;;  %v15202_v61 = vld [vmem:[#allocation37_spill] sm:$0xff]  ;;  %v4785_v9 = vpop.permute.xlu1 %4784 }
 0x828   : > { %15197 = vst [vmem:[#allocation118_spill] sm:$0xff] %v13085_v46  ;;  %9304 = vrcp.f32 %v15200_v63  ;;  %v5709_v63 = vpop.f32.mrf.mxu1 }
 0x829   : > { %15195 = vst [vmem:[#allocation116_spill] sm:$0xff] %v13077_v57  ;;  %15196 = vst [vmem:[#allocation117_spill] sm:$0xff] %v13081_v8  ;;  %v5824_v30 = vmax.f32 %v13085_v46, %v13077_v57  ;;  %v5821_v43 = vmax.f32 %v13088_v37, %v13081_v8 }
 0x82a   : > { %5810 = vmax.xlane.f32.xlu0 %v5809_v13  ;;  %15199 = vst [vmem:[#allocation17_spill] sm:$0xff] %v13088_v37  ;;  %v13105_v37 = vpop.f32.mrf.mxu0 }
 0x82b   : > { %15205 = vst [vmem:[#allocation31_spill] sm:$0xff] %v13105_v37 }
 0x82c   : > { %v13117_v19 = vpop.f32.mrf.mxu0 }
 0x82e   : > { %4620 = vadd.xlane.f32.xlu0 %v4619_v39 }
 0x831   : > { %v13073_v13 = vpop.eup %9298 }
 0x832   : > { %v13075_v6 = vpop.eup %9300  ;;  %5816 = vmax.xlane.f32.xlu0 %v5815_v14  ;;  %v15201_v14 = vld [vmem:[#allocation16_spill] sm:$0xff] }
 0x833   : > { %v4628_v39 = vadd.f32 %v13075_v6, %v13073_v13 }
 0x834   : > { %v9303_v60 = vpop.eup %9302 }
 0x835   : > { %4629 = vadd.xlane.f32.xlu1 %v4628_v39 }
 0x836   : > { %v4345_v31 = vpop.xlane.xlu0 %4344  ;;  %4626 = vadd.xlane.f32.xlu0 %v4625_v21 }
 0x837   : > { %v4410_v27 = vsub.f32 %v15201_v14, %v4345_v31  ;;  %v4411_v22 = vsub.f32 %v15202_v61, %v4345_v31  ;;  %v9305_v31 = vpop.eup %9304  ;;  %v5256_v14 = vld [vmem:[#allocation4 + $0x3a8] sm:$0xff] }
 0x838   : > { %v5310_v61 = vunpack.c.h.bf16 %v5256_v14 }
 0x839   : > { %v4532_v48 = vmul.f32 1.442695, %v4410_v27  ;;  %v4534_v50 = vmul.f32 1.442695, %v4411_v22  ;;  %5825 = vmax.xlane.f32.xlu1 %v5824_v30  ;;  %v15203_v27 = vld [vmem:[#allocation22_spill] sm:$0xff]  ;;  %v4769_v22 = vpop.permute.xlu1 %4768 }
 0x83a   : > { %5822 = vmax.xlane.f32.xlu0 %v5821_v43  ;;  %v4564_v33 = vpop.xlane.xlu0 %4563  ;;  %v4679_v30 = vmul.f32 %v9303_v60, %v15203_v27  ;;  %v5711_v43 = vpop.f32.mrf.mxu1  ;;  %v15208_v27 = vld [vmem:[#allocation64_spill] sm:$0xff]  ;;  %15212 = vst [vmem:[#allocation22_spill] sm:$0xff] %v13117_v19 }
 0x83b   : > { %9306 = vpow2.f32 %v4532_v48  ;;  %v13107_v57 = vadd.f32 %v5711_v43, %v5310_v61  ;;  %v15214_v43 = vld [vmem:[#allocation50_spill] sm:$0xff]  ;;  %v15218_v19 = vld [vmem:[#allocation68_spill] sm:$0xff] }
 0x83c   : > { %9308 = vpow2.f32 %v4534_v50 }
 0x83d   : > { %9310 = vrcp.f32 %v12900_v34  ;;  %v15204_v34 = vld [vmem:[#allocation72_spill] sm:$0xff]  ;;  %15206 = vst [vmem:[#allocation16_spill] sm:$0xff] %v13107_v57 }
 0x83e   : > { %v4567_v21 = vpop.xlane.xlu0 %4566  ;;  %9312 = vrcp.f32 %v12876_v45  ;;  %v4677_v50 = vmul.f32 %v9305_v31, %v15204_v34  ;;  %v5309_v45 = vunpack.c.l.bf16 %v5256_v14  ;;  %v15211_v14 = vld [vmem:[#allocation48_spill] sm:$0xff] }
 0x83f   : > { %9314 = vrcp.f32 %v4567_v21  ;;  %v15207_v21 = vld [vmem:[#allocation7_spill] sm:$0xff]  ;;  %v4678_v15 = vmul.f32 %v9303_v60, %v15211_v14 }
 0x840   : > { %9316 = vrcp.f32 %v4564_v33  ;;  %v15209_v46 = vpack.c.bf16 %v15207_v21, %v15208_v27  ;;  %v13114_v34 = vadd.f32 %v5709_v63, %v5309_v45  ;;  %v4676_v21 = vmul.f32 %v9305_v31, %v15214_v43  ;;  %v15215_v27 = vld [vmem:[#allocation52_spill] sm:$0xff]  ;;  %v15217_v14 = vld [vmem:[#allocation63_spill] sm:$0xff] }
 0x841   : > { %v15220_v31 = vld [vmem:[#allocation19_spill] sm:$0xff] }
 0x842   : > { %v4771_v39 = vpop.permute.xlu0 %4770  ;;  %15210 = vst [vmem:[#allocation37_spill] sm:$0xff] %v13114_v34  ;;  %v5827_v61 = vmax.f32 %v13114_v34, %v13107_v57  ;;  %v15219_v57 = vld [vmem:[#allocation24_spill] sm:$0xff] }
 0x843   : > { %8278 = vmatpush3.bf16.msra.mxu0 %v4771_v39  ;;  %v4739_v39 = vpack.c.bf16 %v4679_v30, %v4677_v50  ;;  %v15213_v30 = vld [vmem:[#allocation34_spill] sm:$0xff] }
 0x844   : > { %8279 = vmatprep.subr.bf16.mxu0 %v4785_v9 }
 0x847   : > { %8280 = vmatpush3.bf16.msra.mxu0 %v4769_v22 }
 0x848   : > { %v13101_v48 = vpop.eup %9306 }
 0x849   : > { %v13103_v8 = vpop.eup %9308 }
 0x84a   : > { %v9311_v9 = vpop.eup %9310  ;;  %4849 = vmatmul.mubr.bf16.vlgmr.msra.gmra.mxu0 %v15209_v46  ;;  %v4631_v33 = vadd.f32 %v13103_v8, %v13101_v48 }
 0x84b   : > { %4856 = vmatprep.mubr.bf16.mxu0 %v4739_v39  ;;  %v9313_v22 = vpop.eup %9312  ;;  %v4683_v50 = vmul.f32 %v9311_v9, %v15213_v30  ;;  %v4738_v39 = vpack.c.bf16 %v4678_v15, %v4676_v21  ;;  %v4682_v30 = vmul.f32 %v9311_v9, %v15217_v14  ;;  %v15223_v21 = vld [vmem:[#allocation59_spill] sm:$0xff] }
 0x84c   : > { %4632 = vadd.xlane.f32.xlu0 %v4631_v33  ;;  %v4681_v37 = vmul.f32 %v9313_v22, %v15215_v27  ;;  %v9315_v45 = vpop.eup %9314  ;;  %v4680_v34 = vmul.f32 %v9313_v22, %v15219_v57  ;;  %v5257_v22 = vld [vmem:[#allocation4 + $0x3b0] sm:$0xff] }
 0x84d   : > { %v9317_v60 = vpop.eup %9316  ;;  %v4687_v20 = vmul.f32 %v9315_v45, %v15218_v19 }
 0x84e   : > { %v4741_v63 = vpack.c.bf16 %v4683_v50, %v4681_v37  ;;  %v4685_v43 = vmul.f32 %v9317_v60, %v15220_v31  ;;  %v4740_v49 = vpack.c.bf16 %v4682_v30, %v4680_v34  ;;  %v15221_v37 = vld [vmem:[#allocation56_spill] sm:$0xff]  ;;  %v5312_v34 = vunpack.c.h.bf16 %v5257_v22 }
 0x84f   : > { %v8211_v46 = vpop.f32.mrf.mxu0  ;;  %v4686_v50 = vmul.f32 %v9315_v45, %v15221_v37 }
 0x850   : > { %5828 = vmax.xlane.f32.xlu0 %v5827_v61  ;;  %v4743_v27 = vpack.c.bf16 %v4687_v20, %v4685_v43  ;;  %v5311_v43 = vunpack.c.l.bf16 %v5257_v22 }
 0x851   : > { %v8212_v36 = vpop.f32.mrf.mxu0 }
 0x852   : > { %v13124_v33 = vadd.f32 %v8212_v36, %v8211_v46  ;;  %4857 = vmatmul.mubr.bf16.gmra.mxu0 %v4738_v39  ;;  %v15222_v36 = vld [vmem:[#allocation58_spill] sm:$0xff] }
 0x853   : > { %4864 = vmatprep.mubr.bf16.mxu0 %v4741_v63  ;;  %v15224_v39 = vld [vmem:[#allocation54_spill] sm:$0xff] }
 0x854   : > { %15216 = vst [vmem:[#allocation72_spill] sm:$0xff] %v13124_v33  ;;  %v4684_v63 = vmul.f32 %v9317_v60, %v15224_v39 }
 0x856   : > { %v4742_v33 = vpack.c.bf16 %v4686_v50, %v4684_v63  ;;  %v15228_v63 = vld [vmem:[#allocation8_spill] sm:$0xff] }
 0x85a   : > { %4865 = vmatmul.mubr.bf16.gmra.mxu0 %v4740_v49  ;;  %v5715_v49 = vpop.f32.mrf.mxu1 }
 0x85b   : > { %4872 = vmatprep.mubr.bf16.mxu0 %v4743_v27 }
 0x85c   : > { %v4348_v15 = vpop.xlane.xlu1 %4347  ;;  %v5717_v45 = vpop.f32.mrf.mxu1 }
 0x85d   : > { %v4412_v61 = vsub.f32 %v15222_v36, %v4348_v15  ;;  %v4413_v46 = vsub.f32 %v15223_v21, %v4348_v15  ;;  %v13140_v60 = vadd.f32 %v5717_v45, %v5312_v34  ;;  %v15227_v21 = vld [vmem:[#allocation23_spill] sm:$0xff]  ;;  %v15229_v34 = vld [vmem:[#allocation41_spill] sm:$0xff] }
 0x85f   : > { %v4536_v9 = vmul.f32 1.442695, %v4412_v61  ;;  %v4538_v14 = vmul.f32 1.442695, %v4413_v46  ;;  %15225 = vst [vmem:[#allocation7_spill] sm:$0xff] %v13140_v60 }
 0x860   : > { %v4570_v19 = vpop.xlane.xlu1 %4569 }
 0x861   : > { %9318 = vpow2.f32 %v4536_v9 }
 0x862   : > { %9320 = vpow2.f32 %v4538_v14  ;;  %4873 = vmatmul.mubr.bf16.gmra.mxu0 %v4742_v33  ;;  %v13144_v33 = vadd.f32 %v5715_v49, %v5311_v43 }
 0x864   : > { %v5766_v57 = vpop.xlane.xlu1 %5765  ;;  %15226 = vst [vmem:[#allocation64_spill] sm:$0xff] %v13144_v33  ;;  %v5830_v36 = vmax.f32 %v13144_v33, %v13140_v60  ;;  %v9618_v33 = vld [vmem:[#allocation2 + $0x70] sm:$0xff]  }
 0x865   : > { %v5860_v9 = vsub.f32 %v15228_v63, %v5766_v57  ;;  %v5861_v45 = vsub.f32 %v15229_v34, %v5766_v57 }
 0x867   : > { %v5926_v60 = vmul.f32 1.442695, %v5861_v45 }
 0x868   : > { %v4576_v20 = vpop.xlane.xlu1 %4575 }
 0x86c   : > { %v13134_v30 = vpop.xlane.xlu1 %5771 }
 0x86e   : > { %v13136_v31 = vpop.eup %9318 }
 0x86f   : > { %v13138_v27 = vpop.eup %9320 }
 0x870   : > { %v4582_v15 = vpop.xlane.xlu1 %4581  ;;  %v4634_v37 = vadd.f32 %v13138_v27, %v13136_v31 }
 0x872   : > { %4635 = vadd.xlane.f32.xlu1 %v4634_v37  ;;  %v5924_v37 = vmul.f32 1.442695, %v5860_v9 }
 0x873   : > { %v4351_v50 = vpop.xlane.xlu0 %4350 }
 0x874   : > { %v4414_v61 = vsub.f32 %v12737_v28, %v4351_v50  ;;  %v4415_v46 = vsub.f32 %v15227_v21, %v4351_v50  ;;  %v13150_v39 = vpop.xlane.xlu1 %5777 }
 0x876   : > { %v4540_v14 = vmul.f32 1.442695, %v4414_v61  ;;  %v4542_v22 = vmul.f32 1.442695, %v4415_v46  ;;  %5831 = vmax.xlane.f32.xlu1 %v5830_v36  ;;  %v5719_v46 = vpop.f32.mrf.mxu1 }
 0x877   : > { %v4573_v49 = vpop.xlane.xlu0 %4572 }
 0x878   : > { %9322 = vpow2.f32 %v4540_v14  ;;  %v13154_v43 = vpop.xlane.xlu1 %4587 }
 0x879   : > { %9324 = vpow2.f32 %v4542_v22 }
 0x87a   : > { %9326 = vrcp.f32 %v4570_v19  ;;  %v5258_v19 = vld [vmem:[#allocation4 + $0x3b8] sm:$0xff] }
 0x87b   : > { %v5769_v28 = vpop.xlane.xlu0 %5768  ;;  %9328 = vrcp.f32 %v4573_v49  ;;  %v5314_v9 = vunpack.c.h.bf16 %v5258_v19  ;;  %v5313_v34 = vunpack.c.l.bf16 %v5258_v19 }
 0x87c   : > { %v5862_v50 = vsub.f32 %v12783_v16, %v5769_v28  ;;  %v5863_v21 = vsub.f32 %v12769_v51, %v5769_v28  ;;  %v13158_v63 = vpop.xlane.xlu1 %5783  ;;  %9330 = vpow2.f32 %v5924_v37  ;;  %v5721_v16 = vpop.f32.mrf.mxu1 }
 0x87d   : > { %9332 = vpow2.f32 %v5926_v60  ;;  %v13168_v49 = vadd.f32 %v5721_v16, %v5314_v9 }
 0x87e   : > { %v5928_v36 = vmul.f32 1.442695, %v5862_v50  ;;  %v5930_v57 = vmul.f32 1.442695, %v5863_v21  ;;  %9334 = vrcp.f32 %v4576_v20  ;;  %v9617_v20 = vld [vmem:[#allocation2 + $0x78] sm:$0xff]  }
 0x87f   : > { %v4579_v61 = vpop.xlane.xlu0 %4578  ;;  %15230 = vst [vmem:[#allocation48_spill] sm:$0xff] %v13168_v49 }
 0x880   : > { %v13160_v14 = vpop.xlane.xlu1 %4593  ;;  %9336 = vpow2.f32 %v5928_v36  ;;  %v13175_v36 = vadd.f32 %v5719_v46, %v5313_v34  ;;  %v15234_v46 = vld [vmem:[#allocation77_spill] sm:$0xff] }
 0x881   : > { %9338 = vpow2.f32 %v5930_v57  ;;  %v15233_v57 = vld [vmem:[#allocation79_spill] sm:$0xff] }
 0x882   : > { %9340 = vrcp.f32 %v4579_v61  ;;  %15232 = vst [vmem:[#allocation50_spill] sm:$0xff] %v13175_v36 }
 0x883   : > { %v13162_v22 = vpop.xlane.xlu0 %5774  ;;  %9342 = vrcp.f32 %v4582_v15 }
 0x884   : > { %v13170_v37 = vpop.xlane.xlu1 %5789 }
 0x885   : > { %v13164_v51 = vpop.eup %9322  ;;  %15231 = vst [vmem:[#allocation34_spill] sm:$0xff] %v13170_v37 }
 0x886   : > { %v13166_v45 = vpop.eup %9324 }
 0x887   : > { %v9327_v60 = vpop.eup %9326  ;;  %6306 = vrot.lane.b32.xlu1 %v9617_v20, %s9684_s29  ;;  %v4585_v28 = vpop.xlane.xlu0 %4584  ;;  %v4637_v50 = vadd.f32 %v13166_v45, %v13164_v51  ;;  %v5833_v20 = vmax.f32 %v13175_v36, %v13168_v49  ;;  %v9619_v49 = vld [vmem:[#allocation2 + $0x30] sm:$0xff]  }
 0x888   : > { %v9329_v21 = vpop.eup %9328  ;;  %v4689_v61 = vmul.f32 %v9327_v60, %v15233_v57  ;;  %v4688_v34 = vmul.f32 %v9327_v60, %v15234_v46  ;;  %9344 = vrcp.f32 %v4585_v28  ;;  %v4600_v57 = vpop.xlane.xlu1 %4599  ;;  %v15235_v28 = vld [vmem:[#allocation81_spill] sm:$0xff] }
 0x889   : > { %4638 = vadd.xlane.f32.xlu0 %v4637_v50  ;;  %v4691_v19 = vmul.f32 %v9329_v21, %v12746_v32  ;;  %v4690_v9 = vmul.f32 %v9329_v21, %v12741_v59  ;;  %v13180_v16 = vpop.eup %9330  ;;  %9346 = vrcp.f32 %v13154_v43 }
 0x88a   : > { %v13188_v50 = vpop.eup %9332 }
 0x88b   : > { %6304 = vrot.lane.b32.xlu1 %v9618_v33, %s9684_s29  ;;  %v13185_v37 = vpop.xlane.xlu0 %5780  ;;  %v4745_v15 = vpack.c.bf16 %v4691_v19, %v4689_v61  ;;  %v4744_v32 = vpack.c.bf16 %v4690_v9, %v4688_v34  ;;  %v9335_v59 = vpop.eup %9334  ;;  %v6052_v36 = vadd.f32 %v13188_v50, %v13180_v16 }
 0x88c   : > { %v4693_v61 = vmul.f32 %v9335_v59, %v15235_v28 }
 0x88d   : > { %5834 = vmax.xlane.f32.xlu0 %v5833_v20  ;;  %4880 = vmatprep.mubr.bf16.mxu0 %v4745_v15  ;;  %v13190_v21 = vpop.eup %9336  ;;  %v13201_v20 = vpop.xlane.xlu1 %5795 }
 0x88e   : > { %4881 = vmatmul.mubr.bf16.gmra.mxu0 %v4744_v32  ;;  %v13195_v60 = vpop.eup %9338  ;;  %15236 = vst [vmem:[#allocation52_spill] sm:$0xff] %v13201_v20 }
 0x88f   : > { %6288 = vrot.lane.b32.xlu1 %v9619_v49, %s9684_s29  ;;  %v4591_v33 = vpop.xlane.xlu0 %4590  ;;  %v9341_v46 = vpop.eup %9340  ;;  %v15237_v49 = vld [vmem:[#allocation13_spill] sm:$0xff]  ;;  %v6055_v32 = vadd.f32 %v13195_v60, %v13190_v21 }
 0x890   : > { %v4695_v19 = vmul.f32 %v9341_v46, %v12792_v40  ;;  %v4694_v9 = vmul.f32 %v9341_v46, %v12787_v38  ;;  %v4692_v15 = vmul.f32 %v9335_v59, %v15237_v49  ;;  %9348 = vrcp.f32 %v4591_v33  ;;  %v9343_v43 = vpop.eup %9342  ;;  %v15238_v38 = vld [vmem:[#allocation83_spill] sm:$0xff]  ;;  %v15239_v33 = vld [vmem:[#allocation73_spill] sm:$0xff] }
 0x891   : > { %6053 = vadd.xlane.f32.xlu0 %v6052_v36  ;;  %v4606_v7 = vpop.xlane.xlu1 %4605  ;;  %9350 = vrcp.f32 %v13160_v14  ;;  %v4697_v46 = vmul.f32 %v9343_v43, %v15238_v38 }
 0x892   : > { %v4747_v54 = vpack.c.bf16 %v4695_v19, %v4693_v61  ;;  %v4746_v36 = vpack.c.bf16 %v4694_v9, %v4692_v15  ;;  %v4696_v61 = vmul.f32 %v9343_v43, %v15239_v33  ;;  %v15241_v43 = vld [vmem:[#allocation85_spill] sm:$0xff]  ;;  %v5725_v33 = vpop.f32.mrf.mxu1 }
 0x893   : > { %v13203_v34 = vpop.xlane.xlu0 %5786 }
 0x894   : > { %4888 = vmatprep.mubr.bf16.mxu0 %v4747_v54 }
 0x895   : > { %6056 = vadd.xlane.f32.xlu0 %v6055_v32  ;;  %v9345_v40 = vpop.eup %9344  ;;  %v13215_v15 = vpop.xlane.xlu1 %5801 }
 0x896   : > { %4889 = vmatmul.mubr.bf16.gmra.mxu0 %v4746_v36  ;;  %v4699_v20 = vmul.f32 %v9345_v40, %v12838_v55  ;;  %v4698_v59 = vmul.f32 %v9345_v40, %v12833_v58  ;;  %v9347_v9 = vpop.eup %9346  ;;  %v15240_v36 = vld [vmem:[#allocation87_spill] sm:$0xff] }
 0x897   : > { %v4597_v28 = vpop.xlane.xlu0 %4596  ;;  %v4701_v38 = vmul.f32 %v9347_v9, %v15240_v36 }
 0x898   : > { %9352 = vrcp.f32 %v4597_v28  ;;  %v4749_v19 = vpack.c.bf16 %v4699_v20, %v4697_v46  ;;  %v4748_v54 = vpack.c.bf16 %v4698_v59, %v4696_v61  ;;  %v4700_v28 = vmul.f32 %v9347_v9, %v15241_v43  ;;  %v15243_v43 = vld [vmem:[#allocation88_spill] sm:$0xff] }
 0x899   : > { %9354 = vrcp.f32 %v4600_v57  ;;  %v4612_v46 = vpop.xlane.xlu1 %4611  ;;  %v5259_v57 = vld [vmem:[#allocation4 + $0x3c0] sm:$0xff] }
 0x89a   : > { %4896 = vmatprep.mubr.bf16.mxu0 %v4749_v19  ;;  %v5316_v36 = vunpack.c.h.bf16 %v5259_v57 }
 0x89b   : > { %v13212_v49 = vpop.xlane.xlu0 %5792 }
 0x89d   : > { %v9349_v14 = vpop.eup %9348 }
 0x89e   : > { %4897 = vmatmul.mubr.bf16.gmra.mxu0 %v4748_v54  ;;  %v4703_v55 = vmul.f32 %v9349_v14, %v12888_v41  ;;  %v4702_v58 = vmul.f32 %v9349_v14, %v12883_v17  ;;  %v9351_v61 = vpop.eup %9350  ;;  %v5727_v41 = vpop.f32.mrf.mxu1 }
 0x89f   : > { %v4603_v32 = vpop.xlane.xlu0 %4602  ;;  %v4705_v17 = vmul.f32 %v9351_v61, %v12804_v62 }
 0x8a0   : > { %9356 = vrcp.f32 %v4603_v32  ;;  %v4751_v20 = vpack.c.bf16 %v4703_v55, %v4701_v38  ;;  %v4750_v59 = vpack.c.bf16 %v4702_v58, %v4700_v28  ;;  %v5315_v32 = vunpack.c.l.bf16 %v5259_v57  ;;  %v13226_v38 = vpop.xlane.xlu1 %5807  ;;  %v9620_v55 = vld [vmem:[#allocation2 + $0x38] sm:$0xff]  }
 0x8a1   : > { %9358 = vrcp.f32 %v4606_v7  ;;  %v4704_v28 = vmul.f32 %v9351_v61, %v15243_v43  ;;  %v13232_v7 = vadd.f32 %v5727_v41, %v5316_v36  ;;  %v15244_v36 = vld [vmem:[#allocation40_spill] sm:$0xff] }
 0x8a2   : > { %4904 = vmatprep.mubr.bf16.mxu0 %v4751_v20  ;;  %v5864_v41 = vsub.f32 %v15244_v36, %v13134_v30 }
 0x8a3   : > { %v13220_v40 = vpop.xlane.xlu0 %5798 }
 0x8a5   : > { %v9353_v54 = vpop.eup %9352 }
 0x8a6   : > { %4905 = vmatmul.mubr.bf16.gmra.mxu0 %v4750_v59  ;;  %v4707_v14 = vmul.f32 %v9353_v54, %v12932_v10  ;;  %v4706_v9 = vmul.f32 %v9353_v54, %v12927_v47  ;;  %v9355_v62 = vpop.eup %9354  ;;  %v13234_v10 = vadd.f32 %v5725_v33, %v5315_v32  ;;  %v15246_v32 = vld [vmem:[#allocation70_spill] sm:$0xff] }
 0x8a7   : > { %v4609_v19 = vpop.xlane.xlu0 %4608 }
 0x8a8   : > { %9360 = vrcp.f32 %v4609_v19  ;;  %v4753_v20 = vpack.c.bf16 %v4707_v14, %v4705_v17  ;;  %v4752_v59 = vpack.c.bf16 %v4706_v9, %v4704_v28  ;;  %v5836_v54 = vmax.f32 %v13234_v10, %v13232_v7  ;;  %v15245_v14 = vld [vmem:[#allocation25_spill] sm:$0xff]  ;;  %v15247_v28 = vld [vmem:[#allocation18_spill] sm:$0xff] }
 0x8a9   : > { %9362 = vrcp.f32 %v4612_v46  ;;  %v4708_v17 = vmul.f32 %v9355_v62, %v12846_v23  ;;  %v5865_v9 = vsub.f32 %v15245_v14, %v13134_v30 }
 0x8aa   : > { %4912 = vmatprep.mubr.bf16.mxu0 %v4753_v20  ;;  %v5867_v20 = vsub.f32 %v15247_v28, %v13162_v22  ;;  %v9621_v28 = vld [vmem:[#allocation2 + $0x68] sm:$0xff]  }
 0x8ab   : > { %6290 = vrot.lane.b32.xlu0 %v9620_v55, %s9684_s29  ;;  %v13229_v58 = vpop.xlane.xlu0 %5804  ;;  %v4618_v55 = vpop.xlane.xlu1 %4617  ;;  %v5934_v23 = vmul.f32 1.442695, %v5865_v9  ;;  %v5260_v9 = vld [vmem:[#allocation4 + $0x3c8] sm:$0xff] }
 0x8ac   : > { %15242 = vst [vmem:[#allocation63_spill] sm:$0xff] %v13229_v58  ;;  %v4709_v58 = vmul.f32 %v9355_v62, %v12854_v35  ;;  %v5866_v35 = vsub.f32 %v15246_v32, %v13162_v22 }
 0x8ad   : > { %v9357_v57 = vpop.eup %9356 }
 0x8ae   : > { %4913 = vmatmul.mubr.bf16.gmra.mxu0 %v4752_v59  ;;  %v4711_v61 = vmul.f32 %v9357_v57, %v12970_v12  ;;  %v4710_v19 = vmul.f32 %v9357_v57, %v12965_v56  ;;  %v9359_v12 = vpop.eup %9358  ;;  %v5932_v56 = vmul.f32 1.442695, %v5864_v41  ;;  %v5936_v30 = vmul.f32 1.442695, %v5866_v35 }
 0x8af   : > { %v4615_v47 = vpop.xlane.xlu0 %4614  ;;  %v13252_v59 = vpop.xlane.xlu1 %5813 }
 0x8b0   : > { %9364 = vrcp.f32 %v4615_v47  ;;  %v4755_v46 = vpack.c.bf16 %v4711_v61, %v4709_v58  ;;  %v4754_v43 = vpack.c.bf16 %v4710_v19, %v4708_v17  ;;  %v4713_v58 = vmul.f32 %v9359_v12, %v12902_v2  ;;  %v5729_v17 = vpop.f32.mrf.mxu1 }
 0x8b1   : > { %9366 = vrcp.f32 %v4618_v55  ;;  %v5938_v19 = vmul.f32 1.442695, %v5867_v20 }
 0x8b2   : > { %4920 = vmatprep.mubr.bf16.mxu0 %v4755_v46  ;;  %v5731_v46 = vpop.f32.mrf.mxu1 }
 0x8b3   : > { %5837 = vmax.xlane.f32.xlu1 %v5836_v54  ;;  %v13243_v33 = vpop.xlane.xlu0 %5810  ;;  %v4712_v54 = vmul.f32 %v9359_v12, %v12896_v52  ;;  %v4624_v55 = vpop.xlane.xlu1 %4623 }
 0x8b5   : > { %v9361_v62 = vpop.eup %9360 }
 0x8b6   : > { %4921 = vmatmul.mubr.bf16.gmra.mxu0 %v4754_v43  ;;  %v4715_v47 = vmul.f32 %v9361_v62, %v13007_v24  ;;  %v4714_v61 = vmul.f32 %v9361_v62, %v13002_v29  ;;  %v9363_v14 = vpop.eup %9362  ;;  %v5318_v24 = vunpack.c.h.bf16 %v5260_v9  ;;  %v5317_v29 = vunpack.c.l.bf16 %v5260_v9 }
 0x8b7   : > { %v4621_v57 = vpop.xlane.xlu0 %4620  ;;  %v4717_v32 = vmul.f32 %v9363_v14, %v12944_v4  ;;  %v4716_v43 = vmul.f32 %v9363_v14, %v12940_v5 }
 0x8b8   : > { %9368 = vrcp.f32 %v4621_v57  ;;  %v4757_v36 = vpack.c.bf16 %v4715_v47, %v4713_v58  ;;  %v4756_v41 = vpack.c.bf16 %v4714_v61, %v4712_v54  ;;  %v13267_v62 = vadd.f32 %v5729_v17, %v5317_v29 }
 0x8b9   : > { %9370 = vpow2.f32 %v5932_v56  ;;  %v13264_v56 = vadd.f32 %v5731_v46, %v5318_v24 }
 0x8ba   : > { %9372 = vpow2.f32 %v5934_v23  ;;  %4928 = vmatprep.mubr.bf16.mxu0 %v4757_v36 }
 0x8bb   : > { %v13258_v22 = vpop.xlane.xlu0 %5816  ;;  %9374 = vpow2.f32 %v5936_v30  ;;  %v5839_v5 = vmax.f32 %v13267_v62, %v13264_v56 }
 0x8bc   : > { %9376 = vpow2.f32 %v5938_v19 }
 0x8bd   : > { %9378 = vrcp.f32 %v4624_v55  ;;  %v9365_v52 = vpop.eup %9364  ;;  %v9623_v55 = vld [vmem:[#allocation2 + $0x20] sm:$0xff]  }
 0x8be   : > { %4929 = vmatmul.mubr.bf16.gmra.mxu0 %v4756_v41  ;;  %v4719_v35 = vmul.f32 %v9365_v52, %v13041_v42  ;;  %v4718_v12 = vmul.f32 %v9365_v52, %v13035_v11  ;;  %v9367_v23 = vpop.eup %9366  ;;  %v9622_v42 = vld [vmem:[#allocation2 + $0x60] sm:$0xff]  }
 0x8bf   : > { %v4627_v2 = vpop.xlane.xlu0 %4626  ;;  %v4721_v11 = vmul.f32 %v9367_v23, %v12982_v3  ;;  %v4720_v61 = vmul.f32 %v9367_v23, %v12976_v0 }
 0x8c0   : > { %9380 = vrcp.f32 %v4627_v2  ;;  %v4759_v20 = vpack.c.bf16 %v4719_v35, %v4717_v32  ;;  %v4758_v57 = vpack.c.bf16 %v4718_v12, %v4716_v43 }
 0x8c2   : > { %4936 = vmatprep.mubr.bf16.mxu0 %v4759_v20 }
 0x8c3   : > { %v13294_v29 = vpop.xlane.xlu0 %5822 }
 0x8c4   : > { %6302 = vrot.lane.b32.xlu1 %v9621_v28, %s9684_s29 }
 0x8c5   : > { %v9369_v30 = vpop.eup %9368 }
 0x8c6   : > { %4937 = vmatmul.mubr.bf16.gmra.mxu0 %v4758_v57  ;;  %v13269_v4 = vpop.eup %9370  ;;  %v4723_v58 = vmul.f32 %v9369_v30, %v13057_v26  ;;  %v4722_v47 = vmul.f32 %v9369_v30, %v13053_v44  ;;  %v13287_v44 = vpop.xlane.xlu1 %5819 }
 0x8c7   : > { %v13277_v54 = vpop.eup %9372 }
 0x8c8   : > { %6300 = vrot.lane.b32.xlu1 %v9622_v42, %s9684_s29  ;;  %v4761_v19 = vpack.c.bf16 %v4723_v58, %v4721_v11  ;;  %v13280_v36 = vpop.eup %9374  ;;  %v4760_v41 = vpack.c.bf16 %v4722_v47, %v4720_v61  ;;  %v6058_v3 = vadd.f32 %v13277_v54, %v13269_v4  ;;  %v9624_v58 = vld [vmem:[#allocation2 + $0x28] sm:$0xff]   ;;  %v15249_v61 = vld [vmem:[#allocation49_spill] sm:$0xff] }
 0x8c9   : > { %v13282_v17 = vpop.eup %9376 }
 0x8ca   : > { %5840 = vmax.xlane.f32.xlu0 %v5839_v5  ;;  %4944 = vmatprep.mubr.bf16.mxu0 %v4761_v19  ;;  %v9379_v26 = vpop.eup %9378  ;;  %v6061_v0 = vadd.f32 %v13282_v17, %v13280_v36  ;;  %v4630_v52 = vpop.xlane.xlu1 %4629  ;;  %v5869_v19 = vsub.f32 %v15249_v61, %v13150_v39 }
 0x8cb   : > { %v4725_v9 = vmul.f32 %v9379_v26, %v13015_v18  ;;  %v4724_v46 = vmul.f32 %v9379_v26, %v13011_v25  ;;  %9382 = vrcp.f32 %v4630_v52  ;;  %v5735_v18 = vpop.f32.mrf.mxu1  ;;  %v5261_v25 = vld [vmem:[#allocation4 + $0x3d0] sm:$0xff] }
 0x8cc   : > { %6284 = vrot.lane.b32.xlu1 %v9623_v55, %s9684_s29  ;;  %v5320_v23 = vunpack.c.h.bf16 %v5261_v25  ;;  %v5319_v11 = vunpack.c.l.bf16 %v5261_v25  ;;  %v15250_v55 = vld [vmem:[#allocation94_spill] sm:$0xff]  ;;  %v5942_v26 = vmul.f32 1.442695, %v5869_v19  ;;  %v9626_v25 = vld [vmem:[#allocation2 + $0x50] sm:$0xff]  }
 0x8cd   : > { %v9381_v14 = vpop.eup %9380  ;;  %v5737_v42 = vpop.f32.mrf.mxu1 }
 0x8ce   : > { %6059 = vadd.xlane.f32.xlu0 %v6058_v3  ;;  %4945 = vmatmul.mubr.bf16.gmra.mxu0 %v4760_v41  ;;  %v4727_v2 = vmul.f32 %v9381_v14, %v13069_v1  ;;  %v4726_v24 = vmul.f32 %v9381_v14, %v13067_v53  ;;  %v13302_v47 = vadd.f32 %v5737_v42, %v5320_v23  ;;  %v15251_v14 = vld [vmem:[#allocation9_spill] sm:$0xff] }
 0x8cf   : > { %v5870_v3 = vsub.f32 %v15250_v55, %v13185_v37  ;;  %v5739_v52 = vpop.f32.mrf.mxu1  ;;  %v9627_v42 = vld [vmem:[#allocation2 + $0x10] sm:$0xff]  }
 0x8d0   : > { %v4763_v32 = vpack.c.bf16 %v4727_v2, %v4725_v9  ;;  %v4762_v35 = vpack.c.bf16 %v4726_v24, %v4724_v46  ;;  %v13316_v9 = vpop.xlane.xlu1 %5825 }
 0x8d1   : > { %v5944_v2 = vmul.f32 1.442695, %v5870_v3 }
 0x8d2   : > { %6062 = vadd.xlane.f32.xlu0 %v6061_v0  ;;  %4952 = vmatprep.mubr.bf16.mxu0 %v4763_v32  ;;  %v5871_v0 = vsub.f32 %v15251_v14, %v13185_v37  ;;  %v5262_v32 = vld [vmem:[#allocation4 + $0x3d8] sm:$0xff] }
 0x8d4   : > { %v5946_v24 = vmul.f32 1.442695, %v5871_v0 }
 0x8d5   : > { %v4633_v43 = vpop.xlane.xlu0 %4632 }
 0x8d6   : > { %9384 = vrcp.f32 %v4633_v43  ;;  %4953 = vmatmul.mubr.bf16.gmra.mxu0 %v4762_v35  ;;  %v5322_v35 = vunpack.c.h.bf16 %v5262_v32  ;;  %v5321_v43 = vunpack.c.l.bf16 %v5262_v32 }
 0x8d8   : > { %v9383_v12 = vpop.eup %9382  ;;  %v13323_v37 = vadd.f32 %v5739_v52, %v5321_v43 }
 0x8d9   : > { %v4729_v1 = vmul.f32 %v9383_v12, %v13075_v6  ;;  %v4728_v20 = vmul.f32 %v9383_v12, %v13073_v13  ;;  %v13304_v6 = vadd.f32 %v5735_v18, %v5319_v11  ;;  %v15248_v13 = vld [vmem:[#allocation75_spill] sm:$0xff]  ;;  %v9625_v18 = vld [vmem:[#allocation2 + $0x58] sm:$0xff]   ;;  %v13347_v19 = vpop.xlane.xlu0 %5828 }
 0x8e3   : > { %v9385_v28 = vpop.eup %9384 }
 0x8e4   : > { %v4731_v53 = vmul.f32 %v9385_v28, %v13103_v8  ;;  %v4730_v57 = vmul.f32 %v9385_v28, %v13101_v48  ;;  %v5842_v8 = vmax.f32 %v13304_v6, %v13302_v47  ;;  %v5868_v48 = vsub.f32 %v15248_v13, %v13150_v39  ;;  %v5741_v39 = vpop.f32.mrf.mxu1 }
 0x8e5   : > { %v13320_v28 = vadd.f32 %v5741_v39, %v5322_v35 }
 0x8e6   : > { %v4765_v30 = vpack.c.bf16 %v4731_v53, %v4729_v1  ;;  %v4764_v5 = vpack.c.bf16 %v4730_v57, %v4728_v20  ;;  %v5940_v41 = vmul.f32 1.442695, %v5868_v48  ;;  %v13325_v53 = vpop.f32.mrf.mxu0 }
 0x8e7   : > { %15252 = vst [vmem:[#allocation68_spill] sm:$0xff] %v13325_v53  ;;  %v5845_v57 = vmax.f32 %v13323_v37, %v13320_v28 }
 0x8e8   : > { %6286 = vrot.lane.b32.xlu0 %v9624_v58, %s9684_s29  ;;  %4960 = vmatprep.mubr.bf16.mxu0 %v4765_v30  ;;  %9386 = vpow2.f32 %v5940_v41  ;;  %v13334_v30 = vpop.f32.mrf.mxu0 }
 0x8e9   : > { %4961 = vmatmul.mubr.bf16.gmra.mxu0 %v4764_v5  ;;  %9388 = vpow2.f32 %v5942_v26  ;;  %15253 = vst [vmem:[#allocation24_spill] sm:$0xff] %v13334_v30 }
 0x8ea   : > { %9390 = vpow2.f32 %v5944_v2 }
 0x8eb   : > { %9392 = vpow2.f32 %v5946_v24 }
 0x8f0   : > { %5843 = vmax.xlane.f32.xlu1 %v5842_v8 }
 0x8f5   : > { %v13327_v20 = vpop.eup %9386 }
 0x8f6   : > { %v13332_v23 = vpop.eup %9388 }
 0x8f7   : > { %v13336_v5 = vpop.eup %9390  ;;  %v6064_v11 = vadd.f32 %v13332_v23, %v13327_v20 }
 0x8f8   : > { %v13341_v58 = vpop.eup %9392 }
 0x8f9   : > { %v6067_v61 = vadd.f32 %v13341_v58, %v13336_v5 }
 0x8fb   : > { %v4636_v46 = vpop.xlane.xlu1 %4635 }
 0x8fc   : > { %9394 = vrcp.f32 %v4636_v46 }
 0x8ff   : > { %v13318_v12 = vpop.xlane.xlu1 %5831 }
 0x901   : > { %6298 = vrot.lane.b32.xlu1 %v9625_v18, %s9684_s29 }
 0x903   : > { %v6307_v1 = vpop.permute.xlu1 %6306 }
 0x904   : > { %8425 = vmatprep.subr.bf16.mxu0 %v6307_v1 }
 0x905   : > { %6296 = vrot.lane.b32.xlu1 %v9626_v25, %s9684_s29 }
 0x907   : > { %5846 = vmax.xlane.f32.xlu0 %v5845_v57  ;;  %v5745_v57 = vpop.f32.mrf.mxu1 }
 0x909   : > { %6280 = vrot.lane.b32.xlu1 %v9627_v42, %s9684_s29  ;;  %v9395_v18 = vpop.eup %9394  ;;  %v6305_v42 = vpop.permute.xlu1 %6304 }
 0x90a   : > { %v8281_v8 = vpop.f32.mrf.mxu0 }
 0x90b   : > { %6065 = vadd.xlane.f32.xlu0 %v6064_v11 }
 0x90c   : > { %v8282_v13 = vpop.f32.mrf.mxu0 }
 0x90d   : > { %v13343_v48 = vadd.f32 %v8282_v13, %v8281_v8  ;;  %v4733_v8 = vmul.f32 %v9395_v18, %v13138_v27  ;;  %v9628_v27 = vld [vmem:[#allocation2 + $0x18] sm:$0xff]  }
 0x90e   : > { %v13349_v41 = vpop.f32.mrf.mxu0 }
 0x90f   : > { %15254 = vst [vmem:[#allocation19_spill] sm:$0xff] %v13343_v48  ;;  %15255 = vst [vmem:[#allocation56_spill] sm:$0xff] %v13349_v41  ;;  %6068 = vadd.xlane.f32.xlu0 %v6067_v61  ;;  %v4732_v61 = vmul.f32 %v9395_v18, %v13136_v31  ;;  %v6289_v31 = vpop.permute.xlu1 %6288 }
 0x910   : > { %v13351_v55 = vpop.f32.mrf.mxu0 }
 0x911   : > { %15256 = vst [vmem:[#allocation58_spill] sm:$0xff] %v13351_v55 }
 0x912   : > { %v4639_v3 = vpop.xlane.xlu0 %4638  ;;  %v8287_v26 = vpop.f32.mrf.mxu0 }
 0x913   : > { %9396 = vrcp.f32 %v4639_v3 }
 0x914   : > { %v8288_v14 = vpop.f32.mrf.mxu0 }
 0x915   : > { %v13353_v0 = vadd.f32 %v8288_v14, %v8287_v26  ;;  %v5263_v26 = vld [vmem:[#allocation4 + $0x3e0] sm:$0xff] }
 0x916   : > { %v13355_v2 = vpop.xlane.xlu0 %5834  ;;  %v13357_v24 = vpop.f32.mrf.mxu0 }
 0x917   : > { %15257 = vst [vmem:[#allocation59_spill] sm:$0xff] %v13353_v0  ;;  %15258 = vst [vmem:[#allocation54_spill] sm:$0xff] %v13357_v24 }
 0x918   : > { %v13359_v52 = vpop.f32.mrf.mxu0 }
 0x919   : > { %15259 = vst [vmem:[#allocation23_spill] sm:$0xff] %v13359_v52 }
 0x91a   : > { %v6054_v32 = vpop.xlane.xlu0 %6053  ;;  %v8293_v35 = vpop.f32.mrf.mxu0 }
 0x91b   : > { %9398 = vrcp.f32 %v6054_v32 }
 0x91c   : > { %v8294_v39 = vpop.f32.mrf.mxu0 }
 0x91d   : > { %v13361_v43 = vadd.f32 %v8294_v39, %v8293_v35  ;;  %v5324_v35 = vunpack.c.h.bf16 %v5263_v26 }
 0x91e   : > { %v6057_v46 = vpop.xlane.xlu0 %6056  ;;  %v13363_v1 = vpop.f32.mrf.mxu0 }
 0x91f   : > { %15260 = vst [vmem:[#allocation8_spill] sm:$0xff] %v13361_v43  ;;  %15261 = vst [vmem:[#allocation41_spill] sm:$0xff] %v13363_v1  ;;  %9400 = vrcp.f32 %v6057_v46  ;;  %v5747_v46 = vpop.f32.mrf.mxu1  ;;  %v5323_v1 = vunpack.c.l.bf16 %v5263_v26 }
 0x920   : > { %v9397_v25 = vpop.eup %9396  ;;  %v13365_v11 = vpop.f32.mrf.mxu0 }
 0x921   : > { %15262 = vst [vmem:[#allocation79_spill] sm:$0xff] %v13365_v11  ;;  %v4735_v13 = vmul.f32 %v9397_v25, %v13166_v45  ;;  %v4734_v3 = vmul.f32 %v9397_v25, %v13164_v51  ;;  %v13374_v51 = vadd.f32 %v5747_v46, %v5324_v35  ;;  %v13376_v45 = vadd.f32 %v5745_v57, %v5323_v1  ;;  %v15265_v57 = vld [vmem:[#allocation39_spill] sm:$0xff]  ;;  %v15266_v35 = vld [vmem:[#allocation97_spill] sm:$0xff] }
 0x922   : > { %v6291_v14 = vpop.permute.xlu0 %6290  ;;  %v8299_v32 = vpop.f32.mrf.mxu0 }
 0x923   : > { %8426 = vmatpush3.bf16.msra.mxu0 %v6291_v14  ;;  %v4767_v39 = vpack.c.bf16 %v4735_v13, %v4733_v8  ;;  %v4766_v30 = vpack.c.bf16 %v4734_v3, %v4732_v61  ;;  %v5848_v25 = vmax.f32 %v13376_v45, %v13374_v51  ;;  %v15264_v8 = vld [vmem:[#allocation43_spill] sm:$0xff]  ;;  %v5873_v3 = vsub.f32 %v15265_v57, %v13158_v63 }
 0x924   : > { %8427 = vmatprep.subr.bf16.mxu0 %v6305_v42  ;;  %v8300_v53 = vpop.f32.mrf.mxu0  ;;  %v15277_v14 = vld [vmem:[#allocation95_spill] sm:$0xff] }
 0x925   : > { %v13371_v11 = vadd.f32 %v8300_v53, %v8299_v32  ;;  %6282 = vrot.lane.b32.xlu0 %v9628_v27, %s9684_s29  ;;  %4968 = vmatprep.mubr.bf16.mxu0 %v4767_v39  ;;  %v5872_v53 = vsub.f32 %v15264_v8, %v13158_v63  ;;  %v5950_v39 = vmul.f32 1.442695, %v5873_v3  ;;  %v5749_v27 = vpop.f32.mrf.mxu1  ;;  %v9630_v3 = vld [vmem:[#allocation2 + $0x40] sm:$0xff]  }
 0x926   : > { %4969 = vmatmul.mubr.bf16.gmra.mxu0 %v4766_v30 }
 0x927   : > { %15263 = vst [vmem:[#allocation77_spill] sm:$0xff] %v13371_v11  ;;  %8428 = vmatpush3.bf16.msra.mxu0 %v6289_v31  ;;  %v5948_v32 = vmul.f32 1.442695, %v5872_v53  ;;  %v5264_v31 = vld [vmem:[#allocation4 + $0x3e8] sm:$0xff] }
 0x928   : > { %v9399_v18 = vpop.eup %9398  ;;  %v5326_v63 = vunpack.c.h.bf16 %v5264_v31  ;;  %v9629_v53 = vld [vmem:[#allocation2 + $0x48] sm:$0xff]  }
 0x929   : > { %v13383_v13 = vmul.f32 %v9399_v18, %v13180_v16  ;;  %v6181_v30 = vmul.f32 %v9399_v18, %v13188_v50  ;;  %v5874_v16 = vsub.f32 %v15266_v35, %v13203_v34  ;;  %9402 = vpow2.f32 %v5948_v32  ;;  %v5751_v18 = vpop.f32.mrf.mxu1  ;;  %v9631_v35 = vld [vmem:[#allocation2] sm:$0xff]  }
 0x92a   : > { %9404 = vpow2.f32 %v5950_v39  ;;  %v13400_v8 = vadd.f32 %v5751_v18, %v5326_v63  ;;  %v15271_v63 = vld [vmem:[#allocation34_spill] sm:$0xff] }
 0x92b   : > { %v5952_v50 = vmul.f32 1.442695, %v5874_v16  ;;  %v15272_v18 = vld [vmem:[#allocation90_spill] sm:$0xff] }
 0x92c   : > { %v9401_v42 = vpop.eup %9400 }
 0x92d   : > { %v13386_v61 = vmul.f32 %v9401_v42, %v13190_v21  ;;  %5849 = vmax.xlane.f32.xlu1 %v5848_v25  ;;  %v6183_v1 = vmul.f32 %v9401_v42, %v13195_v60  ;;  %v15267_v21 = vld [vmem:[#allocation47_spill] sm:$0xff]  ;;  %9406 = vpow2.f32 %v5952_v50  ;;  %v5325_v25 = vunpack.c.l.bf16 %v5264_v31 }
 0x92e   : > { %v5875_v46 = vsub.f32 %v15267_v21, %v13203_v34  ;;  %v13419_v21 = vpop.f32.mrf.mxu0 }
 0x92f   : > { %v6245_v26 = vpack.c.bf16 %v6183_v1, %v6181_v30  ;;  %v13403_v30 = vadd.f32 %v5749_v27, %v5325_v25  ;;  %15268 = vst [vmem:[#allocation81_spill] sm:$0xff] %v13419_v21  ;;  %v5876_v25 = vsub.f32 %v15272_v18, %v15271_v63 }
 0x930   : > { %v5954_v60 = vmul.f32 1.442695, %v5875_v46  ;;  %v13423_v50 = vpop.f32.mrf.mxu0 }
 0x931   : > { %6356 = vmatprep.mubr.bf16.mxu0 %v6245_v26  ;;  %v5851_v57 = vmax.f32 %v13403_v30, %v13400_v8  ;;  %15269 = vst [vmem:[#allocation13_spill] sm:$0xff] %v13423_v50 }
 0x932   : > { %9408 = vpow2.f32 %v5954_v60 }
 0x936   : > { %v13405_v1 = vpop.eup %9402 }
 0x937   : > { %v13410_v26 = vpop.eup %9404 }
 0x938   : > { %v6070_v16 = vadd.f32 %v13410_v26, %v13405_v1 }
 0x93a   : > { %v13412_v32 = vpop.eup %9406 }
 0x93c   : > { %v13398_v42 = vpop.xlane.xlu1 %5837 }
 0x93e   : > { %6294 = vrot.lane.b32.xlu1 %v9629_v53, %s9684_s29 }
 0x93f   : > { %v13417_v39 = vpop.eup %9408 }
 0x940   : > { %v6303_v34 = vpop.permute.xlu1 %6302  ;;  %v6073_v46 = vadd.f32 %v13417_v39, %v13412_v32 }
 0x941   : > { %8429 = vmatprep.subr.bf16.mxu0 %v6303_v34 }
 0x942   : > { %6292 = vrot.lane.b32.xlu1 %v9630_v3, %s9684_s29 }
 0x944   : > { %5852 = vmax.xlane.f32.xlu0 %v5851_v57  ;;  %v15274_v57 = vld [vmem:[#allocation60_spill] sm:$0xff]  ;;  %v6301_v0 = vpop.permute.xlu1 %6300 }
 0x945   : > { %v5877_v3 = vsub.f32 %v15274_v57, %v15271_v63  ;;  %v15280_v63 = vld [vmem:[#allocation98_spill] sm:$0xff] }
 0x946   : > { %6276 = vrot.lane.b32.xlu1 %v9631_v35, %s9684_s29  ;;  %v5884_v57 = vsub.f32 %v15280_v63, %v13215_v15 }
 0x948   : > { %6071 = vadd.xlane.f32.xlu0 %v6070_v16  ;;  %v5956_v16 = vmul.f32 1.442695, %v5876_v25  ;;  %v6285_v41 = vpop.permute.xlu1 %6284 }
 0x94a   : > { %9410 = vpow2.f32 %v5956_v16 }
 0x94c   : > { %6074 = vadd.xlane.f32.xlu0 %v6073_v46  ;;  %v15276_v46 = vld [vmem:[#allocation52_spill] sm:$0xff] }
 0x94d   : > { %v5880_v50 = vsub.f32 %v15277_v14, %v15276_v46  ;;  %v5755_v14 = vpop.f32.mrf.mxu1 }
 0x94e   : > { %v8305_v60 = vpop.f32.mrf.mxu0 }
 0x94f   : > { %v5964_v43 = vmul.f32 1.442695, %v5880_v50  ;;  %v15284_v50 = vld [vmem:[#allocation102_spill] sm:$0xff] }
 0x950   : > { %v8306_v27 = vpop.f32.mrf.mxu0  ;;  %v5888_v16 = vsub.f32 %v15284_v50, %v13226_v38  ;;  %v15288_v50 = vld [vmem:[#allocation107_spill] sm:$0xff] }
 0x951   : > { %v13425_v31 = vadd.f32 %v8306_v27, %v8305_v60  ;;  %v5958_v60 = vmul.f32 1.442695, %v5877_v3  ;;  %v15278_v27 = vld [vmem:[#allocation93_spill] sm:$0xff]  ;;  %v15282_v3 = vld [vmem:[#allocation76_spill] sm:$0xff]  ;;  %v5892_v55 = vsub.f32 %v15288_v50, %v13252_v59  ;;  %v15293_v50 = vld [vmem:[#allocation111_spill] sm:$0xff] }
 0x952   : > { %v13429_v53 = vpop.f32.mrf.mxu0  ;;  %v5881_v18 = vsub.f32 %v15278_v27, %v15276_v46  ;;  %v5885_v24 = vsub.f32 %v15282_v3, %v13215_v15  ;;  %v5757_v15 = vpop.f32.mrf.mxu1  ;;  %v5896_v48 = vsub.f32 %v15293_v50, %v13287_v44 }
 0x953   : > { %15270 = vst [vmem:[#allocation83_spill] sm:$0xff] %v13425_v31  ;;  %15273 = vst [vmem:[#allocation73_spill] sm:$0xff] %v13429_v53  ;;  %v13431_v34 = vpop.xlane.xlu0 %5840  ;;  %9412 = vpow2.f32 %v5958_v60  ;;  %v15286_v60 = vld [vmem:[#allocation100_spill] sm:$0xff] }
 0x954   : > { %v13435_v35 = vpop.f32.mrf.mxu0  ;;  %v5966_v52 = vmul.f32 1.442695, %v5881_v18  ;;  %9414 = vpow2.f32 %v5964_v43  ;;  %v5889_v18 = vsub.f32 %v15286_v60, %v13226_v38  ;;  %v9632_v43 = vld [vmem:[#allocation2 + $0x8] sm:$0xff]  }
 0x955   : > { %15275 = vst [vmem:[#allocation87_spill] sm:$0xff] %v13435_v35 }
 0x956   : > { %v8311_v21 = vpop.f32.mrf.mxu0  ;;  %9416 = vpow2.f32 %v5966_v52  ;;  %v5982_v38 = vmul.f32 1.442695, %v5889_v18 }
 0x957   : > { %v13439_v11 = vpop.xlane.xlu0 %6059 }
 0x958   : > { %v8312_v31 = vpop.f32.mrf.mxu0 }
 0x959   : > { %v13443_v53 = vadd.f32 %v8312_v31, %v8311_v21  ;;  %v5265_v21 = vld [vmem:[#allocation4 + $0x3f0] sm:$0xff]  ;;  %v5972_v31 = vmul.f32 1.442695, %v5884_v57  ;;  %v5980_v57 = vmul.f32 1.442695, %v5888_v16 }
 0x95a   : > { %v13447_v35 = vpop.f32.mrf.mxu0 }
 0x95b   : > { %15279 = vst [vmem:[#allocation85_spill] sm:$0xff] %v13443_v53  ;;  %15281 = vst [vmem:[#allocation88_spill] sm:$0xff] %v13447_v35  ;;  %v13449_v25 = vpop.xlane.xlu0 %6062  ;;  %v5328_v35 = vunpack.c.h.bf16 %v5265_v21  ;;  %v5974_v53 = vmul.f32 1.442695, %v5885_v24  ;;  %9418 = vpow2.f32 %v5972_v31  ;;  %v15292_v31 = vld [vmem:[#allocation101_spill] sm:$0xff] }
 0x95c   : > { %v13453_v46 = vpop.f32.mrf.mxu0  ;;  %v5878_v16 = vsub.f32 %v15292_v31, %v13212_v49  ;;  %v15298_v31 = vld [vmem:[#allocation106_spill] sm:$0xff] }
 0x95d   : > { %15283 = vst [vmem:[#allocation40_spill] sm:$0xff] %v13453_v46  ;;  %v5327_v46 = vunpack.c.l.bf16 %v5265_v21  ;;  %v13468_v24 = vadd.f32 %v5757_v15, %v5328_v35  ;;  %9420 = vpow2.f32 %v5974_v53  ;;  %v13482_v53 = vpop.eup %9410  ;;  %v15296_v15 = vld [vmem:[#allocation30_spill] sm:$0xff]  ;;  %v5882_v50 = vsub.f32 %v15298_v31, %v13220_v40 }
 0x95e   : > { %v13457_v27 = vpop.f32.mrf.mxu0  ;;  %9422 = vpow2.f32 %v5980_v57 }
 0x95f   : > { %15285 = vst [vmem:[#allocation25_spill] sm:$0xff] %v13457_v27  ;;  %v6287_v63 = vpop.permute.xlu0 %6286  ;;  %v13474_v21 = vadd.f32 %v5755_v14, %v5327_v46  ;;  %9424 = vpow2.f32 %v5982_v38  ;;  %v15295_v14 = vld [vmem:[#allocation109_spill] sm:$0xff]  ;;  %v15299_v38 = vld [vmem:[#allocation118_spill] sm:$0xff]  ;;  %v15305_v27 = vld [vmem:[#allocation63_spill] sm:$0xff] }
 0x960   : > { %8430 = vmatpush3.bf16.msra.mxu0 %v6287_v63  ;;  %v13461_v3 = vpop.f32.mrf.mxu0  ;;  %v15290_v63 = vld [vmem:[#allocation105_spill] sm:$0xff]  ;;  %v5897_v46 = vsub.f32 %v15295_v14, %v13287_v44  ;;  %v13488_v18 = vpop.eup %9412 }
 0x961   : > { %15287 = vst [vmem:[#allocation70_spill] sm:$0xff] %v13461_v3  ;;  %8431 = vmatprep.subr.bf16.mxu0 %v6301_v0  ;;  %v5893_v60 = vsub.f32 %v15290_v63, %v13252_v59  ;;  %v5854_v59 = vmax.f32 %v13474_v21, %v13468_v24  ;;  %v5960_v63 = vmul.f32 1.442695, %v5878_v16  ;;  %v13500_v44 = vpop.eup %9414  ;;  %v6076_v16 = vadd.f32 %v13488_v18, %v13482_v53 }
 0x962   : > { %6278 = vrot.lane.b32.xlu0 %v9632_v43, %s9684_s29  ;;  %v13466_v52 = vpop.f32.mrf.mxu0  ;;  %v5988_v43 = vmul.f32 1.442695, %v5892_v55  ;;  %v5879_v55 = vsub.f32 %v15296_v15, %v13212_v49  ;;  %15301 = vst [vmem:[#allocation43_spill] sm:$0xff] %v13500_v44  ;;  %v5998_v14 = vmul.f32 1.442695, %v5897_v46  ;;  %v15302_v49 = vld [vmem:[#allocation116_spill] sm:$0xff] }
 0x963   : > { %15289 = vst [vmem:[#allocation18_spill] sm:$0xff] %v13466_v52  ;;  %v5901_v15 = vsub.f32 %v15302_v49, %v13316_v9 }
 0x964   : > { %8432 = vmatpush3.bf16.msra.mxu0 %v6285_v41  ;;  %v13472_v0 = vpop.f32.mrf.mxu0  ;;  %v5990_v41 = vmul.f32 1.442695, %v5893_v60  ;;  %9426 = vpow2.f32 %v5988_v43  ;;  %v5900_v60 = vsub.f32 %v15299_v38, %v13316_v9  ;;  %v5968_v38 = vmul.f32 1.442695, %v5882_v50  ;;  %v15307_v9 = vld [vmem:[#allocation64_spill] sm:$0xff] }
 0x965   : > { %15291 = vst [vmem:[#allocation75_spill] sm:$0xff] %v13472_v0  ;;  %v5904_v49 = vsub.f32 %v15307_v9, %v13318_v12 }
 0x966   : > { %v13480_v35 = vpop.f32.mrf.mxu0  ;;  %9428 = vpow2.f32 %v5990_v41  ;;  %v6004_v46 = vmul.f32 1.442695, %v5900_v60 }
 0x967   : > { %15294 = vst [vmem:[#allocation49_spill] sm:$0xff] %v13480_v35  ;;  %v5996_v35 = vmul.f32 1.442695, %v5896_v48  ;;  %v15303_v48 = vld [vmem:[#allocation104_spill] sm:$0xff]  ;;  %9430 = vpow2.f32 %v5960_v63 }
 0x968   : > { %v13492_v57 = vpop.f32.mrf.mxu0  ;;  %v5883_v43 = vsub.f32 %v15303_v48, %v13220_v40  ;;  %v15308_v40 = vld [vmem:[#allocation7_spill] sm:$0xff] }
 0x969   : > { %15297 = vst [vmem:[#allocation94_spill] sm:$0xff] %v13492_v57  ;;  %v13506_v57 = vpop.eup %9416  ;;  %9432 = vpow2.f32 %v5996_v35  ;;  %v5905_v48 = vsub.f32 %v15308_v40, %v13318_v12  ;;  %v15309_v35 = vld [vmem:[#allocation108_spill] sm:$0xff]  ;;  %v5908_v12 = vsub.f32 %v13234_v10, %v13398_v42 }
 0x96a   : > { %5855 = vmax.xlane.f32.xlu1 %v5854_v59  ;;  %v13498_v3 = vpop.f32.mrf.mxu0  ;;  %v5962_v59 = vmul.f32 1.442695, %v5879_v55  ;;  %v13516_v52 = vpop.eup %9418  ;;  %9434 = vpow2.f32 %v5998_v14  ;;  %v6006_v55 = vmul.f32 1.442695, %v5901_v15  ;;  %v6082_v63 = vadd.f32 %v13506_v57, %v13500_v44  ;;  %v15313_v10 = vld [vmem:[#allocation112_spill] sm:$0xff] }
 0x96b   : > { %15300 = vst [vmem:[#allocation9_spill] sm:$0xff] %v13498_v3  ;;  %v15306_v3 = vld [vmem:[#allocation110_spill] sm:$0xff]  ;;  %v13522_v50 = vpop.eup %9420  ;;  %v5887_v60 = vsub.f32 %v15309_v35, %v15305_v27  ;;  %v6012_v14 = vmul.f32 1.442695, %v5904_v49  ;;  %v5759_v44 = vpop.f32.mrf.mxu1  ;;  %v5891_v49 = vsub.f32 %v15313_v10, %v13243_v33 }
 0x96c   : > { %v13510_v31 = vpop.f32.mrf.mxu0  ;;  %v5886_v41 = vsub.f32 %v15306_v3, %v15305_v27  ;;  %9436 = vpow2.f32 %v5962_v59  ;;  %v5970_v3 = vmul.f32 1.442695, %v5883_v43  ;;  %v13530_v40 = vpop.eup %9422  ;;  %v6014_v59 = vmul.f32 1.442695, %v5905_v48  ;;  %v5266_v35 = vld [vmem:[#allocation4 + $0x3f8] sm:$0xff] }
 0x96d   : > { %15304 = vst [vmem:[#allocation39_spill] sm:$0xff] %v13510_v31  ;;  %9438 = vpow2.f32 %v5968_v38  ;;  %15311 = vst [vmem:[#allocation47_spill] sm:$0xff] %v13530_v40  ;;  %v5909_v27 = vsub.f32 %v13232_v7, %v13398_v42  ;;  %v6088_v43 = vadd.f32 %v13522_v50, %v13516_v52  ;;  %v5978_v38 = vmul.f32 1.442695, %v5887_v60 }
 0x96e   : > { %6077 = vadd.xlane.f32.xlu1 %v6076_v16  ;;  %v8329_v0 = vpop.f32.mrf.mxu0  ;;  %v5976_v9 = vmul.f32 1.442695, %v5886_v41  ;;  %9440 = vpow2.f32 %v6004_v46  ;;  %v15312_v41 = vld [vmem:[#allocation113_spill] sm:$0xff]  ;;  %v5330_v7 = vunpack.c.h.bf16 %v5266_v35  ;;  %v6020_v42 = vmul.f32 1.442695, %v5908_v12 }
 0x96f   : > { %9442 = vpow2.f32 %v6006_v55  ;;  %v5890_v46 = vsub.f32 %v15312_v41, %v13243_v33  ;;  %v6022_v60 = vmul.f32 1.442695, %v5909_v27  ;;  %v5329_v33 = vunpack.c.l.bf16 %v5266_v35 }
 0x970   : > { %v8330_v16 = vpop.f32.mrf.mxu0  ;;  %9444 = vpow2.f32 %v5970_v3  ;;  %v5761_v3 = vpop.f32.mrf.mxu1 }
 0x971   : > { %v13526_v31 = vadd.f32 %v8330_v16, %v8329_v0  ;;  %v13536_v0 = vpop.eup %9424  ;;  %9446 = vpow2.f32 %v5976_v9  ;;  %v5984_v9 = vmul.f32 1.442695, %v5890_v46 }
 0x972   : > { %6083 = vadd.xlane.f32.xlu1 %v6082_v63  ;;  %v8332_v15 = vpop.f32.mrf.mxu0  ;;  %9448 = vpow2.f32 %v6012_v14  ;;  %v13544_v16 = vpop.eup %9426  ;;  %v6094_v41 = vadd.f32 %v13536_v0, %v13530_v40  ;;  %v15315_v14 = vld [vmem:[#allocation115_spill] sm:$0xff]  ;;  %v13558_v40 = vadd.f32 %v5761_v3, %v5330_v7 }
 0x973   : > { %15310 = vst [vmem:[#allocation97_spill] sm:$0xff] %v13526_v31  ;;  %9450 = vpow2.f32 %v6014_v59  ;;  %v13548_v31 = vpop.eup %9428  ;;  %v5894_v12 = vsub.f32 %v15315_v14, %v13258_v22 }
 0x974   : > { %v8333_v63 = vpop.f32.mrf.mxu0  ;;  %9452 = vpow2.f32 %v5978_v38  ;;  %v13556_v27 = vpop.eup %9430  ;;  %v15317_v38 = vld [vmem:[#allocation114_spill] sm:$0xff] }
 0x975   : > { %v13542_v55 = vadd.f32 %v8333_v63, %v8332_v15  ;;  %v5986_v15 = vmul.f32 1.442695, %v5891_v49  ;;  %v5895_v46 = vsub.f32 %v15317_v38, %v13258_v22  ;;  %9454 = vpow2.f32 %v6020_v42  ;;  %v15319_v42 = vld [vmem:[#allocation17_spill] sm:$0xff] }
 0x976   : > { %6089 = vadd.xlane.f32.xlu1 %v6088_v43  ;;  %v8335_v48 = vpop.f32.mrf.mxu0  ;;  %v13562_v35 = vpop.eup %9432  ;;  %9456 = vpow2.f32 %v6022_v60  ;;  %v5992_v22 = vmul.f32 1.442695, %v5894_v12 }
 0x977   : > { %15314 = vst [vmem:[#allocation34_spill] sm:$0xff] %v13542_v55  ;;  %15318 = vst [vmem:[#allocation60_spill] sm:$0xff] %v13562_v35  ;;  %9458 = vpow2.f32 %v5984_v9  ;;  %v15321_v9 = vld [vmem:[#allocation117_spill] sm:$0xff] }
 0x978   : > { %v8336_v10 = vpop.f32.mrf.mxu0  ;;  %9460 = vpow2.f32 %v5986_v15 }
 0x979   : > { %v5844_v43 = vpop.xlane.xlu1 %5843  ;;  %v13552_v63 = vadd.f32 %v8336_v10, %v8335_v48  ;;  %v13566_v10 = vpop.eup %9434 }
 0x97a   : > { %v5912_v55 = vsub.f32 %v13304_v6, %v5844_v43  ;;  %v5913_v59 = vsub.f32 %v13302_v47, %v5844_v43  ;;  %6095 = vadd.xlane.f32.xlu1 %v6094_v41  ;;  %v8338_v49 = vpop.f32.mrf.mxu0  ;;  %v6100_v6 = vadd.f32 %v13548_v31, %v13544_v16  ;;  %v13568_v47 = vadd.f32 %v5759_v44, %v5329_v33  ;;  %v13570_v41 = vpop.eup %9436 }
 0x97b   : > { %15316 = vst [vmem:[#allocation90_spill] sm:$0xff] %v13552_v63  ;;  %v5898_v43 = vsub.f32 %v15319_v42, %v13294_v29  ;;  %v5994_v33 = vmul.f32 1.442695, %v5895_v46  ;;  %v6106_v12 = vadd.f32 %v13566_v10, %v13562_v35  ;;  %v15324_v46 = vld [vmem:[#allocation37_spill] sm:$0xff] }
 0x97c   : > { %v6028_v14 = vmul.f32 1.442695, %v5912_v55  ;;  %v6030_v48 = vmul.f32 1.442695, %v5913_v59  ;;  %v8339_v7 = vpop.f32.mrf.mxu0  ;;  %v13576_v55 = vpop.eup %9438  ;;  %v5857_v44 = vmax.f32 %v13568_v47, %v13558_v40  ;;  %v5899_v59 = vsub.f32 %v15321_v9, %v13294_v29  ;;  %v15326_v9 = vld [vmem:[#allocation16_spill] sm:$0xff] }
 0x97d   : > { %v6299_v3 = vpop.permute.xlu1 %6298  ;;  %v13574_v60 = vadd.f32 %v8339_v7, %v8338_v49  ;;  %v13582_v15 = vpop.eup %9440  ;;  %v5902_v42 = vsub.f32 %v15324_v46, %v13347_v19 }
 0x97e   : > { %6101 = vadd.xlane.f32.xlu1 %v6100_v6  ;;  %8433 = vmatprep.subr.bf16.mxu0 %v6299_v3  ;;  %9462 = vpow2.f32 %v6028_v14  ;;  %v8341_v38 = vpop.f32.mrf.mxu0  ;;  %15322 = vst [vmem:[#allocation95_spill] sm:$0xff] %v13582_v15  ;;  %v13586_v49 = vpop.eup %9442  ;;  %v6000_v3 = vmul.f32 1.442695, %v5898_v43 }
 0x97f   : > { %15320 = vst [vmem:[#allocation52_spill] sm:$0xff] %v13574_v60  ;;  %9464 = vpow2.f32 %v6030_v48  ;;  %15323 = vst [vmem:[#allocation93_spill] sm:$0xff] %v13586_v49  ;;  %v13588_v7 = vpop.eup %9444  ;;  %v6002_v48 = vmul.f32 1.442695, %v5899_v59  ;;  %v5903_v60 = vsub.f32 %v15326_v9, %v13347_v19  ;;  %v15329_v59 = vld [vmem:[#allocation50_spill] sm:$0xff]  ;;  %v15331_v9 = vld [vmem:[#allocation48_spill] sm:$0xff] }
 0x980   : > { %v8342_v6 = vpop.f32.mrf.mxu0  ;;  %9466 = vpow2.f32 %v5992_v22  ;;  %v13594_v14 = vpop.eup %9446  ;;  %v6112_v22 = vadd.f32 %v13586_v49, %v13582_v15  ;;  %v5906_v19 = vsub.f32 %v15329_v59, %v13355_v2  ;;  %v6085_v49 = vadd.f32 %v13588_v7, %v13576_v55 }
 0x981   : > { %5858 = vmax.xlane.f32.xlu0 %v5857_v44  ;;  %v13592_v29 = vadd.f32 %v8342_v6, %v8341_v38  ;;  %9468 = vpow2.f32 %v5994_v33  ;;  %v6079_v44 = vadd.f32 %v13570_v41, %v13556_v27  ;;  %v13600_v35 = vpop.eup %9448  ;;  %v6008_v33 = vmul.f32 1.442695, %v5902_v42 }
 0x982   : > { %6107 = vadd.xlane.f32.xlu1 %v6106_v12  ;;  %v8344_v63 = vpop.f32.mrf.mxu0  ;;  %15327 = vst [vmem:[#allocation76_spill] sm:$0xff] %v13600_v35  ;;  %v13604_v43 = vpop.eup %9450  ;;  %9470 = vpow2.f32 %v6000_v3  ;;  %v6010_v46 = vmul.f32 1.442695, %v5903_v60  ;;  %v6016_v60 = vmul.f32 1.442695, %v5906_v19 }
 0x983   : > { %15325 = vst [vmem:[#allocation98_spill] sm:$0xff] %v13592_v29  ;;  %15328 = vst [vmem:[#allocation102_spill] sm:$0xff] %v13604_v43  ;;  %v13606_v12 = vpop.eup %9452  ;;  %9472 = vpow2.f32 %v6002_v48  ;;  %v5907_v29 = vsub.f32 %v15331_v9, %v13355_v2  ;;  %v6118_v3 = vadd.f32 %v13604_v43, %v13600_v35  ;;  %v5910_v2 = vsub.f32 %v13267_v62, %v13431_v34 }
 0x984   : > { %v8345_v38 = vpop.f32.mrf.mxu0  ;;  %9474 = vpow2.f32 %v6008_v33  ;;  %v5911_v9 = vsub.f32 %v13264_v56, %v13431_v34 }
 0x985   : > { %6080 = vadd.xlane.f32.xlu0 %v6079_v44  ;;  %v13610_v6 = vadd.f32 %v8345_v38, %v8344_v63  ;;  %v13616_v44 = vpop.eup %9454  ;;  %9476 = vpow2.f32 %v6010_v46  ;;  %v6018_v38 = vmul.f32 1.442695, %v5907_v29  ;;  %v6024_v19 = vmul.f32 1.442695, %v5910_v2 }
 0x986   : > { %6113 = vadd.xlane.f32.xlu1 %v6112_v22  ;;  %v8347_v15 = vpop.f32.mrf.mxu0  ;;  %15332 = vst [vmem:[#allocation107_spill] sm:$0xff] %v13616_v44  ;;  %v13620_v42 = vpop.eup %9456  ;;  %9478 = vpow2.f32 %v6016_v60  ;;  %v6026_v56 = vmul.f32 1.442695, %v5911_v9 }
 0x987   : > { %15330 = vst [vmem:[#allocation100_spill] sm:$0xff] %v13610_v6  ;;  %15333 = vst [vmem:[#allocation105_spill] sm:$0xff] %v13620_v42  ;;  %v13622_v63 = vpop.eup %9458  ;;  %v6124_v33 = vadd.f32 %v13620_v42, %v13616_v44  ;;  %9480 = vpow2.f32 %v6018_v38 }
 0x988   : > { %v8348_v59 = vpop.f32.mrf.mxu0  ;;  %v13628_v22 = vpop.eup %9460  ;;  %9482 = vpow2.f32 %v6024_v19 }
 0x989   : > { %6086 = vadd.xlane.f32.xlu0 %v6085_v49  ;;  %v13626_v48 = vadd.f32 %v8348_v59, %v8347_v15  ;;  %v6091_v49 = vadd.f32 %v13606_v12, %v13594_v14  ;;  %9484 = vpow2.f32 %v6026_v56 }
 0x98a   : > { %6119 = vadd.xlane.f32.xlu1 %v6118_v3  ;;  %v8350_v6 = vpop.f32.mrf.mxu0  ;;  %v6097_v3 = vadd.f32 %v13628_v22, %v13622_v63 }
 0x98b   : > { %15334 = vst [vmem:[#allocation101_spill] sm:$0xff] %v13626_v48  ;;  %v13634_v35 = vpop.eup %9462 }
 0x98c   : > { %15335 = vst [vmem:[#allocation111_spill] sm:$0xff] %v13634_v35  ;;  %v13638_v62 = vpop.eup %9464  ;;  %v8351_v15 = vpop.f32.mrf.mxu0 }
 0x98d   : > { %15336 = vst [vmem:[#allocation109_spill] sm:$0xff] %v13638_v62  ;;  %6092 = vadd.xlane.f32.xlu0 %v6091_v49  ;;  %v13640_v46 = vadd.f32 %v8351_v15, %v8350_v6  ;;  %v13642_v29 = vpop.eup %9466  ;;  %v6130_v44 = vadd.f32 %v13638_v62, %v13634_v35 }
 0x98e   : > { %6125 = vadd.xlane.f32.xlu1 %v6124_v33  ;;  %v8353_v34 = vpop.f32.mrf.mxu0  ;;  %v13646_v59 = vpop.eup %9468 }
 0x98f   : > { %15337 = vst [vmem:[#allocation30_spill] sm:$0xff] %v13640_v46  ;;  %v13654_v38 = vpop.eup %9470  ;;  %v6103_v46 = vadd.f32 %v13646_v59, %v13642_v29 }
 0x990   : > { %v5847_v48 = vpop.xlane.xlu0 %5846  ;;  %v8354_v49 = vpop.f32.mrf.mxu0 }
 0x991   : > { %v5914_v60 = vsub.f32 %v13323_v37, %v5847_v48  ;;  %v5915_v6 = vsub.f32 %v13320_v28, %v5847_v48  ;;  %6098 = vadd.xlane.f32.xlu0 %v6097_v3  ;;  %v13652_v2 = vadd.f32 %v8354_v49, %v8353_v34  ;;  %v13658_v35 = vpop.eup %9472  ;;  %v6297_v49 = vpop.permute.xlu1 %6296 }
 0x992   : > { %6131 = vadd.xlane.f32.xlu1 %v6130_v44  ;;  %v8356_v15 = vpop.f32.mrf.mxu0  ;;  %v13664_v48 = vpop.eup %9474  ;;  %v6109_v19 = vadd.f32 %v13658_v35, %v13654_v38 }
 0x993   : > { %15338 = vst [vmem:[#allocation106_spill] sm:$0xff] %v13652_v2  ;;  %v6032_v9 = vmul.f32 1.442695, %v5914_v60  ;;  %v6034_v33 = vmul.f32 1.442695, %v5915_v6  ;;  %v13668_v56 = vpop.eup %9476 }
 0x994   : > { %v13660_v62 = vpop.xlane.xlu0 %6065  ;;  %v8357_v37 = vpop.f32.mrf.mxu0 }
 0x995   : > { %6104 = vadd.xlane.f32.xlu0 %v6103_v46  ;;  %9486 = vpow2.f32 %v6032_v9  ;;  %v13662_v28 = vadd.f32 %v8357_v37, %v8356_v15  ;;  %v13672_v6 = vpop.eup %9478  ;;  %v6115_v9 = vadd.f32 %v13668_v56, %v13664_v48 }
 0x996   : > { %9488 = vpow2.f32 %v6034_v33  ;;  %v8359_v44 = vpop.f32.mrf.mxu0  ;;  %15341 = vst [vmem:[#allocation104_spill] sm:$0xff] %v13672_v6  ;;  %v13676_v15 = vpop.eup %9480 }
 0x997   : > { %15339 = vst [vmem:[#allocation118_spill] sm:$0xff] %v13662_v28  ;;  %15342 = vst [vmem:[#allocation63_spill] sm:$0xff] %v13676_v15  ;;  %v13680_v2 = vpop.eup %9482 }
 0x998   : > { %v6069_v34 = vpop.xlane.xlu0 %6068  ;;  %v8360_v3 = vpop.f32.mrf.mxu0  ;;  %15344 = vst [vmem:[#allocation64_spill] sm:$0xff] %v13680_v2 }
 0x999   : > { %6110 = vadd.xlane.f32.xlu0 %v6109_v19  ;;  %v13670_v60 = vadd.f32 %v8360_v3, %v8359_v44  ;;  %v6121_v44 = vadd.f32 %v13676_v15, %v13672_v6  ;;  %v13684_v19 = vpop.eup %9484  ;;  %v6281_v3 = vpop.permute.xlu1 %6280 }
 0x99a   : > { %v8362_v46 = vpop.f32.mrf.mxu0  ;;  %15345 = vst [vmem:[#allocation7_spill] sm:$0xff] %v13684_v19  ;;  %v6127_v42 = vadd.f32 %v13684_v19, %v13680_v2 }
 0x99b   : > { %15340 = vst [vmem:[#allocation116_spill] sm:$0xff] %v13670_v60 }
 0x99c   : > { %v6283_v33 = vpop.permute.xlu0 %6282  ;;  %v8363_v37 = vpop.f32.mrf.mxu0 }
 0x99d   : > { %6116 = vadd.xlane.f32.xlu0 %v6115_v9  ;;  %8434 = vmatpush3.bf16.msra.mxu0 %v6283_v33  ;;  %v13678_v28 = vadd.f32 %v8363_v37, %v8362_v46 }
 0x99e   : > { %8435 = vmatprep.subr.bf16.mxu0 %v6297_v49 }
 0x99f   : > { %15343 = vst [vmem:[#allocation110_spill] sm:$0xff] %v13678_v28 }
 0x9a1   : > { %6122 = vadd.xlane.f32.xlu0 %v6121_v44  ;;  %8436 = vmatpush3.bf16.msra.mxu0 %v6281_v3 }
 0x9a2   : > { %v13686_v60 = vpop.eup %9486 }
 0x9a3   : > { %15346 = vst [vmem:[#allocation108_spill] sm:$0xff] %v13686_v60  ;;  %v13690_v9 = vpop.eup %9488 }
 0x9a4   : > { %v6133_v49 = vadd.f32 %v13690_v9, %v13686_v60 }
 0x9a5   : > { %6128 = vadd.xlane.f32.xlu0 %v6127_v42 }
 0x9a9   : > { %6134 = vadd.xlane.f32.xlu0 %v6133_v49  ;;  %v8365_v46 = vpop.f32.mrf.mxu0 }
 0x9ab   : > { %v8366_v33 = vpop.f32.mrf.mxu0 }
 0x9ac   : > { %v13694_v37 = vadd.f32 %v8366_v33, %v8365_v46 }
 0x9ad   : > { %v8368_v28 = vpop.f32.mrf.mxu0 }
 0x9af   : > { %v8369_v6 = vpop.f32.mrf.mxu0 }
 0x9b0   : > { %v13696_v44 = vadd.f32 %v8369_v6, %v8368_v28 }
 0x9b6   : > { %v5850_v3 = vpop.xlane.xlu1 %5849 }
 0x9b7   : > { %v5916_v43 = vsub.f32 %v13376_v45, %v5850_v3  ;;  %v5917_v2 = vsub.f32 %v13374_v51, %v5850_v3 }
 0x9b9   : > { %v6036_v19 = vmul.f32 1.442695, %v5916_v43  ;;  %v6038_v15 = vmul.f32 1.442695, %v5917_v2 }
 0x9ba   : > { %v6295_v42 = vpop.permute.xlu1 %6294 }
 0x9bb   : > { %9490 = vpow2.f32 %v6036_v19  ;;  %8437 = vmatprep.subr.bf16.mxu0 %v6295_v42 }
 0x9bc   : > { %9492 = vpow2.f32 %v6038_v15 }
 0x9bd   : > { %9494 = vrcp.f32 %v13449_v25 }
 0x9be   : > { %9496 = vrcp.f32 %v13439_v11  ;;  %v6293_v19 = vpop.permute.xlu1 %6292 }
 0x9c8   : > { %v13700_v49 = vpop.eup %9490 }
 0x9c9   : > { %v13702_v60 = vpop.eup %9492 }
 0x9ca   : > { %v6136_v46 = vadd.f32 %v13702_v60, %v13700_v49  ;;  %v9495_v33 = vpop.eup %9494 }
 0x9cb   : > { %v9497_v3 = vpop.eup %9496  ;;  %v6187_v11 = vmul.f32 %v9495_v33, %v13282_v17 }
 0x9cc   : > { %6137 = vadd.xlane.f32.xlu1 %v6136_v46 }
 0x9cd   : > { %v5853_v28 = vpop.xlane.xlu0 %5852 }
 0x9ce   : > { %v5918_v51 = vsub.f32 %v13403_v30, %v5853_v28  ;;  %v5919_v45 = vsub.f32 %v13400_v8, %v5853_v28  ;;  %v6277_v30 = vpop.permute.xlu1 %6276  ;;  %v6185_v8 = vmul.f32 %v9497_v3, %v13277_v54  ;;  %v15347_v28 = vpack.c.bf16 %v13386_v61, %v13383_v13 }
 0x9d0   : > { %v6040_v43 = vmul.f32 1.442695, %v5918_v51  ;;  %v6042_v2 = vmul.f32 1.442695, %v5919_v45  ;;  %v6247_v46 = vpack.c.bf16 %v6187_v11, %v6185_v8  ;;  %v6186_v45 = vmul.f32 %v9495_v33, %v13280_v36 }
 0x9d1   : > { %v6072_v6 = vpop.xlane.xlu0 %6071 }
 0x9d2   : > { %9498 = vpow2.f32 %v6040_v43  ;;  %v6184_v43 = vmul.f32 %v9497_v3, %v13269_v4 }
 0x9d3   : > { %9500 = vpow2.f32 %v6042_v2 }
 0x9d4   : > { %9502 = vrcp.f32 %v6069_v34 }
 0x9d5   : > { %v6075_v15 = vpop.xlane.xlu0 %6074  ;;  %9504 = vrcp.f32 %v13660_v62 }
 0x9d6   : > { %9506 = vrcp.f32 %v6075_v15  ;;  %v6246_v15 = vpack.c.bf16 %v6186_v45, %v6184_v43 }
 0x9d7   : > { %9508 = vrcp.f32 %v6072_v6 }
 0x9d9   : > { %v6279_v25 = vpop.permute.xlu0 %6278 }
 0x9da   : > { %8438 = vmatpush3.bf16.msra.mxu0 %v6279_v25 }
 0x9db   : > { %8439 = vmatprep.subr.bf16.mxu0 %v6293_v19 }
 0x9de   : > { %8440 = vmatpush3.bf16.msra.mxu0 %v6277_v30 }
 0x9df   : > { %v13713_v42 = vpop.eup %9498 }
 0x9e0   : > { %v13715_v34 = vpop.eup %9500 }
 0x9e1   : > { %v9503_v62 = vpop.eup %9502  ;;  %6357 = vmatmul.mubr.bf16.vlgmr.msra.gmra.mxu0 %v15347_v28  ;;  %v6139_v51 = vadd.f32 %v13715_v34, %v13713_v42 }
 0x9e2   : > { %6364 = vmatprep.mubr.bf16.mxu0 %v6247_v46  ;;  %v9505_v17 = vpop.eup %9504  ;;  %v6191_v54 = vmul.f32 %v9503_v62, %v13341_v58  ;;  %v6190_v30 = vmul.f32 %v9503_v62, %v13336_v5 }
 0x9e3   : > { %6140 = vadd.xlane.f32.xlu0 %v6139_v51  ;;  %v6189_v6 = vmul.f32 %v9505_v17, %v13332_v23  ;;  %v9507_v13 = vpop.eup %9506  ;;  %v6188_v58 = vmul.f32 %v9505_v17, %v13327_v20 }
 0x9e4   : > { %v9509_v11 = vpop.eup %9508  ;;  %v6195_v36 = vmul.f32 %v9507_v13, %v13417_v39  ;;  %v6194_v8 = vmul.f32 %v9507_v13, %v13412_v32 }
 0x9e5   : > { %v6249_v25 = vpack.c.bf16 %v6191_v54, %v6189_v6  ;;  %v6193_v4 = vmul.f32 %v9509_v11, %v13410_v26  ;;  %v6248_v33 = vpack.c.bf16 %v6190_v30, %v6188_v58  ;;  %v6192_v51 = vmul.f32 %v9509_v11, %v13405_v1  ;;  %v15349_v30 = vld [vmem:[#allocation20_spill] sm:$0xff]  ;;  %v15350_v58 = vld [vmem:[#allocation78_spill] sm:$0xff] }
 0x9e6   : > { %v8371_v2 = vpop.f32.mrf.mxu0 }
 0x9e7   : > { %v6251_v3 = vpack.c.bf16 %v6195_v36, %v6193_v4  ;;  %v6250_v39 = vpack.c.bf16 %v6194_v8, %v6192_v51  ;;  %v7765_v36 = vpack.c.bf16 %v15349_v30, %v15349_v30  ;;  %v15351_v4 = vld [vmem:[#allocation65_spill] sm:$0xff]  ;;  %v15356_v30 = vld [vmem:[#allocation43_spill] sm:$0xff] }
 0x9e8   : > { %v8372_v19 = vpop.f32.mrf.mxu0 }
 0x9e9   : > { %v13726_v61 = vadd.f32 %v8372_v19, %v8371_v2  ;;  %6365 = vmatmul.mubr.bf16.gmra.mxu0 %v6246_v15 }
 0x9ea   : > { %6372 = vmatprep.mubr.bf16.mxu0 %v6249_v25  ;;  %v15348_v25 = vld [vmem:[#allocation35_spill] sm:$0xff] }
 0x9eb   : > { %v7763_v13 = vpack.c.bf16 %v15348_v25, %v15348_v25 }
 0x9f1   : > { %6373 = vmatmul.mubr.bf16.gmra.mxu0 %v6248_v33  ;;  %v8168_v33 = vadd.f32 %v15351_v4, %v15350_v58 }
 0x9f2   : > { %6380 = vmatprep.mubr.bf16.mxu0 %v6251_v3 }
 0x9f3   : > { %v5856_v23 = vpop.xlane.xlu1 %5855 }
 0x9f4   : > { %v5920_v46 = vsub.f32 %v13474_v21, %v5856_v23  ;;  %v5921_v28 = vsub.f32 %v13468_v24, %v5856_v23 }
 0x9f6   : > { %v6044_v5 = vmul.f32 1.442695, %v5920_v46  ;;  %v6046_v62 = vmul.f32 1.442695, %v5921_v28 }
 0x9f7   : > { %v6078_v26 = vpop.xlane.xlu1 %6077 }
 0x9f8   : > { %9510 = vpow2.f32 %v6044_v5 }
 0x9f9   : > { %9512 = vpow2.f32 %v6046_v62  ;;  %6381 = vmatmul.mubr.bf16.gmra.mxu0 %v6250_v39 }
 0x9fa   : > { %9514 = vrcp.f32 %v6078_v26 }
 0x9fb   : > { %v6084_v45 = vpop.xlane.xlu1 %6083 }
 0x9fc   : > { %9516 = vrcp.f32 %v6084_v45  ;;  %v15353_v45 = vld [vmem:[#allocation75_spill] sm:$0xff] }
 0x9ff   : > { %v6090_v15 = vpop.xlane.xlu1 %6089 }
 0xa03   : > { %v6096_v8 = vpop.xlane.xlu1 %6095 }
 0xa05   : > { %v13736_v20 = vpop.eup %9510 }
 0xa06   : > { %v13738_v17 = vpop.eup %9512 }
 0xa07   : > { %v6142_v32 = vadd.f32 %v13738_v17, %v13736_v20 }
 0xa09   : > { %6143 = vadd.xlane.f32.xlu1 %v6142_v32  ;;  %v7766_v32 = vpack.c.bf16 %v8168_v33, %v8168_v33 }
 0xa0a   : > { %v5859_v21 = vpop.xlane.xlu0 %5858 }
 0xa0b   : > { %v5922_v24 = vsub.f32 %v13568_v47, %v5859_v21  ;;  %v5923_v1 = vsub.f32 %v13558_v40, %v5859_v21  ;;  %v9515_v47 = vpop.eup %9514  ;;  %v15352_v21 = vld [vmem:[#allocation18_spill] sm:$0xff] }
 0xa0c   : > { %v9517_v40 = vpop.eup %9516  ;;  %v6197_v51 = vmul.f32 %v9515_v47, %v13488_v18  ;;  %v6196_v62 = vmul.f32 %v9515_v47, %v13482_v53 }
 0xa0d   : > { %v6048_v54 = vmul.f32 1.442695, %v5922_v24  ;;  %v6050_v43 = vmul.f32 1.442695, %v5923_v1  ;;  %v8322_v24 = vadd.f32 %v15353_v45, %v15352_v21  ;;  %v15359_v45 = vld [vmem:[#allocation25_spill] sm:$0xff] }
 0xa0e   : > { %v6081_v2 = vpop.xlane.xlu0 %6080 }
 0xa0f   : > { %9518 = vpow2.f32 %v6048_v54 }
 0xa10   : > { %9520 = vpow2.f32 %v6050_v43  ;;  %v6201_v43 = vmul.f32 %v9517_v40, %v13506_v57 }
 0xa11   : > { %9522 = vrcp.f32 %v6081_v2  ;;  %v7796_v2 = vpack.c.bf16 %v8322_v24, %v8322_v24  ;;  %v15360_v24 = vld [vmem:[#allocation70_spill] sm:$0xff] }
 0xa12   : > { %v6087_v6 = vpop.xlane.xlu0 %6086 }
 0xa13   : > { %9524 = vrcp.f32 %v6087_v6  ;;  %v15355_v6 = vld [vmem:[#allocation39_spill] sm:$0xff] }
 0xa16   : > { %v6093_v19 = vpop.xlane.xlu0 %6092 }
 0xa17   : > { %9526 = vrcp.f32 %v6093_v19 }
 0xa18   : > { %9528 = vrcp.f32 %v6090_v15 }
 0xa1a   : > { %3589 = vrot.lane.b32.xlu1 %v7763_v13, %s9685_s30  ;;  %v6099_v3 = vpop.xlane.xlu0 %6098  ;;  %v6102_v13 = vpop.xlane.xlu1 %6101 }
 0xa1b   : > { %9530 = vrcp.f32 %v6099_v3 }
 0xa1c   : > { %v13747_v11 = vpop.eup %9518  ;;  %9532 = vrcp.f32 %v6096_v8 }
 0xa1d   : > { %v13753_v23 = vpop.eup %9520 }
 0xa1e   : > { %v9523_v46 = vpop.eup %9522  ;;  %3593 = vrot.lane.b32.xlu1 %v7765_v36, %s9685_s30  ;;  %v6145_v28 = vadd.f32 %v13753_v23, %v13747_v11  ;;  %v6105_v19 = vpop.xlane.xlu0 %6104  ;;  %v6200_v36 = vmul.f32 %v9517_v40, %v15356_v30  ;;  %v15358_v40 = vld [vmem:[#allocation61_spill] sm:$0xff] }
 0xa1f   : > { %v6199_v5 = vmul.f32 %v9523_v46, %v13570_v41  ;;  %v6198_v39 = vmul.f32 %v9523_v46, %v13556_v27  ;;  %v15354_v27 = vld [vmem:[#allocation9_spill] sm:$0xff]  ;;  %9534 = vrcp.f32 %v6105_v19 }
 0xa20   : > { %v9525_v26 = vpop.eup %9524  ;;  %6146 = vadd.xlane.f32.xlu0 %v6145_v28  ;;  %v8328_v15 = vadd.f32 %v15355_v6, %v15354_v27  ;;  %9536 = vrcp.f32 %v6102_v13  ;;  %v6108_v28 = vpop.xlane.xlu1 %6107 }
 0xa21   : > { %v6253_v1 = vpack.c.bf16 %v6199_v5, %v6197_v51  ;;  %v6252_v54 = vpack.c.bf16 %v6198_v39, %v6196_v62  ;;  %v6203_v18 = vmul.f32 %v9525_v26, %v13588_v7  ;;  %v6202_v57 = vmul.f32 %v9525_v26, %v13576_v55  ;;  %v15357_v51 = vld [vmem:[#allocation53_spill] sm:$0xff] }
 0xa22   : > { %3595 = vrot.lane.b32.xlu1 %v7766_v32, %s9685_s30  ;;  %v7798_v47 = vpack.c.bf16 %v8328_v15, %v8328_v15  ;;  %v6111_v8 = vpop.xlane.xlu0 %6110  ;;  %v8162_v5 = vadd.f32 %v15358_v40, %v15357_v51 }
 0xa23   : > { %6388 = vmatprep.mubr.bf16.mxu0 %v6253_v1  ;;  %v6255_v41 = vpack.c.bf16 %v6203_v18, %v6201_v43  ;;  %v6254_v4 = vpack.c.bf16 %v6202_v57, %v6200_v36  ;;  %9538 = vrcp.f32 %v6111_v8  ;;  %v8319_v1 = vadd.f32 %v15360_v24, %v15359_v45  ;;  %v15361_v18 = vld [vmem:[#allocation49_spill] sm:$0xff] }
 0xa24   : > { %v9527_v53 = vpop.eup %9526  ;;  %6389 = vmatmul.mubr.bf16.gmra.mxu0 %v6252_v54  ;;  %9540 = vrcp.f32 %v6108_v28  ;;  %v7764_v21 = vpack.c.bf16 %v8162_v5, %v8162_v5  ;;  %v15364_v28 = vld [vmem:[#allocation60_spill] sm:$0xff] }
 0xa25   : > { %6396 = vmatprep.mubr.bf16.mxu0 %v6255_v41  ;;  %v9529_v25 = vpop.eup %9528  ;;  %v6207_v7 = vmul.f32 %v9527_v53, %v13606_v12  ;;  %v6206_v55 = vmul.f32 %v9527_v53, %v13594_v14  ;;  %v15362_v41 = vld [vmem:[#allocation94_spill] sm:$0xff] }
 0xa26   : > { %5099 = vrot.lane.b32.xlu1 %v7796_v2, %s9686_s8  ;;  %v6205_v58 = vmul.f32 %v9529_v25, %v13522_v50  ;;  %v6204_v50 = vmul.f32 %v9529_v25, %v13516_v52  ;;  %v6117_v54 = vpop.xlane.xlu0 %6116  ;;  %v8325_v53 = vadd.f32 %v15362_v41, %v15361_v18  ;;  %v15363_v2 = vld [vmem:[#allocation47_spill] sm:$0xff]  ;;  %v15372_v18 = vld [vmem:[#allocation105_spill] sm:$0xff] }
 0xa27   : > { %9542 = vrcp.f32 %v6117_v54 }
 0xa28   : > { %v6257_v33 = vpack.c.bf16 %v6207_v7, %v6205_v58  ;;  %v9531_v3 = vpop.eup %9530  ;;  %v6256_v39 = vpack.c.bf16 %v6206_v55, %v6204_v50  ;;  %v7797_v13 = vpack.c.bf16 %v8325_v53, %v8325_v53 }
 0xa29   : > { %v9533_v46 = vpop.eup %9532  ;;  %v6211_v12 = vmul.f32 %v9531_v3, %v13628_v22  ;;  %v6114_v22 = vpop.xlane.xlu1 %6113  ;;  %v6210_v43 = vmul.f32 %v9531_v3, %v13622_v63 }
 0xa2a   : > { %5103 = vrot.lane.b32.xlu1 %v7798_v47, %s9686_s8  ;;  %v6209_v62 = vmul.f32 %v9533_v46, %v13536_v0  ;;  %v7795_v0 = vpack.c.bf16 %v8319_v1, %v8319_v1  ;;  %v6208_v27 = vmul.f32 %v9533_v46, %v15363_v2  ;;  %9544 = vrcp.f32 %v6114_v22  ;;  %v6123_v57 = vpop.xlane.xlu0 %6122 }
 0xa2b   : > { %9546 = vrcp.f32 %v6123_v57 }
 0xa2c   : > { %6397 = vmatmul.mubr.bf16.gmra.mxu0 %v6254_v4  ;;  %v6259_v26 = vpack.c.bf16 %v6211_v12, %v6209_v62  ;;  %v9535_v32 = vpop.eup %9534  ;;  %v6258_v15 = vpack.c.bf16 %v6210_v43, %v6208_v27  ;;  %v15370_v43 = vld [vmem:[#allocation7_spill] sm:$0xff] }
 0xa2d   : > { %6404 = vmatprep.mubr.bf16.mxu0 %v6257_v33  ;;  %v9537_v14 = vpop.eup %9536  ;;  %v6215_v52 = vmul.f32 %v9535_v32, %v13646_v59  ;;  %v6120_v59 = vpop.xlane.xlu1 %6119  ;;  %v6214_v7 = vmul.f32 %v9535_v32, %v13642_v29  ;;  %v15368_v32 = vld [vmem:[#allocation102_spill] sm:$0xff] }
 0xa2e   : > { %v6213_v6 = vmul.f32 %v9537_v14, %v13548_v31  ;;  %v6212_v31 = vmul.f32 %v9537_v14, %v13544_v16  ;;  %9548 = vrcp.f32 %v6120_v59  ;;  %v6129_v33 = vpop.xlane.xlu0 %6128  ;;  %v15365_v16 = vld [vmem:[#allocation93_spill] sm:$0xff]  ;;  %v15369_v14 = vld [vmem:[#allocation104_spill] sm:$0xff] }
 0xa2f   : > { %9550 = vrcp.f32 %v6129_v33 }
 0xa30   : > { %v6261_v19 = vpack.c.bf16 %v6215_v52, %v6213_v6  ;;  %v9539_v25 = vpop.eup %9538  ;;  %v6260_v36 = vpack.c.bf16 %v6214_v7, %v6212_v31  ;;  %v15376_v31 = vld [vmem:[#allocation108_spill] sm:$0xff] }
 0xa31   : > { %v9541_v63 = vpop.eup %9540  ;;  %v6219_v47 = vmul.f32 %v9539_v25, %v13658_v35  ;;  %v6126_v8 = vpop.xlane.xlu1 %6125  ;;  %v6218_v46 = vmul.f32 %v9539_v25, %v13654_v38  ;;  %v15366_v38 = vld [vmem:[#allocation63_spill] sm:$0xff] }
 0xa32   : > { %v6217_v30 = vmul.f32 %v9541_v63, %v13566_v10  ;;  %v6216_v35 = vmul.f32 %v9541_v63, %v15364_v28  ;;  %9552 = vrcp.f32 %v6126_v8  ;;  %v6135_v40 = vpop.xlane.xlu0 %6134  ;;  %v15375_v63 = vld [vmem:[#allocation109_spill] sm:$0xff] }
 0xa33   : > { %9554 = vrcp.f32 %v6135_v40  ;;  %v13819_v40 = vpop.f32.mrf.mxu0 }
 0xa34   : > { %6405 = vmatmul.mubr.bf16.gmra.mxu0 %v6256_v39  ;;  %v6263_v58 = vpack.c.bf16 %v6219_v47, %v6217_v30  ;;  %v9543_v4 = vpop.eup %9542  ;;  %v6262_v12 = vpack.c.bf16 %v6218_v46, %v6216_v35 }
 0xa35   : > { %6412 = vmatprep.mubr.bf16.mxu0 %v6259_v26  ;;  %v6223_v29 = vmul.f32 %v9543_v4, %v13668_v56  ;;  %v6132_v50 = vpop.xlane.xlu1 %6131  ;;  %v6222_v62 = vmul.f32 %v9543_v4, %v13664_v48  ;;  %v15367_v26 = vld [vmem:[#allocation95_spill] sm:$0xff] }
 0xa36   : > { %3591 = vrot.lane.b32.xlu0 %v7764_v21, %s9685_s30  ;;  %9556 = vrcp.f32 %v6132_v50 }
 0xa37   : > { %v9545_v3 = vpop.eup %9544 }
 0xa38   : > { %v6221_v55 = vmul.f32 %v9545_v3, %v15365_v16  ;;  %v9547_v51 = vpop.eup %9546  ;;  %v6220_v56 = vmul.f32 %v9545_v3, %v15367_v26 }
 0xa39   : > { %v6227_v39 = vmul.f32 %v9547_v51, %v15366_v38  ;;  %v6226_v22 = vmul.f32 %v9547_v51, %v15369_v14 }
 0xa3a   : > { %5097 = vrot.lane.b32.xlu0 %v7795_v0, %s9686_s8  ;;  %v6265_v10 = vpack.c.bf16 %v6223_v29, %v6221_v55  ;;  %v6264_v45 = vpack.c.bf16 %v6222_v62, %v6220_v56  ;;  %v15371_v0 = vld [vmem:[#allocation76_spill] sm:$0xff] }
 0xa3b   : > { %v9549_v5 = vpop.eup %9548 }
 0xa3c   : > { %6413 = vmatmul.mubr.bf16.gmra.mxu0 %v6258_v15  ;;  %v6225_v21 = vmul.f32 %v9549_v5, %v15368_v32  ;;  %v9551_v1 = vpop.eup %9550  ;;  %v6224_v48 = vmul.f32 %v9549_v5, %v15371_v0  ;;  %v15373_v15 = vld [vmem:[#allocation64_spill] sm:$0xff] }
 0xa3d   : > { %6420 = vmatprep.mubr.bf16.mxu0 %v6261_v19  ;;  %v6231_v52 = vmul.f32 %v9551_v1, %v15370_v43  ;;  %v6230_v19 = vmul.f32 %v9551_v1, %v15373_v15 }
 0xa3e   : > { %5101 = vrot.lane.b32.xlu0 %v7797_v13, %s9686_s8  ;;  %v6267_v24 = vpack.c.bf16 %v6227_v39, %v6225_v21  ;;  %v6266_v53 = vpack.c.bf16 %v6226_v22, %v6224_v48  ;;  %v15374_v13 = vld [vmem:[#allocation107_spill] sm:$0xff] }
 0xa3f   : > { %v9553_v54 = vpop.eup %9552 }
 0xa40   : > { %v6229_v41 = vmul.f32 %v9553_v54, %v15372_v18  ;;  %v9555_v27 = vpop.eup %9554  ;;  %v6228_v57 = vmul.f32 %v9553_v54, %v15374_v13 }
 0xa41   : > { %v6235_v25 = vmul.f32 %v9555_v27, %v13690_v9  ;;  %v6234_v30 = vmul.f32 %v9555_v27, %v15376_v31 }
 0xa42   : > { %v6269_v2 = vpack.c.bf16 %v6231_v52, %v6229_v41  ;;  %v6268_v7 = vpack.c.bf16 %v6230_v19, %v6228_v57 }
 0xa43   : > { %v9557_v6 = vpop.eup %9556 }
 0xa44   : > { %6421 = vmatmul.mubr.bf16.gmra.mxu0 %v6260_v36  ;;  %v6233_v59 = vmul.f32 %v9557_v6, %v15375_v63 }
 0xa45   : > { %6428 = vmatprep.mubr.bf16.mxu0 %v6263_v58  ;;  %v15377_v58 = vld [vmem:[#allocation111_spill] sm:$0xff] }
 0xa46   : > { %v6271_v47 = vpack.c.bf16 %v6235_v25, %v6233_v59  ;;  %v6232_v4 = vmul.f32 %v9557_v6, %v15377_v58 }
 0xa48   : > { %v6270_v33 = vpack.c.bf16 %v6234_v30, %v6232_v4 }
 0xa4c   : > { %6429 = vmatmul.mubr.bf16.gmra.mxu0 %v6262_v12 }
 0xa4d   : > { %6436 = vmatprep.mubr.bf16.mxu0 %v6265_v10 }
 0xa54   : > { %6437 = vmatmul.mubr.bf16.gmra.mxu0 %v6264_v45 }
 0xa55   : > { %6444 = vmatprep.mubr.bf16.mxu0 %v6267_v24  ;;  %v6138_v36 = vpop.xlane.xlu1 %6137 }
 0xa56   : > { %9558 = vrcp.f32 %v6138_v36 }
 0xa5c   : > { %6445 = vmatmul.mubr.bf16.gmra.mxu0 %v6266_v53 }
 0xa5d   : > { %6452 = vmatprep.mubr.bf16.mxu0 %v6269_v2 }
 0xa63   : > { %v9559_v8 = vpop.eup %9558 }
 0xa64   : > { %6453 = vmatmul.mubr.bf16.gmra.mxu0 %v6268_v7  ;;  %v6237_v46 = vmul.f32 %v9559_v8, %v13702_v60  ;;  %v6236_v28 = vmul.f32 %v9559_v8, %v13700_v49 }
 0xa65   : > { %6460 = vmatprep.mubr.bf16.mxu0 %v6271_v47 }
 0xa6c   : > { %6461 = vmatmul.mubr.bf16.gmra.mxu0 %v6270_v33  ;;  %v6141_v3 = vpop.xlane.xlu0 %6140 }
 0xa6d   : > { %9560 = vrcp.f32 %v6141_v3 }
 0xa7a   : > { %v9561_v9 = vpop.eup %9560 }
 0xa7b   : > { %v6239_v29 = vmul.f32 %v9561_v9, %v13715_v34  ;;  %v6238_v35 = vmul.f32 %v9561_v9, %v13713_v42  ;;  %v13822_v34 = vpop.f32.mrf.mxu0 }
 0xa7d   : > { %v6273_v16 = vpack.c.bf16 %v6239_v29, %v6237_v46  ;;  %v6272_v55 = vpack.c.bf16 %v6238_v35, %v6236_v28 }
 0xa7f   : > { %6468 = vmatprep.mubr.bf16.mxu0 %v6273_v16 }
 0xa80   : > { %6469 = vmatmul.mubr.bf16.gmra.mxu0 %v6272_v55 }
 0xa92   : > { %v6144_v12 = vpop.xlane.xlu1 %6143 }
 0xa93   : > { %9562 = vrcp.f32 %v6144_v12 }
 0xa96   : > { %v3590_v10 = vpop.permute.xlu1 %3589 }
 0xa97   : > { %3674 = vst.msk [vmem:[#allocation3 + $0x30] sm:$0xf] %vm3661_vm4, %v3590_v10 }
 0xa9a   : > { %v3594_v51 = vpop.permute.xlu1 %3593 }
 0xa9b   : > { %3676 = vst.msk [vmem:[#allocation3 + $0x38] sm:$0xf] %vm3661_vm4, %v3594_v51  ;;  %v8780_v51 = vld [vmem:[%s14306_s3 + $0x8] sm:$0xff]  }
 0xa9c   : > { %8627 = vmatprep.subr.bf16.mxu1 %v8780_v51  ;;  %8591 = vmatprep.subr.bf16.mxu0 %v8780_v51 }
 0xa9d   : > { %8629 = vmatpush3.bf16.msra.mxu1 %v8780_v51  ;;  %8592 = vmatpush3.bf16.msra.mxu0 %v8780_v51 }
 0xa9e   : > { %v3596_v60 = vpop.permute.xlu1 %3595 }
 0xa9f   : > { %3677 = vst.msk [vmem:[#allocation3 + $0x3c] sm:$0xf] %vm3661_vm4, %v3596_v60 }
 0xaa0   : > { %v9563_v0 = vpop.eup %9562 }
 0xaa1   : > { %v8441_v49 = vpop.f32.mrf.mxu0  ;;  %v6241_v27 = vmul.f32 %v9563_v0, %v13738_v17  ;;  %v6240_v19 = vmul.f32 %v9563_v0, %v13736_v20 }
 0xaa2   : > { %v5100_v42 = vpop.permute.xlu1 %5099 }
 0xaa3   : > { %v8442_v5 = vpop.f32.mrf.mxu0 }
 0xaa4   : > { %v13825_v50 = vadd.f32 %v8442_v5, %v8441_v49 }
 0xaa5   : > { %v8444_v62 = vpop.f32.mrf.mxu0 }
 0xaa6   : > { %v5104_v38 = vpop.permute.xlu1 %5103 }
 0xaa7   : > { %5185 = vst.msk [vmem:[#allocation3 + $0x3c] sm:$0xf] %vm5169_vm5, %v5104_v38  ;;  %v8445_v39 = vpop.f32.mrf.mxu0 }
 0xaa8   : > { %v13828_v26 = vadd.f32 %v8445_v39, %v8444_v62  ;;  %v8782_v62 = vld [vmem:[%s14306_s3] sm:$0xff]  }
 0xaa9   : > { %v6147_v56 = vpop.xlane.xlu0 %6146  ;;  %v8447_v32 = vpop.f32.mrf.mxu0  ;;  %8628 = vmatprep.subr.bf16.mxu1 %v8782_v62  ;;  %8593 = vmatprep.subr.bf16.mxu0 %v8782_v62 }
 0xaaa   : > { %9564 = vrcp.f32 %v6147_v56  ;;  %8630 = vmatpush3.bf16.msra.mxu1 %v8782_v62  ;;  %8594 = vmatpush3.bf16.msra.mxu0 %v8782_v62 }
 0xaab   : > { %v8448_v21 = vpop.f32.mrf.mxu0 }
 0xaac   : > { %v13830_v45 = vadd.f32 %v8448_v21, %v8447_v32 }
 0xaad   : > { %v3592_v24 = vpop.permute.xlu0 %3591  ;;  %v8450_v1 = vpop.f32.mrf.mxu0 }
 0xaae   : > { %3675 = vst.msk [vmem:[#allocation3 + $0x34] sm:$0xf] %vm3661_vm4, %v3592_v24  ;;  %v15378_v24 = vld [vmem:[#allocation57_spill] sm:$0xff] }
 0xaaf   : > { %5183 = vst.msk [vmem:[#allocation3 + $0x34] sm:$0xf] %vm5169_vm5, %v5100_v42  ;;  %v8451_v54 = vpop.f32.mrf.mxu0 }
 0xab0   : > { %v13834_v14 = vadd.f32 %v8451_v54, %v8450_v1  ;;  %v7767_v1 = vpack.c.bf16 %v15378_v24, %v15378_v24  ;;  %v15379_v54 = vld [vmem:[#allocation80_spill] sm:$0xff]  ;;  %v15394_v24 = vld [vmem:[#allocation62_spill] sm:$0xff] }
 0xab1   : > { %v5098_v22 = vpop.permute.xlu0 %5097  ;;  %v8453_v43 = vpop.f32.mrf.mxu0 }
 0xab2   : > { %5182 = vst.msk [vmem:[#allocation3 + $0x30] sm:$0xf] %vm5169_vm5, %v5098_v22  ;;  %v15380_v22 = vld [vmem:[#allocation71_spill] sm:$0xff] }
 0xab3   : > { %v8454_v52 = vpop.f32.mrf.mxu0 }
 0xab4   : > { %v13837_v48 = vadd.f32 %v8454_v52, %v8453_v43  ;;  %v8174_v43 = vadd.f32 %v15380_v22, %v15379_v54  ;;  %v15395_v54 = vld [vmem:[#allocation29_spill] sm:$0xff]  ;;  %v15396_v22 = vld [vmem:[#allocation32_spill] sm:$0xff] }
 0xab5   : > { %v5102_v18 = vpop.permute.xlu0 %5101  ;;  %v8456_v41 = vpop.f32.mrf.mxu0 }
 0xab6   : > { %5184 = vst.msk [vmem:[#allocation3 + $0x38] sm:$0xf] %vm5169_vm5, %v5102_v18 }
 0xab7   : > { %v9565_v53 = vpop.eup %9564  ;;  %v8457_v2 = vpop.f32.mrf.mxu0 }
 0xab8   : > { %v13841_v6 = vadd.f32 %v8457_v2, %v8456_v41  ;;  %v6243_v15 = vmul.f32 %v9565_v53, %v13753_v23  ;;  %v6242_v25 = vmul.f32 %v9565_v53, %v13747_v11  ;;  %v7768_v41 = vpack.c.bf16 %v8174_v43, %v8174_v43  ;;  %v15381_v53 = vld [vmem:[#allocation74_spill] sm:$0xff] }
 0xab9   : > { %v8459_v13 = vpop.f32.mrf.mxu0  ;;  %v7769_v2 = vpack.c.bf16 %v15381_v53, %v15381_v53  ;;  %v8132_v43 = vadd.f32 %v15396_v22, %v15395_v54  ;;  %v15398_v53 = vld [vmem:[#allocation89_spill] sm:$0xff]  ;;  %v15410_v22 = vld [vmem:[#allocation55_spill] sm:$0xff] }
 0xaba   : > { %v6275_v57 = vpack.c.bf16 %v6243_v15, %v6241_v27  ;;  %v6274_v63 = vpack.c.bf16 %v6242_v25, %v6240_v19  ;;  %v15382_v27 = vld [vmem:[#allocation82_spill] sm:$0xff] }
 0xabb   : > { %v8460_v59 = vpop.f32.mrf.mxu0  ;;  %v15383_v15 = vld [vmem:[#allocation42_spill] sm:$0xff] }
 0xabc   : > { %v13846_v7 = vadd.f32 %v8460_v59, %v8459_v13  ;;  %6476 = vmatprep.mubr.bf16.mxu0 %v6275_v57  ;;  %v8180_v19 = vadd.f32 %v15383_v15, %v15382_v27 }
 0xabd   : > { %6477 = vmatmul.mubr.bf16.gmra.mxu0 %v6274_v63  ;;  %v8462_v47 = vpop.f32.mrf.mxu0  ;;  %v15384_v63 = vld [vmem:[#allocation97_spill] sm:$0xff] }
 0xabe   : > { %v7770_v57 = vpack.c.bf16 %v8180_v19, %v8180_v19  ;;  %v7799_v59 = vpack.c.bf16 %v15384_v63, %v15384_v63  ;;  %v15402_v63 = vld [vmem:[#allocation58_spill] sm:$0xff] }
 0xabf   : > { %v8463_v31 = vpop.f32.mrf.mxu0 }
 0xac0   : > { %v13848_v30 = vadd.f32 %v8463_v31, %v8462_v47  ;;  %v15385_v31 = vld [vmem:[#allocation34_spill] sm:$0xff] }
 0xae4   : > { %v8465_v17 = vpop.f32.mrf.mxu0 }
 0xae6   : > { %v8466_v36 = vpop.f32.mrf.mxu0 }
 0xae7   : > { %v13850_v58 = vadd.f32 %v8466_v36, %v8465_v17  ;;  %v7800_v17 = vpack.c.bf16 %v15385_v31, %v15385_v31  ;;  %v15386_v36 = vld [vmem:[#allocation90_spill] sm:$0xff] }
 0xae8   : > { %v8468_v23 = vpop.f32.mrf.mxu0 }
 0xaea   : > { %v8469_v20 = vpop.f32.mrf.mxu0 }
 0xaeb   : > { %v13852_v4 = vadd.f32 %v8469_v20, %v8468_v23  ;;  %v7801_v23 = vpack.c.bf16 %v15386_v36, %v15386_v36 }
 0xaec   : > { %v8471_v11 = vpop.f32.mrf.mxu0 }
 0xaee   : > { %v8472_v33 = vpop.f32.mrf.mxu0 }
 0xaef   : > { %v13854_v3 = vadd.f32 %v8472_v33, %v8471_v11  ;;  %v15387_v33 = vld [vmem:[#allocation52_spill] sm:$0xff] }
 0xaf0   : > { %v8474_v8 = vpop.f32.mrf.mxu0 }
 0xaf2   : > { %v8475_v9 = vpop.f32.mrf.mxu0 }
 0xaf3   : > { %v13856_v46 = vadd.f32 %v8475_v9, %v8474_v8  ;;  %v7802_v8 = vpack.c.bf16 %v15387_v33, %v15387_v33  ;;  %v15405_v33 = vld [vmem:[#allocation54_spill] sm:$0xff] }
 0xaf4   : > { %v8477_v29 = vpop.f32.mrf.mxu0 }
 0xaf6   : > { %v8478_v28 = vpop.f32.mrf.mxu0 }
 0xaf7   : > { %v8479_v35 = vadd.f32 %v8478_v28, %v8477_v29 }
 0xaf8   : > { %v8480_v16 = vpop.f32.mrf.mxu0 }
 0xaf9   : > { %v7827_v55 = vpack.c.bf16 %v8479_v35, %v8479_v35 }
 0xafa   : > { %v8481_v12 = vpop.f32.mrf.mxu0 }
 0xafb   : > { %v8482_v10 = vadd.f32 %v8481_v12, %v8480_v16  ;;  %6605 = vrot.lane.b32.xlu0 %v7827_v55, %s9687_s9 }
 0xafc   : > { %v8483_v60 = vpop.f32.mrf.mxu0 }
 0xafd   : > { %v7828_v49 = vpack.c.bf16 %v8482_v10, %v8482_v10  ;;  %v15388_v10 = vld [vmem:[#allocation28_spill] sm:$0xff] }
 0xafe   : > { %v8484_v42 = vpop.f32.mrf.mxu0  ;;  %v7751_v51 = vpack.c.bf16 %v15388_v10, %v15388_v10 }
 0xaff   : > { %v8485_v5 = vadd.f32 %v8484_v42, %v8483_v60  ;;  %6607 = vrot.lane.b32.xlu1 %v7828_v49, %s9687_s9  ;;  %v15389_v60 = vld [vmem:[#allocation51_spill] sm:$0xff] }
 0xb00   : > { %v8486_v38 = vpop.f32.mrf.mxu0  ;;  %v15390_v49 = vld [vmem:[#allocation11_spill] sm:$0xff] }
 0xb01   : > { %v7829_v39 = vpack.c.bf16 %v8485_v5, %v8485_v5  ;;  %v8126_v42 = vadd.f32 %v15390_v49, %v15389_v60  ;;  %v7815_v49 = vpack.c.bf16 %v13825_v50, %v13825_v50 }
 0xb02   : > { %v8487_v56 = vpop.f32.mrf.mxu0 }
 0xb03   : > { %v8488_v32 = vadd.f32 %v8487_v56, %v8486_v38  ;;  %6609 = vrot.lane.b32.xlu0 %v7829_v39, %s9687_s9  ;;  %v7752_v62 = vpack.c.bf16 %v8126_v42, %v8126_v42  ;;  %v15391_v38 = vld [vmem:[#allocation84_spill] sm:$0xff]  ;;  %v15392_v56 = vld [vmem:[#allocation86_spill] sm:$0xff] }
 0xb04   : > { %v8489_v21 = vpop.f32.mrf.mxu0  ;;  %v7771_v39 = vpack.c.bf16 %v15391_v38, %v15391_v38 }
 0xb05   : > { %v7830_v52 = vpack.c.bf16 %v8488_v32, %v8488_v32  ;;  %v15393_v32 = vld [vmem:[#allocation10_spill] sm:$0xff] }
 0xb06   : > { %v8490_v0 = vpop.f32.mrf.mxu0 }
 0xb07   : > { %6611 = vrot.lane.b32.xlu1 %v7830_v52, %s9687_s9  ;;  %3597 = vrot.lane.b32.xlu0 %v7767_v1, %s9685_s30  ;;  %v8491_v20 = vadd.f32 %v8490_v0, %v8489_v21  ;;  %v8186_v21 = vadd.f32 %v15393_v32, %v15392_v56  ;;  %v7753_v1 = vpack.c.bf16 %v15394_v24, %v15394_v24 }
 0xb08   : > { %v8492_v18 = vpop.f32.mrf.mxu0  ;;  %v7754_v0 = vpack.c.bf16 %v8132_v43, %v8132_v43  ;;  %v7817_v32 = vpack.c.bf16 %v13830_v45, %v13830_v45  ;;  %v7755_v43 = vpack.c.bf16 %v15410_v22, %v15410_v22  ;;  %v15411_v45 = vld [vmem:[#allocation67_spill] sm:$0xff] }
 0xb09   : > { %v7831_v9 = vpack.c.bf16 %v8491_v20, %v8491_v20  ;;  %v7772_v52 = vpack.c.bf16 %v8186_v21, %v8186_v21  ;;  %v15404_v20 = vld [vmem:[#allocation59_spill] sm:$0xff] }
 0xb0a   : > { %v8493_v25 = vpop.f32.mrf.mxu0 }
 0xb0b   : > { %3599 = vrot.lane.b32.xlu1 %v7768_v41, %s9685_s30  ;;  %3601 = vrot.lane.b32.xlu0 %v7769_v2, %s9685_s30  ;;  %v8494_v29 = vadd.f32 %v8493_v25, %v8492_v18  ;;  %v15397_v18 = vld [vmem:[#allocation38_spill] sm:$0xff]  ;;  %v15399_v2 = vld [vmem:[#allocation44_spill] sm:$0xff]  ;;  %v15400_v25 = vld [vmem:[#allocation19_spill] sm:$0xff] }
 0xb0c   : > { %v8495_v13 = vpop.f32.mrf.mxu0  ;;  %v7773_v41 = vpack.c.bf16 %v15397_v18, %v15397_v18  ;;  %v8192_v27 = vadd.f32 %v15399_v2, %v15398_v53  ;;  %v15413_v53 = vld [vmem:[#allocation91_spill] sm:$0xff]  ;;  %v15414_v2 = vld [vmem:[#allocation92_spill] sm:$0xff] }
 0xb0d   : > { %v7832_v16 = vpack.c.bf16 %v8494_v29, %v8494_v29  ;;  %v15407_v29 = vld [vmem:[#allocation100_spill] sm:$0xff] }
 0xb0e   : > { %v8496_v47 = vpop.f32.mrf.mxu0  ;;  %v7774_v19 = vpack.c.bf16 %v8192_v27, %v8192_v27  ;;  %v15415_v27 = vld [vmem:[#allocation27_spill] sm:$0xff] }
 0xb0f   : > { %3603 = vrot.lane.b32.xlu1 %v7770_v57, %s9685_s30  ;;  %5105 = vrot.lane.b32.xlu0 %v7799_v59, %s9686_s8  ;;  %v8497_v28 = vadd.f32 %v8496_v47, %v8495_v13  ;;  %v7783_v13 = vpack.c.bf16 %v15400_v25, %v15400_v25  ;;  %v15401_v57 = vld [vmem:[#allocation56_spill] sm:$0xff] }
 0xb10   : > { %v8498_v11 = vpop.f32.mrf.mxu0  ;;  %v8286_v59 = vadd.f32 %v15402_v63, %v15401_v57  ;;  %v15418_v57 = vld [vmem:[#allocation15_spill] sm:$0xff] }
 0xb11   : > { %v7833_v55 = vpack.c.bf16 %v8497_v28, %v8497_v28  ;;  %v7804_v28 = vpack.c.bf16 %v15407_v29, %v15407_v29  ;;  %v15423_v29 = vld [vmem:[#allocation41_spill] sm:$0xff] }
 0xb12   : > { %v8499_v35 = vpop.f32.mrf.mxu0  ;;  %v7784_v31 = vpack.c.bf16 %v8286_v59, %v8286_v59 }
 0xb13   : > { %5107 = vrot.lane.b32.xlu1 %v7800_v17, %s9686_s8  ;;  %5109 = vrot.lane.b32.xlu0 %v7801_v23, %s9686_s8  ;;  %v8500_v12 = vadd.f32 %v8499_v35, %v8498_v11  ;;  %v15403_v17 = vld [vmem:[#allocation98_spill] sm:$0xff]  ;;  %v7785_v11 = vpack.c.bf16 %v15404_v20, %v15404_v20 }
 0xb14   : > { %v8501_v15 = vpop.f32.mrf.mxu0  ;;  %v7803_v36 = vpack.c.bf16 %v15403_v17, %v15403_v17 }
 0xb15   : > { %v7834_v5 = vpack.c.bf16 %v8500_v12, %v8500_v12 }
 0xb16   : > { %v8502_v47 = vpop.f32.mrf.mxu0 }
 0xb17   : > { %5111 = vrot.lane.b32.xlu1 %v7802_v8, %s9686_s8  ;;  %6613 = vrot.lane.b32.xlu0 %v7831_v9, %s9687_s9  ;;  %v15406_v8 = vld [vmem:[#allocation23_spill] sm:$0xff]  ;;  %v8503_v42 = vadd.f32 %v8502_v47, %v8501_v15  ;;  %v8198_v15 = vadd.f32 %v15415_v27, %v15414_v2 }
 0xb18   : > { %v8504_v23 = vpop.f32.mrf.mxu0  ;;  %v8292_v9 = vadd.f32 %v15406_v8, %v15405_v33  ;;  %v15422_v8 = vld [vmem:[#allocation8_spill] sm:$0xff] }
 0xb19   : > { %v7835_v38 = vpack.c.bf16 %v8503_v42, %v8503_v42  ;;  %v7776_v59 = vpack.c.bf16 %v8198_v15, %v8198_v15  ;;  %v15427_v42 = vld [vmem:[#allocation81_spill] sm:$0xff] }
 0xb1a   : > { %v8505_v35 = vpop.f32.mrf.mxu0 }
 0xb1b   : > { %6615 = vrot.lane.b32.xlu1 %v7832_v16, %s9687_s9  ;;  %6617 = vrot.lane.b32.xlu0 %v7833_v55, %s9687_s9  ;;  %v7786_v16 = vpack.c.bf16 %v8292_v9, %v8292_v9  ;;  %v15408_v55 = vld [vmem:[#allocation101_spill] sm:$0xff]  ;;  %v7787_v9 = vpack.c.bf16 %v15422_v8, %v15422_v8  ;;  %v15436_v8 = vld [vmem:[#allocation31_spill] sm:$0xff] }
 0xb1c   : > { %v7805_v12 = vpack.c.bf16 %v15408_v55, %v15408_v55  ;;  %v8507_v10 = vpop.f32.mrf.mxu0 }
 0xb1f   : > { %6619 = vrot.lane.b32.xlu1 %v7834_v5, %s9687_s9  ;;  %3565 = vrot.lane.b32.xlu0 %v7751_v51, %s9685_s30  ;;  %v15409_v51 = vld [vmem:[#allocation30_spill] sm:$0xff]  ;;  %v8508_v5 = vpop.f32.mrf.mxu0 }
 0xb20   : > { %v7806_v60 = vpack.c.bf16 %v15409_v51, %v15409_v51  ;;  %v8509_v21 = vadd.f32 %v8508_v5, %v8507_v10  ;;  %v15428_v5 = vld [vmem:[#allocation13_spill] sm:$0xff] }
 0xb21   : > { %v8510_v56 = vpop.f32.mrf.mxu0 }
 0xb23   : > { %3567 = vrot.lane.b32.xlu1 %v7752_v62, %s9685_s30  ;;  %3605 = vrot.lane.b32.xlu0 %v7771_v39, %s9685_s30  ;;  %v7816_v62 = vpack.c.bf16 %v13828_v26, %v13828_v26  ;;  %v8506_v39 = vadd.f32 %v8505_v35, %v8504_v23  ;;  %v8511_v24 = vpop.f32.mrf.mxu0  ;;  %v7818_v26 = vpack.c.bf16 %v13834_v14, %v13834_v14  ;;  %v15421_v23 = vld [vmem:[#allocation46_spill] sm:$0xff] }
 0xb24   : > { %v8512_v54 = vadd.f32 %v8511_v24, %v8510_v56  ;;  %v7775_v14 = vpack.c.bf16 %v15413_v53, %v15413_v53 }
 0xb25   : > { %v7836_v50 = vpack.c.bf16 %v8506_v39, %v8506_v39 }
 0xb26   : > { %v7838_v18 = vpack.c.bf16 %v8512_v54, %v8512_v54  ;;  %v7819_v54 = vpack.c.bf16 %v13837_v48, %v13837_v48  ;;  %v7821_v48 = vpack.c.bf16 %v13846_v7, %v13846_v7  ;;  %v15432_v7 = vld [vmem:[#allocation26_spill] sm:$0xff] }
 0xb27   : > { %3607 = vrot.lane.b32.xlu1 %v7772_v52, %s9685_s30  ;;  %3569 = vrot.lane.b32.xlu0 %v7753_v1, %s9685_s30  ;;  %v7837_v1 = vpack.c.bf16 %v8509_v21, %v8509_v21  ;;  %v15412_v52 = vld [vmem:[#allocation12_spill] sm:$0xff] }
 0xb2b   : > { %3571 = vrot.lane.b32.xlu1 %v7754_v0, %s9685_s30  ;;  %3609 = vrot.lane.b32.xlu0 %v7773_v41, %s9685_s30  ;;  %v8138_v0 = vadd.f32 %v15412_v52, %v15411_v45  ;;  %v7820_v52 = vpack.c.bf16 %v13841_v6, %v13841_v6  ;;  %v7822_v6 = vpack.c.bf16 %v13848_v30, %v13848_v30  ;;  %v15434_v30 = vld [vmem:[#allocation66_spill] sm:$0xff] }
 0xb2d   : > { %v7756_v41 = vpack.c.bf16 %v8138_v0, %v8138_v0 }
 0xb2f   : > { %3611 = vrot.lane.b32.xlu1 %v7774_v19, %s9685_s30  ;;  %5073 = vrot.lane.b32.xlu0 %v7783_v13, %s9686_s8  ;;  %v15416_v19 = vld [vmem:[#allocation21_spill] sm:$0xff]  ;;  %v15417_v13 = vld [vmem:[#allocation14_spill] sm:$0xff] }
 0xb30   : > { %v7757_v25 = vpack.c.bf16 %v15416_v19, %v15416_v19  ;;  %v8144_v63 = vadd.f32 %v15418_v57, %v15417_v13 }
 0xb32   : > { %v7758_v47 = vpack.c.bf16 %v8144_v63, %v8144_v63 }
 0xb33   : > { %5075 = vrot.lane.b32.xlu1 %v7784_v31, %s9686_s8  ;;  %5113 = vrot.lane.b32.xlu0 %v7803_v36, %s9686_s8  ;;  %v15419_v31 = vld [vmem:[#allocation96_spill] sm:$0xff]  ;;  %v15420_v36 = vld [vmem:[#allocation99_spill] sm:$0xff] }
 0xb34   : > { %v7777_v17 = vpack.c.bf16 %v15419_v31, %v15419_v31  ;;  %v8204_v20 = vadd.f32 %v15421_v23, %v15420_v36 }
 0xb36   : > { %v7778_v33 = vpack.c.bf16 %v8204_v20, %v8204_v20 }
 0xb37   : > { %5115 = vrot.lane.b32.xlu1 %v7804_v28, %s9686_s8  ;;  %5077 = vrot.lane.b32.xlu0 %v7785_v11, %s9686_s8  ;;  %v8513_v11 = vpop.f32.mrf.mxu0  ;;  %v15424_v28 = vld [vmem:[#allocation79_spill] sm:$0xff] }
 0xb38   : > { %v8298_v35 = vadd.f32 %v15424_v28, %v15423_v29 }
 0xb3a   : > { %v7788_v55 = vpack.c.bf16 %v8298_v35, %v8298_v35 }
 0xb3b   : > { %5079 = vrot.lane.b32.xlu1 %v7786_v16, %s9686_s8  ;;  %5117 = vrot.lane.b32.xlu0 %v7805_v12, %s9686_s8  ;;  %v8514_v16 = vpop.f32.mrf.mxu0  ;;  %v15425_v12 = vld [vmem:[#allocation106_spill] sm:$0xff] }
 0xb3c   : > { %v7807_v10 = vpack.c.bf16 %v15425_v12, %v15425_v12  ;;  %v8515_v22 = vadd.f32 %v8514_v16, %v8513_v11  ;;  %v15435_v11 = vld [vmem:[#allocation103_spill] sm:$0xff] }
 0xb3d   : > { %v8516_v51 = vpop.f32.mrf.mxu0 }
 0xb3e   : > { %v7839_v0 = vpack.c.bf16 %v8515_v22, %v8515_v22 }
 0xb3f   : > { %5119 = vrot.lane.b32.xlu1 %v7806_v60, %s9686_s8  ;;  %6581 = vrot.lane.b32.xlu0 %v7815_v49, %s9687_s9  ;;  %v15426_v60 = vld [vmem:[#allocation77_spill] sm:$0xff]  ;;  %v8517_v56 = vpop.f32.mrf.mxu0 }
 0xb40   : > { %v7789_v49 = vpack.c.bf16 %v15426_v60, %v15426_v60 }
 0xb41   : > { %v8519_v24 = vpop.f32.mrf.mxu0 }
 0xb43   : > { %6583 = vrot.lane.b32.xlu1 %v7816_v62, %s9687_s9  ;;  %6621 = vrot.lane.b32.xlu0 %v7835_v38, %s9687_s9  ;;  %v8304_v62 = vadd.f32 %v15428_v5, %v15427_v42  ;;  %v15429_v38 = vld [vmem:[#allocation118_spill] sm:$0xff]  ;;  %v8520_v45 = vpop.f32.mrf.mxu0 }
 0xb44   : > { %v7808_v39 = vpack.c.bf16 %v15429_v38, %v15429_v38  ;;  %v8521_v2 = vadd.f32 %v8520_v45, %v8519_v24  ;;  %v15441_v38 = vld [vmem:[#allocation72_spill] sm:$0xff]  ;;  %v15446_v45 = vld [vmem:[#allocation87_spill] sm:$0xff] }
 0xb45   : > { %v8522_v53 = vpop.f32.mrf.mxu0 }
 0xb46   : > { %v7841_v19 = vpack.c.bf16 %v8521_v2, %v8521_v2 }
 0xb47   : > { %6623 = vrot.lane.b32.xlu1 %v7836_v50, %s9687_s9  ;;  %6585 = vrot.lane.b32.xlu0 %v7817_v32, %s9687_s9  ;;  %v7790_v32 = vpack.c.bf16 %v8304_v62, %v8304_v62  ;;  %v15430_v50 = vld [vmem:[#allocation116_spill] sm:$0xff]  ;;  %v8523_v15 = vpop.f32.mrf.mxu0 }
 0xb48   : > { %v7809_v21 = vpack.c.bf16 %v15430_v50, %v15430_v50 }
 0xb4b   : > { %6587 = vrot.lane.b32.xlu1 %v7818_v26, %s9687_s9  ;;  %6625 = vrot.lane.b32.xlu0 %v7837_v1, %s9687_s9  ;;  %v15431_v26 = vld [vmem:[#allocation110_spill] sm:$0xff] }
 0xb4c   : > { %v7810_v1 = vpack.c.bf16 %v15431_v26, %v15431_v26  ;;  %v8525_v26 = vpop.f32.mrf.mxu0 }
 0xb4f   : > { %6627 = vrot.lane.b32.xlu1 %v7838_v18, %s9687_s9  ;;  %3573 = vrot.lane.b32.xlu0 %v7755_v43, %s9685_s30  ;;  %v8518_v18 = vadd.f32 %v8517_v56, %v8516_v51  ;;  %v15440_v51 = vld [vmem:[#allocation36_spill] sm:$0xff] }
 0xb50   : > { %v15442_v56 = vld [vmem:[#allocation68_spill] sm:$0xff] }
 0xb53   : > { %3575 = vrot.lane.b32.xlu1 %v7756_v41, %s9685_s30  ;;  %3613 = vrot.lane.b32.xlu0 %v7775_v14, %s9685_s30  ;;  %v7840_v14 = vpack.c.bf16 %v8518_v18, %v8518_v18 }
 0xb57   : > { %3615 = vrot.lane.b32.xlu1 %v7776_v59, %s9685_s30  ;;  %3577 = vrot.lane.b32.xlu0 %v7757_v25, %s9685_s30  ;;  %v8524_v25 = vadd.f32 %v8523_v15, %v8522_v53  ;;  %v7759_v59 = vpack.c.bf16 %v15432_v7, %v15432_v7  ;;  %v15447_v15 = vld [vmem:[#allocation85_spill] sm:$0xff] }
 0xb5b   : > { %3579 = vrot.lane.b32.xlu1 %v7758_v47, %s9685_s30  ;;  %3617 = vrot.lane.b32.xlu0 %v7777_v17, %s9685_s30  ;;  %v15433_v47 = vld [vmem:[#allocation33_spill] sm:$0xff]  ;;  %v7842_v17 = vpack.c.bf16 %v8524_v25, %v8524_v25  ;;  %v15449_v25 = vld [vmem:[#allocation40_spill] sm:$0xff] }
 0xb5c   : > { %v8150_v31 = vadd.f32 %v15434_v30, %v15433_v47  ;;  %v7813_v30 = vpack.c.bf16 %v13726_v61, %v13726_v61  ;;  %v7823_v61 = vpack.c.bf16 %v13850_v58, %v13850_v58 }
 0xb5e   : > { %v7760_v20 = vpack.c.bf16 %v8150_v31, %v8150_v31 }
 0xb5f   : > { %3619 = vrot.lane.b32.xlu1 %v7778_v33, %s9685_s30  ;;  %5081 = vrot.lane.b32.xlu0 %v7787_v9, %s9686_s8  ;;  %v7779_v33 = vpack.c.bf16 %v15435_v11, %v15435_v11  ;;  %v15437_v9 = vld [vmem:[#allocation22_spill] sm:$0xff] }
 0xb60   : > { %v8210_v29 = vadd.f32 %v15437_v9, %v15436_v8  ;;  %v7824_v8 = vpack.c.bf16 %v13852_v4, %v13852_v4 }
 0xb63   : > { %5083 = vrot.lane.b32.xlu1 %v7788_v55, %s9686_s8  ;;  %5121 = vrot.lane.b32.xlu0 %v7807_v10, %s9686_s8  ;;  %v15438_v55 = vld [vmem:[#allocation69_spill] sm:$0xff] }
 0xb64   : > { %v7761_v12 = vpack.c.bf16 %v15438_v55, %v15438_v55  ;;  %v15439_v10 = vld [vmem:[#allocation45_spill] sm:$0xff] }
 0xb65   : > { %v8156_v60 = vadd.f32 %v15440_v51, %v15439_v10 }
 0xb67   : > { %5123 = vrot.lane.b32.xlu1 %v7808_v39, %s9686_s8  ;;  %5085 = vrot.lane.b32.xlu0 %v7789_v49, %s9686_s8  ;;  %v7780_v49 = vpack.c.bf16 %v8210_v29, %v8210_v29  ;;  %v7762_v62 = vpack.c.bf16 %v8156_v60, %v8156_v60  ;;  %v7781_v39 = vpack.c.bf16 %v15441_v38, %v15441_v38 }
 0xb68   : > { %v7826_v60 = vpack.c.bf16 %v13856_v46, %v13856_v46 }
 0xb6b   : > { %5087 = vrot.lane.b32.xlu1 %v7790_v32, %s9686_s8  ;;  %5125 = vrot.lane.b32.xlu0 %v7809_v21, %s9686_s8  ;;  %v15443_v32 = vld [vmem:[#allocation24_spill] sm:$0xff] }
 0xb6c   : > { %v8216_v50 = vadd.f32 %v15443_v32, %v15442_v56 }
 0xb6d   : > { %v6606_v43 = vpop.permute.xlu0 %6605 }
 0xb6e   : > { %6690 = vst.msk [vmem:[#allocation3 + $0x30] sm:$0xf] %vm6677_vm6, %v6606_v43  ;;  %v15445_v43 = vld [vmem:[#allocation73_spill] sm:$0xff] }
 0xb6f   : > { %5127 = vrot.lane.b32.xlu1 %v7810_v1, %s9686_s8  ;;  %6589 = vrot.lane.b32.xlu0 %v7819_v54, %s9687_s9  ;;  %v7782_v1 = vpack.c.bf16 %v8216_v50, %v8216_v50  ;;  %v15444_v54 = vld [vmem:[#allocation83_spill] sm:$0xff] }
 0xb70   : > { %v7791_v22 = vpack.c.bf16 %v15444_v54, %v15444_v54 }
 0xb71   : > { %v6608_v41 = vpop.permute.xlu1 %6607 }
 0xb72   : > { %6691 = vst.msk [vmem:[#allocation3 + $0x34] sm:$0xf] %vm6677_vm6, %v6608_v41  ;;  %v8526_v41 = vpop.f32.mrf.mxu0 }
 0xb73   : > { %6591 = vrot.lane.b32.xlu1 %v7820_v52, %s9687_s9  ;;  %6629 = vrot.lane.b32.xlu0 %v7839_v0, %s9687_s9  ;;  %v8310_v52 = vadd.f32 %v15446_v45, %v15445_v43  ;;  %v8527_v11 = vadd.f32 %v8526_v41, %v8525_v26 }
 0xb75   : > { %v6610_v27 = vpop.permute.xlu0 %6609  ;;  %v7792_v53 = vpack.c.bf16 %v8310_v52, %v8310_v52  ;;  %v7843_v9 = vpack.c.bf16 %v8527_v11, %v8527_v11 }
 0xb76   : > { %6692 = vst.msk [vmem:[#allocation3 + $0x38] sm:$0xf] %vm6677_vm6, %v6610_v27  ;;  %v8528_v27 = vpop.f32.mrf.mxu0 }
 0xb77   : > { %6631 = vrot.lane.b32.xlu1 %v7840_v14, %s9687_s9  ;;  %6593 = vrot.lane.b32.xlu0 %v7821_v48, %s9687_s9  ;;  %v7811_v48 = vpack.c.bf16 %v13694_v37, %v13694_v37  ;;  %v7812_v37 = vpack.c.bf16 %v13696_v44, %v13696_v44  ;;  %v8376_v44 = vadd.f32 %v13822_v34, %v13819_v40 }
 0xb79   : > { %v3598_v13 = vpop.permute.xlu0 %3597  ;;  %v6612_v57 = vpop.permute.xlu1 %6611  ;;  %v8781_v63 = vld [vmem:[#allocation3 + $0x30] sm:$0xff]  }
 0xb7a   : > { %3678 = vst.msk [vmem:[#allocation3 + $0x40] sm:$0xf] %vm3661_vm4, %v3598_v13  ;;  %8607 = vmatprep.mubr.msk.bf16.mxu1 %vm403_vm0, %v8781_v63 }
 0xb7b   : > { %6693 = vst.msk [vmem:[#allocation3 + $0x3c] sm:$0xf] %vm6677_vm6, %v6612_v57  ;;  %6595 = vrot.lane.b32.xlu1 %v7822_v6, %s9687_s9  ;;  %6633 = vrot.lane.b32.xlu0 %v7841_v19, %s9687_s9  ;;  %v7793_v6 = vpack.c.bf16 %v15447_v15, %v15447_v15  ;;  %v15448_v19 = vld [vmem:[#allocation88_spill] sm:$0xff] }
 0xb7c   : > { %v8316_v13 = vadd.f32 %v15449_v25, %v15448_v19 }
 0xb7d   : > { %v3602_v36 = vpop.permute.xlu0 %3601  ;;  %v3600_v23 = vpop.permute.xlu1 %3599 }
 0xb7e   : > { %3680 = vst.msk [vmem:[#allocation3 + $0x48] sm:$0xf] %vm3661_vm4, %v3602_v36  ;;  %3679 = vst.msk [vmem:[#allocation3 + $0x44] sm:$0xf] %vm3661_vm4, %v3600_v23  ;;  %v7794_v47 = vpack.c.bf16 %v8316_v13, %v8316_v13 }
 0xb7f   : > { %6635 = vrot.lane.b32.xlu1 %v7842_v17, %s9687_s9  ;;  %3581 = vrot.lane.b32.xlu0 %v7759_v59, %s9685_s30  ;;  %v8529_v59 = vpop.f32.mrf.mxu0 }
 0xb80   : > { %v8530_v29 = vadd.f32 %v8529_v59, %v8528_v27 }
 0xb81   : > { %v5106_v28 = vpop.permute.xlu0 %5105  ;;  %v3604_v35 = vpop.permute.xlu1 %3603 }
 0xb82   : > { %v8783_v16 = vld [vmem:[#allocation3 + $0x38] sm:$0xff]   ;;  %5186 = vst.msk [vmem:[#allocation3 + $0x40] sm:$0xf] %vm5169_vm5, %v5106_v28  ;;  %v8531_v23 = vpop.f32.mrf.mxu0  ;;  %v7844_v55 = vpack.c.bf16 %v8530_v29, %v8530_v29 }
 0xb83   : > { %3681 = vst.msk [vmem:[#allocation3 + $0x4c] sm:$0xf] %vm3661_vm4, %v3604_v35  ;;  %3583 = vrot.lane.b32.xlu1 %v7760_v20, %s9685_s30  ;;  %3621 = vrot.lane.b32.xlu0 %v7779_v33, %s9685_s30  ;;  %v7814_v20 = vpack.c.bf16 %v8376_v44, %v8376_v44 }
 0xb84   : > { %8608 = vmatmul.mubr.msk.bf16.vlgmr.msra.gmra.mxu1 %vm403_vm0, %v8783_v16  ;;  %v8532_v33 = vpop.f32.mrf.mxu0  ;;  %v7825_v16 = vpack.c.bf16 %v13854_v3, %v13854_v3 }
 0xb85   : > { %v5110_v42 = vpop.permute.xlu0 %5109  ;;  %v5108_v5 = vpop.permute.xlu1 %5107 }
 0xb86   : > { %5188 = vst.msk [vmem:[#allocation3 + $0x48] sm:$0xf] %vm5169_vm5, %v5110_v42  ;;  %5187 = vst.msk [vmem:[#allocation3 + $0x44] sm:$0xf] %vm5169_vm5, %v5108_v5  ;;  %v8534_v58 = vpop.f32.mrf.mxu0 }
 0xb87   : > { %3623 = vrot.lane.b32.xlu1 %v7780_v49, %s9685_s30  ;;  %3585 = vrot.lane.b32.xlu0 %v7761_v12, %s9685_s30  ;;  %v8533_v12 = vadd.f32 %v8532_v33, %v8531_v23 }
 0xb88   : > { %v8535_v51 = vpop.f32.mrf.mxu0 }
 0xb89   : > { %v6614_v21 = vpop.permute.xlu0 %6613  ;;  %v5112_v24 = vpop.permute.xlu1 %5111  ;;  %v7845_v49 = vpack.c.bf16 %v8533_v12, %v8533_v12  ;;  %v8536_v42 = vadd.f32 %v8535_v51, %v8534_v58 }
 0xb8a   : > { %6694 = vst.msk [vmem:[#allocation3 + $0x40] sm:$0xf] %vm6677_vm6, %v6614_v21 }
 0xb8b   : > { %5189 = vst.msk [vmem:[#allocation3 + $0x4c] sm:$0xf] %vm5169_vm5, %v5112_v24  ;;  %3587 = vrot.lane.b32.xlu1 %v7762_v62, %s9685_s30  ;;  %3625 = vrot.lane.b32.xlu0 %v7781_v39, %s9685_s30  ;;  %v7846_v62 = vpack.c.bf16 %v8536_v42, %v8536_v42 }
 0xb8d   : > { %v6618_v0 = vpop.permute.xlu0 %6617  ;;  %v6616_v18 = vpop.permute.xlu1 %6615 }
 0xb8e   : > { %6696 = vst.msk [vmem:[#allocation3 + $0x48] sm:$0xf] %vm6677_vm6, %v6618_v0  ;;  %6695 = vst.msk [vmem:[#allocation3 + $0x44] sm:$0xf] %vm6677_vm6, %v6616_v18 }
 0xb8f   : > { %3627 = vrot.lane.b32.xlu1 %v7782_v1, %s9685_s30  ;;  %5089 = vrot.lane.b32.xlu0 %v7791_v22, %s9686_s8 }
 0xb91   : > { %v3566_v14 = vpop.permute.xlu0 %3565  ;;  %v6620_v2 = vpop.permute.xlu1 %6619 }
 0xb92   : > { %3662 = vst.msk [vmem:[#allocation3] sm:$0xf] %vm3661_vm4, %v3566_v14 }
 0xb93   : > { %6697 = vst.msk [vmem:[#allocation3 + $0x4c] sm:$0xf] %vm6677_vm6, %v6620_v2  ;;  %5091 = vrot.lane.b32.xlu1 %v7792_v53, %s9686_s8  ;;  %5129 = vrot.lane.b32.xlu0 %v7811_v48, %s9686_s8 }
 0xb95   : > { %v3606_v57 = vpop.permute.xlu0 %3605  ;;  %v3568_v63 = vpop.permute.xlu1 %3567  ;;  %v8784_v7 = vld [vmem:[#allocation3 + $0x40] sm:$0xff]  }
 0xb96   : > { %3682 = vst.msk [vmem:[#allocation3 + $0x50] sm:$0xf] %vm3661_vm4, %v3606_v57  ;;  %3663 = vst.msk [vmem:[#allocation3 + $0x4] sm:$0xf] %vm3661_vm4, %v3568_v63  ;;  %8611 = vmatprep.mubr.msk.bf16.mxu1 %vm403_vm0, %v8784_v7 }
 0xb97   : > { %5131 = vrot.lane.b32.xlu1 %v7812_v37, %s9686_s8  ;;  %5093 = vrot.lane.b32.xlu0 %v7793_v6, %s9686_s8 }
 0xb99   : > { %v3570_v31 = vpop.permute.xlu0 %3569  ;;  %v3608_v17 = vpop.permute.xlu1 %3607 }
 0xb9a   : > { %v8785_v36 = vld [vmem:[#allocation3 + $0x48] sm:$0xff]   ;;  %3664 = vst.msk [vmem:[#allocation3 + $0x8] sm:$0xf] %vm3661_vm4, %v3570_v31  ;;  %3683 = vst.msk [vmem:[#allocation3 + $0x54] sm:$0xf] %vm3661_vm4, %v3608_v17 }
 0xb9b   : > { %5095 = vrot.lane.b32.xlu1 %v7794_v47, %s9686_s8  ;;  %5133 = vrot.lane.b32.xlu0 %v7813_v30, %s9686_s8 }
 0xb9c   : > { %8612 = vmatmul.mubr.msk.bf16.gmra.mxu1 %vm403_vm0, %v8785_v36 }
 0xb9d   : > { %v3610_v40 = vpop.permute.xlu0 %3609  ;;  %v3572_v34 = vpop.permute.xlu1 %3571 }
 0xb9e   : > { %3684 = vst.msk [vmem:[#allocation3 + $0x58] sm:$0xf] %vm3661_vm4, %v3610_v40  ;;  %3665 = vst.msk [vmem:[#allocation3 + $0xc] sm:$0xf] %vm3661_vm4, %v3572_v34 }
 0xb9f   : > { %5135 = vrot.lane.b32.xlu1 %v7814_v20, %s9686_s8  ;;  %6597 = vrot.lane.b32.xlu0 %v7823_v61, %s9687_s9 }
 0xba1   : > { %v5074_v28 = vpop.permute.xlu0 %5073  ;;  %v3612_v35 = vpop.permute.xlu1 %3611 }
 0xba2   : > { %5170 = vst.msk [vmem:[#allocation3] sm:$0xf] %vm5169_vm5, %v5074_v28 }
 0xba3   : > { %3685 = vst.msk [vmem:[#allocation3 + $0x5c] sm:$0xf] %vm3661_vm4, %v3612_v35  ;;  %6599 = vrot.lane.b32.xlu1 %v7824_v8, %s9687_s9  ;;  %6637 = vrot.lane.b32.xlu0 %v7843_v9, %s9687_s9 }
 0xba5   : > { %v5114_v10 = vpop.permute.xlu0 %5113  ;;  %v5076_v4 = vpop.permute.xlu1 %5075 }
 0xba6   : > { %5190 = vst.msk [vmem:[#allocation3 + $0x50] sm:$0xf] %vm5169_vm5, %v5114_v10  ;;  %5171 = vst.msk [vmem:[#allocation3 + $0x4] sm:$0xf] %vm5169_vm5, %v5076_v4 }
 0xba7   : > { %6639 = vrot.lane.b32.xlu1 %v7844_v55, %s9687_s9  ;;  %6601 = vrot.lane.b32.xlu0 %v7825_v16, %s9687_s9 }
 0xba9   : > { %v5078_v5 = vpop.permute.xlu0 %5077  ;;  %v5116_v3 = vpop.permute.xlu1 %5115 }
 0xbaa   : > { %5172 = vst.msk [vmem:[#allocation3 + $0x8] sm:$0xf] %vm5169_vm5, %v5078_v5  ;;  %5191 = vst.msk [vmem:[#allocation3 + $0x54] sm:$0xf] %vm5169_vm5, %v5116_v3 }
 0xbab   : > { %6603 = vrot.lane.b32.xlu1 %v7826_v60, %s9687_s9  ;;  %6641 = vrot.lane.b32.xlu0 %v7845_v49, %s9687_s9 }
 0xbad   : > { %v5118_v38 = vpop.permute.xlu0 %5117  ;;  %v5080_v39 = vpop.permute.xlu1 %5079 }
 0xbae   : > { %5192 = vst.msk [vmem:[#allocation3 + $0x58] sm:$0xf] %vm5169_vm5, %v5118_v38  ;;  %5173 = vst.msk [vmem:[#allocation3 + $0xc] sm:$0xf] %vm5169_vm5, %v5080_v39 }
 0xbaf   : > { %6643 = vrot.lane.b32.xlu1 %v7846_v62, %s9687_s9 }
 0xbb1   : > { %v6582_v46 = vpop.permute.xlu0 %6581  ;;  %v5120_v56 = vpop.permute.xlu1 %5119 }
 0xbb2   : > { %6678 = vst.msk [vmem:[#allocation3] sm:$0xf] %vm6677_vm6, %v6582_v46 }
 0xbb3   : > { %5193 = vst.msk [vmem:[#allocation3 + $0x5c] sm:$0xf] %vm5169_vm5, %v5120_v56 }
 0xbb5   : > { %v6622_v32 = vpop.permute.xlu0 %6621  ;;  %v6584_v50 = vpop.permute.xlu1 %6583 }
 0xbb6   : > { %6698 = vst.msk [vmem:[#allocation3 + $0x50] sm:$0xf] %vm6677_vm6, %v6622_v32  ;;  %6679 = vst.msk [vmem:[#allocation3 + $0x4] sm:$0xf] %vm6677_vm6, %v6584_v50 }
 0xbb9   : > { %v6586_v21 = vpop.permute.xlu0 %6585  ;;  %v6624_v24 = vpop.permute.xlu1 %6623 }
 0xbba   : > { %6680 = vst.msk [vmem:[#allocation3 + $0x8] sm:$0xf] %vm6677_vm6, %v6586_v21  ;;  %6699 = vst.msk [vmem:[#allocation3 + $0x54] sm:$0xf] %vm6677_vm6, %v6624_v24  ;;  %v14195_v24 = vld [vmem:[%s14307_s4] ss:$0 sm:$0xff] }
 0xbbd   : > { %v6626_v26 = vpop.permute.xlu0 %6625  ;;  %v6588_v1 = vpop.permute.xlu1 %6587  ;;  %v8786_v54 = vld [vmem:[#allocation3] sm:$0xff]  }
 0xbbe   : > { %6700 = vst.msk [vmem:[#allocation3 + $0x58] sm:$0xf] %vm6677_vm6, %v6626_v26  ;;  %6681 = vst.msk [vmem:[#allocation3 + $0xc] sm:$0xf] %vm6677_vm6, %v6588_v1  ;;  %8595 = vmatprep.mubr.msk.bf16.mxu0 %vm403_vm0, %v8786_v54 }
 0xbc1   : > { %v3574_v22 = vpop.permute.xlu0 %3573  ;;  %v6628_v43 = vpop.permute.xlu1 %6627  ;;  %v8787_v45 = vld [vmem:[#allocation3 + $0x50] sm:$0xff]  }
 0xbc2   : > { %3666 = vst.msk [vmem:[#allocation3 + $0x10] sm:$0xf] %vm3661_vm4, %v3574_v22  ;;  %8615 = vmatprep.mubr.msk.bf16.mxu1 %vm403_vm0, %v8787_v45 }
 0xbc3   : > { %6701 = vst.msk [vmem:[#allocation3 + $0x5c] sm:$0xf] %vm6677_vm6, %v6628_v43 }
 0xbc5   : > { %v3614_v52 = vpop.permute.xlu0 %3613  ;;  %v3576_v0 = vpop.permute.xlu1 %3575  ;;  %v8788_v18 = vld [vmem:[#allocation3 + $0x8] sm:$0xff]  }
 0xbc6   : > { %3686 = vst.msk [vmem:[#allocation3 + $0x60] sm:$0xf] %vm3661_vm4, %v3614_v52  ;;  %3667 = vst.msk [vmem:[#allocation3 + $0x14] sm:$0xf] %vm3661_vm4, %v3576_v0  ;;  %8596 = vmatmul.mubr.msk.bf16.vlgmr.msra.gmra.mxu0 %vm403_vm0, %v8788_v18 }
 0xbc9   : > { %v3578_v41 = vpop.permute.xlu0 %3577  ;;  %v3616_v53 = vpop.permute.xlu1 %3615 }
 0xbca   : > { %v8789_v48 = vld [vmem:[#allocation3 + $0x58] sm:$0xff]   ;;  %3668 = vst.msk [vmem:[#allocation3 + $0x18] sm:$0xf] %vm3661_vm4, %v3578_v41  ;;  %3687 = vst.msk [vmem:[#allocation3 + $0x64] sm:$0xf] %vm3661_vm4, %v3616_v53 }
 0xbcb   : > { %8616 = vmatmul.mubr.msk.bf16.gmra.mxu1 %vm403_vm0, %v8789_v48 }
 0xbcd   : > { %v3618_v14 = vpop.permute.xlu0 %3617  ;;  %v3580_v2 = vpop.permute.xlu1 %3579 }
 0xbce   : > { %3688 = vst.msk [vmem:[#allocation3 + $0x68] sm:$0xf] %vm3661_vm4, %v3618_v14  ;;  %3669 = vst.msk [vmem:[#allocation3 + $0x1c] sm:$0xf] %vm3661_vm4, %v3580_v2 }
 0xbd1   : > { %v5082_v27 = vpop.permute.xlu0 %5081  ;;  %v3620_v15 = vpop.permute.xlu1 %3619 }
 0xbd2   : > { %5174 = vst.msk [vmem:[#allocation3 + $0x10] sm:$0xf] %vm5169_vm5, %v5082_v27 }
 0xbd3   : > { %3689 = vst.msk [vmem:[#allocation3 + $0x6c] sm:$0xf] %vm3661_vm4, %v3620_v15 }
 0xbd5   : > { %v5122_v6 = vpop.permute.xlu0 %5121  ;;  %v5084_v19 = vpop.permute.xlu1 %5083 }
 0xbd6   : > { %5194 = vst.msk [vmem:[#allocation3 + $0x60] sm:$0xf] %vm5169_vm5, %v5122_v6  ;;  %5175 = vst.msk [vmem:[#allocation3 + $0x14] sm:$0xf] %vm5169_vm5, %v5084_v19 }
 0xbd9   : > { %v5086_v25 = vpop.permute.xlu0 %5085  ;;  %v5124_v13 = vpop.permute.xlu1 %5123 }
 0xbda   : > { %5176 = vst.msk [vmem:[#allocation3 + $0x18] sm:$0xf] %vm5169_vm5, %v5086_v25  ;;  %5195 = vst.msk [vmem:[#allocation3 + $0x64] sm:$0xf] %vm5169_vm5, %v5124_v13 }
 0xbdd   : > { %v5126_v37 = vpop.permute.xlu0 %5125  ;;  %v5088_v57 = vpop.permute.xlu1 %5087 }
 0xbde   : > { %5196 = vst.msk [vmem:[#allocation3 + $0x68] sm:$0xf] %vm5169_vm5, %v5126_v37  ;;  %5177 = vst.msk [vmem:[#allocation3 + $0x1c] sm:$0xf] %vm5169_vm5, %v5088_v57 }
 0xbe1   : > { %v6590_v63 = vpop.permute.xlu0 %6589  ;;  %v5128_v7 = vpop.permute.xlu1 %5127 }
 0xbe2   : > { %6682 = vst.msk [vmem:[#allocation3 + $0x10] sm:$0xf] %vm6677_vm6, %v6590_v63 }
 0xbe3   : > { %5197 = vst.msk [vmem:[#allocation3 + $0x6c] sm:$0xf] %vm5169_vm5, %v5128_v7 }
 0xbe5   : > { %v6630_v59 = vpop.permute.xlu0 %6629  ;;  %v6592_v47 = vpop.permute.xlu1 %6591 }
 0xbe6   : > { %6702 = vst.msk [vmem:[#allocation3 + $0x60] sm:$0xf] %vm6677_vm6, %v6630_v59  ;;  %6683 = vst.msk [vmem:[#allocation3 + $0x14] sm:$0xf] %vm6677_vm6, %v6592_v47 }
 0xbe9   : > { %v6594_v30 = vpop.permute.xlu0 %6593  ;;  %v6632_v44 = vpop.permute.xlu1 %6631 }
 0xbea   : > { %6684 = vst.msk [vmem:[#allocation3 + $0x18] sm:$0xf] %vm6677_vm6, %v6594_v30  ;;  %6703 = vst.msk [vmem:[#allocation3 + $0x64] sm:$0xf] %vm6677_vm6, %v6632_v44 }
 0xbed   : > { %v6634_v31 = vpop.permute.xlu0 %6633  ;;  %v6596_v17 = vpop.permute.xlu1 %6595  ;;  %v8790_v36 = vld [vmem:[#allocation3 + $0x10] sm:$0xff]  }
 0xbee   : > { %6704 = vst.msk [vmem:[#allocation3 + $0x68] sm:$0xf] %vm6677_vm6, %v6634_v31  ;;  %6685 = vst.msk [vmem:[#allocation3 + $0x1c] sm:$0xf] %vm6677_vm6, %v6596_v17  ;;  %8599 = vmatprep.mubr.msk.bf16.mxu0 %vm403_vm0, %v8790_v36 }
 0xbf1   : > { %v3582_v23 = vpop.permute.xlu0 %3581  ;;  %v6636_v20 = vpop.permute.xlu1 %6635  ;;  %v8791_v61 = vld [vmem:[#allocation3 + $0x60] sm:$0xff]  }
 0xbf2   : > { %3670 = vst.msk [vmem:[#allocation3 + $0x20] sm:$0xf] %vm3661_vm4, %v3582_v23  ;;  %8619 = vmatprep.mubr.msk.bf16.mxu1 %vm403_vm0, %v8791_v61 }
 0xbf3   : > { %6705 = vst.msk [vmem:[#allocation3 + $0x6c] sm:$0xf] %vm6677_vm6, %v6636_v20 }
 0xbf5   : > { %v3622_v11 = vpop.permute.xlu0 %3621  ;;  %v3584_v40 = vpop.permute.xlu1 %3583  ;;  %v8792_v34 = vld [vmem:[#allocation3 + $0x18] sm:$0xff]  }
 0xbf6   : > { %3690 = vst.msk [vmem:[#allocation3 + $0x70] sm:$0xf] %vm3661_vm4, %v3622_v11  ;;  %3671 = vst.msk [vmem:[#allocation3 + $0x24] sm:$0xf] %vm3661_vm4, %v3584_v40  ;;  %8600 = vmatmul.mubr.msk.bf16.gmra.mxu0 %vm403_vm0, %v8792_v34 }
 0xbf9   : > { %v3586_v33 = vpop.permute.xlu0 %3585  ;;  %v3624_v8 = vpop.permute.xlu1 %3623 }
 0xbfa   : > { %v8793_v9 = vld [vmem:[#allocation3 + $0x68] sm:$0xff]   ;;  %3672 = vst.msk [vmem:[#allocation3 + $0x28] sm:$0xf] %vm3661_vm4, %v3586_v33  ;;  %3691 = vst.msk [vmem:[#allocation3 + $0x74] sm:$0xf] %vm3661_vm4, %v3624_v8 }
 0xbfb   : > { %8620 = vmatmul.mubr.msk.bf16.gmra.mxu1 %vm403_vm0, %v8793_v9 }
 0xbfd   : > { %v3626_v29 = vpop.permute.xlu0 %3625  ;;  %v3588_v28 = vpop.permute.xlu1 %3587 }
 0xbfe   : > { %3692 = vst.msk [vmem:[#allocation3 + $0x78] sm:$0xf] %vm3661_vm4, %v3626_v29  ;;  %3673 = vst.msk [vmem:[#allocation3 + $0x2c] sm:$0xf] %vm3661_vm4, %v3588_v28 }
 0xc01   : > { %v5090_v35 = vpop.permute.xlu0 %5089  ;;  %v3628_v58 = vpop.permute.xlu1 %3627 }
 0xc02   : > { %5178 = vst.msk [vmem:[#allocation3 + $0x20] sm:$0xf] %vm5169_vm5, %v5090_v35 }
 0xc03   : > { %3693 = vst.msk [vmem:[#allocation3 + $0x7c] sm:$0xf] %vm3661_vm4, %v3628_v58 }
 0xc05   : > { %v5130_v16 = vpop.permute.xlu0 %5129  ;;  %v5092_v55 = vpop.permute.xlu1 %5091 }
 0xc06   : > { %5198 = vst.msk [vmem:[#allocation3 + $0x70] sm:$0xf] %vm5169_vm5, %v5130_v16  ;;  %5179 = vst.msk [vmem:[#allocation3 + $0x24] sm:$0xf] %vm5169_vm5, %v5092_v55 }
 0xc09   : > { %v5094_v12 = vpop.permute.xlu0 %5093  ;;  %v5132_v10 = vpop.permute.xlu1 %5131 }
 0xc0a   : > { %5180 = vst.msk [vmem:[#allocation3 + $0x28] sm:$0xf] %vm5169_vm5, %v5094_v12  ;;  %5199 = vst.msk [vmem:[#allocation3 + $0x74] sm:$0xf] %vm5169_vm5, %v5132_v10 }
 0xc0d   : > { %v5134_v4 = vpop.permute.xlu0 %5133  ;;  %v5096_v51 = vpop.permute.xlu1 %5095 }
 0xc0e   : > { %5200 = vst.msk [vmem:[#allocation3 + $0x78] sm:$0xf] %vm5169_vm5, %v5134_v4  ;;  %5181 = vst.msk [vmem:[#allocation3 + $0x2c] sm:$0xf] %vm5169_vm5, %v5096_v51 }
 0xc11   : > { %v6598_v60 = vpop.permute.xlu0 %6597  ;;  %v5136_v49 = vpop.permute.xlu1 %5135 }
 0xc12   : > { %6686 = vst.msk [vmem:[#allocation3 + $0x20] sm:$0xf] %vm6677_vm6, %v6598_v60 }
 0xc13   : > { %5201 = vst.msk [vmem:[#allocation3 + $0x7c] sm:$0xf] %vm5169_vm5, %v5136_v49 }
 0xc15   : > { %v6638_v42 = vpop.permute.xlu0 %6637  ;;  %v6600_v5 = vpop.permute.xlu1 %6599 }
 0xc16   : > { %6706 = vst.msk [vmem:[#allocation3 + $0x70] sm:$0xf] %vm6677_vm6, %v6638_v42  ;;  %6687 = vst.msk [vmem:[#allocation3 + $0x24] sm:$0xf] %vm6677_vm6, %v6600_v5 }
 0xc19   : > { %v6602_v3 = vpop.permute.xlu0 %6601  ;;  %v6640_v62 = vpop.permute.xlu1 %6639 }
 0xc1a   : > { %6688 = vst.msk [vmem:[#allocation3 + $0x28] sm:$0xf] %vm6677_vm6, %v6602_v3  ;;  %6707 = vst.msk [vmem:[#allocation3 + $0x74] sm:$0xf] %vm6677_vm6, %v6640_v62 }
 0xc1d   : > { %v6642_v38 = vpop.permute.xlu0 %6641  ;;  %v6604_v39 = vpop.permute.xlu1 %6603  ;;  %v8794_v46 = vld [vmem:[#allocation3 + $0x20] sm:$0xff]  }
 0xc1e   : > { %6708 = vst.msk [vmem:[#allocation3 + $0x78] sm:$0xf] %vm6677_vm6, %v6642_v38  ;;  %6689 = vst.msk [vmem:[#allocation3 + $0x2c] sm:$0xf] %vm6677_vm6, %v6604_v39  ;;  %8603 = vmatprep.mubr.msk.bf16.mxu0 %vm403_vm0, %v8794_v46 }
 0xc21   : > { %v6644_v56 = vpop.permute.xlu1 %6643  ;;  %v8795_v32 = vld [vmem:[#allocation3 + $0x70] sm:$0xff]  }
 0xc22   : > { %6709 = vst.msk [vmem:[#allocation3 + $0x7c] sm:$0xf] %vm6677_vm6, %v6644_v56  ;;  %8623 = vmatprep.mubr.msk.bf16.mxu1 %vm403_vm0, %v8795_v32 }
 0xc25   : > { %v8796_v50 = vld [vmem:[#allocation3 + $0x28] sm:$0xff]  }
 0xc26   : > { %8604 = vmatmul.mubr.msk.bf16.gmra.mxu0 %vm403_vm0, %v8796_v50 }
 0xc29   : > { %v8797_v21 = vld [vmem:[#allocation3 + $0x78] sm:$0xff]  }
 0xc2a   : > { %8624 = vmatmul.mubr.msk.bf16.gmra.mxu1 %vm403_vm0, %v8797_v21 }
 0xc44   : > { %v8609_v26 = vpop.f32.mrf.mxu1 }
 0xc45   : > { %v6984_v1 = vadd.f32 %v8609_v26, %v14195_v24 }
 0xc46   : > { %v6975_v54 = vpop.f32.mrf.mxu1 }
 0xc47   : > { %v7861_v22 = vpack.c.bf16 %v6984_v1, %v6984_v1  ;;  %v6976_v43 = vadd.f32 %v14195_v24, %v6975_v54 }
 0xc48   : > { %v8610_v45 = vpop.f32.mrf.mxu1 }
 0xc49   : > { %7197 = vst.msk [vmem:[%s14203_s18 + $0x38] sm:$0xf] %vm7182_vm7, %v7861_v22  ;;  %v7859_v52 = vpack.c.bf16 %v6976_v43, %v6976_v43  ;;  %v6987_v0 = vadd.f32 %v8610_v45, %v14195_v24 }
 0xc4a   : > { %v6978_v18 = vpop.f32.mrf.mxu1 }
 0xc4b   : > { %7195 = vst.msk [vmem:[%s14203_s18 + $0x30] sm:$0xf] %vm7182_vm7, %v7859_v52  ;;  %v7862_v41 = vpack.c.bf16 %v6987_v0, %v6987_v0  ;;  %v6979_v53 = vadd.f32 %v14195_v24, %v6978_v18 }
 0xc4d   : > { %7198 = vst.msk [vmem:[%s14203_s18 + $0x3c] sm:$0xf] %vm7182_vm7, %v7862_v41  ;;  %v7860_v48 = vpack.c.bf16 %v6979_v53, %v6979_v53 }
 0xc4f   : > { %7196 = vst.msk [vmem:[%s14203_s18 + $0x34] sm:$0xf] %vm7182_vm7, %v7860_v48 }
 0xc5c   : > { %v8613_v14 = vpop.f32.mrf.mxu1 }
 0xc5d   : > { %v7000_v2 = vadd.f32 %v8613_v14, %v14195_v24 }
 0xc5e   : > { %v6991_v27 = vpop.f32.mrf.mxu1 }
 0xc5f   : > { %v7865_v15 = vpack.c.bf16 %v7000_v2, %v7000_v2  ;;  %v6992_v6 = vadd.f32 %v14195_v24, %v6991_v27 }
 0xc60   : > { %v8614_v19 = vpop.f32.mrf.mxu1 }
 0xc61   : > { %7201 = vst.msk [vmem:[%s14203_s18 + $0x48] sm:$0xf] %vm7182_vm7, %v7865_v15  ;;  %v7863_v25 = vpack.c.bf16 %v6992_v6, %v6992_v6  ;;  %v7003_v13 = vadd.f32 %v8614_v19, %v14195_v24 }
 0xc62   : > { %v6994_v37 = vpop.f32.mrf.mxu1 }
 0xc63   : > { %7199 = vst.msk [vmem:[%s14203_s18 + $0x40] sm:$0xf] %vm7182_vm7, %v7863_v25  ;;  %v7866_v57 = vpack.c.bf16 %v7003_v13, %v7003_v13  ;;  %v6995_v63 = vadd.f32 %v14195_v24, %v6994_v37 }
 0xc65   : > { %7202 = vst.msk [vmem:[%s14203_s18 + $0x4c] sm:$0xf] %vm7182_vm7, %v7866_v57  ;;  %v7864_v7 = vpack.c.bf16 %v6995_v63, %v6995_v63 }
 0xc67   : > { %7200 = vst.msk [vmem:[%s14203_s18 + $0x44] sm:$0xf] %vm7182_vm7, %v7864_v7 }
 0xc86   : > { %v8597_v59 = vpop.f32.mrf.mxu0 }
 0xc87   : > { %v6936_v47 = vadd.f32 %v8597_v59, %v14195_v24 }
 0xc88   : > { %v6927_v30 = vpop.f32.mrf.mxu0 }
 0xc89   : > { %v7849_v44 = vpack.c.bf16 %v6936_v47, %v6936_v47  ;;  %v6928_v31 = vadd.f32 %v14195_v24, %v6927_v30 }
 0xc8a   : > { %v8598_v17 = vpop.f32.mrf.mxu0 }
 0xc8b   : > { %v8617_v36 = vpop.f32.mrf.mxu1  ;;  %7185 = vst.msk [vmem:[%s14203_s18 + $0x8] sm:$0xf] %vm7182_vm7, %v7849_v44  ;;  %v7847_v23 = vpack.c.bf16 %v6928_v31, %v6928_v31  ;;  %v6939_v20 = vadd.f32 %v8598_v17, %v14195_v24 }
 0xc8c   : > { %v7016_v61 = vadd.f32 %v8617_v36, %v14195_v24  ;;  %v6930_v11 = vpop.f32.mrf.mxu0 }
 0xc8d   : > { %v7007_v40 = vpop.f32.mrf.mxu1  ;;  %7183 = vst.msk [vmem:[%s14203_s18] sm:$0xf] %vm7182_vm7, %v7847_v23  ;;  %v7850_v34 = vpack.c.bf16 %v6939_v20, %v6939_v20  ;;  %v6931_v8 = vadd.f32 %v14195_v24, %v6930_v11 }
 0xc8e   : > { %v7869_v33 = vpack.c.bf16 %v7016_v61, %v7016_v61  ;;  %v7008_v9 = vadd.f32 %v14195_v24, %v7007_v40 }
 0xc8f   : > { %v8618_v29 = vpop.f32.mrf.mxu1  ;;  %7186 = vst.msk [vmem:[%s14203_s18 + $0xc] sm:$0xf] %vm7182_vm7, %v7850_v34  ;;  %v7848_v28 = vpack.c.bf16 %v6931_v8, %v6931_v8 }
 0xc90   : > { %7205 = vst.msk [vmem:[%s14203_s18 + $0x58] sm:$0xf] %vm7182_vm7, %v7869_v33  ;;  %v7867_v35 = vpack.c.bf16 %v7008_v9, %v7008_v9  ;;  %v7019_v58 = vadd.f32 %v8618_v29, %v14195_v24 }
 0xc91   : > { %v7010_v16 = vpop.f32.mrf.mxu1  ;;  %7184 = vst.msk [vmem:[%s14203_s18 + $0x4] sm:$0xf] %vm7182_vm7, %v7848_v28 }
 0xc92   : > { %7203 = vst.msk [vmem:[%s14203_s18 + $0x50] sm:$0xf] %vm7182_vm7, %v7867_v35  ;;  %v7870_v55 = vpack.c.bf16 %v7019_v58, %v7019_v58  ;;  %v7011_v12 = vadd.f32 %v14195_v24, %v7010_v16 }
 0xc94   : > { %7206 = vst.msk [vmem:[%s14203_s18 + $0x5c] sm:$0xf] %vm7182_vm7, %v7870_v55  ;;  %v7868_v10 = vpack.c.bf16 %v7011_v12, %v7011_v12 }
 0xc96   : > { %7204 = vst.msk [vmem:[%s14203_s18 + $0x54] sm:$0xf] %vm7182_vm7, %v7868_v10 }
 0xcb6   : > { %v8601_v4 = vpop.f32.mrf.mxu0 }
 0xcb7   : > { %v6952_v51 = vadd.f32 %v8601_v4, %v14195_v24 }
 0xcb8   : > { %v6943_v60 = vpop.f32.mrf.mxu0 }
 0xcb9   : > { %v7853_v49 = vpack.c.bf16 %v6952_v51, %v6952_v51  ;;  %v6944_v42 = vadd.f32 %v14195_v24, %v6943_v60 }
 0xcba   : > { %v8602_v5 = vpop.f32.mrf.mxu0 }
 0xcbb   : > { %v8621_v3 = vpop.f32.mrf.mxu1  ;;  %7189 = vst.msk [vmem:[%s14203_s18 + $0x18] sm:$0xf] %vm7182_vm7, %v7853_v49  ;;  %v7851_v62 = vpack.c.bf16 %v6944_v42, %v6944_v42  ;;  %v6955_v38 = vadd.f32 %v8602_v5, %v14195_v24 }
 0xcbc   : > { %v7032_v39 = vadd.f32 %v8621_v3, %v14195_v24  ;;  %v6946_v46 = vpop.f32.mrf.mxu0 }
 0xcbd   : > { %v7023_v56 = vpop.f32.mrf.mxu1  ;;  %7187 = vst.msk [vmem:[%s14203_s18 + $0x10] sm:$0xf] %vm7182_vm7, %v7851_v62  ;;  %v7854_v32 = vpack.c.bf16 %v6955_v38, %v6955_v38  ;;  %v6947_v21 = vadd.f32 %v14195_v24, %v6946_v46 }
 0xcbe   : > { %v7873_v50 = vpack.c.bf16 %v7032_v39, %v7032_v39  ;;  %v7024_v26 = vadd.f32 %v14195_v24, %v7023_v56 }
 0xcbf   : > { %v8622_v1 = vpop.f32.mrf.mxu1  ;;  %7190 = vst.msk [vmem:[%s14203_s18 + $0x1c] sm:$0xf] %vm7182_vm7, %v7854_v32  ;;  %v7852_v54 = vpack.c.bf16 %v6947_v21, %v6947_v21 }
 0xcc0   : > { %7209 = vst.msk [vmem:[%s14203_s18 + $0x68] sm:$0xf] %vm7182_vm7, %v7873_v50  ;;  %v7871_v22 = vpack.c.bf16 %v7024_v26, %v7024_v26  ;;  %v7035_v43 = vadd.f32 %v8622_v1, %v14195_v24 }
 0xcc1   : > { %v7026_v45 = vpop.f32.mrf.mxu1  ;;  %7188 = vst.msk [vmem:[%s14203_s18 + $0x14] sm:$0xf] %vm7182_vm7, %v7852_v54 }
 0xcc2   : > { %7207 = vst.msk [vmem:[%s14203_s18 + $0x60] sm:$0xf] %vm7182_vm7, %v7871_v22  ;;  %v7874_v52 = vpack.c.bf16 %v7035_v43, %v7035_v43  ;;  %v7027_v0 = vadd.f32 %v14195_v24, %v7026_v45 }
 0xcc4   : > { %7210 = vst.msk [vmem:[%s14203_s18 + $0x6c] sm:$0xf] %vm7182_vm7, %v7874_v52  ;;  %v7872_v18 = vpack.c.bf16 %v7027_v0, %v7027_v0 }
 0xcc6   : > { %7208 = vst.msk [vmem:[%s14203_s18 + $0x64] sm:$0xf] %vm7182_vm7, %v7872_v18 }
 0xce6   : > { %v8605_v41 = vpop.f32.mrf.mxu0 }
 0xce7   : > { %v6968_v53 = vadd.f32 %v8605_v41, %v14195_v24 }
 0xce8   : > { %v6959_v48 = vpop.f32.mrf.mxu0 }
 0xce9   : > { %v7857_v14 = vpack.c.bf16 %v6968_v53, %v6968_v53  ;;  %v6960_v2 = vadd.f32 %v14195_v24, %v6959_v48 }
 0xcea   : > { %v8606_v27 = vpop.f32.mrf.mxu0  ;;  %v8625_v15 = vpop.f32.mrf.mxu1 }
 0xceb   : > { %7193 = vst.msk [vmem:[%s14203_s18 + $0x28] sm:$0xf] %vm7182_vm7, %v7857_v14  ;;  %v7855_v6 = vpack.c.bf16 %v6960_v2, %v6960_v2  ;;  %v6971_v19 = vadd.f32 %v8606_v27, %v14195_v24  ;;  %v7048_v25 = vadd.f32 %v8625_v15, %v14195_v24 }
 0xcec   : > { %v6962_v13 = vpop.f32.mrf.mxu0  ;;  %v7039_v37 = vpop.f32.mrf.mxu1 }
 0xced   : > { %7191 = vst.msk [vmem:[%s14203_s18 + $0x20] sm:$0xf] %vm7182_vm7, %v7855_v6  ;;  %v7858_v57 = vpack.c.bf16 %v6971_v19, %v6971_v19  ;;  %v7877_v63 = vpack.c.bf16 %v7048_v25, %v7048_v25  ;;  %v6963_v7 = vadd.f32 %v14195_v24, %v6962_v13  ;;  %v7040_v59 = vadd.f32 %v14195_v24, %v7039_v37 }
 0xcee   : > { %v8626_v47 = vpop.f32.mrf.mxu1 }
 0xcef   : > { %7194 = vst.msk [vmem:[%s14203_s18 + $0x2c] sm:$0xf] %vm7182_vm7, %v7858_v57  ;;  %7213 = vst.msk [vmem:[%s14203_s18 + $0x78] sm:$0xf] %vm7182_vm7, %v7877_v63  ;;  %v7856_v30 = vpack.c.bf16 %v6963_v7, %v6963_v7  ;;  %v7875_v44 = vpack.c.bf16 %v7040_v59, %v7040_v59  ;;  %v7051_v31 = vadd.f32 %v8626_v47, %v14195_v24 }
 0xcf0   : > { %v7042_v17 = vpop.f32.mrf.mxu1 }
 0xcf1   : > { %7192 = vst.msk [vmem:[%s14203_s18 + $0x24] sm:$0xf] %vm7182_vm7, %v7856_v30  ;;  %7211 = vst.msk [vmem:[%s14203_s18 + $0x70] sm:$0xf] %vm7182_vm7, %v7875_v44  ;;  %v7878_v36 = vpack.c.bf16 %v7051_v31, %v7051_v31  ;;  %v7043_v23 = vadd.f32 %v14195_v24, %v7042_v17 }
 0xcf3   : > { %7214 = vst.msk [vmem:[%s14203_s18 + $0x7c] sm:$0xf] %vm7182_vm7, %v7878_v36  ;;  %v7876_v20 = vpack.c.bf16 %v7043_v23, %v7043_v23 }
 0xcf5   : > { %7212 = vst.msk [vmem:[%s14203_s18 + $0x74] sm:$0xf] %vm7182_vm7, %v7876_v20 }
 0xcf6 PF: > { %s17_s21 = sadd.s32 1, %s9669_s21  }
 0xcf7   : > { %p14_p1 = scmp.ge.s32.totalorder %s17_s21, 4  }
 0xcf9   :  { %16 = sbr.rel (!%p14_p1) target bundleno = 1 (0x1), region = 82 }
 0xcfe   :  { %7236 = vsyncpa [#allocation5], 1 }
 0xcff   :  { %7238 = vsyncpa [#allocation5 + $0x1], 1 }

</bundles_post_ra>
